<compile_context>
chip_gen: v7x
topology: tpu7x:2x2x1
jax: 0.10.0
libtpu: 0.0.40
codegen_flags: <defaults>
</compile_context>

<pallas_src>
import jax
import jax.numpy as jnp
from jax.experimental import pallas as pl
from jax.experimental.pallas import tpu as pltpu


def _round_up(x, m):
    return ((x + m - 1) // m) * m


# ----------------------------------------------------------------------------
# Kernels: one network per grid step (grid axis = which MLP).
# ----------------------------------------------------------------------------
def _encoder_kernel(x_ref, w1_ref, b1_ref, w2_ref, b2_ref,
                    w3_ref, b3_ref, w4_ref, b4_ref, o_ref):
    # 784 -> 1024 -> 1024 -> 1024 -> out_p, linear head (mu || logvar, padded).
    h = x_ref[0]                                                       # (Bp, 784) bf16
    h = jnp.dot(h, w1_ref[0], preferred_element_type=jnp.float32) + b1_ref[0]
    h = jnp.maximum(h, 0.0).astype(jnp.bfloat16)
    h = jnp.dot(h, w2_ref[0], preferred_element_type=jnp.float32) + b2_ref[0]
    h = jnp.maximum(h, 0.0).astype(jnp.bfloat16)
    h = jnp.dot(h, w3_ref[0], preferred_element_type=jnp.float32) + b3_ref[0]
    h = jnp.maximum(h, 0.0).astype(jnp.bfloat16)
    o_ref[0] = jnp.dot(h, w4_ref[0], preferred_element_type=jnp.float32) + b4_ref[0]


def _decoder_kernel(z_ref, h_ref, w1z_ref, w1h_ref, b1_ref,
                    w2_ref, b2_ref, w3_ref, b3_ref, w4_ref, b4_ref, o_ref):
    # cat(z, h_priv) -> 1024 -> 1024 -> 1024 -> 896 (sigmoid); the concat is
    # expressed as a split matmul so no (B, z+h) buffer is ever materialized.
    a = jnp.dot(z_ref[...], w1z_ref[0], preferred_element_type=jnp.float32)
    a = a + jnp.dot(h_ref[0], w1h_ref[0], preferred_element_type=jnp.float32)
    h = jnp.maximum(a + b1_ref[0], 0.0).astype(jnp.bfloat16)
    h = jnp.dot(h, w2_ref[0], preferred_element_type=jnp.float32) + b2_ref[0]
    h = jnp.maximum(h, 0.0).astype(jnp.bfloat16)
    h = jnp.dot(h, w3_ref[0], preferred_element_type=jnp.float32) + b3_ref[0]
    h = jnp.maximum(h, 0.0).astype(jnp.bfloat16)
    out = jnp.dot(h, w4_ref[0], preferred_element_type=jnp.float32) + b4_ref[0]
    o_ref[0] = jax.nn.sigmoid(out)


_COMPILER_PARAMS = pltpu.CompilerParams(
    dimension_semantics=("parallel",),   # v7x: nets split across 2 TensorCores
    vmem_limit_bytes=48 << 20,           # <= 64 MiB physical VMEM on v7x
)


def _run_encoders(x_stack, w1, b1, w2, b2, w3, b3, w4, b4):
    n, bp, d_in = x_stack.shape
    d_h = w1.shape[2]
    d_out = w4.shape[2]
    spec = lambda shape: pl.BlockSpec(shape, lambda g: (g, 0, 0))
    return pl.pallas_call(
        _encoder_kernel,
        out_shape=jax.ShapeDtypeStruct((n, bp, d_out), jnp.float32),
        grid_spec=pltpu.PrefetchScalarGridSpec(
            num_scalar_prefetch=0,
            grid=(n,),
            in_specs=[
                spec((1, bp, d_in)),
                spec((1, d_in, d_h)), spec((1, 1, d_h)),
                spec((1, d_h, d_h)), spec((1, 1, d_h)),
                spec((1, d_h, d_h)), spec((1, 1, d_h)),
                spec((1, d_h, d_out)), spec((1, 1, d_out)),
            ],
            out_specs=spec((1, bp, d_out)),
        ),
        compiler_params=_COMPILER_PARAMS,
    )(x_stack, w1, b1, w2, b2, w3, b3, w4, b4)


def _run_decoders(z_in, h_in, w1z, w1h, b1, w2, b2, w3, b3, w4, b4):
    bp, z_p = z_in.shape
    n, _, h_p = h_in.shape
    d_h = w2.shape[2]
    d_out = w4.shape[2]
    spec = lambda shape: pl.BlockSpec(shape, lambda g: (g, 0, 0))
    return pl.pallas_call(
        _decoder_kernel,
        out_shape=jax.ShapeDtypeStruct((n, bp, d_out), jnp.float32),
        grid_spec=pltpu.PrefetchScalarGridSpec(
            num_scalar_prefetch=0,
            grid=(n,),
            in_specs=[
                pl.BlockSpec((bp, z_p), lambda g: (0, 0)),   # shared z, VMEM-resident
                spec((1, bp, h_p)),
                spec((1, z_p, d_h)), spec((1, h_p, d_h)), spec((1, 1, d_h)),
                spec((1, d_h, d_h)), spec((1, 1, d_h)),
                spec((1, d_h, d_h)), spec((1, 1, d_h)),
                spec((1, d_h, d_out)), spec((1, 1, d_out)),
            ],
            out_specs=spec((1, bp, d_out)),
        ),
        compiler_params=_COMPILER_PARAMS,
    )(z_in, h_in, w1z, w1h, b1, w2, b2, w3, b3, w4, b4)


# ----------------------------------------------------------------------------
# Parameter init: torch init.kaiming_normal (fan_in, gain sqrt(2)); bias = 0.
# Weights are stored as (in, out) = transpose of torch's (out, in), in bf16.
# ----------------------------------------------------------------------------
def _kaiming(key, d_in, d_out):
    std = jnp.sqrt(2.0 / d_in)
    return std * jax.random.normal(key, (d_in, d_out), dtype=jnp.float32)


class VCCAPrivatePallas:
    """JAX/Pallas equivalent of VCCA_Private(z_dim, num_z_inputs, hx_dim, hy_dim)."""

    HID = 1024
    IMG = 784

    def __init__(self, z_dim, num_z_inputs, hx_dim, hy_dim, dropout_prob=0.0,
                 key=jax.random.PRNGKey(0)):
        assert num_z_inputs == 1, \
            "reference encode() feeds only x_input to encode_z; num_z_inputs=2 is shape-inconsistent there"
        assert dropout_prob == 0.0  # TODO(synk): training-mode dropout not implemented
        self.z_dim, self.hx_dim, self.hy_dim = z_dim, hx_dim, hy_dim

        # Padded sizes (lane/sublane friendly; zero-padded weights -> exact math).
        self.enc_out_p = _round_up(2 * max(z_dim, hx_dim, hy_dim), 128)
        self.z_p = _round_up(z_dim, 128)
        self.h_p = _round_up(max(hx_dim, hy_dim), 128)
        self.dec_out_p = _round_up(self.IMG, 128)   # 896: lane-dense output stores

        k_enc, k_dec = jax.random.split(key)
        self._init_encoders(k_enc)
        self._init_decoders(k_dec)

    # --- encoders: nets = [encode_hx(x), encode_hy(y), encode_z(x)] ---
    def _init_encoders(self, key):
        out_dims = (2 * self.hx_dim, 2 * self.hy_dim, 2 * self.z_dim)
        n = 3
        keys = jax.random.split(key, 4 * n)
        HID, IMG = self.HID, self.IMG
        w1 = jnp.stack([_kaiming(keys[4 * i + 0], IMG, HID) for i in range(n)])
        w2 = jnp.stack([_kaiming(keys[4 * i + 1], HID, HID) for i in range(n)])
        w3 = jnp.stack([_kaiming(keys[4 * i + 2], HID, HID) for i in range(n)])
        w4 = jnp.zeros((n, HID, self.enc_out_p), jnp.float32)
        for i, d in enumerate(out_dims):
            w4 = w4.at[i, :, :d].set(_kaiming(keys[4 * i + 3], HID, d))
        self.enc_w = tuple(w.astype(jnp.bfloat16) for w in (w1, w2, w3, w4))
        self.enc_b = (jnp.zeros((n, 1, HID), jnp.float32),
                      jnp.zeros((n, 1, HID), jnp.float32),
                      jnp.zeros((n, 1, HID), jnp.float32),
                      jnp.zeros((n, 1, self.enc_out_p), jnp.float32))

    # --- decoders: nets = [decode_x(cat(z,hx)), decode_y(cat(z,hy))] ---
    def _init_decoders(self, key):
        priv_dims = (self.hx_dim, self.hy_dim)
        n = 2
        keys = jax.random.split(key, 4 * n)
        HID, IMG = self.HID, self.IMG
        w1z = jnp.zeros((n, self.z_p, HID), jnp.float32)
        w1h = jnp.zeros((n, self.h_p, HID), jnp.float32)
        for i, hd in enumerate(priv_dims):
            w_full = _kaiming(keys[4 * i + 0], self.z_dim + hd, HID)  # rows: [z ; h_priv]
            w1z = w1z.at[i, :self.z_dim].set(w_full[:self.z_dim])
            w1h = w1h.at[i, :hd].set(w_full[self.z_dim:])
        w2 = jnp.stack([_kaiming(keys[4 * i + 1], HID, HID) for i in range(n)])
        w3 = jnp.stack([_kaiming(keys[4 * i + 2], HID, HID) for i in range(n)])
        w4 = jnp.zeros((n, HID, self.dec_out_p), jnp.float32)
        for i in range(n):
            w4 = w4.at[i, :, :IMG].set(_kaiming(keys[4 * i + 3], HID, IMG))
        self.dec_w = tuple(w.astype(jnp.bfloat16) for w in (w1z, w1h, w2, w3, w4))
        self.dec_b = (jnp.zeros((n, 1, HID), jnp.float32),
                      jnp.zeros((n, 1, HID), jnp.float32),
                      jnp.zeros((n, 1, HID), jnp.float32),
                      jnp.zeros((n, 1, self.dec_out_p), jnp.float32))

    # --- forward-pass pieces ---
    def encode(self, x, y):
        B = x.shape[0]
        bp = _round_up(max(B, 8), 8)                       # >= 8 sublanes
        x_flat = jnp.pad(x.reshape(B, -1), ((0, bp - B), (0, 0)))
        y_flat = jnp.pad(y.reshape(B, -1), ((0, bp - B), (0, 0)))
        enc_in = jnp.stack([x_flat, y_flat, x_flat]).astype(jnp.bfloat16)
        w1, w2, w3, w4 = self.enc_w
        b1, b2, b3, b4 = self.enc_b
        out = _run_encoders(enc_in, w1, b1, w2, b2, w3, b3, w4, b4)
        hx_mu, hx_logvar = out[0, :B, :self.hx_dim], out[0, :B, self.hx_dim:2 * self.hx_dim]
        hy_mu, hy_logvar = out[1, :B, :self.hy_dim], out[1, :B, self.hy_dim:2 * self.hy_dim]
        z_mu, z_logvar = out[2, :B, :self.z_dim], out[2, :B, self.z_dim:2 * self.z_dim]
        return z_mu, z_logvar, hx_mu, hx_logvar, hy_mu, hy_logvar

    @staticmethod
    def reparameterize(key, mu, logvar):
        std = jnp.exp(0.5 * logvar)
        eps = jax.random.normal(key, std.shape, dtype=std.dtype)
        return mu + eps * std

    def decode(self, z, hx, hy):
        B = z.shape[0]
        bp = _round_up(max(B, 8), 8)
        z_in = jnp.pad(z, ((0, bp - B), (0, self.z_p - self.z_dim))).astype(jnp.bfloat16)
        hx_p = jnp.pad(hx, ((0, bp - B), (0, self.h_p - self.hx_dim)))
        hy_p = jnp.pad(hy, ((0, bp - B), (0, self.h_p - self.hy_dim)))
        h_in = jnp.stack([hx_p, hy_p]).astype(jnp.bfloat16)
        w1z, w1h, w2, w3, w4 = self.dec_w
        b1, b2, b3, b4 = self.dec_b
        out = _run_decoders(z_in, h_in, w1z, w1h, b1, w2, b2, w3, b3, w4, b4)
        x_hat = out[0, :B, :self.IMG].reshape(B, 1, 28, 28)
        y_hat = out[1, :B, :self.IMG].reshape(B, 1, 28, 28)
        return x_hat, y_hat

    def forward(self, x, y, key):
        z_mu, z_logvar, hx_mu, hx_logvar, hy_mu, hy_logvar = self.encode(x, y)
        kz, kx, ky = jax.random.split(key, 3)
        z = self.reparameterize(kz, z_mu, z_logvar)
        hx = self.reparameterize(kx, hx_mu, hx_logvar)
        hy = self.reparameterize(ky, hy_mu, hy_logvar)
        x_hat, y_hat = self.decode(z, hx, hy)
        return (x_hat, y_hat, z_mu, z_logvar, hx_mu, hx_logvar,
                hy_mu, hy_logvar, z, hx, hy)

    __call__ = forward


if __name__ == "__main__":
    key = jax.random.PRNGKey(0)
    k_model, k_x, k_y, k_noise = jax.random.split(key, 4)

    B, z_dim, hx_dim, hy_dim = 2, 16, 32, 24
    model = VCCAPrivatePallas(z_dim=z_dim, num_z_inputs=1,
                              hx_dim=hx_dim, hy_dim=hy_dim, key=k_model)

    # NCHW inputs, like the torch module expects.
    x = jax.random.uniform(k_x, (B, 1, 28, 28), dtype=jnp.float32)
    y = jax.random.uniform(k_y, (B, 1, 28, 28), dtype=jnp.float32)

    outs = jax.block_until_ready(model(x, y, k_noise))
    (x_hat, y_hat, z_mu, z_logvar, hx_mu, hx_logvar,
     hy_mu, hy_logvar, z, hx, hy) = outs

    assert x_hat.shape == (B, 1, 28, 28) and y_hat.shape == (B, 1, 28, 28)
    assert x_hat.dtype == jnp.float32 and y_hat.dtype == jnp.float32
    assert z_mu.shape == (B, z_dim) and z_logvar.shape == (B, z_dim)
    assert hx_mu.shape == (B, hx_dim) and hx_logvar.shape == (B, hx_dim)
    assert hy_mu.shape == (B, hy_dim) and hy_logvar.shape == (B, hy_dim)
    assert z.shape == (B, z_dim) and hx.shape == (B, hx_dim) and hy.shape == (B, hy_dim)
    for t in outs:
        assert bool(jnp.all(jnp.isfinite(t)))
    # Sigmoid reconstructions must lie in (0, 1)
    assert bool(jnp.all((x_hat > 0) & (x_hat < 1)))
    assert bool(jnp.all((y_hat > 0) & (y_hat < 1)))

    print("KERNEL_OK")
</pallas_src>

<mosaic_0001>
module attributes {stable_mosaic.version = 11 : i64} {
  func.func @_encoder_kernel(%arg0: i32, %arg1: memref<1x8x784xbf16, #tpu.memory_space<vmem>>, %arg2: memref<1x784x1024xbf16, #tpu.memory_space<vmem>>, %arg3: memref<1x1x1024xf32, #tpu.memory_space<vmem>>, %arg4: memref<1x1024x1024xbf16, #tpu.memory_space<vmem>>, %arg5: memref<1x1x1024xf32, #tpu.memory_space<vmem>>, %arg6: memref<1x1024x1024xbf16, #tpu.memory_space<vmem>>, %arg7: memref<1x1x1024xf32, #tpu.memory_space<vmem>>, %arg8: memref<1x1024x128xbf16, #tpu.memory_space<vmem>>, %arg9: memref<1x1x128xf32, #tpu.memory_space<vmem>>, %arg10: memref<1x8x128xf32, #tpu.memory_space<vmem>>) attributes {dimension_semantics = [#tpu.dimension_semantics<parallel>], iteration_bounds = array<i64: 3>, scalar_prefetch = 0 : i64, scratch_operands = 0 : i64, tpu.core_type = #tpu.core_type<tc>, window_params = [{transform_indices = @transform_0, window_bounds = array<i64: 1, 8, 784>}, {transform_indices = @transform_1, window_bounds = array<i64: 1, 784, 1024>}, {transform_indices = @transform_2, window_bounds = array<i64: 1, 1, 1024>}, {transform_indices = @transform_3, window_bounds = array<i64: 1, 1024, 1024>}, {transform_indices = @transform_4, window_bounds = array<i64: 1, 1, 1024>}, {transform_indices = @transform_5, window_bounds = array<i64: 1, 1024, 1024>}, {transform_indices = @transform_6, window_bounds = array<i64: 1, 1, 1024>}, {transform_indices = @transform_7, window_bounds = array<i64: 1, 1024, 128>}, {transform_indices = @transform_8, window_bounds = array<i64: 1, 1, 128>}, {transform_indices = @transform_9, window_bounds = array<i64: 1, 8, 128>}]} {
    %c0 = arith.constant 0 : index
    %c0_0 = arith.constant 0 : index
    %c0_1 = arith.constant 0 : index
    %0 = vector.load %arg1[%c0, %c0_0, %c0_1] : memref<1x8x784xbf16, #tpu.memory_space<vmem>>, vector<1x8x784xbf16>
    %1 = vector.shape_cast %0 : vector<1x8x784xbf16> to vector<8x784xbf16>
    %c0_2 = arith.constant 0 : index
    %c0_3 = arith.constant 0 : index
    %c0_4 = arith.constant 0 : index
    %2 = vector.load %arg2[%c0_2, %c0_3, %c0_4] : memref<1x784x1024xbf16, #tpu.memory_space<vmem>>, vector<1x784x1024xbf16>
    %3 = vector.shape_cast %2 : vector<1x784x1024xbf16> to vector<784x1024xbf16>
    %cst = arith.constant dense<0.000000e+00> : vector<8x1024xf32>
    %4 = tpu.matmul %1, %3, %cst {dimension_numbers = #tpu.dot_dimension_numbers<[1], [0], [0], [1], [0, 0, 1, 1], [], []>} : vector<8x784xbf16>, vector<784x1024xbf16>, vector<8x1024xf32> -> vector<8x1024xf32>
    %c0_5 = arith.constant 0 : index
    %c0_6 = arith.constant 0 : index
    %c0_7 = arith.constant 0 : index
    %5 = vector.load %arg3[%c0_5, %c0_6, %c0_7] : memref<1x1x1024xf32, #tpu.memory_space<vmem>>, vector<1x1x1024xf32>
    %6 = vector.shape_cast %5 : vector<1x1x1024xf32> to vector<1x1024xf32>
    %7 = vector.broadcast %6 : vector<1x1024xf32> to vector<8x1024xf32>
    %8 = arith.addf %4, %7 : vector<8x1024xf32>
    %cst_8 = arith.constant 0.000000e+00 : f32
    %9 = vector.broadcast %cst_8 : f32 to vector<8x1024xf32>
    %10 = arith.maximumf %8, %9 : vector<8x1024xf32>
    %11 = arith.truncf %10 : vector<8x1024xf32> to vector<8x1024xbf16>
    %c0_9 = arith.constant 0 : index
    %c0_10 = arith.constant 0 : index
    %c0_11 = arith.constant 0 : index
    %12 = vector.load %arg4[%c0_9, %c0_10, %c0_11] : memref<1x1024x1024xbf16, #tpu.memory_space<vmem>>, vector<1x1024x1024xbf16>
    %13 = vector.shape_cast %12 : vector<1x1024x1024xbf16> to vector<1024x1024xbf16>
    %cst_12 = arith.constant dense<0.000000e+00> : vector<8x1024xf32>
    %14 = tpu.matmul %11, %13, %cst_12 {dimension_numbers = #tpu.dot_dimension_numbers<[1], [0], [0], [1], [0, 0, 1, 1], [], []>} : vector<8x1024xbf16>, vector<1024x1024xbf16>, vector<8x1024xf32> -> vector<8x1024xf32>
    %c0_13 = arith.constant 0 : index
    %c0_14 = arith.constant 0 : index
    %c0_15 = arith.constant 0 : index
    %15 = vector.load %arg5[%c0_13, %c0_14, %c0_15] : memref<1x1x1024xf32, #tpu.memory_space<vmem>>, vector<1x1x1024xf32>
    %16 = vector.shape_cast %15 : vector<1x1x1024xf32> to vector<1x1024xf32>
    %17 = vector.broadcast %16 : vector<1x1024xf32> to vector<8x1024xf32>
    %18 = arith.addf %14, %17 : vector<8x1024xf32>
    %cst_16 = arith.constant 0.000000e+00 : f32
    %19 = vector.broadcast %cst_16 : f32 to vector<8x1024xf32>
    %20 = arith.maximumf %18, %19 : vector<8x1024xf32>
    %21 = arith.truncf %20 : vector<8x1024xf32> to vector<8x1024xbf16>
    %c0_17 = arith.constant 0 : index
    %c0_18 = arith.constant 0 : index
    %c0_19 = arith.constant 0 : index
    %22 = vector.load %arg6[%c0_17, %c0_18, %c0_19] : memref<1x1024x1024xbf16, #tpu.memory_space<vmem>>, vector<1x1024x1024xbf16>
    %23 = vector.shape_cast %22 : vector<1x1024x1024xbf16> to vector<1024x1024xbf16>
    %cst_20 = arith.constant dense<0.000000e+00> : vector<8x1024xf32>
    %24 = tpu.matmul %21, %23, %cst_20 {dimension_numbers = #tpu.dot_dimension_numbers<[1], [0], [0], [1], [0, 0, 1, 1], [], []>} : vector<8x1024xbf16>, vector<1024x1024xbf16>, vector<8x1024xf32> -> vector<8x1024xf32>
    %c0_21 = arith.constant 0 : index
    %c0_22 = arith.constant 0 : index
    %c0_23 = arith.constant 0 : index
    %25 = vector.load %arg7[%c0_21, %c0_22, %c0_23] : memref<1x1x1024xf32, #tpu.memory_space<vmem>>, vector<1x1x1024xf32>
    %26 = vector.shape_cast %25 : vector<1x1x1024xf32> to vector<1x1024xf32>
    %27 = vector.broadcast %26 : vector<1x1024xf32> to vector<8x1024xf32>
    %28 = arith.addf %24, %27 : vector<8x1024xf32>
    %cst_24 = arith.constant 0.000000e+00 : f32
    %29 = vector.broadcast %cst_24 : f32 to vector<8x1024xf32>
    %30 = arith.maximumf %28, %29 : vector<8x1024xf32>
    %31 = arith.truncf %30 : vector<8x1024xf32> to vector<8x1024xbf16>
    %c0_25 = arith.constant 0 : index
    %c0_26 = arith.constant 0 : index
    %c0_27 = arith.constant 0 : index
    %32 = vector.load %arg8[%c0_25, %c0_26, %c0_27] : memref<1x1024x128xbf16, #tpu.memory_space<vmem>>, vector<1x1024x128xbf16>
    %33 = vector.shape_cast %32 : vector<1x1024x128xbf16> to vector<1024x128xbf16>
    %cst_28 = arith.constant dense<0.000000e+00> : vector<8x128xf32>
    %34 = tpu.matmul %31, %33, %cst_28 {dimension_numbers = #tpu.dot_dimension_numbers<[1], [0], [0], [1], [0, 0, 1, 1], [], []>} : vector<8x1024xbf16>, vector<1024x128xbf16>, vector<8x128xf32> -> vector<8x128xf32>
    %c0_29 = arith.constant 0 : index
    %c0_30 = arith.constant 0 : index
    %c0_31 = arith.constant 0 : index
    %35 = vector.load %arg9[%c0_29, %c0_30, %c0_31] : memref<1x1x128xf32, #tpu.memory_space<vmem>>, vector<1x1x128xf32>
    %36 = vector.shape_cast %35 : vector<1x1x128xf32> to vector<1x128xf32>
    %37 = vector.broadcast %36 : vector<1x128xf32> to vector<8x128xf32>
    %38 = arith.addf %34, %37 : vector<8x128xf32>
    %c0_32 = arith.constant 0 : index
    %c0_33 = arith.constant 0 : index
    %c0_34 = arith.constant 0 : index
    %39 = vector.load %arg10[%c0_32, %c0_33, %c0_34] : memref<1x8x128xf32, #tpu.memory_space<vmem>>, vector<1x8x128xf32>
    %40 = vector.shape_cast %39 : vector<1x8x128xf32> to vector<8x128xf32>
    %41 = vector.shape_cast %38 : vector<8x128xf32> to vector<1x8x128xf32>
    tpu.vector_store %arg10[%c0_32, %c0_33, %c0_34], %41 {strides = array<i32>} : memref<1x8x128xf32, #tpu.memory_space<vmem>>, vector<1x8x128xf32>,
    return
  }
  func.func @transform_0(%arg0: i32) -> (i32, i32, i32) {
    %c0_i32 = arith.constant 0 : i32
    %c0_i32_0 = arith.constant 0 : i32
    %c0_i32_1 = arith.constant 0 : i32
    return %arg0, %c0_i32, %c0_i32_0 : i32, i32, i32
  }
  func.func @transform_1(%arg0: i32) -> (i32, i32, i32) {
    %c0_i32 = arith.constant 0 : i32
    %c0_i32_0 = arith.constant 0 : i32
    %c0_i32_1 = arith.constant 0 : i32
    return %arg0, %c0_i32, %c0_i32_0 : i32, i32, i32
  }
  func.func @transform_2(%arg0: i32) -> (i32, i32, i32) {
    %c0_i32 = arith.constant 0 : i32
    %c0_i32_0 = arith.constant 0 : i32
    %c0_i32_1 = arith.constant 0 : i32
    return %arg0, %c0_i32, %c0_i32_0 : i32, i32, i32
  }
  func.func @transform_3(%arg0: i32) -> (i32, i32, i32) {
    %c0_i32 = arith.constant 0 : i32
    %c0_i32_0 = arith.constant 0 : i32
    %c0_i32_1 = arith.constant 0 : i32
    return %arg0, %c0_i32, %c0_i32_0 : i32, i32, i32
  }
  func.func @transform_4(%arg0: i32) -> (i32, i32, i32) {
    %c0_i32 = arith.constant 0 : i32
    %c0_i32_0 = arith.constant 0 : i32
    %c0_i32_1 = arith.constant 0 : i32
    return %arg0, %c0_i32, %c0_i32_0 : i32, i32, i32
  }
  func.func @transform_5(%arg0: i32) -> (i32, i32, i32) {
    %c0_i32 = arith.constant 0 : i32
    %c0_i32_0 = arith.constant 0 : i32
    %c0_i32_1 = arith.constant 0 : i32
    return %arg0, %c0_i32, %c0_i32_0 : i32, i32, i32
  }
  func.func @transform_6(%arg0: i32) -> (i32, i32, i32) {
    %c0_i32 = arith.constant 0 : i32
    %c0_i32_0 = arith.constant 0 : i32
    %c0_i32_1 = arith.constant 0 : i32
    return %arg0, %c0_i32, %c0_i32_0 : i32, i32, i32
  }
  func.func @transform_7(%arg0: i32) -> (i32, i32, i32) {
    %c0_i32 = arith.constant 0 : i32
    %c0_i32_0 = arith.constant 0 : i32
    %c0_i32_1 = arith.constant 0 : i32
    return %arg0, %c0_i32, %c0_i32_0 : i32, i32, i32
  }
  func.func @transform_8(%arg0: i32) -> (i32, i32, i32) {
    %c0_i32 = arith.constant 0 : i32
    %c0_i32_0 = arith.constant 0 : i32
    %c0_i32_1 = arith.constant 0 : i32
    return %arg0, %c0_i32, %c0_i32_0 : i32, i32, i32
  }
  func.func @transform_9(%arg0: i32) -> (i32, i32, i32) {
    %c0_i32 = arith.constant 0 : i32
    %c0_i32_0 = arith.constant 0 : i32
    %c0_i32_1 = arith.constant 0 : i32
    return %arg0, %c0_i32, %c0_i32_0 : i32, i32, i32
  }
}

</mosaic_0001>

<bundles_post_ra>
// kernel: tpu_custom_call.1
= control target key start
LH: loop header
LB: loop body
LE: loop exit
PB: predicated region body
PF: predicated region fallthrough
CT: control target
= control target key end

     0   :  { %s16868_s0 = inlined_call_operand.hbm [shape: bf16[3,8,784], index: 0, kind: input, shape index: {}]   ;;  %s16869_s1 = inlined_call_operand.hbm [shape: bf16[3,784,1024], index: 1, kind: input, shape index: {}]   ;;  %s16870_s2 = inlined_call_operand.hbm [shape: f32[3,1,1024], index: 2, kind: input, shape index: {}]   ;;  %s16871_s3 = inlined_call_operand.hbm [shape: bf16[3,1024,1024], index: 3, kind: input, shape index: {}]   ;;  %s16872_s4 = inlined_call_operand.hbm [shape: f32[3,1,1024], index: 4, kind: input, shape index: {}]   ;;  %s16873_s5 = inlined_call_operand.hbm [shape: bf16[3,1024,1024], index: 5, kind: input, shape index: {}]   ;;  %s16874_s6 = inlined_call_operand.hbm [shape: f32[3,1,1024], index: 6, kind: input, shape index: {}]   ;;  %s16875_s7 = inlined_call_operand.hbm [shape: bf16[3,1024,128], index: 7, kind: input, shape index: {}]   ;;  %s16876_s8 = inlined_call_operand.hbm [shape: f32[3,1,128], index: 8, kind: input, shape index: {}]   ;;  %s16877_s9 = inlined_call_operand.hbm [shape: f32[3,8,128], index: 9, kind: output, shape index: {}]  }
   0x1   :  { %16898 = sst [smem:[#allocation30_spill]] %s16868_s0 }
   0x2   :  { %16899 = sst [smem:[#allocation31_spill]] %s16869_s1 }
   0x3   :  { %16900 = sst [smem:[#allocation32_spill]] %s16871_s3 }
   0x4   :  { %16901 = sst [smem:[#allocation33_spill]] %s16873_s5 }
   0x5   :  { %16902 = sst [smem:[#allocation34_spill]] %s16877_s9 }
   0x6   :  { %14 = vsyncpa [#allocation3], 0 }
   0x7   :  { %16 = vsyncpa [#allocation3 + $0x1], 0 }
   0x8   :  { %17 = vsyncpa [#allocation6], 0 }
   0x9   :  { %19 = vsyncpa [#allocation6 + $0x1], 0 }
   0xa   :  { %20 = vsyncpa [#allocation9], 0 }
   0xb   :  { %22 = vsyncpa [#allocation9 + $0x1], 0 }
   0xc   :  { %23 = vsyncpa [#allocation12], 0 }
   0xd   :  { %25 = vsyncpa [#allocation12 + $0x1], 0 }
   0xe   :  { %26 = vsyncpa [#allocation15], 0 }
   0xf   :  { %28 = vsyncpa [#allocation15 + $0x1], 0 }
  0x10   :  { %29 = vsyncpa [#allocation4], 0 }
  0x11   :  { %31 = vsyncpa [#allocation4 + $0x1], 0  ;;  %s14629_s30 = smov 0   ;;  %s14631_s10 = smov 0  }
  0x12   :  { %s14633_s11 = smov 0   ;;  %s14635_s12 = smov 0  }
  0x13 LB: > { %16903 = sst [smem:[#allocation24_spill]] %s14550_s30  ;;  %s14650_s13 = sadd.s32 4294967295, %s14562_s12   ;;  %s14562_s12 = sphi %s14635_s12, %s16940_s12   ;;  %s14558_s11 = sphi %s14633_s11, %s16942_s11   ;;  %s14554_s10 = sphi %s14631_s10, %s16944_s10   ;;  %s14550_s30 = sphi %s14629_s30, %s16943_s30  }
  0x14   : > { %16904 = sst [smem:[#allocation25_spill]] %s14558_s11  ;;  %s12249_s14 = sadd.s32 4294967294, %s14562_s12  }
  0x15   : > { %s14654_s15 = sadd.s32 1, %s14562_s12   ;;  %s44_s16 = sadd.s32 1, %s14558_s11 }
  0x16   : > { %16905 = sst [smem:[#allocation26_spill]] %s14654_s15  ;;  %s41_s17 = ssub.s32 %s14562_s12, %s14654_s15 }
  0x17   : > { %p51_p0 = scmp.ne.s32.totalorder %s14558_s11, %s14554_s10  ;;  %p42_p1 = scmp.eq.s32.totalorder %s41_s17, 0 }
  0x18   : > { %p52_p2 = scmp.eq.s32.totalorder %s14562_s12, 0  ;;  %p57_p3 = scmp.ne.s32.totalorder %s14554_s10, %s14550_s30 }
  0x19   : > { %p58_p4 = scmp.eq.s32.totalorder %s14650_s13, 0  ;;  %p289_p7 = scmp.eq.s32.totalorder %s14650_s13, 2 }
  0x1a   : > { %s14666_s18 = scalar_select %p42_p1, %s14558_s11, %s44_s16  }
  0x1b   : > { %p53_p5 = por %p52_p2, %p51_p0  ;;  %p14668_p6 = por %p58_p4, %p57_p3 }
  0x1c   : > { %16906 = sst [smem:[#allocation27_spill]] %s14666_s18  ;;  %p295_p8 = scmp.eq.s32.totalorder %s12249_s14, 2 }
  0x1d   : > { %s16907_s19 = scalar_select %p14668_p6, 1, 0 }
  0x1e   : > { %p14097_p9 = scmp.lt.s32.totalorder %s14562_s12, 3  ;;  %p14674_p10 = por %p289_p7, %p51_p0 }
  0x1f   : > { %p14678_p11 = por %p295_p8, %p57_p3  ;;  %s14683_s22 = sand.u32 1, %s14558_s11  }
  0x20   : > { %s16908_s20 = scalar_select %p14674_p10, 1, 0 }
  0x21   : > { %s16910_s21 = scalar_select %p14678_p11, 1, 0 }
  0x22   : > { %16909 = sst [smem:[#allocation28_spill]] %s16908_s20  ;;  %p14685_p12 = pnand %p14097_p9, %p53_p5 }
  0x23   : > { %16911 = sst [smem:[#allocation29_spill]] %s16910_s21  ;;  %s14690_s24 = sand.u32 1, %s14562_s12  }
  0x24   : > { %s16912_s23 = scalar_select %p14685_p12, 1, 0 }
  0x25   : > { %s14041_s25 = smul.u32 3136, %s14683_s22  ;;  %s16913_s1 = sld [smem:[#allocation31_spill]] }
  0x26   : > { %s14042_s26 = smul.u32 50176, %s14562_s12  ;;  %p14707_p1 = pneg %p14685_p12 }
  0x27   : > { %s338_s27 = scalar_lea.vmem [#allocation5], %s14041_s25 }
  0x28   : > { %s345_s28 = sshll.u32 %s338_s27, 4  ;;  %s14699_s28 = int_to_ptr.vmem [resolvable:$true] %s345_s28 }
  0x2b   : > { %s14697_s16 = scalar_lea.hbm %s16913_s1, %s14042_s26  ;;  %s14215_s27 = scalar_lea.hbm %s16913_s1, 150528 }
  0x2c   : > { %s14210_s18 = scalar_lea.hbm %s14697_s16, 50176  ;;  %p14216_p4 = scmp.lt.u32.totalorder %s14697_s16, %s16913_s1 }
  0x2d   : > { %p14211_p0 = scmp.ne.s32.totalorder %s14697_s16, %s14210_s18  ;;  %p14217_p5 = scmp.lt.u32.totalorder %s14215_s27, %s14210_s18 }
  0x2e   : > { %p14219_p8 = scmp.lt.u32.totalorder %s14210_s18, %s14697_s16 }
  0x2f   : > { %p14213_p2 = pnand %p14707_p1, %p14211_p0  ;;  %p14218_p7 = por %p14217_p5, %p14216_p4 }
  0x31   : > { %p14214_p3 = pneg %p14213_p2  ;;  %p14220_p9 = por %p14219_p8, %p14218_p7 }
  0x33   : > { %p14221_p13 = pnand %p14220_p9, %p14214_p3 }
  0x35   : > { %14224 = shalt.err (!%p14221_p13)
}
  0x36   : > { %s14225_s17 = scalar_lea.vmem %s14699_s28, 50176  ;;  %s14564_s25 = smov [#allocation5]  }
  0x37   : > { %p14226_p0 = scmp.ne.s32.totalorder %s14699_s28, %s14225_s17  ;;  %s14230_s26 = sshll.u32 %s14564_s25, 4  ;;  %s14231_s26 = int_to_ptr.vmem [resolvable:$false] %s14230_s26 }
  0x38   : > { %s14232_s29 = scalar_lea.vmem %s14231_s26, 100352  ;;  %p14233_p10 = scmp.lt.s32.totalorder %s14699_s28, %s14231_s26 }
  0x39   : > { %p14228_p2 = pnand %p14226_p0, %p14707_p1  ;;  %p14234_p6 = scmp.lt.s32.totalorder %s14232_s29, %s14225_s17 }
  0x3b   : > { %p14229_p11 = pneg %p14228_p2  ;;  %p14235_p4 = por %p14234_p6, %p14233_p10 }
  0x3d   : > { %p14236_p5 = pnand %p14235_p4, %p14229_p11 }
  0x3f   : > { %14239 = shalt.err (!%p14236_p5)
}
  0x40   : > { %s16883_s18 = smov 512   ;;  %s16885_s27 = smov 32  }
  0x41   : > { %s16915_s17 = scalar_lea.sflag [#allocation6], %s14690_s24  ;;  %p490_p6 = scmp.lt.s32.totalorder %s14562_s12, 4 }
  0x42   : > { %14071 = dma.hbm_to_vmem [thread:$0]  (!%p14685_p12), %s14697_s16, 50176, %s14699_s28, %s16915_s17, %s16883_s18, %s16883_s18, %s16885_s27  }
  0x43   : > { %s12257_s14 = sshll.u32 %s14683_s22, 12  ;;  %s16888_s25 = sshll.u32 %s14562_s12, 16 }
  0x44   : > { %p16916_p10 = scmp.ge.s32.totalorder %s14562_s12, 1  ;;  %s16918_s3 = sld [smem:[#allocation32_spill]] }
  0x45   : > { %s378_s28 = scalar_lea.vmem [#allocation8], %s12257_s14  ;;  %s16895_s17 = scalar_lea.sflag [#allocation9], %s14690_s24 }
  0x46   : > { %p14740_p11 = pnand %p16916_p10, %p490_p6  ;;  %s385_s16 = sshll.u32 %s378_s28, 4  ;;  %s14753_s16 = int_to_ptr.vmem [resolvable:$true] %s385_s16 }
  0x48   : > { %s16917_s26 = scalar_select %p14740_p11, 1, 0 }
  0x4a   : > { %s14749_s15 = scalar_lea.hbm %s16918_s3, %s16888_s25  ;;  %s14245_s1 = scalar_lea.hbm %s16918_s3, 196608 }
  0x4b   : > { %s14240_s18 = scalar_lea.hbm %s14749_s15, 65536  ;;  %p14246_p8 = scmp.lt.u32.totalorder %s14749_s15, %s16918_s3 }
  0x4c   : > { %p14241_p13 = scmp.ne.s32.totalorder %s14749_s15, %s14240_s18  ;;  %p14247_p9 = scmp.lt.u32.totalorder %s14245_s1, %s14240_s18 }
  0x4d   : > { %p14249_p2 = scmp.lt.u32.totalorder %s14240_s18, %s14749_s15 }
  0x4e   : > { %p14243_p3 = pnand %p14241_p13, %p14707_p1  ;;  %p14248_p0 = por %p14247_p9, %p14246_p8 }
  0x50   : > { %p14244_p7 = pneg %p14243_p3  ;;  %p14250_p4 = por %p14249_p2, %p14248_p0 }
  0x52   : > { %p14251_p5 = pnand %p14250_p4, %p14244_p7 }
  0x54   : > { %14254 = shalt.err (!%p14251_p5)
}
  0x55   : > { %s14255_s28 = scalar_lea.vmem %s14753_s16, 65536  ;;  %s14567_s21 = smov [#allocation8]  }
  0x56   : > { %p14256_p6 = scmp.ne.s32.totalorder %s14753_s16, %s14255_s28  ;;  %s14260_s27 = sshll.u32 %s14567_s21, 4  ;;  %s14261_s27 = int_to_ptr.vmem [resolvable:$false] %s14260_s27 }
  0x57   : > { %s14262_s25 = scalar_lea.vmem %s14261_s27, 131072  ;;  %p14263_p3 = scmp.lt.s32.totalorder %s14753_s16, %s14261_s27 }
  0x58   : > { %p14258_p10 = pnand %p14256_p6, %p14707_p1  ;;  %p14264_p11 = scmp.lt.s32.totalorder %s14262_s25, %s14255_s28 }
  0x5a   : > { %p14259_p13 = pneg %p14258_p10  ;;  %p14265_p8 = por %p14264_p11, %p14263_p3 }
  0x5c   : > { %p14266_p9 = pnand %p14265_p8, %p14259_p13 }
  0x5e   : > { %14269 = shalt.err (!%p14266_p9)
}
  0x5f   : > { %s16919_s18 = smov 32   ;;  %s16920_s1 = smov 512  }
  0x60   : > { %14077 = dma.hbm_to_vmem [thread:$0]  (!%p14685_p12), %s14749_s15, 65536, %s14753_s16, %s16895_s17, %s16920_s1, %s16920_s1, %s16919_s18  }
  0x61   : > { %s16921_s29 = sshll.u32 %s14562_s12, 16  ;;  %s16922_s5 = sld [smem:[#allocation33_spill]] }
  0x62   : > { %s418_s25 = scalar_lea.vmem [#allocation11], %s12257_s14  ;;  %s12269_s30 = sshll.u32 %s14683_s22, 9 }
  0x63   : > { %s425_s3 = sshll.u32 %s418_s25, 4  ;;  %s16893_s9 = scalar_lea.sflag [#allocation12], %s14690_s24  ;;  %s14791_s3 = int_to_ptr.vmem [resolvable:$true] %s425_s3 }
  0x67   : > { %s14787_s27 = scalar_lea.hbm %s16922_s5, %s16921_s29  ;;  %s14275_s29 = scalar_lea.hbm %s16922_s5, 196608 }
  0x68   : > { %s14270_s20 = scalar_lea.hbm %s14787_s27, 65536  ;;  %p14276_p2 = scmp.lt.u32.totalorder %s14787_s27, %s16922_s5 }
  0x69   : > { %p14271_p11 = scmp.ne.s32.totalorder %s14787_s27, %s14270_s20  ;;  %p14277_p4 = scmp.lt.u32.totalorder %s14275_s29, %s14270_s20 }
  0x6a   : > { %p14279_p6 = scmp.lt.u32.totalorder %s14270_s20, %s14787_s27 }
  0x6b   : > { %p14273_p7 = pnand %p14271_p11, %p14707_p1  ;;  %p14278_p5 = por %p14277_p4, %p14276_p2 }
  0x6d   : > { %p14274_p0 = pneg %p14273_p7  ;;  %p14280_p10 = por %p14279_p6, %p14278_p5 }
  0x6f   : > { %p14281_p13 = pnand %p14280_p10, %p14274_p0 }
  0x71   : > { %14284 = shalt.err (!%p14281_p13)
}
  0x72   : > { %s14285_s14 = scalar_lea.vmem %s14791_s3, 65536  ;;  %s14568_s25 = smov [#allocation11]  }
  0x73   : > { %p14286_p3 = scmp.ne.s32.totalorder %s14791_s3, %s14285_s14  ;;  %s14290_s15 = sshll.u32 %s14568_s25, 4  ;;  %s14291_s15 = int_to_ptr.vmem [resolvable:$false] %s14290_s15 }
  0x74   : > { %s14292_s16 = scalar_lea.vmem %s14291_s15, 131072  ;;  %p14293_p11 = scmp.lt.s32.totalorder %s14791_s3, %s14291_s15 }
  0x75   : > { %p14288_p8 = pnand %p14286_p3, %p14707_p1  ;;  %p14294_p7 = scmp.lt.s32.totalorder %s14292_s16, %s14285_s14 }
  0x77   : > { %p14289_p9 = pneg %p14288_p8  ;;  %p14295_p2 = por %p14294_p7, %p14293_p11 }
  0x79   : > { %p14296_p4 = pnand %p14295_p2, %p14289_p9 }
  0x7b   : > { %14299 = shalt.err (!%p14296_p4)
}
  0x7c   : > { %14083 = dma.hbm_to_vmem [thread:$0]  (!%p14685_p12), %s14787_s27, 65536, %s14791_s3, %s16893_s9, %s16920_s1, %s16920_s1, %s16919_s18  }
  0x7d   : > { %s13782_s20 = sshll.u32 %s14562_s12, 13  ;;  %s458_s14 = scalar_lea.vmem [#allocation14], %s12269_s30 }
  0x7e   : > { %s14825_s21 = scalar_lea.hbm %s16875_s7, %s13782_s20  ;;  %s465_s25 = sshll.u32 %s458_s14, 4  ;;  %s14829_s25 = int_to_ptr.vmem [resolvable:$true] %s465_s25 }
  0x7f   : > { %s16894_s15 = scalar_lea.sflag [#allocation15], %s14690_s24  ;;  %s14300_s16 = scalar_lea.hbm %s14825_s21, 8192 }
  0x80   : > { %p14301_p0 = scmp.ne.s32.totalorder %s14825_s21, %s14300_s16  ;;  %s14305_s1 = scalar_lea.hbm %s16875_s7, 24576 }
  0x81   : > { %p14306_p10 = scmp.lt.u32.totalorder %s14825_s21, %s16875_s7  ;;  %p14307_p13 = scmp.lt.u32.totalorder %s14305_s1, %s14300_s16 }
  0x82   : > { %p14303_p5 = pnand %p14301_p0, %p14707_p1  ;;  %p14309_p8 = scmp.lt.u32.totalorder %s14300_s16, %s14825_s21 }
  0x83   : > { %p14308_p3 = por %p14307_p13, %p14306_p10 }
  0x84   : > { %p14304_p6 = pneg %p14303_p5 }
  0x85   : > { %p14310_p9 = por %p14309_p8, %p14308_p3 }
  0x87   : > { %p14311_p11 = pnand %p14310_p9, %p14304_p6 }
  0x89   : > { %14314 = shalt.err (!%p14311_p11)
}
  0x8a   : > { %s14315_s30 = scalar_lea.vmem %s14829_s25, 8192  ;;  %s14569_s29 = smov [#allocation14]  }
  0x8b   : > { %p14316_p7 = scmp.ne.s32.totalorder %s14829_s25, %s14315_s30  ;;  %s14320_s28 = sshll.u32 %s14569_s29, 4  ;;  %s14321_s28 = int_to_ptr.vmem [resolvable:$false] %s14320_s28 }
  0x8c   : > { %s14322_s14 = scalar_lea.vmem %s14321_s28, 16384  ;;  %p14323_p0 = scmp.lt.s32.totalorder %s14829_s25, %s14321_s28 }
  0x8d   : > { %p14318_p2 = pnand %p14316_p7, %p14707_p1  ;;  %p14324_p5 = scmp.lt.s32.totalorder %s14322_s14, %s14315_s30 }
  0x8f   : > { %p14319_p4 = pneg %p14318_p2  ;;  %p14325_p10 = por %p14324_p5, %p14323_p0 }
  0x91   : > { %p14326_p13 = pnand %p14325_p10, %p14319_p4 }
  0x93   : > { %14329 = shalt.err (!%p14326_p13)
}
  0x94   : > { %s14570_s16 = smov 64   ;;  %s14571_s3 = smov 4  }
  0x95   : > { %14089 = dma.hbm_to_vmem [thread:$0]  (!%p14685_p12), %s14825_s21, 8192, %s14829_s25, %s16894_s15, %s14570_s16, %s14570_s16, %s14571_s3  }
  0x96   : > { %s14039_s18 = smul.u32 28, %s14683_s22  ;;  %s14857_s1 = sshll.u32 %s14683_s22, 3 }
  0x97   : > { %s14040_s27 = smul.u32 448, %s14562_s12  ;;  %s14861_s20 = sshll.u32 %s14562_s12, 7 }
  0x98   : > { %s16923_s0 = sld [smem:[#allocation30_spill]]  ;;  %s319_s14 = scalar_lea.vmem [#allocation2], %s14039_s18 }
  0x99   : > { %s327_s9 = sshll.u32 %s319_s14, 4  ;;  %s14874_s16 = scalar_lea.hbm %s16870_s2, %s14861_s20  ;;  %s14868_s9 = int_to_ptr.vmem [resolvable:$true] %s327_s9 }
  0x9a   : > { %s316_s3 = scalar_lea.sflag [#allocation3], %s14683_s22 }
  0x9e   : > { %s14866_s28 = scalar_lea.hbm %s16923_s0, %s14040_s27  ;;  %s14335_s29 = scalar_lea.hbm %s16923_s0, 1344 }
  0x9f   : > { %s14330_s15 = scalar_lea.hbm %s14866_s28, 448  ;;  %p14336_p9 = scmp.lt.u32.totalorder %s14866_s28, %s16923_s0 }
  0xa0   : > { %p14331_p6 = scmp.ne.s32.totalorder %s14866_s28, %s14330_s15  ;;  %p14337_p11 = scmp.lt.u32.totalorder %s14335_s29, %s14330_s15 }
  0xa1   : > { %p14339_p2 = scmp.lt.u32.totalorder %s14330_s15, %s14866_s28 }
  0xa2   : > { %p14333_p3 = pnand %p14331_p6, %p14707_p1  ;;  %p14338_p7 = por %p14337_p11, %p14336_p9 }
  0xa4   : > { %p14334_p8 = pneg %p14333_p3  ;;  %p14340_p4 = por %p14339_p2, %p14338_p7 }
  0xa6   : > { %p14341_p0 = pnand %p14340_p4, %p14334_p8 }
  0xa8   : > { %14344 = shalt.err (!%p14341_p0)
}
  0xa9   : > { %s14345_s14 = scalar_lea.vmem %s14868_s9, 448  ;;  %s14572_s21 = smov [#allocation2]  }
  0xaa   : > { %p14346_p5 = scmp.ne.s32.totalorder %s14868_s9, %s14345_s14  ;;  %s14350_s25 = sshll.u32 %s14572_s21, 4  ;;  %s14351_s25 = int_to_ptr.vmem [resolvable:$false] %s14350_s25 }
  0xab   : > { %s14352_s17 = scalar_lea.vmem %s14351_s25, 896  ;;  %p14353_p6 = scmp.lt.s32.totalorder %s14868_s9, %s14351_s25 }
  0xac   : > { %p14348_p10 = pnand %p14346_p5, %p14707_p1  ;;  %p14354_p3 = scmp.lt.s32.totalorder %s14352_s17, %s14345_s14 }
  0xae   : > { %p14349_p13 = pneg %p14348_p10  ;;  %p14355_p9 = por %p14354_p3, %p14353_p6 }
  0xb0   : > { %p14356_p11 = pnand %p14355_p9, %p14349_p13 }
  0xb2   : > { %14359 = shalt.err (!%p14356_p11)
}
  0xb3   : > { %14068 = dma.hbm_to_vmem [thread:$0]  (!%p14685_p12), %s14866_s28, 448, %s14868_s9, %s316_s3  }
  0xb4   : > { %s359_s15 = scalar_lea.vmem [#allocation7], %s14857_s1  ;;  %s14903_s18 = scalar_lea.hbm %s16872_s4, %s14861_s20 }
  0xb5   : > { %s367_s27 = sshll.u32 %s359_s15, 4  ;;  %s14360_s14 = scalar_lea.hbm %s14874_s16, 128  ;;  %s368_s27 = int_to_ptr.vmem [resolvable:$true] %s367_s27 }
  0xb6   : > { %p14361_p8 = scmp.ne.s32.totalorder %s14874_s16, %s14360_s14  ;;  %s14365_s17 = scalar_lea.hbm %s16870_s2, 384 }
  0xb7   : > { %p14366_p4 = scmp.lt.u32.totalorder %s14874_s16, %s16870_s2  ;;  %p14367_p0 = scmp.lt.u32.totalorder %s14365_s17, %s14360_s14 }
  0xb8   : > { %p14363_p7 = pnand %p14361_p8, %p14707_p1  ;;  %p14369_p10 = scmp.lt.u32.totalorder %s14360_s14, %s14874_s16 }
  0xb9   : > { %p14368_p5 = por %p14367_p0, %p14366_p4 }
  0xba   : > { %p14364_p2 = pneg %p14363_p7 }
  0xbb   : > { %p14370_p13 = por %p14369_p10, %p14368_p5 }
  0xbd   : > { %p14371_p6 = pnand %p14370_p13, %p14364_p2 }
  0xbf   : > { %14374 = shalt.err (!%p14371_p6)
}
  0xc0   : > { %s14375_s9 = scalar_lea.vmem %s368_s27, 128  ;;  %s14573_s28 = smov [#allocation7]  }
  0xc1   : > { %p14376_p3 = scmp.ne.s32.totalorder %s368_s27, %s14375_s9  ;;  %s14380_s3 = sshll.u32 %s14573_s28, 4  ;;  %s14381_s3 = int_to_ptr.vmem [resolvable:$false] %s14380_s3 }
  0xc2   : > { %s14382_s15 = scalar_lea.vmem %s14381_s3, 256  ;;  %p14383_p8 = scmp.lt.s32.totalorder %s368_s27, %s14381_s3 }
  0xc3   : > { %p14378_p9 = pnand %p14376_p3, %p14707_p1  ;;  %p14384_p7 = scmp.lt.s32.totalorder %s14382_s15, %s14375_s9 }
  0xc5   : > { %p14379_p11 = pneg %p14378_p9  ;;  %p14385_p12 = por %p14384_p7, %p14383_p8 }
  0xc7   : > { %p14386_p0 = pnand %p14385_p12, %p14379_p11 }
  0xc9   : > { %14389 = shalt.err (!%p14386_p0)
}
  0xca   : > { %p16924_p4 = scmp.ne.s32.totalorder %s16912_s23, 0  ;;  %s16925_s0 = scalar_lea.sflag [#allocation6], %s14690_s24 }
  0xcb   : > { %s399_s5 = scalar_lea.vmem [#allocation10], %s14857_s1  ;;  %s14929_s21 = scalar_lea.hbm %s16874_s6, %s14861_s20 }
  0xcc   : > { %14074 = dma.hbm_to_vmem [thread:$0]  (!%p16924_p4), %s14874_s16, 128, %s368_s27, %s16925_s0  }
  0xcd   : > { %s407_s30 = sshll.u32 %s399_s5, 4  ;;  %s14390_s25 = scalar_lea.hbm %s14903_s18, 128  ;;  %s408_s30 = int_to_ptr.vmem [resolvable:$true] %s407_s30 }
  0xce   : > { %p14391_p12 = scmp.ne.s32.totalorder %s14903_s18, %s14390_s25  ;;  %s14395_s28 = scalar_lea.hbm %s16872_s4, 384 }
  0xcf   : > { %p14396_p10 = scmp.lt.u32.totalorder %s14903_s18, %s16872_s4  ;;  %p14397_p13 = scmp.lt.u32.totalorder %s14395_s28, %s14390_s25 }
  0xd0   : > { %p14393_p2 = pnand %p14391_p12, %p14707_p1  ;;  %p14399_p3 = scmp.lt.u32.totalorder %s14390_s25, %s14903_s18 }
  0xd1   : > { %p14398_p6 = por %p14397_p13, %p14396_p10 }
  0xd2   : > { %p14394_p5 = pneg %p14393_p2 }
  0xd3   : > { %p14400_p9 = por %p14399_p3, %p14398_p6 }
  0xd5   : > { %p14401_p11 = pnand %p14400_p9, %p14394_p5 }
  0xd7   : > { %14404 = shalt.err (!%p14401_p11)
}
  0xd8   : > { %s14405_s20 = scalar_lea.vmem %s408_s30, 128  ;;  %s14574_s16 = smov [#allocation10]  }
  0xd9   : > { %p14406_p8 = scmp.ne.s32.totalorder %s408_s30, %s14405_s20  ;;  %s14410_s27 = sshll.u32 %s14574_s16, 4  ;;  %s14411_s27 = int_to_ptr.vmem [resolvable:$false] %s14410_s27 }
  0xda   : > { %s14412_s0 = scalar_lea.vmem %s14411_s27, 256  ;;  %p14413_p12 = scmp.lt.s32.totalorder %s408_s30, %s14411_s27 }
  0xdb   : > { %p14408_p7 = pnand %p14406_p8, %p14707_p1  ;;  %p14414_p2 = scmp.lt.s32.totalorder %s14412_s0, %s14405_s20 }
  0xdd   : > { %p14409_p0 = pneg %p14408_p7  ;;  %p14415_p4 = por %p14414_p2, %p14413_p12 }
  0xdf   : > { %p14416_p10 = pnand %p14415_p4, %p14409_p0 }
  0xe1   : > { %14419 = shalt.err (!%p14416_p10)
}
  0xe2   : > { %p16926_p13 = scmp.ne.s32.totalorder %s16912_s23, 0  ;;  %s16927_s5 = scalar_lea.sflag [#allocation9], %s14690_s24 }
  0xe3   : > { %s439_s29 = scalar_lea.vmem [#allocation13], %s14857_s1  ;;  %s12272_s25 = sshll.u32 %s14562_s12, 4 }
  0xe4   : > { %14080 = dma.hbm_to_vmem [thread:$0]  (!%p16926_p13), %s14903_s18, 128, %s408_s30, %s16927_s5  }
  0xe5   : > { %s447_s14 = sshll.u32 %s439_s29, 4  ;;  %s14420_s17 = scalar_lea.hbm %s14929_s21, 128  ;;  %s448_s14 = int_to_ptr.vmem [resolvable:$true] %s447_s14 }
  0xe6   : > { %p14421_p4 = scmp.ne.s32.totalorder %s14929_s21, %s14420_s17  ;;  %s14425_s3 = scalar_lea.hbm %s16874_s6, 384 }
  0xe7   : > { %p14426_p3 = scmp.lt.u32.totalorder %s14929_s21, %s16874_s6  ;;  %p14427_p9 = scmp.lt.u32.totalorder %s14425_s3, %s14420_s17 }
  0xe8   : > { %p14423_p5 = pnand %p14421_p4, %p14707_p1  ;;  %p14429_p8 = scmp.lt.u32.totalorder %s14420_s17, %s14929_s21 }
  0xe9   : > { %p14428_p11 = por %p14427_p9, %p14426_p3 }
  0xea   : > { %p14424_p6 = pneg %p14423_p5 }
  0xeb   : > { %p14430_p7 = por %p14429_p8, %p14428_p11 }
  0xed   : > { %p14431_p0 = pnand %p14430_p7, %p14424_p6 }
  0xef   : > { %14434 = shalt.err (!%p14431_p0)
}
  0xf0   : > { %s14435_s1 = scalar_lea.vmem %s448_s14, 128  ;;  %s14575_s18 = smov [#allocation13]  }
  0xf1   : > { %p14436_p12 = scmp.ne.s32.totalorder %s448_s14, %s14435_s1  ;;  %s14440_s30 = sshll.u32 %s14575_s18, 4  ;;  %s14441_s30 = int_to_ptr.vmem [resolvable:$false] %s14440_s30 }
  0xf2   : > { %s14442_s16 = scalar_lea.vmem %s14441_s30, 256  ;;  %p14443_p4 = scmp.lt.s32.totalorder %s448_s14, %s14441_s30 }
  0xf3   : > { %p14438_p2 = pnand %p14436_p12, %p14707_p1  ;;  %p14444_p5 = scmp.lt.s32.totalorder %s14442_s16, %s14435_s1 }
  0xf5   : > { %p14439_p10 = pneg %p14438_p2  ;;  %p14445_p13 = por %p14444_p5, %p14443_p4 }
  0xf7   : > { %p14446_p3 = pnand %p14445_p13, %p14439_p10 }
  0xf9   : > { %14449 = shalt.err (!%p14446_p3)
}
  0xfa   : > { %p16928_p9 = scmp.ne.s32.totalorder %s16912_s23, 0  ;;  %s16929_s27 = scalar_lea.sflag [#allocation12], %s14690_s24 }
  0xfb   : > { %s14974_s29 = scalar_lea.hbm %s16876_s8, %s12272_s25  ;;  %s478_s17 = scalar_lea.vmem [#allocation16], %s14683_s22 }
  0xfc   : > { %14086 = dma.hbm_to_vmem [thread:$0]  (!%p16928_p9), %s14929_s21, 128, %s448_s14, %s16929_s27  }
  0xfd   : > { %s485_s9 = sshll.u32 %s478_s17, 4  ;;  %s14450_s28 = scalar_lea.hbm %s14974_s29, 16  ;;  %s486_s9 = int_to_ptr.vmem [resolvable:$true] %s485_s9 }
  0xfe   : > { %p14451_p13 = scmp.ne.s32.totalorder %s14974_s29, %s14450_s28  ;;  %s14455_s21 = scalar_lea.hbm %s16876_s8, 48 }
  0xff   : > { %p14456_p8 = scmp.lt.u32.totalorder %s14974_s29, %s16876_s8  ;;  %p14457_p7 = scmp.lt.u32.totalorder %s14455_s21, %s14450_s28 }
 0x100   : > { %p14453_p6 = pnand %p14451_p13, %p14707_p1  ;;  %p14459_p12 = scmp.lt.u32.totalorder %s14450_s28, %s14974_s29 }
 0x101   : > { %p14458_p0 = por %p14457_p7, %p14456_p8 }
 0x102   : > { %p14454_p11 = pneg %p14453_p6 }
 0x103   : > { %p14460_p2 = por %p14459_p12, %p14458_p0 }
 0x105   : > { %p14461_p10 = pnand %p14460_p2, %p14454_p11 }
 0x107   : > { %14464 = shalt.err (!%p14461_p10)
}
 0x108   : > { %s14465_s22 = scalar_lea.vmem %s486_s9, 16  ;;  %s14576_s25 = smov [#allocation16]  }
 0x109   : > { %p14466_p4 = scmp.ne.s32.totalorder %s486_s9, %s14465_s22  ;;  %s14470_s1 = sshll.u32 %s14576_s25, 4  ;;  %s14471_s1 = int_to_ptr.vmem [resolvable:$false] %s14470_s1 }
 0x10a   : > { %s14472_s18 = scalar_lea.vmem %s14471_s1, 32  ;;  %p14473_p13 = scmp.lt.s32.totalorder %s486_s9, %s14471_s1 }
 0x10b   : > { %p14468_p5 = pnand %p14466_p4, %p14707_p1  ;;  %p14474_p6 = scmp.lt.s32.totalorder %s14472_s18, %s14465_s22 }
 0x10d   : > { %p14469_p3 = pneg %p14468_p5  ;;  %p14475_p9 = por %p14474_p6, %p14473_p13 }
 0x10f   : > { %p14476_p7 = pnand %p14475_p9, %p14469_p3 }
 0x111   : > { %14479 = shalt.err (!%p14476_p7)
}
 0x112   : > { %p16930_p8 = scmp.ne.s32.totalorder %s16912_s23, 0  ;;  %s16931_s30 = scalar_lea.sflag [#allocation15], %s14690_s24 }
 0x113   : > { %p16932_p11 = scmp.ne.s32.totalorder %s16917_s26, 0 }
 0x114   : > { %14092 = dma.hbm_to_vmem [thread:$0]  (!%p16930_p8), %s14974_s29, 16, %s486_s9, %s16931_s30  }
 0x115   : > { %494 = sbr.rel (%p16932_p11) target bundleno = 2244 (0x8c4), region = 56  ;;  %s14999_s11 = sand.u32 (!%p16932_p11), 1, %s14554_s10  }
 0x116   : > { %s14043_s16 = smul.u32 (!%p16932_p11), 28, %s14999_s11  ;;  %s497_s27 = scalar_lea.sflag (!%p16932_p11), [#allocation3], %s14999_s11 }
 0x117   : > { %p16933_p1 = scmp.ne.s32.totalorder (!%p16932_p11), %s16907_s19, 0 }
 0x118   : > { %s15003_s0 = scalar_lea.vmem (!%p16932_p11), [#allocation2], %s14043_s16 }
 0x11c   : > { %14525 = dma.done.wait (%p16933_p1), %s497_s27, 448  }
 0x11d   : > { %14527 = vsyncadd (%p16933_p1), %s497_s27, 4294966848  ;;  %s505_s23 = sand.u32 1, %s14650_s13   ;;  %s14044_s24 = smul.u32 3136, %s14999_s11 }
 0x11e   : > { %s506_s26 = scalar_lea.sflag [#allocation6], %s505_s23 }
 0x11f   : > { %s15011_s5 = scalar_lea.vmem [#allocation5], %s14044_s24 }
 0x120   : > { %14529 = dma.done.wait (%p16933_p1), %s506_s26, 50304  }
 0x121   : > { %14531 = vsyncadd (%p16933_p1), %s506_s26, 4294916992  ;;  %s15018_s29 = sshll.u32 %s14999_s11, 3  ;;  %s12275_s17 = sshll.u32 %s14999_s11, 12 }
 0x122   : > { %s518_s9 = scalar_lea.vmem [#allocation7], %s15018_s29  ;;  %s524_s28 = scalar_lea.sflag [#allocation9], %s505_s23 }
 0x123   : > { %s15022_s3 = scalar_lea.vmem [#allocation8], %s12275_s17 }
 0x124   : > { %14533 = dma.done.wait (%p16933_p1), %s524_s28, 65664  }
 0x125   : > { %14535 = vsyncadd (%p16933_p1), %s524_s28, 4294901632  ;;  %s536_s15 = scalar_lea.vmem [#allocation10], %s15018_s29  ;;  %s542_s21 = scalar_lea.sflag [#allocation12], %s505_s23 }
 0x126   : > { %s15029_s14 = scalar_lea.vmem [#allocation11], %s12275_s17 }
 0x127   : > { %14537 = dma.done.wait (%p16933_p1), %s542_s21, 65664  }
 0x128   : > { %14539 = vsyncadd (%p16933_p1), %s542_s21, 4294901632  ;;  %s12279_s20 = sshll.u32 %s14999_s11, 9  ;;  %s554_s22 = scalar_lea.vmem [#allocation13], %s15018_s29 }
 0x129   : > { %s560_s25 = scalar_lea.sflag [#allocation15], %s505_s23  ;;  %s15037_s1 = scalar_lea.vmem [#allocation14], %s12279_s20 }
 0x12a   : > { %14541 = dma.done.wait (%p16933_p1), %s560_s25, 8208  }
 0x12b   : > { %14543 = vsyncadd (%p16933_p1), %s560_s25, 4294959088  ;;  %v650_v0 = vld [vmem:[%s15011_s5] sm:$0xff]  ;;  %v651_v2 = vld [vmem:[%s15011_s5 + $0x8] sm:$0xff]  ;;  %vm3068_vm0 = vcmask 130048   ;;  %s571_s19 = scalar_lea.vmem [#allocation16], %s14999_s11  ;;  %s16934_s18 = sld [smem:[#allocation28_spill]] }
 0x12c   : > { %v654_v1 = vld [vmem:[%s15011_s5 + $0x20] sm:$0xff]  ;;  %v655_v4 = vld [vmem:[%s15011_s5 + $0x28] sm:$0xff]  ;;  %s13774_s30 = sshll.u32 %s14650_s13, 7  ;;  %s644_s16 = scalar_lea.vmem [#allocation17], %s15018_s29 }
 0x12d   : > { %v12289_v3 = vcombine.high %v650_v0, %v654_v1  ;;  %v12288_v5 = vcombine.low %v650_v0, %v654_v1  ;;  %v658_v6 = vld [vmem:[%s15011_s5 + $0x40] sm:$0xff]  ;;  %v12291_v8 = vcombine.high %v651_v2, %v655_v4  ;;  %v12290_v9 = vcombine.low %v651_v2, %v655_v4  ;;  %v659_v11 = vld [vmem:[%s15011_s5 + $0x48] sm:$0xff]  ;;  %s12010_s27 = sshll.u32 %s644_s16, 4  ;;  %s16935_s24 = sld [smem:[#allocation34_spill]]  ;;  %s16827_s27 = int_to_ptr.vmem [resolvable:$true] %s12010_s27 }
 0x12e   : > { %v662_v7 = vld [vmem:[%s15011_s5 + $0x60] sm:$0xff]  ;;  %v663_v12 = vld [vmem:[%s15011_s5 + $0x68] sm:$0xff]  ;;  %s14480_s17 = scalar_lea.vmem %s16827_s27, 128  ;;  %s14578_s13 = smov [#allocation17]  }
 0x12f   : > { %v12297_v10 = vcombine.high %v658_v6, %v662_v7  ;;  %v666_v13 = vld [vmem:[%s15011_s5 + $0x80] sm:$0xff]  ;;  %3072 = vmatprep.subr.bf16.mxu0 %v12289_v3  ;;  %v12299_v14 = vcombine.high %v659_v11, %v663_v12  ;;  %v667_v16 = vld [vmem:[%s15011_s5 + $0x88] sm:$0xff]  ;;  %3236 = vmatprep.subr.bf16.mxu1 %v12291_v8  ;;  %v12296_v18 = vcombine.low %v658_v6, %v662_v7  ;;  %p14481_p9 = scmp.ne.s32.totalorder %s16827_s27, %s14480_s17  ;;  %s14484_s29 = sshll.u32 %s14578_s13, 4  ;;  %s14485_s29 = int_to_ptr.vmem [resolvable:$false] %s14484_s29 }
 0x130   : > { %v670_v15 = vld [vmem:[%s15011_s5 + $0xa0] sm:$0xff]  ;;  %v671_v17 = vld [vmem:[%s15011_s5 + $0xa8] sm:$0xff]  ;;  %3073 = vmatpush1.bf16.msra.mxu0 %v12288_v5  ;;  %3237 = vmatpush1.bf16.msra.mxu1 %v12290_v9  ;;  %v12298_v19 = vcombine.low %v659_v11, %v663_v12  ;;  %p14487_p10 = scmp.lt.s32.totalorder %s16827_s27, %s14485_s29 }
 0x131   : > { %3074 = vmatprep.subr.bf16.mxu0 %v12297_v10  ;;  %v12305_v20 = vcombine.high %v666_v13, %v670_v15  ;;  %3238 = vmatprep.subr.bf16.mxu1 %v12299_v14  ;;  %v12307_v21 = vcombine.high %v667_v16, %v671_v17  ;;  %v674_v22 = vld [vmem:[%s15011_s5 + $0xc0] sm:$0xff]  ;;  %v675_v24 = vld [vmem:[%s15011_s5 + $0xc8] sm:$0xff]  ;;  %v12304_v26 = vcombine.low %v666_v13, %v670_v15  ;;  %p16936_p0 = scmp.ne.s32.totalorder %s16934_s18, 0 }
 0x132   : > { %v678_v23 = vld [vmem:[%s15011_s5 + $0xe0] sm:$0xff]  ;;  %v679_v25 = vld [vmem:[%s15011_s5 + $0xe8] sm:$0xff]  ;;  %v12306_v27 = vcombine.low %v667_v16, %v671_v17 }
 0x133   : > { %v12313_v28 = vcombine.high %v674_v22, %v678_v23  ;;  %v12315_v29 = vcombine.high %v675_v24, %v679_v25  ;;  %v682_v30 = vld [vmem:[%s15011_s5 + $0x100] sm:$0xff]  ;;  %v683_v32 = vld [vmem:[%s15011_s5 + $0x108] sm:$0xff]  ;;  %v12312_v34 = vcombine.low %v674_v22, %v678_v23  ;;  %v12314_v35 = vcombine.low %v675_v24, %v679_v25  ;;  %s16825_s26 = scalar_lea.hbm %s16935_s24, %s13774_s30  ;;  %p14482_p12 = pnand %p14481_p9, %p16936_p0 }
 0x134   : > { %3075 = vmatpush1.bf16.msra.mxu0 %v12296_v18  ;;  %3239 = vmatpush1.bf16.msra.mxu1 %v12298_v19  ;;  %v686_v31 = vld [vmem:[%s15011_s5 + $0x120] sm:$0xff]  ;;  %v687_v33 = vld [vmem:[%s15011_s5 + $0x128] sm:$0xff] }
 0x135   : > { %3076 = vmatprep.subr.bf16.mxu0 %v12305_v20  ;;  %3240 = vmatprep.subr.bf16.mxu1 %v12307_v21  ;;  %v12321_v36 = vcombine.high %v682_v30, %v686_v31  ;;  %v12323_v37 = vcombine.high %v683_v32, %v687_v33  ;;  %v690_v38 = vld [vmem:[%s15011_s5 + $0x140] sm:$0xff]  ;;  %v691_v40 = vld [vmem:[%s15011_s5 + $0x148] sm:$0xff]  ;;  %v12320_v42 = vcombine.low %v682_v30, %v686_v31  ;;  %p14483_p2 = pneg %p14482_p12 }
 0x136   : > { %v694_v39 = vld [vmem:[%s15011_s5 + $0x160] sm:$0xff]  ;;  %v695_v41 = vld [vmem:[%s15011_s5 + $0x168] sm:$0xff]  ;;  %v12322_v43 = vcombine.low %v683_v32, %v687_v33 }
 0x137   : > { %v12329_v44 = vcombine.high %v690_v38, %v694_v39  ;;  %v12331_v45 = vcombine.high %v691_v40, %v695_v41  ;;  %v698_v46 = vld [vmem:[%s15011_s5 + $0x180] sm:$0xff]  ;;  %v699_v48 = vld [vmem:[%s15011_s5 + $0x188] sm:$0xff]  ;;  %v12328_v50 = vcombine.low %v690_v38, %v694_v39  ;;  %v12330_v51 = vcombine.low %v691_v40, %v695_v41 }
 0x138   : > { %3077 = vmatpush1.bf16.msra.mxu0 %v12304_v26  ;;  %3241 = vmatpush1.bf16.msra.mxu1 %v12306_v27  ;;  %v702_v47 = vld [vmem:[%s15011_s5 + $0x1a0] sm:$0xff]  ;;  %v703_v49 = vld [vmem:[%s15011_s5 + $0x1a8] sm:$0xff] }
 0x139   : > { %3078 = vmatprep.subr.bf16.mxu0 %v12313_v28  ;;  %3242 = vmatprep.subr.bf16.mxu1 %v12315_v29  ;;  %v12337_v52 = vcombine.high %v698_v46, %v702_v47  ;;  %v15072_v53 = vld [vmem:[%s15003_s0] sm:$0xff]  ;;  %v12339_v54 = vcombine.high %v699_v48, %v703_v49  ;;  %v12336_v60 = vcombine.low %v698_v46, %v702_v47 }
 0x13a   : > { %v706_v55 = vld [vmem:[%s15011_s5 + $0x1c0] sm:$0xff]  ;;  %v15078_v57 = vcombine.high %v15072_v53, %v15072_v53  ;;  %v707_v58 = vld [vmem:[%s15011_s5 + $0x1c8] sm:$0xff]  ;;  %v12338_v61 = vcombine.low %v699_v48, %v703_v49 }
 0x13b   : > { %v710_v56 = vld [vmem:[%s15011_s5 + $0x1e0] sm:$0xff]  ;;  %v711_v59 = vld [vmem:[%s15011_s5 + $0x1e8] sm:$0xff] }
 0x13c   : > { %3079 = vmatpush1.bf16.msra.mxu0 %v12312_v34  ;;  %3243 = vmatpush1.bf16.msra.mxu1 %v12314_v35  ;;  %v12345_v62 = vcombine.high %v706_v55, %v710_v56  ;;  %v12347_v63 = vcombine.high %v707_v58, %v711_v59  ;;  %v714_v0 = vld [vmem:[%s15011_s5 + $0x200] sm:$0xff]  ;;  %v715_v2 = vld [vmem:[%s15011_s5 + $0x208] sm:$0xff]  ;;  %v12344_v4 = vcombine.low %v706_v55, %v710_v56 }
 0x13d   : > { %3080 = vmatprep.subr.bf16.mxu0 %v12321_v36  ;;  %3244 = vmatprep.subr.bf16.mxu1 %v12323_v37  ;;  %v718_v1 = vld [vmem:[%s15011_s5 + $0x220] sm:$0xff]  ;;  %v719_v3 = vld [vmem:[%s15011_s5 + $0x228] sm:$0xff]  ;;  %v12346_v5 = vcombine.low %v707_v58, %v711_v59 }
 0x13e   : > { %3104 = vmatprep.mubr.bf16.mxu0 %v15078_v57  ;;  %3268 = vmatprep.mubr.bf16.mxu1 %v15078_v57  ;;  %v12353_v6 = vcombine.high %v714_v0, %v718_v1  ;;  %v12355_v7 = vcombine.high %v715_v2, %v719_v3  ;;  %v722_v8 = vld [vmem:[%s15011_s5 + $0x240] sm:$0xff]  ;;  %v723_v10 = vld [vmem:[%s15011_s5 + $0x248] sm:$0xff]  ;;  %v12352_v12 = vcombine.low %v714_v0, %v718_v1 }
 0x13f   : > { %v726_v9 = vld [vmem:[%s15011_s5 + $0x260] sm:$0xff]  ;;  %v727_v11 = vld [vmem:[%s15011_s5 + $0x268] sm:$0xff]  ;;  %v12354_v13 = vcombine.low %v715_v2, %v719_v3 }
 0x140   : > { %3081 = vmatpush1.bf16.msra.mxu0 %v12320_v42  ;;  %3245 = vmatpush1.bf16.msra.mxu1 %v12322_v43  ;;  %v12361_v14 = vcombine.high %v722_v8, %v726_v9  ;;  %v12363_v15 = vcombine.high %v723_v10, %v727_v11  ;;  %v730_v16 = vld [vmem:[%s15011_s5 + $0x280] sm:$0xff]  ;;  %v731_v18 = vld [vmem:[%s15011_s5 + $0x288] sm:$0xff]  ;;  %v12360_v20 = vcombine.low %v722_v8, %v726_v9 }
 0x141   : > { %3082 = vmatprep.subr.bf16.mxu0 %v12329_v44  ;;  %3246 = vmatprep.subr.bf16.mxu1 %v12331_v45  ;;  %v734_v17 = vld [vmem:[%s15011_s5 + $0x2a0] sm:$0xff]  ;;  %v735_v19 = vld [vmem:[%s15011_s5 + $0x2a8] sm:$0xff]  ;;  %v12362_v21 = vcombine.low %v723_v10, %v727_v11 }
 0x142   : > { %v12369_v22 = vcombine.high %v730_v16, %v734_v17  ;;  %v12371_v23 = vcombine.high %v731_v18, %v735_v19  ;;  %v738_v24 = vld [vmem:[%s15011_s5 + $0x2c0] sm:$0xff]  ;;  %v739_v26 = vld [vmem:[%s15011_s5 + $0x2c8] sm:$0xff]  ;;  %v12368_v28 = vcombine.low %v730_v16, %v734_v17  ;;  %v12370_v29 = vcombine.low %v731_v18, %v735_v19 }
 0x143   : > { %v742_v25 = vld [vmem:[%s15011_s5 + $0x2e0] sm:$0xff]  ;;  %v743_v27 = vld [vmem:[%s15011_s5 + $0x2e8] sm:$0xff] }
 0x144   : > { %3083 = vmatpush1.bf16.msra.mxu0 %v12328_v50  ;;  %3247 = vmatpush1.bf16.msra.mxu1 %v12330_v51  ;;  %v12377_v30 = vcombine.high %v738_v24, %v742_v25  ;;  %v12379_v31 = vcombine.high %v739_v26, %v743_v27  ;;  %v746_v32 = vld [vmem:[%s15011_s5 + $0x300] sm:$0xff]  ;;  %v747_v34 = vld [vmem:[%s15011_s5 + $0x308] sm:$0xff]  ;;  %v12376_v36 = vcombine.low %v738_v24, %v742_v25 }
 0x145   : > { %3084 = vmatprep.subr.bf16.mxu0 %v12337_v52  ;;  %3248 = vmatprep.subr.bf16.mxu1 %v12339_v54  ;;  %v750_v33 = vld [vmem:[%s15011_s5 + $0x320] sm:$0xff]  ;;  %v751_v35 = vld [vmem:[%s15011_s5 + $0x328] sm:$0xff]  ;;  %v12378_v37 = vcombine.low %v739_v26, %v743_v27 }
 0x146   : > { %v12385_v38 = vcombine.high %v746_v32, %v750_v33  ;;  %v12387_v39 = vcombine.high %v747_v34, %v751_v35  ;;  %v754_v40 = vld [vmem:[%s15011_s5 + $0x340] sm:$0xff]  ;;  %v755_v42 = vld [vmem:[%s15011_s5 + $0x348] sm:$0xff]  ;;  %v12384_v44 = vcombine.low %v746_v32, %v750_v33  ;;  %v12386_v45 = vcombine.low %v747_v34, %v751_v35 }
 0x147   : > { %v758_v41 = vld [vmem:[%s15011_s5 + $0x360] sm:$0xff]  ;;  %v759_v43 = vld [vmem:[%s15011_s5 + $0x368] sm:$0xff] }
 0x148   : > { %3085 = vmatpush1.bf16.msra.mxu0 %v12336_v60  ;;  %3249 = vmatpush1.bf16.msra.mxu1 %v12338_v61  ;;  %v12393_v46 = vcombine.high %v754_v40, %v758_v41  ;;  %v12395_v47 = vcombine.high %v755_v42, %v759_v43  ;;  %v762_v48 = vld [vmem:[%s15011_s5 + $0x380] sm:$0xff]  ;;  %v763_v50 = vld [vmem:[%s15011_s5 + $0x388] sm:$0xff]  ;;  %v12392_v52 = vcombine.low %v754_v40, %v758_v41 }
 0x149   : > { %3086 = vmatprep.subr.bf16.mxu0 %v12345_v62  ;;  %3250 = vmatprep.subr.bf16.mxu1 %v12347_v63  ;;  %v766_v49 = vld [vmem:[%s15011_s5 + $0x3a0] sm:$0xff]  ;;  %v767_v51 = vld [vmem:[%s15011_s5 + $0x3a8] sm:$0xff]  ;;  %v12394_v54 = vcombine.low %v755_v42, %v759_v43 }
 0x14a   : > { %v12401_v55 = vcombine.high %v762_v48, %v766_v49  ;;  %v12403_v56 = vcombine.high %v763_v50, %v767_v51  ;;  %v770_v58 = vld [vmem:[%s15011_s5 + $0x3c0] sm:$0xff]  ;;  %v771_v60 = vld [vmem:[%s15011_s5 + $0x3c8] sm:$0xff]  ;;  %v12400_v62 = vcombine.low %v762_v48, %v766_v49  ;;  %v12402_v63 = vcombine.low %v763_v50, %v767_v51 }
 0x14b   : > { %v774_v59 = vld [vmem:[%s15011_s5 + $0x3e0] sm:$0xff]  ;;  %v775_v61 = vld [vmem:[%s15011_s5 + $0x3e8] sm:$0xff] }
 0x14c   : > { %3087 = vmatpush1.bf16.msra.mxu0 %v12344_v4  ;;  %3251 = vmatpush1.bf16.msra.mxu1 %v12346_v5  ;;  %v12409_v0 = vcombine.high %v770_v58, %v774_v59  ;;  %v12411_v1 = vcombine.high %v771_v60, %v775_v61  ;;  %v778_v2 = vld [vmem:[%s15011_s5 + $0x400] sm:$0xff]  ;;  %v779_v4 = vld [vmem:[%s15011_s5 + $0x408] sm:$0xff] }
 0x14d   : > { %3088 = vmatprep.subr.bf16.mxu0 %v12353_v6  ;;  %3252 = vmatprep.subr.bf16.mxu1 %v12355_v7  ;;  %v782_v3 = vld [vmem:[%s15011_s5 + $0x420] sm:$0xff]  ;;  %v783_v5 = vld [vmem:[%s15011_s5 + $0x428] sm:$0xff]  ;;  %v12408_v6 = vcombine.low %v770_v58, %v774_v59  ;;  %v12410_v7 = vcombine.low %v771_v60, %v775_v61 }
 0x14e   : > { %v12417_v8 = vcombine.high %v778_v2, %v782_v3  ;;  %v12419_v9 = vcombine.high %v779_v4, %v783_v5  ;;  %v786_v10 = vld [vmem:[%s15011_s5 + $0x440] sm:$0xff]  ;;  %v12416_v16 = vcombine.low %v778_v2, %v782_v3  ;;  %v12418_v19 = vcombine.low %v779_v4, %v783_v5 }
 0x14f   : > { %v790_v11 = vld [vmem:[%s15011_s5 + $0x460] sm:$0xff] }
 0x150   : > { %3089 = vmatpush1.bf16.msra.mxu0 %v12352_v12  ;;  %3253 = vmatpush1.bf16.msra.mxu1 %v12354_v13  ;;  %v15124_v12 = vcombine.low %v15072_v53, %v15072_v53  ;;  %v787_v13 = vld [vmem:[%s15011_s5 + $0x448] sm:$0xff]  ;;  %v794_v17 = vld [vmem:[%s15011_s5 + $0x480] sm:$0xff]  ;;  %v12424_v24 = vcombine.low %v786_v10, %v790_v11 }
 0x151   : > { %3090 = vmatprep.subr.bf16.mxu0 %v12361_v14  ;;  %3254 = vmatprep.subr.bf16.mxu1 %v12363_v15  ;;  %v791_v14 = vld [vmem:[%s15011_s5 + $0x468] sm:$0xff]  ;;  %v798_v18 = vld [vmem:[%s15011_s5 + $0x4a0] sm:$0xff] }
 0x152   : > { %v15129_v15 = vld [vmem:[%s15003_s0 + $0x8] sm:$0xff]  ;;  %v12426_v25 = vcombine.low %v787_v13, %v791_v14  ;;  %v12433_v26 = vcombine.high %v794_v17, %v798_v18  ;;  %v12432_v32 = vcombine.low %v794_v17, %v798_v18  ;;  %v810_v33 = vld [vmem:[%s15011_s5 + $0x500] sm:$0xff] }
 0x153   : > { %v15135_v53 = vcombine.high %v15129_v15, %v15129_v15  ;;  %v814_v34 = vld [vmem:[%s15011_s5 + $0x520] sm:$0xff]  ;;  %v851_v17 = vld [vmem:[%s15011_s5 + $0x648] sm:$0xff] }
 0x154   : > { %3091 = vmatpush1.bf16.msra.mxu0 %v12360_v20  ;;  %3255 = vmatpush1.bf16.msra.mxu1 %v12362_v21  ;;  %v12425_v20 = vcombine.high %v786_v10, %v790_v11  ;;  %v12427_v21 = vcombine.high %v787_v13, %v791_v14  ;;  %v818_v41 = vld [vmem:[%s15011_s5 + $0x540] sm:$0xff]  ;;  %v12448_v48 = vcombine.low %v810_v33, %v814_v34 }
 0x155   : > { %3092 = vmatprep.subr.bf16.mxu0 %v12369_v22  ;;  %3256 = vmatprep.subr.bf16.mxu1 %v12371_v23  ;;  %v795_v22 = vld [vmem:[%s15011_s5 + $0x488] sm:$0xff]  ;;  %v822_v42 = vld [vmem:[%s15011_s5 + $0x560] sm:$0xff] }
 0x156   : > { %v799_v23 = vld [vmem:[%s15011_s5 + $0x4a8] sm:$0xff]  ;;  %v12457_v50 = vcombine.high %v818_v41, %v822_v42  ;;  %v826_v51 = vld [vmem:[%s15011_s5 + $0x580] sm:$0xff]  ;;  %v12456_v58 = vcombine.low %v818_v41, %v822_v42 }
 0x157   : > { %v12435_v27 = vcombine.high %v795_v22, %v799_v23  ;;  %v12434_v35 = vcombine.low %v795_v22, %v799_v23  ;;  %v834_v61 = vld [vmem:[%s15011_s5 + $0x5c0] sm:$0xff]  ;;  %v875_v41 = vld [vmem:[%s15011_s5 + $0x708] sm:$0xff] }
 0x158   : > { %3093 = vmatpush1.bf16.msra.mxu0 %v12368_v28  ;;  %3257 = vmatpush1.bf16.msra.mxu1 %v12370_v29  ;;  %v802_v28 = vld [vmem:[%s15011_s5 + $0x4c0] sm:$0xff] }
 0x159   : > { %3094 = vmatprep.subr.bf16.mxu0 %v12377_v30  ;;  %3258 = vmatprep.subr.bf16.mxu1 %v12379_v31  ;;  %v806_v29 = vld [vmem:[%s15011_s5 + $0x4e0] sm:$0xff]  ;;  %v803_v30 = vld [vmem:[%s15011_s5 + $0x4c8] sm:$0xff] }
 0x15a   : > { %v807_v31 = vld [vmem:[%s15011_s5 + $0x4e8] sm:$0xff]  ;;  %v12440_v40 = vcombine.low %v802_v28, %v806_v29  ;;  %v842_v5 = vld [vmem:[%s15011_s5 + $0x600] sm:$0xff] }
 0x15b   : > { %v12442_v43 = vcombine.low %v803_v30, %v807_v31  ;;  %v850_v14 = vld [vmem:[%s15011_s5 + $0x640] sm:$0xff] }
 0x15c   : > { %3095 = vmatpush1.bf16.msra.mxu0 %v12376_v36  ;;  %3259 = vmatpush1.bf16.msra.mxu1 %v12378_v37  ;;  %v12441_v36 = vcombine.high %v802_v28, %v806_v29  ;;  %v811_v37 = vld [vmem:[%s15011_s5 + $0x508] sm:$0xff]  ;;  %v858_v23 = vld [vmem:[%s15011_s5 + $0x680] sm:$0xff] }
 0x15d   : > { %3096 = vmatprep.subr.bf16.mxu0 %v12385_v38  ;;  %3260 = vmatprep.subr.bf16.mxu1 %v12387_v39  ;;  %v815_v38 = vld [vmem:[%s15011_s5 + $0x528] sm:$0xff]  ;;  %v12443_v39 = vcombine.high %v803_v30, %v807_v31  ;;  %v866_v31 = vld [vmem:[%s15011_s5 + $0x6c0] sm:$0xff] }
 0x15e   : > { %v12450_v49 = vcombine.low %v811_v37, %v815_v38 }
 0x160   : > { %3097 = vmatpush1.bf16.msra.mxu0 %v12384_v44  ;;  %3261 = vmatpush1.bf16.msra.mxu1 %v12386_v45  ;;  %v12449_v44 = vcombine.high %v810_v33, %v814_v34  ;;  %v819_v45 = vld [vmem:[%s15011_s5 + $0x548] sm:$0xff] }
 0x161   : > { %3098 = vmatprep.subr.bf16.mxu0 %v12393_v46  ;;  %3262 = vmatprep.subr.bf16.mxu1 %v12395_v47  ;;  %v823_v46 = vld [vmem:[%s15011_s5 + $0x568] sm:$0xff]  ;;  %v12451_v47 = vcombine.high %v811_v37, %v815_v38 }
 0x162   : > { %v12458_v59 = vcombine.low %v819_v45, %v823_v46  ;;  %v867_v33 = vld [vmem:[%s15011_s5 + $0x6c8] sm:$0xff] }
 0x164   : > { %3099 = vmatpush1.bf16.msra.mxu0 %v12392_v52  ;;  %3263 = vmatpush1.bf16.msra.mxu1 %v12394_v54  ;;  %v830_v52 = vld [vmem:[%s15011_s5 + $0x5a0] sm:$0xff]  ;;  %v827_v54 = vld [vmem:[%s15011_s5 + $0x588] sm:$0xff] }
 0x165   : > { %3100 = vmatprep.subr.bf16.mxu0 %v12401_v55  ;;  %3264 = vmatprep.subr.bf16.mxu1 %v12403_v56  ;;  %v12459_v55 = vcombine.high %v819_v45, %v823_v46  ;;  %v831_v56 = vld [vmem:[%s15011_s5 + $0x5a8] sm:$0xff]  ;;  %v12465_v60 = vcombine.high %v826_v51, %v830_v52  ;;  %v12464_v2 = vcombine.low %v826_v51, %v830_v52 }
 0x166   : > { %v12466_v3 = vcombine.low %v827_v54, %v831_v56  ;;  %v887_v51 = vld [vmem:[%s15011_s5 + $0x768] sm:$0xff] }
 0x168   : > { %3101 = vmatpush1.bf16.msra.mxu0 %v12400_v62  ;;  %3265 = vmatpush1.bf16.msra.mxu1 %v12402_v63  ;;  %v838_v62 = vld [vmem:[%s15011_s5 + $0x5e0] sm:$0xff]  ;;  %v835_v63 = vld [vmem:[%s15011_s5 + $0x5c8] sm:$0xff] }
 0x169   : > { %3102 = vmatprep.subr.bf16.mxu0 %v12409_v0  ;;  %3266 = vmatprep.subr.bf16.mxu1 %v12411_v1  ;;  %v12467_v0 = vcombine.high %v827_v54, %v831_v56  ;;  %v839_v1 = vld [vmem:[%s15011_s5 + $0x5e8] sm:$0xff]  ;;  %v12473_v4 = vcombine.high %v834_v61, %v838_v62  ;;  %v12472_v10 = vcombine.low %v834_v61, %v838_v62  ;;  %v890_v56 = vld [vmem:[%s15011_s5 + $0x780] sm:$0xff] }
 0x16a   : > { %v12474_v11 = vcombine.low %v835_v63, %v839_v1  ;;  %v895_v61 = vld [vmem:[%s15011_s5 + $0x7a8] sm:$0xff] }
 0x16c   : > { %3103 = vmatpush1.bf16.msra.mxu0 %v12408_v6  ;;  %3267 = vmatpush1.bf16.msra.mxu1 %v12410_v7  ;;  %v846_v6 = vld [vmem:[%s15011_s5 + $0x620] sm:$0xff]  ;;  %v843_v7 = vld [vmem:[%s15011_s5 + $0x608] sm:$0xff] }
 0x16d   : > { %3113 = vmatprep.subr.bf16.mxu0 %v12417_v8  ;;  %3277 = vmatprep.subr.bf16.mxu1 %v12419_v9  ;;  %v12475_v8 = vcombine.high %v835_v63, %v839_v1  ;;  %v847_v9 = vld [vmem:[%s15011_s5 + $0x628] sm:$0xff]  ;;  %v12481_v13 = vcombine.high %v842_v5, %v846_v6  ;;  %v898_v1 = vld [vmem:[%s15011_s5 + $0x7c0] sm:$0xff] }
 0x16e   : > { %v12483_v18 = vcombine.high %v843_v7, %v847_v9 }
 0x16f   : > { %3105 = vmatmul.mubr.bf16.vlgmr.msra.gmra.mrb[0].mxu0 %v15124_v12  ;;  %3269 = vmatmul.mubr.bf16.vlgmr.msra.gmra.mrb[0].mxu1 %v15124_v12 }
 0x170   : > { %3114 = vmatpush1.bf16.msra.mxu0 %v12416_v16  ;;  %3278 = vmatpush1.bf16.msra.mxu1 %v12418_v19  ;;  %v854_v16 = vld [vmem:[%s15011_s5 + $0x660] sm:$0xff]  ;;  %v855_v19 = vld [vmem:[%s15011_s5 + $0x668] sm:$0xff] }
 0x171   : > { %3115 = vmatprep.subr.bf16.mxu0 %v12425_v20  ;;  %3279 = vmatprep.subr.bf16.mxu1 %v12427_v21  ;;  %v12480_v20 = vcombine.low %v842_v5, %v846_v6  ;;  %v12482_v21 = vcombine.low %v843_v7, %v847_v9  ;;  %v12489_v22 = vcombine.high %v850_v14, %v854_v16  ;;  %v903_v5 = vld [vmem:[%s15011_s5 + $0x7e8] sm:$0xff]  ;;  %v906_v9 = vld [vmem:[%s15011_s5 + $0x800] sm:$0xff] }
 0x172   : > { %3145 = vmatprep.mubr.bf16.mxu0 %v15135_v53  ;;  %3309 = vmatprep.mubr.bf16.mxu1 %v15135_v53  ;;  %v12488_v28 = vcombine.low %v850_v14, %v854_v16  ;;  %v12490_v29 = vcombine.low %v851_v17, %v855_v19  ;;  %v911_v14 = vld [vmem:[%s15011_s5 + $0x828] sm:$0xff] }
 0x174   : > { %3116 = vmatpush1.bf16.msra.mxu0 %v12424_v24  ;;  %3280 = vmatpush1.bf16.msra.mxu1 %v12426_v25  ;;  %v862_v24 = vld [vmem:[%s15011_s5 + $0x6a0] sm:$0xff]  ;;  %v859_v25 = vld [vmem:[%s15011_s5 + $0x688] sm:$0xff] }
 0x175   : > { %3117 = vmatprep.subr.bf16.mxu0 %v12433_v26  ;;  %3281 = vmatprep.subr.bf16.mxu1 %v12435_v27  ;;  %v12491_v26 = vcombine.high %v851_v17, %v855_v19  ;;  %v863_v27 = vld [vmem:[%s15011_s5 + $0x6a8] sm:$0xff]  ;;  %v12497_v30 = vcombine.high %v858_v23, %v862_v24  ;;  %v914_v19 = vld [vmem:[%s15011_s5 + $0x840] sm:$0xff] }
 0x176   : > { %v12499_v34 = vcombine.high %v859_v25, %v863_v27  ;;  %v12498_v37 = vcombine.low %v859_v25, %v863_v27  ;;  %v15208_v25 = vld [vmem:[%s15003_s0 + $0x10] sm:$0xff] }
 0x178   : > { %3118 = vmatpush1.bf16.msra.mxu0 %v12432_v32  ;;  %3282 = vmatpush1.bf16.msra.mxu1 %v12434_v35  ;;  %v870_v32 = vld [vmem:[%s15011_s5 + $0x6e0] sm:$0xff]  ;;  %v871_v35 = vld [vmem:[%s15011_s5 + $0x6e8] sm:$0xff] }
 0x179   : > { %3119 = vmatprep.subr.bf16.mxu0 %v12441_v36  ;;  %3283 = vmatprep.subr.bf16.mxu1 %v12443_v39  ;;  %v12496_v36 = vcombine.low %v858_v23, %v862_v24  ;;  %v12505_v38 = vcombine.high %v866_v31, %v870_v32  ;;  %v874_v39 = vld [vmem:[%s15011_s5 + $0x700] sm:$0xff]  ;;  %v12507_v42 = vcombine.high %v867_v33, %v871_v35  ;;  %v919_v24 = vld [vmem:[%s15011_s5 + $0x868] sm:$0xff] }
 0x17a   : > { %v12506_v45 = vcombine.low %v867_v33, %v871_v35  ;;  %v15204_v23 = vcombine.low %v15129_v15, %v15129_v15  ;;  %v15214_v15 = vcombine.high %v15208_v25, %v15208_v25  ;;  %v927_v33 = vld [vmem:[%s15011_s5 + $0x8a8] sm:$0xff] }
 0x17c   : > { %3120 = vmatpush1.bf16.msra.mxu0 %v12440_v40  ;;  %3284 = vmatpush1.bf16.msra.mxu1 %v12442_v43  ;;  %v878_v40 = vld [vmem:[%s15011_s5 + $0x720] sm:$0xff]  ;;  %v879_v43 = vld [vmem:[%s15011_s5 + $0x728] sm:$0xff] }
 0x17d   : > { %3121 = vmatprep.subr.bf16.mxu0 %v12449_v44  ;;  %3285 = vmatprep.subr.bf16.mxu1 %v12451_v47  ;;  %v12504_v44 = vcombine.low %v866_v31, %v870_v32  ;;  %v12513_v46 = vcombine.high %v874_v39, %v878_v40  ;;  %v882_v47 = vld [vmem:[%s15011_s5 + $0x740] sm:$0xff]  ;;  %v12512_v52 = vcombine.low %v874_v39, %v878_v40  ;;  %v923_v32 = vld [vmem:[%s15011_s5 + $0x888] sm:$0xff] }
 0x17e   : > { %v12514_v54 = vcombine.low %v875_v41, %v879_v43  ;;  %v926_v31 = vld [vmem:[%s15011_s5 + $0x8a0] sm:$0xff]  ;;  %v931_v40 = vld [vmem:[%s15011_s5 + $0x8c8] sm:$0xff] }
 0x17f   : > { %v934_v39 = vld [vmem:[%s15011_s5 + $0x8e0] sm:$0xff] }
 0x180   : > { %3122 = vmatpush1.bf16.msra.mxu0 %v12448_v48  ;;  %3286 = vmatpush1.bf16.msra.mxu1 %v12450_v49  ;;  %v886_v48 = vld [vmem:[%s15011_s5 + $0x760] sm:$0xff]  ;;  %v883_v49 = vld [vmem:[%s15011_s5 + $0x748] sm:$0xff] }
 0x181   : > { %3123 = vmatprep.subr.bf16.mxu0 %v12457_v50  ;;  %3287 = vmatprep.subr.bf16.mxu1 %v12459_v55  ;;  %v12515_v50 = vcombine.high %v875_v41, %v879_v43  ;;  %v12521_v55 = vcombine.high %v882_v47, %v886_v48  ;;  %v12520_v62 = vcombine.low %v882_v47, %v886_v48  ;;  %v935_v41 = vld [vmem:[%s15011_s5 + $0x8e8] sm:$0xff]  ;;  %v942_v47 = vld [vmem:[%s15011_s5 + $0x920] sm:$0xff] }
 0x182   : > { %v12522_v63 = vcombine.low %v883_v49, %v887_v51  ;;  %v12562_v43 = vcombine.low %v923_v32, %v927_v33  ;;  %v939_v48 = vld [vmem:[%s15011_s5 + $0x908] sm:$0xff] }
 0x184   : > { %3124 = vmatpush1.bf16.msra.mxu0 %v12456_v58  ;;  %3288 = vmatpush1.bf16.msra.mxu1 %v12458_v59  ;;  %v894_v58 = vld [vmem:[%s15011_s5 + $0x7a0] sm:$0xff]  ;;  %v891_v59 = vld [vmem:[%s15011_s5 + $0x788] sm:$0xff] }
 0x185   : > { %3125 = vmatprep.subr.bf16.mxu0 %v12465_v60  ;;  %3289 = vmatprep.subr.bf16.mxu1 %v12467_v0  ;;  %v12523_v60 = vcombine.high %v883_v49, %v887_v51  ;;  %v12529_v0 = vcombine.high %v890_v56, %v894_v58  ;;  %v12528_v6 = vcombine.low %v890_v56, %v894_v58  ;;  %v943_v49 = vld [vmem:[%s15011_s5 + $0x928] sm:$0xff]  ;;  %v950_v56 = vld [vmem:[%s15011_s5 + $0x960] sm:$0xff] }
 0x186   : > { %v12530_v7 = vcombine.low %v891_v59, %v895_v61  ;;  %v12570_v51 = vcombine.low %v931_v40, %v935_v41  ;;  %v947_v58 = vld [vmem:[%s15011_s5 + $0x948] sm:$0xff] }
 0x188   : > { %3126 = vmatpush1.bf16.msra.mxu0 %v12464_v2  ;;  %3290 = vmatpush1.bf16.msra.mxu1 %v12466_v3  ;;  %v902_v2 = vld [vmem:[%s15011_s5 + $0x7e0] sm:$0xff]  ;;  %v899_v3 = vld [vmem:[%s15011_s5 + $0x7c8] sm:$0xff] }
 0x189   : > { %3127 = vmatprep.subr.bf16.mxu0 %v12473_v4  ;;  %3291 = vmatprep.subr.bf16.mxu1 %v12475_v8  ;;  %v12531_v4 = vcombine.high %v891_v59, %v895_v61  ;;  %v12537_v8 = vcombine.high %v898_v1, %v902_v2  ;;  %v12536_v16 = vcombine.low %v898_v1, %v902_v2  ;;  %v951_v59 = vld [vmem:[%s15011_s5 + $0x968] sm:$0xff]  ;;  %v958_v1 = vld [vmem:[%s15011_s5 + $0x9a0] sm:$0xff] }
 0x18a   : > { %v12538_v17 = vcombine.low %v899_v3, %v903_v5  ;;  %v12578_v61 = vcombine.low %v939_v48, %v943_v49  ;;  %v955_v2 = vld [vmem:[%s15011_s5 + $0x988] sm:$0xff] }
 0x18c   : > { %3128 = vmatpush1.bf16.msra.mxu0 %v12472_v10  ;;  %3292 = vmatpush1.bf16.msra.mxu1 %v12474_v11  ;;  %v910_v10 = vld [vmem:[%s15011_s5 + $0x820] sm:$0xff]  ;;  %v907_v11 = vld [vmem:[%s15011_s5 + $0x808] sm:$0xff] }
 0x18d   : > { %3129 = vmatprep.subr.bf16.mxu0 %v12481_v13  ;;  %3293 = vmatprep.subr.bf16.mxu1 %v12483_v18  ;;  %v12539_v13 = vcombine.high %v899_v3, %v903_v5  ;;  %v12545_v18 = vcombine.high %v906_v9, %v910_v10  ;;  %v12546_v27 = vcombine.low %v907_v11, %v911_v14  ;;  %v959_v3 = vld [vmem:[%s15011_s5 + $0x9a8] sm:$0xff] }
 0x18e   : > { %v12586_v5 = vcombine.low %v947_v58, %v951_v59 }
 0x190   : > { %3130 = vmatpush1.bf16.msra.mxu0 %v12480_v20  ;;  %3294 = vmatpush1.bf16.msra.mxu1 %v12482_v21  ;;  %v918_v20 = vld [vmem:[%s15011_s5 + $0x860] sm:$0xff]  ;;  %v12547_v21 = vcombine.high %v907_v11, %v911_v14  ;;  %v967_v11 = vld [vmem:[%s15011_s5 + $0x9e8] sm:$0xff]  ;;  %v12594_v14 = vcombine.low %v955_v2, %v959_v3 }
 0x191   : > { %3131 = vmatprep.subr.bf16.mxu0 %v12489_v22  ;;  %3295 = vmatprep.subr.bf16.mxu1 %v12491_v26  ;;  %v915_v22 = vld [vmem:[%s15011_s5 + $0x848] sm:$0xff]  ;;  %v12544_v26 = vcombine.low %v906_v9, %v910_v10  ;;  %v966_v9 = vld [vmem:[%s15011_s5 + $0x9e0] sm:$0xff] }
 0x192   : > { %v12554_v35 = vcombine.low %v915_v22, %v919_v24  ;;  %v963_v10 = vld [vmem:[%s15011_s5 + $0x9c8] sm:$0xff] }
 0x194   : > { %3132 = vmatpush1.bf16.msra.mxu0 %v12488_v28  ;;  %3296 = vmatpush1.bf16.msra.mxu1 %v12490_v29  ;;  %v12553_v28 = vcombine.high %v914_v19, %v918_v20  ;;  %v12555_v29 = vcombine.high %v915_v22, %v919_v24  ;;  %v12602_v24 = vcombine.low %v963_v10, %v967_v11 }
 0x195   : > { %3133 = vmatprep.subr.bf16.mxu0 %v12497_v30  ;;  %3297 = vmatprep.subr.bf16.mxu1 %v12499_v34  ;;  %v922_v30 = vld [vmem:[%s15011_s5 + $0x880] sm:$0xff]  ;;  %v12552_v34 = vcombine.low %v914_v19, %v918_v20  ;;  %v971_v20 = vld [vmem:[%s15011_s5 + $0xa08] sm:$0xff] }
 0x196   : > { %v974_v19 = vld [vmem:[%s15011_s5 + $0xa20] sm:$0xff] }
 0x198   : > { %3134 = vmatpush1.bf16.msra.mxu0 %v12496_v36  ;;  %3298 = vmatpush1.bf16.msra.mxu1 %v12498_v37  ;;  %v12561_v36 = vcombine.high %v922_v30, %v926_v31  ;;  %v12563_v37 = vcombine.high %v923_v32, %v927_v33 }
 0x199   : > { %3135 = vmatprep.subr.bf16.mxu0 %v12505_v38  ;;  %3299 = vmatprep.subr.bf16.mxu1 %v12507_v42  ;;  %v930_v38 = vld [vmem:[%s15011_s5 + $0x8c0] sm:$0xff]  ;;  %v12560_v42 = vcombine.low %v922_v30, %v926_v31  ;;  %v979_v30 = vld [vmem:[%s15011_s5 + $0xa48] sm:$0xff] }
 0x19a   : > { %v983_v31 = vld [vmem:[%s15011_s5 + $0xa68] sm:$0xff] }
 0x19c   : > { %3136 = vmatpush1.bf16.msra.mxu0 %v12504_v44  ;;  %3300 = vmatpush1.bf16.msra.mxu1 %v12506_v45  ;;  %v12569_v44 = vcombine.high %v930_v38, %v934_v39  ;;  %v12571_v45 = vcombine.high %v931_v40, %v935_v41  ;;  %v12618_v41 = vcombine.low %v979_v30, %v983_v31 }
 0x19d   : > { %3137 = vmatprep.subr.bf16.mxu0 %v12513_v46  ;;  %3301 = vmatprep.subr.bf16.mxu1 %v12515_v50  ;;  %v938_v46 = vld [vmem:[%s15011_s5 + $0x900] sm:$0xff]  ;;  %v12568_v50 = vcombine.low %v930_v38, %v934_v39  ;;  %v987_v38 = vld [vmem:[%s15011_s5 + $0xa88] sm:$0xff] }
 0x19e   : > { %v991_v39 = vld [vmem:[%s15011_s5 + $0xaa8] sm:$0xff] }
 0x1a0   : > { %3138 = vmatpush1.bf16.msra.mxu0 %v12512_v52  ;;  %3302 = vmatpush1.bf16.msra.mxu1 %v12514_v54  ;;  %v12577_v52 = vcombine.high %v938_v46, %v942_v47  ;;  %v12579_v54 = vcombine.high %v939_v48, %v943_v49  ;;  %v12626_v49 = vcombine.low %v987_v38, %v991_v39 }
 0x1a1   : > { %3139 = vmatprep.subr.bf16.mxu0 %v12521_v55  ;;  %3303 = vmatprep.subr.bf16.mxu1 %v12523_v60  ;;  %v946_v55 = vld [vmem:[%s15011_s5 + $0x940] sm:$0xff]  ;;  %v12576_v60 = vcombine.low %v938_v46, %v942_v47  ;;  %v995_v46 = vld [vmem:[%s15011_s5 + $0xac8] sm:$0xff] }
 0x1a2   : > { %v999_v47 = vld [vmem:[%s15011_s5 + $0xae8] sm:$0xff] }
 0x1a4   : > { %3140 = vmatpush1.bf16.msra.mxu0 %v12520_v62  ;;  %3304 = vmatpush1.bf16.msra.mxu1 %v12522_v63  ;;  %v12585_v62 = vcombine.high %v946_v55, %v950_v56  ;;  %v12587_v63 = vcombine.high %v947_v58, %v951_v59  ;;  %v12634_v59 = vcombine.low %v995_v46, %v999_v47 }
 0x1a5   : > { %3141 = vmatprep.subr.bf16.mxu0 %v12529_v0  ;;  %3305 = vmatprep.subr.bf16.mxu1 %v12531_v4  ;;  %v954_v0 = vld [vmem:[%s15011_s5 + $0x980] sm:$0xff]  ;;  %v12584_v4 = vcombine.low %v946_v55, %v950_v56  ;;  %v1003_v55 = vld [vmem:[%s15011_s5 + $0xb08] sm:$0xff] }
 0x1a6   : > { %v1007_v56 = vld [vmem:[%s15011_s5 + $0xb28] sm:$0xff] }
 0x1a8   : > { %3142 = vmatpush1.bf16.msra.mxu0 %v12528_v6  ;;  %3306 = vmatpush1.bf16.msra.mxu1 %v12530_v7  ;;  %v12593_v6 = vcombine.high %v954_v0, %v958_v1  ;;  %v12595_v7 = vcombine.high %v955_v2, %v959_v3  ;;  %v12642_v3 = vcombine.low %v1003_v55, %v1007_v56 }
 0x1a9   : > { %3143 = vmatprep.subr.bf16.mxu0 %v12537_v8  ;;  %3307 = vmatprep.subr.bf16.mxu1 %v12539_v13  ;;  %v962_v8 = vld [vmem:[%s15011_s5 + $0x9c0] sm:$0xff]  ;;  %v12592_v13 = vcombine.low %v954_v0, %v958_v1  ;;  %v1011_v0 = vld [vmem:[%s15011_s5 + $0xb48] sm:$0xff] }
 0x1aa   : > { %v12600_v22 = vcombine.low %v962_v8, %v966_v9  ;;  %v1015_v1 = vld [vmem:[%s15011_s5 + $0xb68] sm:$0xff] }
 0x1ac   : > { %3144 = vmatpush1.bf16.msra.mxu0 %v12536_v16  ;;  %3308 = vmatpush1.bf16.msra.mxu1 %v12538_v17  ;;  %v12601_v16 = vcombine.high %v962_v8, %v966_v9  ;;  %v12603_v17 = vcombine.high %v963_v10, %v967_v11  ;;  %v1019_v8 = vld [vmem:[%s15011_s5 + $0xb88] sm:$0xff]  ;;  %v12650_v11 = vcombine.low %v1011_v0, %v1015_v1 }
 0x1ad   : > { %3154 = vmatprep.subr.bf16.mxu0 %v12545_v18  ;;  %3318 = vmatprep.subr.bf16.mxu1 %v12547_v21  ;;  %v970_v18 = vld [vmem:[%s15011_s5 + $0xa00] sm:$0xff]  ;;  %v975_v21 = vld [vmem:[%s15011_s5 + $0xa28] sm:$0xff] }
 0x1ae   : > { %v12608_v32 = vcombine.low %v970_v18, %v974_v19  ;;  %v12610_v33 = vcombine.low %v971_v20, %v975_v21  ;;  %v1023_v9 = vld [vmem:[%s15011_s5 + $0xba8] sm:$0xff] }
 0x1af   : > { %3146 = vmatmul.mubr.bf16.vlgmr.msra.gmra.mrb[0].mxu0 %v15204_v23  ;;  %3310 = vmatmul.mubr.bf16.vlgmr.msra.gmra.mrb[0].mxu1 %v15204_v23 }
 0x1b0   : > { %3155 = vmatpush1.bf16.msra.mxu0 %v12544_v26  ;;  %3319 = vmatpush1.bf16.msra.mxu1 %v12546_v27  ;;  %v12609_v26 = vcombine.high %v970_v18, %v974_v19  ;;  %v12611_v27 = vcombine.high %v971_v20, %v975_v21  ;;  %v1027_v18 = vld [vmem:[%s15011_s5 + $0xbc8] sm:$0xff]  ;;  %v12658_v21 = vcombine.low %v1019_v8, %v1023_v9 }
 0x1b1   : > { %3156 = vmatprep.subr.bf16.mxu0 %v12553_v28  ;;  %3320 = vmatprep.subr.bf16.mxu1 %v12555_v29  ;;  %v978_v28 = vld [vmem:[%s15011_s5 + $0xa40] sm:$0xff]  ;;  %v1031_v19 = vld [vmem:[%s15011_s5 + $0xbe8] sm:$0xff] }
 0x1b2   : > { %3186 = vmatprep.mubr.bf16.mxu0 %v15214_v15  ;;  %3350 = vmatprep.mubr.bf16.mxu1 %v15214_v15  ;;  %v982_v29 = vld [vmem:[%s15011_s5 + $0xa60] sm:$0xff] }
 0x1b3   : > { %v12616_v40 = vcombine.low %v978_v28, %v982_v29 }
 0x1b4   : > { %3157 = vmatpush1.bf16.msra.mxu0 %v12552_v34  ;;  %3321 = vmatpush1.bf16.msra.mxu1 %v12554_v35  ;;  %v12617_v34 = vcombine.high %v978_v28, %v982_v29  ;;  %v12619_v35 = vcombine.high %v979_v30, %v983_v31  ;;  %v1035_v28 = vld [vmem:[%s15011_s5 + $0xc08] sm:$0xff]  ;;  %v12666_v31 = vcombine.low %v1027_v18, %v1031_v19 }
 0x1b5   : > { %3158 = vmatprep.subr.bf16.mxu0 %v12561_v36  ;;  %3322 = vmatprep.subr.bf16.mxu1 %v12563_v37  ;;  %v986_v36 = vld [vmem:[%s15011_s5 + $0xa80] sm:$0xff]  ;;  %v1039_v29 = vld [vmem:[%s15011_s5 + $0xc28] sm:$0xff] }
 0x1b6   : > { %v990_v37 = vld [vmem:[%s15011_s5 + $0xaa0] sm:$0xff] }
 0x1b7   : > { %v12624_v48 = vcombine.low %v986_v36, %v990_v37 }
 0x1b8   : > { %3159 = vmatpush1.bf16.msra.mxu0 %v12560_v42  ;;  %3323 = vmatpush1.bf16.msra.mxu1 %v12562_v43  ;;  %v12625_v42 = vcombine.high %v986_v36, %v990_v37  ;;  %v12627_v43 = vcombine.high %v987_v38, %v991_v39  ;;  %v656_v36 = vld [vmem:[%s15011_s5 + $0x30] sm:$0xff]  ;;  %v653_v38 = vld [vmem:[%s15011_s5 + $0x18] sm:$0xff] }
 0x1b9   : > { %3160 = vmatprep.subr.bf16.mxu0 %v12569_v44  ;;  %3324 = vmatprep.subr.bf16.mxu1 %v12571_v45  ;;  %v994_v44 = vld [vmem:[%s15011_s5 + $0xac0] sm:$0xff]  ;;  %v657_v39 = vld [vmem:[%s15011_s5 + $0x38] sm:$0xff] }
 0x1ba   : > { %v998_v45 = vld [vmem:[%s15011_s5 + $0xae0] sm:$0xff] }
 0x1bb   : > { %v12632_v58 = vcombine.low %v994_v44, %v998_v45 }
 0x1bc   : > { %3161 = vmatpush1.bf16.msra.mxu0 %v12568_v50  ;;  %3325 = vmatpush1.bf16.msra.mxu1 %v12570_v51  ;;  %v12633_v50 = vcombine.high %v994_v44, %v998_v45  ;;  %v12635_v51 = vcombine.high %v995_v46, %v999_v47  ;;  %v664_v44 = vld [vmem:[%s15011_s5 + $0x70] sm:$0xff]  ;;  %v14142_v45 = vld [vmem:[%s15003_s0 + $0x18] ss:$0 sps:$4 sm:$0xff]  }
 0x1bd   : > { %3162 = vmatprep.subr.bf16.mxu0 %v12577_v52  ;;  %3326 = vmatprep.subr.bf16.mxu1 %v12579_v54  ;;  %v1002_v52 = vld [vmem:[%s15011_s5 + $0xb00] sm:$0xff]  ;;  %v661_v46 = vld [vmem:[%s15011_s5 + $0x58] sm:$0xff] }
 0x1be   : > { %v1006_v54 = vld [vmem:[%s15011_s5 + $0xb20] sm:$0xff]  ;;  %v665_v47 = vld [vmem:[%s15011_s5 + $0x78] sm:$0xff] }
 0x1bf   : > { %v12640_v2 = vcombine.low %v1002_v52, %v1006_v54 }
 0x1c0   : > { %3163 = vmatpush1.bf16.msra.mxu0 %v12576_v60  ;;  %3327 = vmatpush1.bf16.msra.mxu1 %v12578_v61  ;;  %v12641_v60 = vcombine.high %v1002_v52, %v1006_v54  ;;  %v12643_v61 = vcombine.high %v1003_v55, %v1007_v56  ;;  %v668_v52 = vld [vmem:[%s15011_s5 + $0x90] sm:$0xff]  ;;  %v669_v55 = vld [vmem:[%s15011_s5 + $0x98] sm:$0xff] }
 0x1c1   : > { %3164 = vmatprep.subr.bf16.mxu0 %v12585_v62  ;;  %3328 = vmatprep.subr.bf16.mxu1 %v12587_v63  ;;  %v1010_v62 = vld [vmem:[%s15011_s5 + $0xb40] sm:$0xff]  ;;  %v672_v54 = vld [vmem:[%s15011_s5 + $0xb0] sm:$0xff]  ;;  %v673_v56 = vld [vmem:[%s15011_s5 + $0xb8] sm:$0xff] }
 0x1c2   : > { %v1014_v63 = vld [vmem:[%s15011_s5 + $0xb60] sm:$0xff] }
 0x1c3   : > { %v12648_v10 = vcombine.low %v1010_v62, %v1014_v63 }
 0x1c4   : > { %3165 = vmatpush1.bf16.msra.mxu0 %v12584_v4  ;;  %3329 = vmatpush1.bf16.msra.mxu1 %v12586_v5  ;;  %v12649_v4 = vcombine.high %v1010_v62, %v1014_v63  ;;  %v12651_v5 = vcombine.high %v1011_v0, %v1015_v1  ;;  %v676_v62 = vld [vmem:[%s15011_s5 + $0xd0] sm:$0xff]  ;;  %v677_v0 = vld [vmem:[%s15011_s5 + $0xd8] sm:$0xff] }
 0x1c5   : > { %3166 = vmatprep.subr.bf16.mxu0 %v12593_v6  ;;  %3330 = vmatprep.subr.bf16.mxu1 %v12595_v7  ;;  %v1018_v6 = vld [vmem:[%s15011_s5 + $0xb80] sm:$0xff]  ;;  %v680_v63 = vld [vmem:[%s15011_s5 + $0xf0] sm:$0xff]  ;;  %v681_v1 = vld [vmem:[%s15011_s5 + $0xf8] sm:$0xff] }
 0x1c6   : > { %v1022_v7 = vld [vmem:[%s15011_s5 + $0xba0] sm:$0xff] }
 0x1c7   : > { %v12656_v20 = vcombine.low %v1018_v6, %v1022_v7 }
 0x1c8   : > { %3167 = vmatpush1.bf16.msra.mxu0 %v12592_v13  ;;  %3331 = vmatpush1.bf16.msra.mxu1 %v12594_v14  ;;  %v12657_v13 = vcombine.high %v1018_v6, %v1022_v7  ;;  %v12659_v14 = vcombine.high %v1019_v8, %v1023_v9  ;;  %v684_v6 = vld [vmem:[%s15011_s5 + $0x110] sm:$0xff]  ;;  %v685_v8 = vld [vmem:[%s15011_s5 + $0x118] sm:$0xff] }
 0x1c9   : > { %3168 = vmatprep.subr.bf16.mxu0 %v12601_v16  ;;  %3332 = vmatprep.subr.bf16.mxu1 %v12603_v17  ;;  %v1026_v16 = vld [vmem:[%s15011_s5 + $0xbc0] sm:$0xff]  ;;  %v688_v7 = vld [vmem:[%s15011_s5 + $0x130] sm:$0xff]  ;;  %v689_v9 = vld [vmem:[%s15011_s5 + $0x138] sm:$0xff] }
 0x1ca   : > { %v1030_v17 = vld [vmem:[%s15011_s5 + $0xbe0] sm:$0xff] }
 0x1cb   : > { %v12664_v30 = vcombine.low %v1026_v16, %v1030_v17 }
 0x1cc   : > { %3169 = vmatpush1.bf16.msra.mxu0 %v12600_v22  ;;  %3333 = vmatpush1.bf16.msra.mxu1 %v12602_v24  ;;  %v12665_v22 = vcombine.high %v1026_v16, %v1030_v17  ;;  %v12667_v24 = vcombine.high %v1027_v18, %v1031_v19  ;;  %v696_v16 = vld [vmem:[%s15011_s5 + $0x170] sm:$0xff]  ;;  %v693_v17 = vld [vmem:[%s15011_s5 + $0x158] sm:$0xff]  ;;  %v12324_v19 = vcombine.low %v684_v6, %v688_v7 }
 0x1cd   : > { %3170 = vmatprep.subr.bf16.mxu0 %v12609_v26  ;;  %3334 = vmatprep.subr.bf16.mxu1 %v12611_v27  ;;  %v1034_v26 = vld [vmem:[%s15011_s5 + $0xc00] sm:$0xff]  ;;  %v697_v18 = vld [vmem:[%s15011_s5 + $0x178] sm:$0xff] }
 0x1ce   : > { %v1038_v27 = vld [vmem:[%s15011_s5 + $0xc20] sm:$0xff] }
 0x1cf   : > { %v12672_v37 = vcombine.low %v1034_v26, %v1038_v27 }
 0x1d0   : > { %3171 = vmatpush1.bf16.msra.mxu0 %v12608_v32  ;;  %3335 = vmatpush1.bf16.msra.mxu1 %v12610_v33  ;;  %v12673_v32 = vcombine.high %v1034_v26, %v1038_v27  ;;  %v12675_v33 = vcombine.high %v1035_v28, %v1039_v29  ;;  %v704_v26 = vld [vmem:[%s15011_s5 + $0x1b0] sm:$0xff]  ;;  %v701_v27 = vld [vmem:[%s15011_s5 + $0x198] sm:$0xff] }
 0x1d1   : > { %3172 = vmatprep.subr.bf16.mxu0 %v12617_v34  ;;  %3336 = vmatprep.subr.bf16.mxu1 %v12619_v35  ;;  %v15280_v34 = vcombine.low %v15208_v25, %v15208_v25  ;;  %v652_v35 = vld [vmem:[%s15011_s5 + $0x10] sm:$0xff]  ;;  %v12295_v25 = vcombine.high %v653_v38, %v657_v39 }
 0x1d4   : > { %3173 = vmatpush1.bf16.msra.mxu0 %v12616_v40  ;;  %3337 = vmatpush1.bf16.msra.mxu1 %v12618_v41  ;;  %v12674_v40 = vcombine.low %v1035_v28, %v1039_v29  ;;  %v12293_v41 = vcombine.high %v652_v35, %v656_v36  ;;  %v705_v28 = vld [vmem:[%s15011_s5 + $0x1b8] sm:$0xff] }
 0x1d5   : > { %3174 = vmatprep.subr.bf16.mxu0 %v12625_v42  ;;  %3338 = vmatprep.subr.bf16.mxu1 %v12627_v43  ;;  %v14577_v42 = vmov 0   ;;  %v660_v43 = vld [vmem:[%s15011_s5 + $0x50] sm:$0xff] }
 0x1d8   : > { %3175 = vmatpush1.bf16.msra.mxu0 %v12624_v48  ;;  %3339 = vmatpush1.bf16.msra.mxu1 %v12626_v49  ;;  %v12292_v48 = vcombine.low %v652_v35, %v656_v36  ;;  %v12294_v49 = vcombine.low %v653_v38, %v657_v39  ;;  %v712_v35 = vld [vmem:[%s15011_s5 + $0x1f0] sm:$0xff]  ;;  %v709_v36 = vld [vmem:[%s15011_s5 + $0x1d8] sm:$0xff]  ;;  %v12342_v39 = vcombine.low %v701_v27, %v705_v28 }
 0x1d9   : > { %3176 = vmatprep.subr.bf16.mxu0 %v12633_v50  ;;  %3340 = vmatprep.subr.bf16.mxu1 %v12635_v51  ;;  %v12301_v50 = vcombine.high %v660_v43, %v664_v44  ;;  %v12303_v51 = vcombine.high %v661_v46, %v665_v47 }
 0x1dc   : > { %3177 = vmatpush1.bf16.msra.mxu0 %v12632_v58  ;;  %3341 = vmatpush1.bf16.msra.mxu1 %v12634_v59  ;;  %v12300_v58 = vcombine.low %v660_v43, %v664_v44  ;;  %v12302_v59 = vcombine.low %v661_v46, %v665_v47  ;;  %v720_v43 = vld [vmem:[%s15011_s5 + $0x230] sm:$0xff]  ;;  %v717_v44 = vld [vmem:[%s15011_s5 + $0x218] sm:$0xff] }
 0x1dd   : > { %3178 = vmatprep.subr.bf16.mxu0 %v12641_v60  ;;  %3342 = vmatprep.subr.bf16.mxu1 %v12643_v61  ;;  %v12309_v60 = vcombine.high %v668_v52, %v672_v54  ;;  %v12311_v61 = vcombine.high %v669_v55, %v673_v56 }
 0x1e0   : > { %3179 = vmatpush1.bf16.msra.mxu0 %v12640_v2  ;;  %3343 = vmatpush1.bf16.msra.mxu1 %v12642_v3  ;;  %v12308_v2 = vcombine.low %v668_v52, %v672_v54  ;;  %v12310_v3 = vcombine.low %v669_v55, %v673_v56  ;;  %v725_v52 = vld [vmem:[%s15011_s5 + $0x258] sm:$0xff] }
 0x1e1   : > { %3180 = vmatprep.subr.bf16.mxu0 %v12649_v4  ;;  %3344 = vmatprep.subr.bf16.mxu1 %v12651_v5  ;;  %v12317_v4 = vcombine.high %v676_v62, %v680_v63  ;;  %v12319_v5 = vcombine.high %v677_v0, %v681_v1  ;;  %v729_v54 = vld [vmem:[%s15011_s5 + $0x278] sm:$0xff] }
 0x1e4   : > { %3181 = vmatpush1.bf16.msra.mxu0 %v12648_v10  ;;  %3345 = vmatpush1.bf16.msra.mxu1 %v12650_v11  ;;  %v12316_v10 = vcombine.low %v676_v62, %v680_v63  ;;  %v12325_v11 = vcombine.high %v684_v6, %v688_v7  ;;  %v733_v62 = vld [vmem:[%s15011_s5 + $0x298] sm:$0xff] }
 0x1e5   : > { %3182 = vmatprep.subr.bf16.mxu0 %v12657_v13  ;;  %3346 = vmatprep.subr.bf16.mxu1 %v12659_v14  ;;  %v12327_v13 = vcombine.high %v685_v8, %v689_v9  ;;  %v692_v14 = vld [vmem:[%s15011_s5 + $0x150] sm:$0xff]  ;;  %v737_v63 = vld [vmem:[%s15011_s5 + $0x2b8] sm:$0xff] }
 0x1e6   : > { %v12332_v29 = vcombine.low %v692_v14, %v696_v16  ;;  %v741_v6 = vld [vmem:[%s15011_s5 + $0x2d8] sm:$0xff] }
 0x1e7   : > { %v745_v7 = vld [vmem:[%s15011_s5 + $0x2f8] sm:$0xff] }
 0x1e8   : > { %3183 = vmatpush1.bf16.msra.mxu0 %v12656_v20  ;;  %3347 = vmatpush1.bf16.msra.mxu1 %v12658_v21  ;;  %v12326_v20 = vcombine.low %v685_v8, %v689_v9  ;;  %v12333_v21 = vcombine.high %v692_v14, %v696_v16  ;;  %v12374_v9 = vcombine.low %v733_v62, %v737_v63  ;;  %v749_v14 = vld [vmem:[%s15011_s5 + $0x318] sm:$0xff] }
 0x1e9   : > { %3184 = vmatprep.subr.bf16.mxu0 %v12665_v22  ;;  %3348 = vmatprep.subr.bf16.mxu1 %v12667_v24  ;;  %v12335_v22 = vcombine.high %v693_v17, %v697_v18  ;;  %v700_v24 = vld [vmem:[%s15011_s5 + $0x190] sm:$0xff]  ;;  %v753_v16 = vld [vmem:[%s15011_s5 + $0x338] sm:$0xff] }
 0x1ea   : > { %v12340_v38 = vcombine.low %v700_v24, %v704_v26 }
 0x1ec   : > { %3185 = vmatpush1.bf16.msra.mxu0 %v12664_v30  ;;  %3349 = vmatpush1.bf16.msra.mxu1 %v12666_v31  ;;  %v12334_v30 = vcombine.low %v693_v17, %v697_v18  ;;  %v12341_v31 = vcombine.high %v700_v24, %v704_v26  ;;  %v12382_v18 = vcombine.low %v741_v6, %v745_v7  ;;  %v757_v24 = vld [vmem:[%s15011_s5 + $0x358] sm:$0xff] }
 0x1ed   : > { %3195 = vmatprep.subr.bf16.mxu0 %v12673_v32  ;;  %3359 = vmatprep.subr.bf16.mxu1 %v12675_v33  ;;  %v12343_v32 = vcombine.high %v701_v27, %v705_v28  ;;  %v708_v33 = vld [vmem:[%s15011_s5 + $0x1d0] sm:$0xff]  ;;  %v761_v26 = vld [vmem:[%s15011_s5 + $0x378] sm:$0xff]  ;;  %v12390_v28 = vcombine.low %v749_v14, %v753_v16 }
 0x1ee   : > { %v12348_v46 = vcombine.low %v708_v33, %v712_v35 }
 0x1ef   : > { %3187 = vmatmul.mubr.bf16.vlgmr.msra.gmra.mrb[0].mxu0 %v15280_v34  ;;  %3351 = vmatmul.mubr.bf16.vlgmr.msra.gmra.mrb[0].mxu1 %v15280_v34 }
 0x1f0   : > { %3196 = vmatpush1.bf16.msra.mxu0 %v12672_v37  ;;  %3360 = vmatpush1.bf16.msra.mxu1 %v12674_v40  ;;  %v713_v37 = vld [vmem:[%s15011_s5 + $0x1f8] sm:$0xff]  ;;  %v12349_v40 = vcombine.high %v708_v33, %v712_v35 }
 0x1f1   : > { %3227 = vmatprep.mubr.bf16.mxu0 %v14577_v42  ;;  %3391 = vmatprep.mubr.bf16.mxu1 %v14577_v42  ;;  %v12350_v47 = vcombine.low %v709_v36, %v713_v37  ;;  %v765_v33 = vld [vmem:[%s15011_s5 + $0x398] sm:$0xff] }
 0x1f2   : > { %3400 = vmatprep.subr.bf16.mxu0 %v12293_v41  ;;  %3564 = vmatprep.subr.bf16.mxu1 %v12295_v25  ;;  %v12351_v41 = vcombine.high %v709_v36, %v713_v37  ;;  %v716_v25 = vld [vmem:[%s15011_s5 + $0x210] sm:$0xff]  ;;  %v769_v35 = vld [vmem:[%s15011_s5 + $0x3b8] sm:$0xff]  ;;  %v12398_v37 = vcombine.low %v757_v24, %v761_v26 }
 0x1f3   : > { %v12356_v55 = vcombine.low %v716_v25, %v720_v43 }
 0x1fb   : > { %12680 = vmatmul.mubr.msk.bf16.vlgmr.msra.gmra.mrb[0].mxu0 %vm3068_vm0, %v14142_v45  ;;  %12681 = vmatmul.mubr.msk.bf16.vlgmr.msra.gmra.mrb[0].mxu1 %vm3068_vm0, %v14142_v45  ;;  %v721_v45 = vld [vmem:[%s15011_s5 + $0x238] sm:$0xff] }
 0x1fc   : > { %3401 = vmatpush1.bf16.msra.mxu0 %v12292_v48  ;;  %3565 = vmatpush1.bf16.msra.mxu1 %v12294_v49  ;;  %v12357_v48 = vcombine.high %v716_v25, %v720_v43  ;;  %v12359_v49 = vcombine.high %v717_v44, %v721_v45  ;;  %v12358_v56 = vcombine.low %v717_v44, %v721_v45  ;;  %v773_v25 = vld [vmem:[%s15011_s5 + $0x3d8] sm:$0xff] }
 0x1fd   : > { %3402 = vmatprep.subr.bf16.mxu0 %v12301_v50  ;;  %3566 = vmatprep.subr.bf16.mxu1 %v12303_v51  ;;  %v724_v50 = vld [vmem:[%s15011_s5 + $0x250] sm:$0xff]  ;;  %v777_v43 = vld [vmem:[%s15011_s5 + $0x3f8] sm:$0xff]  ;;  %v12406_v45 = vcombine.low %v765_v33, %v769_v35 }
 0x1fe   : > { %3432 = vmatprep.mubr.bf16.mxu0 %v15078_v57  ;;  %3596 = vmatprep.mubr.bf16.mxu1 %v15078_v57  ;;  %v12318_v57 = vcombine.low %v677_v0, %v681_v1  ;;  %v728_v51 = vld [vmem:[%s15011_s5 + $0x270] sm:$0xff]  ;;  %v12366_v1 = vcombine.low %v725_v52, %v729_v54 }
 0x1ff   : > { %v12364_v0 = vcombine.low %v724_v50, %v728_v51 }
 0x200   : > { %3403 = vmatpush1.bf16.msra.mxu0 %v12300_v58  ;;  %3567 = vmatpush1.bf16.msra.mxu1 %v12302_v59  ;;  %v12365_v58 = vcombine.high %v724_v50, %v728_v51  ;;  %v12367_v59 = vcombine.high %v725_v52, %v729_v54  ;;  %v781_v50 = vld [vmem:[%s15011_s5 + $0x418] sm:$0xff]  ;;  %v12414_v54 = vcombine.low %v773_v25, %v777_v43 }
 0x201   : > { %3404 = vmatprep.subr.bf16.mxu0 %v12309_v60  ;;  %3568 = vmatprep.subr.bf16.mxu1 %v12311_v61  ;;  %v732_v60 = vld [vmem:[%s15011_s5 + $0x290] sm:$0xff]  ;;  %v785_v51 = vld [vmem:[%s15011_s5 + $0x438] sm:$0xff] }
 0x202   : > { %v736_v61 = vld [vmem:[%s15011_s5 + $0x2b0] sm:$0xff] }
 0x203   : > { %v12372_v8 = vcombine.low %v732_v60, %v736_v61 }
 0x204   : > { %3405 = vmatpush1.bf16.msra.mxu0 %v12308_v2  ;;  %3569 = vmatpush1.bf16.msra.mxu1 %v12310_v3  ;;  %v12373_v2 = vcombine.high %v732_v60, %v736_v61  ;;  %v12375_v3 = vcombine.high %v733_v62, %v737_v63  ;;  %v789_v60 = vld [vmem:[%s15011_s5 + $0x458] sm:$0xff]  ;;  %v12422_v63 = vcombine.low %v781_v50, %v785_v51 }
 0x205   : > { %3406 = vmatprep.subr.bf16.mxu0 %v12317_v4  ;;  %3570 = vmatprep.subr.bf16.mxu1 %v12319_v5  ;;  %v740_v4 = vld [vmem:[%s15011_s5 + $0x2d0] sm:$0xff]  ;;  %v793_v61 = vld [vmem:[%s15011_s5 + $0x478] sm:$0xff] }
 0x206   : > { %v744_v5 = vld [vmem:[%s15011_s5 + $0x2f0] sm:$0xff] }
 0x207   : > { %v12380_v17 = vcombine.low %v740_v4, %v744_v5 }
 0x208   : > { %3407 = vmatpush1.bf16.msra.mxu0 %v12316_v10  ;;  %3571 = vmatpush1.bf16.msra.mxu1 %v12318_v57  ;;  %v12381_v10 = vcombine.high %v740_v4, %v744_v5  ;;  %v12383_v57 = vcombine.high %v741_v6, %v745_v7  ;;  %v797_v4 = vld [vmem:[%s15011_s5 + $0x498] sm:$0xff]  ;;  %v12430_v7 = vcombine.low %v789_v60, %v793_v61 }
 0x209   : > { %3408 = vmatprep.subr.bf16.mxu0 %v12325_v11  ;;  %3572 = vmatprep.subr.bf16.mxu1 %v12327_v13  ;;  %v748_v11 = vld [vmem:[%s15011_s5 + $0x310] sm:$0xff]  ;;  %v801_v5 = vld [vmem:[%s15011_s5 + $0x4b8] sm:$0xff] }
 0x20a   : > { %v752_v13 = vld [vmem:[%s15011_s5 + $0x330] sm:$0xff] }
 0x20b   : > { %v12388_v27 = vcombine.low %v748_v11, %v752_v13 }
 0x20c   : > { %3409 = vmatpush1.bf16.msra.mxu0 %v12324_v19  ;;  %3573 = vmatpush1.bf16.msra.mxu1 %v12326_v20  ;;  %v12389_v19 = vcombine.high %v748_v11, %v752_v13  ;;  %v12391_v20 = vcombine.high %v749_v14, %v753_v16  ;;  %v805_v11 = vld [vmem:[%s15011_s5 + $0x4d8] sm:$0xff]  ;;  %v12438_v14 = vcombine.low %v797_v4, %v801_v5 }
 0x20d   : > { %3410 = vmatprep.subr.bf16.mxu0 %v12333_v21  ;;  %3574 = vmatprep.subr.bf16.mxu1 %v12335_v22  ;;  %v756_v21 = vld [vmem:[%s15011_s5 + $0x350] sm:$0xff]  ;;  %v809_v13 = vld [vmem:[%s15011_s5 + $0x4f8] sm:$0xff] }
 0x20e   : > { %v760_v22 = vld [vmem:[%s15011_s5 + $0x370] sm:$0xff] }
 0x20f   : > { %v12396_v36 = vcombine.low %v756_v21, %v760_v22 }
 0x210   : > { %3411 = vmatpush1.bf16.msra.mxu0 %v12332_v29  ;;  %3575 = vmatpush1.bf16.msra.mxu1 %v12334_v30  ;;  %v12397_v29 = vcombine.high %v756_v21, %v760_v22  ;;  %v12399_v30 = vcombine.high %v757_v24, %v761_v26  ;;  %v817_v21 = vld [vmem:[%s15011_s5 + $0x538] sm:$0xff] }
 0x211   : > { %3412 = vmatprep.subr.bf16.mxu0 %v12341_v31  ;;  %3576 = vmatprep.subr.bf16.mxu1 %v12343_v32  ;;  %v764_v31 = vld [vmem:[%s15011_s5 + $0x390] sm:$0xff] }
 0x212   : > { %v768_v32 = vld [vmem:[%s15011_s5 + $0x3b0] sm:$0xff] }
 0x213   : > { %v12404_v44 = vcombine.low %v764_v31, %v768_v32 }
 0x214   : > { %3413 = vmatpush1.bf16.msra.mxu0 %v12340_v38  ;;  %3577 = vmatpush1.bf16.msra.mxu1 %v12342_v39  ;;  %v12405_v38 = vcombine.high %v764_v31, %v768_v32  ;;  %v12407_v39 = vcombine.high %v765_v33, %v769_v35 }
 0x215   : > { %3414 = vmatprep.subr.bf16.mxu0 %v12349_v40  ;;  %3578 = vmatprep.subr.bf16.mxu1 %v12351_v41  ;;  %v772_v40 = vld [vmem:[%s15011_s5 + $0x3d0] sm:$0xff] }
 0x216   : > { %v776_v41 = vld [vmem:[%s15011_s5 + $0x3f0] sm:$0xff] }
 0x217   : > { %v12412_v52 = vcombine.low %v772_v40, %v776_v41 }
 0x218   : > { %3415 = vmatpush1.bf16.msra.mxu0 %v12348_v46  ;;  %3579 = vmatpush1.bf16.msra.mxu1 %v12350_v47  ;;  %v12413_v46 = vcombine.high %v772_v40, %v776_v41  ;;  %v12415_v47 = vcombine.high %v773_v25, %v777_v43 }
 0x219   : > { %3416 = vmatprep.subr.bf16.mxu0 %v12357_v48  ;;  %3580 = vmatprep.subr.bf16.mxu1 %v12359_v49  ;;  %v780_v48 = vld [vmem:[%s15011_s5 + $0x410] sm:$0xff] }
 0x21a   : > { %v784_v49 = vld [vmem:[%s15011_s5 + $0x430] sm:$0xff] }
 0x21b   : > { %v12420_v62 = vcombine.low %v780_v48, %v784_v49 }
 0x21c   : > { %3417 = vmatpush1.bf16.msra.mxu0 %v12356_v55  ;;  %3581 = vmatpush1.bf16.msra.mxu1 %v12358_v56  ;;  %v12421_v55 = vcombine.high %v780_v48, %v784_v49  ;;  %v12423_v56 = vcombine.high %v781_v50, %v785_v51 }
 0x21d   : > { %3418 = vmatprep.subr.bf16.mxu0 %v12365_v58  ;;  %3582 = vmatprep.subr.bf16.mxu1 %v12367_v59  ;;  %v788_v58 = vld [vmem:[%s15011_s5 + $0x450] sm:$0xff] }
 0x21e   : > { %v792_v59 = vld [vmem:[%s15011_s5 + $0x470] sm:$0xff] }
 0x21f   : > { %v12428_v6 = vcombine.low %v788_v58, %v792_v59 }
 0x220   : > { %3419 = vmatpush1.bf16.msra.mxu0 %v12364_v0  ;;  %3583 = vmatpush1.bf16.msra.mxu1 %v12366_v1  ;;  %v12429_v0 = vcombine.high %v788_v58, %v792_v59  ;;  %v12431_v1 = vcombine.high %v789_v60, %v793_v61 }
 0x221   : > { %3420 = vmatprep.subr.bf16.mxu0 %v12373_v2  ;;  %3584 = vmatprep.subr.bf16.mxu1 %v12375_v3  ;;  %v796_v2 = vld [vmem:[%s15011_s5 + $0x490] sm:$0xff] }
 0x222   : > { %v800_v3 = vld [vmem:[%s15011_s5 + $0x4b0] sm:$0xff] }
 0x224   : > { %3421 = vmatpush1.bf16.msra.mxu0 %v12372_v8  ;;  %3585 = vmatpush1.bf16.msra.mxu1 %v12374_v9  ;;  %v12437_v8 = vcombine.high %v796_v2, %v800_v3  ;;  %v12439_v9 = vcombine.high %v797_v4, %v801_v5 }
 0x225   : > { %3422 = vmatprep.subr.bf16.mxu0 %v12381_v10  ;;  %3586 = vmatprep.subr.bf16.mxu1 %v12383_v57  ;;  %v804_v10 = vld [vmem:[%s15011_s5 + $0x4d0] sm:$0xff] }
 0x226   : > { %v808_v57 = vld [vmem:[%s15011_s5 + $0x4f0] sm:$0xff] }
 0x227   : > { %v12445_v16 = vcombine.high %v804_v10, %v808_v57  ;;  %v12444_v22 = vcombine.low %v804_v10, %v808_v57 }
 0x228   : > { %3423 = vmatpush1.bf16.msra.mxu0 %v12380_v17  ;;  %3587 = vmatpush1.bf16.msra.mxu1 %v12382_v18  ;;  %v12447_v17 = vcombine.high %v805_v11, %v809_v13  ;;  %v812_v18 = vld [vmem:[%s15011_s5 + $0x510] sm:$0xff] }
 0x229   : > { %3424 = vmatprep.subr.bf16.mxu0 %v12389_v19  ;;  %3588 = vmatprep.subr.bf16.mxu1 %v12391_v20  ;;  %v816_v19 = vld [vmem:[%s15011_s5 + $0x530] sm:$0xff]  ;;  %v813_v20 = vld [vmem:[%s15011_s5 + $0x518] sm:$0xff] }
 0x22a   : > { %v12453_v24 = vcombine.high %v812_v18, %v816_v19  ;;  %v12455_v26 = vcombine.high %v813_v20, %v817_v21  ;;  %v12452_v31 = vcombine.low %v812_v18, %v816_v19  ;;  %v12454_v32 = vcombine.low %v813_v20, %v817_v21 }
 0x22c   : > { %3425 = vmatpush1.bf16.msra.mxu0 %v12388_v27  ;;  %3589 = vmatpush1.bf16.msra.mxu1 %v12390_v28  ;;  %v820_v27 = vld [vmem:[%s15011_s5 + $0x550] sm:$0xff] }
 0x22d   : > { %3426 = vmatprep.subr.bf16.mxu0 %v12397_v29  ;;  %3590 = vmatprep.subr.bf16.mxu1 %v12399_v30  ;;  %v824_v28 = vld [vmem:[%s15011_s5 + $0x570] sm:$0xff]  ;;  %v821_v29 = vld [vmem:[%s15011_s5 + $0x558] sm:$0xff] }
 0x22e   : > { %v825_v30 = vld [vmem:[%s15011_s5 + $0x578] sm:$0xff]  ;;  %v12461_v33 = vcombine.high %v820_v27, %v824_v28  ;;  %v12460_v40 = vcombine.low %v820_v27, %v824_v28 }
 0x22f   : > { %v12463_v35 = vcombine.high %v821_v29, %v825_v30  ;;  %v12462_v41 = vcombine.low %v821_v29, %v825_v30 }
 0x230   : > { %3427 = vmatpush1.bf16.msra.mxu0 %v12396_v36  ;;  %3591 = vmatpush1.bf16.msra.mxu1 %v12398_v37  ;;  %v828_v36 = vld [vmem:[%s15011_s5 + $0x590] sm:$0xff] }
 0x231   : > { %3428 = vmatprep.subr.bf16.mxu0 %v12405_v38  ;;  %3592 = vmatprep.subr.bf16.mxu1 %v12407_v39  ;;  %v832_v37 = vld [vmem:[%s15011_s5 + $0x5b0] sm:$0xff]  ;;  %v829_v38 = vld [vmem:[%s15011_s5 + $0x598] sm:$0xff] }
 0x232   : > { %v833_v39 = vld [vmem:[%s15011_s5 + $0x5b8] sm:$0xff]  ;;  %v12469_v25 = vcombine.high %v828_v36, %v832_v37  ;;  %v12468_v48 = vcombine.low %v828_v36, %v832_v37 }
 0x233   : > { %v12471_v43 = vcombine.high %v829_v38, %v833_v39  ;;  %v12470_v49 = vcombine.low %v829_v38, %v833_v39 }
 0x234   : > { %3429 = vmatpush1.bf16.msra.mxu0 %v12404_v44  ;;  %3593 = vmatpush1.bf16.msra.mxu1 %v12406_v45  ;;  %v836_v44 = vld [vmem:[%s15011_s5 + $0x5d0] sm:$0xff] }
 0x235   : > { %3430 = vmatprep.subr.bf16.mxu0 %v12413_v46  ;;  %3594 = vmatprep.subr.bf16.mxu1 %v12415_v47  ;;  %v840_v45 = vld [vmem:[%s15011_s5 + $0x5f0] sm:$0xff]  ;;  %v837_v46 = vld [vmem:[%s15011_s5 + $0x5d8] sm:$0xff] }
 0x236   : > { %v841_v47 = vld [vmem:[%s15011_s5 + $0x5f8] sm:$0xff]  ;;  %v12477_v50 = vcombine.high %v836_v44, %v840_v45  ;;  %v12476_v58 = vcombine.low %v836_v44, %v840_v45 }
 0x237   : > { %v12479_v51 = vcombine.high %v837_v46, %v841_v47  ;;  %v12478_v59 = vcombine.low %v837_v46, %v841_v47 }
 0x238   : > { %3431 = vmatpush1.bf16.msra.mxu0 %v12412_v52  ;;  %3595 = vmatpush1.bf16.msra.mxu1 %v12414_v54  ;;  %v844_v52 = vld [vmem:[%s15011_s5 + $0x610] sm:$0xff] }
 0x239   : > { %3441 = vmatprep.subr.bf16.mxu0 %v12421_v55  ;;  %3605 = vmatprep.subr.bf16.mxu1 %v12423_v56  ;;  %v848_v54 = vld [vmem:[%s15011_s5 + $0x630] sm:$0xff]  ;;  %v845_v55 = vld [vmem:[%s15011_s5 + $0x618] sm:$0xff] }
 0x23a   : > { %v849_v56 = vld [vmem:[%s15011_s5 + $0x638] sm:$0xff]  ;;  %v12485_v60 = vcombine.high %v844_v52, %v848_v54 }
 0x23b   : > { %3433 = vmatmul.mubr.bf16.vlgmr.msra.gmra.mrb[4].mxu0 %v15124_v12  ;;  %3597 = vmatmul.mubr.bf16.vlgmr.msra.gmra.mrb[4].mxu1 %v15124_v12  ;;  %v12436_v12 = vcombine.low %v796_v2, %v800_v3  ;;  %v12487_v61 = vcombine.high %v845_v55, %v849_v56  ;;  %v12484_v2 = vcombine.low %v844_v52, %v848_v54 }
 0x23c   : > { %3442 = vmatpush1.bf16.msra.mxu0 %v12420_v62  ;;  %3606 = vmatpush1.bf16.msra.mxu1 %v12422_v63  ;;  %v852_v62 = vld [vmem:[%s15011_s5 + $0x650] sm:$0xff]  ;;  %v12486_v3 = vcombine.low %v845_v55, %v849_v56 }
 0x23d   : > { %3443 = vmatprep.subr.bf16.mxu0 %v12429_v0  ;;  %3607 = vmatprep.subr.bf16.mxu1 %v12431_v1  ;;  %v856_v63 = vld [vmem:[%s15011_s5 + $0x670] sm:$0xff]  ;;  %v853_v0 = vld [vmem:[%s15011_s5 + $0x658] sm:$0xff] }
 0x23e   : > { %3473 = vmatprep.mubr.bf16.mxu0 %v15135_v53  ;;  %3637 = vmatprep.mubr.bf16.mxu1 %v15135_v53  ;;  %v12446_v53 = vcombine.low %v805_v11, %v809_v13  ;;  %v857_v1 = vld [vmem:[%s15011_s5 + $0x678] sm:$0xff]  ;;  %v12493_v4 = vcombine.high %v852_v62, %v856_v63  ;;  %v12492_v10 = vcombine.low %v852_v62, %v856_v63 }
 0x23f   : > { %v12495_v5 = vcombine.high %v853_v0, %v857_v1  ;;  %v12494_v57 = vcombine.low %v853_v0, %v857_v1 }
 0x240   : > { %3444 = vmatpush1.bf16.msra.mxu0 %v12428_v6  ;;  %3608 = vmatpush1.bf16.msra.mxu1 %v12430_v7  ;;  %v860_v6 = vld [vmem:[%s15011_s5 + $0x690] sm:$0xff] }
 0x241   : > { %3445 = vmatprep.subr.bf16.mxu0 %v12437_v8  ;;  %3609 = vmatprep.subr.bf16.mxu1 %v12439_v9  ;;  %v864_v7 = vld [vmem:[%s15011_s5 + $0x6b0] sm:$0xff]  ;;  %v861_v8 = vld [vmem:[%s15011_s5 + $0x698] sm:$0xff] }
 0x242   : > { %v865_v9 = vld [vmem:[%s15011_s5 + $0x6b8] sm:$0xff]  ;;  %v12501_v11 = vcombine.high %v860_v6, %v864_v7  ;;  %v12500_v18 = vcombine.low %v860_v6, %v864_v7 }
 0x243   : > { %v12503_v13 = vcombine.high %v861_v8, %v865_v9  ;;  %v12502_v19 = vcombine.low %v861_v8, %v865_v9 }
 0x244   : > { %3446 = vmatpush1.bf16.msra.mxu0 %v12436_v12  ;;  %3610 = vmatpush1.bf16.msra.mxu1 %v12438_v14  ;;  %v868_v12 = vld [vmem:[%s15011_s5 + $0x6d0] sm:$0xff] }
 0x245   : > { %3447 = vmatprep.subr.bf16.mxu0 %v12445_v16  ;;  %3611 = vmatprep.subr.bf16.mxu1 %v12447_v17  ;;  %v872_v14 = vld [vmem:[%s15011_s5 + $0x6f0] sm:$0xff]  ;;  %v869_v16 = vld [vmem:[%s15011_s5 + $0x6d8] sm:$0xff] }
 0x246   : > { %v873_v17 = vld [vmem:[%s15011_s5 + $0x6f8] sm:$0xff]  ;;  %v12509_v20 = vcombine.high %v868_v12, %v872_v14  ;;  %v12508_v27 = vcombine.low %v868_v12, %v872_v14 }
 0x247   : > { %v12511_v21 = vcombine.high %v869_v16, %v873_v17  ;;  %v12510_v28 = vcombine.low %v869_v16, %v873_v17 }
 0x248   : > { %3448 = vmatpush1.bf16.msra.mxu0 %v12444_v22  ;;  %3612 = vmatpush1.bf16.msra.mxu1 %v12446_v53  ;;  %v876_v22 = vld [vmem:[%s15011_s5 + $0x710] sm:$0xff] }
 0x249   : > { %3449 = vmatprep.subr.bf16.mxu0 %v12453_v24  ;;  %3613 = vmatprep.subr.bf16.mxu1 %v12455_v26  ;;  %v880_v53 = vld [vmem:[%s15011_s5 + $0x730] sm:$0xff]  ;;  %v877_v24 = vld [vmem:[%s15011_s5 + $0x718] sm:$0xff] }
 0x24a   : > { %v881_v26 = vld [vmem:[%s15011_s5 + $0x738] sm:$0xff]  ;;  %v12517_v29 = vcombine.high %v876_v22, %v880_v53  ;;  %v12516_v36 = vcombine.low %v876_v22, %v880_v53 }
 0x24b   : > { %v12519_v30 = vcombine.high %v877_v24, %v881_v26  ;;  %v12518_v37 = vcombine.low %v877_v24, %v881_v26  ;;  %v940_v26 = vld [vmem:[%s15011_s5 + $0x910] sm:$0xff] }
 0x24c   : > { %3450 = vmatpush1.bf16.msra.mxu0 %v12452_v31  ;;  %3614 = vmatpush1.bf16.msra.mxu1 %v12454_v32  ;;  %v884_v31 = vld [vmem:[%s15011_s5 + $0x750] sm:$0xff] }
 0x24d   : > { %3451 = vmatprep.subr.bf16.mxu0 %v12461_v33  ;;  %3615 = vmatprep.subr.bf16.mxu1 %v12463_v35  ;;  %v888_v32 = vld [vmem:[%s15011_s5 + $0x770] sm:$0xff]  ;;  %v885_v33 = vld [vmem:[%s15011_s5 + $0x758] sm:$0xff] }
 0x24e   : > { %v889_v35 = vld [vmem:[%s15011_s5 + $0x778] sm:$0xff]  ;;  %v12525_v38 = vcombine.high %v884_v31, %v888_v32  ;;  %v12524_v44 = vcombine.low %v884_v31, %v888_v32 }
 0x24f   : > { %v12527_v39 = vcombine.high %v885_v33, %v889_v35  ;;  %v12526_v45 = vcombine.low %v885_v33, %v889_v35  ;;  %v948_v33 = vld [vmem:[%s15011_s5 + $0x950] sm:$0xff] }
 0x250   : > { %3452 = vmatpush1.bf16.msra.mxu0 %v12460_v40  ;;  %3616 = vmatpush1.bf16.msra.mxu1 %v12462_v41  ;;  %v892_v40 = vld [vmem:[%s15011_s5 + $0x790] sm:$0xff] }
 0x251   : > { %3453 = vmatprep.subr.bf16.mxu0 %v12469_v25  ;;  %3617 = vmatprep.subr.bf16.mxu1 %v12471_v43  ;;  %v896_v41 = vld [vmem:[%s15011_s5 + $0x7b0] sm:$0xff]  ;;  %v893_v25 = vld [vmem:[%s15011_s5 + $0x798] sm:$0xff] }
 0x252   : > { %v897_v43 = vld [vmem:[%s15011_s5 + $0x7b8] sm:$0xff]  ;;  %v12533_v46 = vcombine.high %v892_v40, %v896_v41  ;;  %v12532_v52 = vcombine.low %v892_v40, %v896_v41  ;;  %v952_v35 = vld [vmem:[%s15011_s5 + $0x970] sm:$0xff] }
 0x253   : > { %v12535_v47 = vcombine.high %v893_v25, %v897_v43  ;;  %v12534_v54 = vcombine.low %v893_v25, %v897_v43  ;;  %v12589_v40 = vcombine.high %v948_v33, %v952_v35  ;;  %v956_v25 = vld [vmem:[%s15011_s5 + $0x990] sm:$0xff] }
 0x254   : > { %3454 = vmatpush1.bf16.msra.mxu0 %v12468_v48  ;;  %3618 = vmatpush1.bf16.msra.mxu1 %v12470_v49  ;;  %v900_v48 = vld [vmem:[%s15011_s5 + $0x7d0] sm:$0xff] }
 0x255   : > { %3455 = vmatprep.subr.bf16.mxu0 %v12477_v50  ;;  %3619 = vmatprep.subr.bf16.mxu1 %v12479_v51  ;;  %v904_v49 = vld [vmem:[%s15011_s5 + $0x7f0] sm:$0xff]  ;;  %v901_v50 = vld [vmem:[%s15011_s5 + $0x7d8] sm:$0xff] }
 0x256   : > { %v905_v51 = vld [vmem:[%s15011_s5 + $0x7f8] sm:$0xff]  ;;  %v12541_v55 = vcombine.high %v900_v48, %v904_v49  ;;  %v12540_v62 = vcombine.low %v900_v48, %v904_v49  ;;  %v960_v43 = vld [vmem:[%s15011_s5 + $0x9b0] sm:$0xff] }
 0x257   : > { %v12543_v56 = vcombine.high %v901_v50, %v905_v51  ;;  %v12542_v63 = vcombine.low %v901_v50, %v905_v51  ;;  %v12597_v48 = vcombine.high %v956_v25, %v960_v43  ;;  %v964_v50 = vld [vmem:[%s15011_s5 + $0x9d0] sm:$0xff] }
 0x258   : > { %3456 = vmatpush1.bf16.msra.mxu0 %v12476_v58  ;;  %3620 = vmatpush1.bf16.msra.mxu1 %v12478_v59  ;;  %v908_v58 = vld [vmem:[%s15011_s5 + $0x810] sm:$0xff] }
 0x259   : > { %3457 = vmatprep.subr.bf16.mxu0 %v12485_v60  ;;  %3621 = vmatprep.subr.bf16.mxu1 %v12487_v61  ;;  %v912_v59 = vld [vmem:[%s15011_s5 + $0x830] sm:$0xff]  ;;  %v909_v60 = vld [vmem:[%s15011_s5 + $0x818] sm:$0xff] }
 0x25a   : > { %v913_v61 = vld [vmem:[%s15011_s5 + $0x838] sm:$0xff]  ;;  %v12549_v0 = vcombine.high %v908_v58, %v912_v59  ;;  %v12548_v6 = vcombine.low %v908_v58, %v912_v59  ;;  %v968_v51 = vld [vmem:[%s15011_s5 + $0x9f0] sm:$0xff] }
 0x25b   : > { %v12551_v1 = vcombine.high %v909_v60, %v913_v61  ;;  %v12550_v7 = vcombine.low %v909_v60, %v913_v61  ;;  %v12605_v58 = vcombine.high %v964_v50, %v968_v51  ;;  %v972_v60 = vld [vmem:[%s15011_s5 + $0xa10] sm:$0xff] }
 0x25c   : > { %3458 = vmatpush1.bf16.msra.mxu0 %v12484_v2  ;;  %3622 = vmatpush1.bf16.msra.mxu1 %v12486_v3  ;;  %v916_v2 = vld [vmem:[%s15011_s5 + $0x850] sm:$0xff] }
 0x25d   : > { %3459 = vmatprep.subr.bf16.mxu0 %v12493_v4  ;;  %3623 = vmatprep.subr.bf16.mxu1 %v12495_v5  ;;  %v920_v3 = vld [vmem:[%s15011_s5 + $0x870] sm:$0xff]  ;;  %v917_v4 = vld [vmem:[%s15011_s5 + $0x858] sm:$0xff] }
 0x25e   : > { %v921_v5 = vld [vmem:[%s15011_s5 + $0x878] sm:$0xff]  ;;  %v12557_v8 = vcombine.high %v916_v2, %v920_v3  ;;  %v12556_v12 = vcombine.low %v916_v2, %v920_v3  ;;  %v976_v61 = vld [vmem:[%s15011_s5 + $0xa30] sm:$0xff] }
 0x25f   : > { %v12559_v9 = vcombine.high %v917_v4, %v921_v5  ;;  %v12558_v14 = vcombine.low %v917_v4, %v921_v5  ;;  %v12613_v2 = vcombine.high %v972_v60, %v976_v61  ;;  %v980_v4 = vld [vmem:[%s15011_s5 + $0xa50] sm:$0xff] }
 0x260   : > { %3460 = vmatpush1.bf16.msra.mxu0 %v12492_v10  ;;  %3624 = vmatpush1.bf16.msra.mxu1 %v12494_v57  ;;  %v924_v10 = vld [vmem:[%s15011_s5 + $0x890] sm:$0xff] }
 0x261   : > { %3461 = vmatprep.subr.bf16.mxu0 %v12501_v11  ;;  %3625 = vmatprep.subr.bf16.mxu1 %v12503_v13  ;;  %v928_v57 = vld [vmem:[%s15011_s5 + $0x8b0] sm:$0xff]  ;;  %v925_v11 = vld [vmem:[%s15011_s5 + $0x898] sm:$0xff] }
 0x262   : > { %v929_v13 = vld [vmem:[%s15011_s5 + $0x8b8] sm:$0xff]  ;;  %v12565_v16 = vcombine.high %v924_v10, %v928_v57  ;;  %v984_v5 = vld [vmem:[%s15011_s5 + $0xa70] sm:$0xff] }
 0x263   : > { %v12567_v17 = vcombine.high %v925_v11, %v929_v13  ;;  %v12566_v22 = vcombine.low %v925_v11, %v929_v13  ;;  %v988_v11 = vld [vmem:[%s15011_s5 + $0xa90] sm:$0xff] }
 0x264   : > { %3462 = vmatpush1.bf16.msra.mxu0 %v12500_v18  ;;  %3626 = vmatpush1.bf16.msra.mxu1 %v12502_v19  ;;  %v932_v18 = vld [vmem:[%s15011_s5 + $0x8d0] sm:$0xff] }
 0x265   : > { %3463 = vmatprep.subr.bf16.mxu0 %v12509_v20  ;;  %3627 = vmatprep.subr.bf16.mxu1 %v12511_v21  ;;  %v936_v19 = vld [vmem:[%s15011_s5 + $0x8f0] sm:$0xff]  ;;  %v933_v20 = vld [vmem:[%s15011_s5 + $0x8d8] sm:$0xff] }
 0x266   : > { %v937_v21 = vld [vmem:[%s15011_s5 + $0x8f8] sm:$0xff]  ;;  %v12573_v53 = vcombine.high %v932_v18, %v936_v19  ;;  %v992_v13 = vld [vmem:[%s15011_s5 + $0xab0] sm:$0xff] }
 0x267   : > { %v12575_v24 = vcombine.high %v933_v20, %v937_v21 }
 0x268   : > { %3464 = vmatpush1.bf16.msra.mxu0 %v12508_v27  ;;  %3628 = vmatpush1.bf16.msra.mxu1 %v12510_v28  ;;  %v944_v27 = vld [vmem:[%s15011_s5 + $0x930] sm:$0xff]  ;;  %v941_v28 = vld [vmem:[%s15011_s5 + $0x918] sm:$0xff] }
 0x269   : > { %3465 = vmatprep.subr.bf16.mxu0 %v12517_v29  ;;  %3629 = vmatprep.subr.bf16.mxu1 %v12519_v30  ;;  %v945_v29 = vld [vmem:[%s15011_s5 + $0x938] sm:$0xff]  ;;  %v12572_v30 = vcombine.low %v932_v18, %v936_v19  ;;  %v12581_v31 = vcombine.high %v940_v26, %v944_v27  ;;  %v12629_v18 = vcombine.high %v988_v11, %v992_v13 }
 0x26a   : > { %v12583_v32 = vcombine.high %v941_v28, %v945_v29 }
 0x26c   : > { %3466 = vmatpush1.bf16.msra.mxu0 %v12516_v36  ;;  %3630 = vmatpush1.bf16.msra.mxu1 %v12518_v37  ;;  %v949_v36 = vld [vmem:[%s15011_s5 + $0x958] sm:$0xff] }
 0x26d   : > { %3467 = vmatprep.subr.bf16.mxu0 %v12525_v38  ;;  %3631 = vmatprep.subr.bf16.mxu1 %v12527_v39  ;;  %v953_v37 = vld [vmem:[%s15011_s5 + $0x978] sm:$0xff]  ;;  %v12580_v38 = vcombine.low %v940_v26, %v944_v27  ;;  %v12582_v39 = vcombine.low %v941_v28, %v945_v29  ;;  %v1004_v28 = vld [vmem:[%s15011_s5 + $0xb10] sm:$0xff] }
 0x26e   : > { %v12591_v41 = vcombine.high %v949_v36, %v953_v37  ;;  %v1008_v29 = vld [vmem:[%s15011_s5 + $0xb30] sm:$0xff] }
 0x270   : > { %3468 = vmatpush1.bf16.msra.mxu0 %v12524_v44  ;;  %3632 = vmatpush1.bf16.msra.mxu1 %v12526_v45  ;;  %v957_v44 = vld [vmem:[%s15011_s5 + $0x998] sm:$0xff] }
 0x271   : > { %3469 = vmatprep.subr.bf16.mxu0 %v12533_v46  ;;  %3633 = vmatprep.subr.bf16.mxu1 %v12535_v47  ;;  %v961_v45 = vld [vmem:[%s15011_s5 + $0x9b8] sm:$0xff]  ;;  %v12588_v46 = vcombine.low %v948_v33, %v952_v35  ;;  %v12590_v47 = vcombine.low %v949_v36, %v953_v37  ;;  %v12645_v33 = vcombine.high %v1004_v28, %v1008_v29  ;;  %v1012_v36 = vld [vmem:[%s15011_s5 + $0xb50] sm:$0xff] }
 0x272   : > { %v12599_v49 = vcombine.high %v957_v44, %v961_v45  ;;  %v1016_v37 = vld [vmem:[%s15011_s5 + $0xb70] sm:$0xff] }
 0x274   : > { %3470 = vmatpush1.bf16.msra.mxu0 %v12532_v52  ;;  %3634 = vmatpush1.bf16.msra.mxu1 %v12534_v54  ;;  %v965_v52 = vld [vmem:[%s15011_s5 + $0x9d8] sm:$0xff] }
 0x275   : > { %3471 = vmatprep.subr.bf16.mxu0 %v12541_v55  ;;  %3635 = vmatprep.subr.bf16.mxu1 %v12543_v56  ;;  %v969_v54 = vld [vmem:[%s15011_s5 + $0x9f8] sm:$0xff]  ;;  %v12596_v55 = vcombine.low %v956_v25, %v960_v43  ;;  %v12598_v56 = vcombine.low %v957_v44, %v961_v45  ;;  %v12653_v25 = vcombine.high %v1012_v36, %v1016_v37  ;;  %v1020_v44 = vld [vmem:[%s15011_s5 + $0xb90] sm:$0xff] }
 0x276   : > { %v12607_v59 = vcombine.high %v965_v52, %v969_v54  ;;  %v1024_v45 = vld [vmem:[%s15011_s5 + $0xbb0] sm:$0xff] }
 0x278   : > { %3472 = vmatpush1.bf16.msra.mxu0 %v12540_v62  ;;  %3636 = vmatpush1.bf16.msra.mxu1 %v12542_v63  ;;  %v973_v62 = vld [vmem:[%s15011_s5 + $0xa18] sm:$0xff] }
 0x279   : > { %3482 = vmatprep.subr.bf16.mxu0 %v12549_v0  ;;  %3646 = vmatprep.subr.bf16.mxu1 %v12551_v1  ;;  %v977_v63 = vld [vmem:[%s15011_s5 + $0xa38] sm:$0xff]  ;;  %v12604_v0 = vcombine.low %v964_v50, %v968_v51  ;;  %v12606_v1 = vcombine.low %v965_v52, %v969_v54  ;;  %v12661_v50 = vcombine.high %v1020_v44, %v1024_v45  ;;  %v1028_v52 = vld [vmem:[%s15011_s5 + $0xbd0] sm:$0xff] }
 0x27a   : > { %v12615_v3 = vcombine.high %v973_v62, %v977_v63  ;;  %v1032_v54 = vld [vmem:[%s15011_s5 + $0xbf0] sm:$0xff] }
 0x27b   : > { %3474 = vmatmul.mubr.bf16.vlgmr.msra.gmra.mrb[4].mxu0 %v15204_v23  ;;  %3638 = vmatmul.mubr.bf16.vlgmr.msra.gmra.mrb[4].mxu1 %v15204_v23  ;;  %v12564_v23 = vcombine.low %v924_v10, %v928_v57  ;;  %v12621_v10 = vcombine.high %v980_v4, %v984_v5 }
 0x27c   : > { %3483 = vmatpush1.bf16.msra.mxu0 %v12548_v6  ;;  %3647 = vmatpush1.bf16.msra.mxu1 %v12550_v7  ;;  %v981_v6 = vld [vmem:[%s15011_s5 + $0xa58] sm:$0xff] }
 0x27d   : > { %3484 = vmatprep.subr.bf16.mxu0 %v12557_v8  ;;  %3648 = vmatprep.subr.bf16.mxu1 %v12559_v9  ;;  %v985_v7 = vld [vmem:[%s15011_s5 + $0xa78] sm:$0xff]  ;;  %v12612_v8 = vcombine.low %v972_v60, %v976_v61  ;;  %v12614_v9 = vcombine.low %v973_v62, %v977_v63  ;;  %v12669_v60 = vcombine.high %v1028_v52, %v1032_v54  ;;  %v1036_v62 = vld [vmem:[%s15011_s5 + $0xc10] sm:$0xff] }
 0x27e   : > { %3514 = vmatprep.mubr.bf16.mxu0 %v15214_v15  ;;  %3678 = vmatprep.mubr.bf16.mxu1 %v15214_v15  ;;  %v12574_v15 = vcombine.low %v933_v20, %v937_v21  ;;  %v12623_v57 = vcombine.high %v981_v6, %v985_v7  ;;  %v996_v20 = vld [vmem:[%s15011_s5 + $0xad0] sm:$0xff] }
 0x27f   : > { %v1000_v21 = vld [vmem:[%s15011_s5 + $0xaf0] sm:$0xff] }
 0x280   : > { %3485 = vmatpush1.bf16.msra.mxu0 %v12556_v12  ;;  %3649 = vmatpush1.bf16.msra.mxu1 %v12558_v14  ;;  %v989_v12 = vld [vmem:[%s15011_s5 + $0xa98] sm:$0xff]  ;;  %v12637_v26 = vcombine.high %v996_v20, %v1000_v21  ;;  %v1040_v63 = vld [vmem:[%s15011_s5 + $0xc30] sm:$0xff] }
 0x281   : > { %3486 = vmatprep.subr.bf16.mxu0 %v12565_v16  ;;  %3650 = vmatprep.subr.bf16.mxu1 %v12567_v17  ;;  %v993_v14 = vld [vmem:[%s15011_s5 + $0xab8] sm:$0xff]  ;;  %v12620_v16 = vcombine.low %v980_v4, %v984_v5  ;;  %v12622_v17 = vcombine.low %v981_v6, %v985_v7  ;;  %v12677_v4 = vcombine.high %v1036_v62, %v1040_v63  ;;  %v3744_v6 = vld [vmem:[%s15022_s3] sm:$0xff] }
 0x282   : > { %v12631_v19 = vcombine.high %v989_v12, %v993_v14  ;;  %v3748_v7 = vld [vmem:[%s15022_s3 + $0x20] sm:$0xff] }
 0x284   : > { %3487 = vmatpush1.bf16.msra.mxu0 %v12564_v23  ;;  %3651 = vmatpush1.bf16.msra.mxu1 %v12566_v22  ;;  %v997_v23 = vld [vmem:[%s15011_s5 + $0xad8] sm:$0xff] }
 0x285   : > { %3488 = vmatprep.subr.bf16.mxu0 %v12573_v53  ;;  %3652 = vmatprep.subr.bf16.mxu1 %v12575_v24  ;;  %v1001_v22 = vld [vmem:[%s15011_s5 + $0xaf8] sm:$0xff]  ;;  %v12628_v53 = vcombine.low %v988_v11, %v992_v13  ;;  %v12630_v24 = vcombine.low %v989_v12, %v993_v14  ;;  %v12685_v11 = vcombine.high %v3744_v6, %v3748_v7  ;;  %v1044_v12 = vlaneseq  ;;  %v3752_v14 = vld [vmem:[%s15022_s3 + $0x40] sm:$0xff] }
 0x286   : > { %v12639_v27 = vcombine.high %v997_v23, %v1001_v22 }
 0x288   : > { %3489 = vmatpush1.bf16.msra.mxu0 %v12572_v30  ;;  %3653 = vmatpush1.bf16.msra.mxu1 %v12574_v15  ;;  %v1005_v30 = vld [vmem:[%s15011_s5 + $0xb18] sm:$0xff] }
 0x289   : > { %3490 = vmatprep.subr.bf16.mxu0 %v12581_v31  ;;  %3654 = vmatprep.subr.bf16.mxu1 %v12583_v32  ;;  %v1009_v15 = vld [vmem:[%s15011_s5 + $0xb38] sm:$0xff]  ;;  %v12636_v31 = vcombine.low %v996_v20, %v1000_v21  ;;  %v12638_v32 = vcombine.low %v997_v23, %v1001_v22  ;;  %v3760_v22 = vld [vmem:[%s15022_s3 + $0x80] sm:$0xff] }
 0x28a   : > { %v12647_v35 = vcombine.high %v1005_v30, %v1009_v15 }
 0x28c   : > { %3491 = vmatpush1.bf16.msra.mxu0 %v12580_v38  ;;  %3655 = vmatpush1.bf16.msra.mxu1 %v12582_v39  ;;  %v1013_v38 = vld [vmem:[%s15011_s5 + $0xb58] sm:$0xff] }
 0x28d   : > { %3492 = vmatprep.subr.bf16.mxu0 %v12589_v40  ;;  %3656 = vmatprep.subr.bf16.mxu1 %v12591_v41  ;;  %v1017_v39 = vld [vmem:[%s15011_s5 + $0xb78] sm:$0xff]  ;;  %v12644_v40 = vcombine.low %v1004_v28, %v1008_v29  ;;  %v12646_v41 = vcombine.low %v1005_v30, %v1009_v15  ;;  %v15521_v15 = vld [vmem:[%s518_s9] sm:$0xff] }
 0x28e   : > { %v12655_v43 = vcombine.high %v1013_v38, %v1017_v39 }
 0x290   : > { %3493 = vmatpush1.bf16.msra.mxu0 %v12588_v46  ;;  %3657 = vmatpush1.bf16.msra.mxu1 %v12590_v47  ;;  %v1021_v46 = vld [vmem:[%s15011_s5 + $0xb98] sm:$0xff] }
 0x291   : > { %3494 = vmatprep.subr.bf16.mxu0 %v12597_v48  ;;  %3658 = vmatprep.subr.bf16.mxu1 %v12599_v49  ;;  %v1025_v47 = vld [vmem:[%s15011_s5 + $0xbb8] sm:$0xff]  ;;  %v12652_v48 = vcombine.low %v1012_v36, %v1016_v37  ;;  %v12654_v49 = vcombine.low %v1013_v38, %v1017_v39 }
 0x292   : > { %v12663_v51 = vcombine.high %v1021_v46, %v1025_v47  ;;  %v3773_v36 = vld [vmem:[%s15022_s3 + $0xe8] sm:$0xff] }
 0x294   : > { %3495 = vmatpush1.bf16.msra.mxu0 %v12596_v55  ;;  %3659 = vmatpush1.bf16.msra.mxu1 %v12598_v56  ;;  %v1029_v55 = vld [vmem:[%s15011_s5 + $0xbd8] sm:$0xff] }
 0x295   : > { %3496 = vmatprep.subr.bf16.mxu0 %v12605_v58  ;;  %3660 = vmatprep.subr.bf16.mxu1 %v12607_v59  ;;  %v1033_v56 = vld [vmem:[%s15011_s5 + $0xbf8] sm:$0xff]  ;;  %v12660_v58 = vcombine.low %v1020_v44, %v1024_v45  ;;  %v12662_v59 = vcombine.low %v1021_v46, %v1025_v47  ;;  %v3780_v44 = vld [vmem:[%s15022_s3 + $0x120] sm:$0xff] }
 0x296   : > { %v12671_v61 = vcombine.high %v1029_v55, %v1033_v56  ;;  %v3777_v47 = vld [vmem:[%s15022_s3 + $0x108] sm:$0xff] }
 0x298   : > { %3497 = vmatpush1.bf16.msra.mxu0 %v12604_v0  ;;  %3661 = vmatpush1.bf16.msra.mxu1 %v12606_v1  ;;  %v1037_v0 = vld [vmem:[%s15011_s5 + $0xc18] sm:$0xff] }
 0x299   : > { %3498 = vmatprep.subr.bf16.mxu0 %v12613_v2  ;;  %3662 = vmatprep.subr.bf16.mxu1 %v12615_v3  ;;  %v1041_v1 = vld [vmem:[%s15011_s5 + $0xc38] sm:$0xff]  ;;  %v12668_v2 = vcombine.low %v1028_v52, %v1032_v54  ;;  %v12670_v3 = vcombine.low %v1029_v55, %v1033_v56  ;;  %s11997_s5 = scalar_lea.sflag [#allocation4], %s14999_s11 }
 0x29a   : > { %v12679_v5 = vcombine.high %v1037_v0, %v1041_v1 }
 0x29c   : > { %3499 = vmatpush1.bf16.msra.mxu0 %v12612_v8  ;;  %3663 = vmatpush1.bf16.msra.mxu1 %v12614_v9  ;;  %v12676_v8 = vcombine.low %v1036_v62, %v1040_v63  ;;  %v3745_v9 = vld [vmem:[%s15022_s3 + $0x8] sm:$0xff]  ;;  %v3784_v62 = vld [vmem:[%s15022_s3 + $0x140] sm:$0xff] }
 0x29d   : > { %3500 = vmatprep.subr.bf16.mxu0 %v12621_v10  ;;  %3664 = vmatprep.subr.bf16.mxu1 %v12623_v57  ;;  %v3749_v10 = vld [vmem:[%s15022_s3 + $0x28] sm:$0xff]  ;;  %v12678_v57 = vcombine.low %v1037_v0, %v1041_v1  ;;  %v3788_v63 = vld [vmem:[%s15022_s3 + $0x160] sm:$0xff] }
 0x29e   : > { %v12687_v13 = vcombine.high %v3745_v9, %v3749_v10  ;;  %v12686_v20 = vcombine.low %v3745_v9, %v3749_v10  ;;  %v3785_v0 = vld [vmem:[%s15022_s3 + $0x148] sm:$0xff] }
 0x29f   : > { %v3789_v1 = vld [vmem:[%s15022_s3 + $0x168] sm:$0xff] }
 0x2a0   : > { %3501 = vmatpush1.bf16.msra.mxu0 %v12620_v16  ;;  %3665 = vmatpush1.bf16.msra.mxu1 %v12622_v17  ;;  %v3756_v16 = vld [vmem:[%s15022_s3 + $0x60] sm:$0xff]  ;;  %v3753_v17 = vld [vmem:[%s15022_s3 + $0x48] sm:$0xff] }
 0x2a1   : > { %3502 = vmatprep.subr.bf16.mxu0 %v12629_v18  ;;  %3666 = vmatprep.subr.bf16.mxu1 %v12631_v19  ;;  %v3757_v18 = vld [vmem:[%s15022_s3 + $0x68] sm:$0xff]  ;;  %v12684_v19 = vcombine.low %v3744_v6, %v3748_v7  ;;  %v12693_v21 = vcombine.high %v3752_v14, %v3756_v16  ;;  %v12727_v6 = vcombine.high %v3785_v0, %v3789_v1  ;;  %v3792_v7 = vld [vmem:[%s15022_s3 + $0x180] sm:$0xff] }
 0x2a2   : > { %v12695_v23 = vcombine.high %v3753_v17, %v3757_v18  ;;  %v12694_v29 = vcombine.low %v3753_v17, %v3757_v18  ;;  %v3793_v9 = vld [vmem:[%s15022_s3 + $0x188] sm:$0xff] }
 0x2a3   : > { %v3797_v10 = vld [vmem:[%s15022_s3 + $0x1a8] sm:$0xff] }
 0x2a4   : > { %3503 = vmatpush1.bf16.msra.mxu0 %v12628_v53  ;;  %3667 = vmatpush1.bf16.msra.mxu1 %v12630_v24  ;;  %v3764_v53 = vld [vmem:[%s15022_s3 + $0xa0] sm:$0xff]  ;;  %v3761_v24 = vld [vmem:[%s15022_s3 + $0x88] sm:$0xff] }
 0x2a5   : > { %3504 = vmatprep.subr.bf16.mxu0 %v12637_v26  ;;  %3668 = vmatprep.subr.bf16.mxu1 %v12639_v27  ;;  %v3765_v26 = vld [vmem:[%s15022_s3 + $0xa8] sm:$0xff]  ;;  %v12692_v27 = vcombine.low %v3752_v14, %v3756_v16  ;;  %v12701_v30 = vcombine.high %v3760_v22, %v3764_v53  ;;  %v12700_v37 = vcombine.low %v3760_v22, %v3764_v53  ;;  %v3800_v14 = vld [vmem:[%s15022_s3 + $0x1c0] sm:$0xff] }
 0x2a6   : > { %v12702_v39 = vcombine.low %v3761_v24, %v3765_v26  ;;  %v3804_v16 = vld [vmem:[%s15022_s3 + $0x1e0] sm:$0xff]  ;;  %v3801_v17 = vld [vmem:[%s15022_s3 + $0x1c8] sm:$0xff] }
 0x2a7   : > { %v3805_v18 = vld [vmem:[%s15022_s3 + $0x1e8] sm:$0xff]  ;;  %v3808_v22 = vld [vmem:[%s15022_s3 + $0x200] sm:$0xff] }
 0x2a8   : > { %3505 = vmatpush1.bf16.msra.mxu0 %v12636_v31  ;;  %3669 = vmatpush1.bf16.msra.mxu1 %v12638_v32  ;;  %v12703_v31 = vcombine.high %v3761_v24, %v3765_v26  ;;  %v3768_v32 = vld [vmem:[%s15022_s3 + $0xc0] sm:$0xff]  ;;  %v3813_v24 = vld [vmem:[%s15022_s3 + $0x228] sm:$0xff]  ;;  %v12740_v26 = vcombine.low %v3800_v14, %v3804_v16 }
 0x2a9   : > { %3506 = vmatprep.subr.bf16.mxu0 %v12645_v33  ;;  %3670 = vmatprep.subr.bf16.mxu1 %v12647_v35  ;;  %v3772_v33 = vld [vmem:[%s15022_s3 + $0xe0] sm:$0xff]  ;;  %v3769_v35 = vld [vmem:[%s15022_s3 + $0xc8] sm:$0xff] }
 0x2aa   : > { %v12708_v52 = vcombine.low %v3768_v32, %v3772_v33  ;;  %v12710_v56 = vcombine.low %v3769_v35, %v3773_v36  ;;  %v3812_v53 = vld [vmem:[%s15022_s3 + $0x220] sm:$0xff] }
 0x2ac   : > { %3507 = vmatpush1.bf16.msra.mxu0 %v12644_v40  ;;  %3671 = vmatpush1.bf16.msra.mxu1 %v12646_v41  ;;  %v12709_v40 = vcombine.high %v3768_v32, %v3772_v33  ;;  %v3820_v32 = vld [vmem:[%s15022_s3 + $0x260] sm:$0xff]  ;;  %v3817_v33 = vld [vmem:[%s15022_s3 + $0x248] sm:$0xff] }
 0x2ad   : > { %3508 = vmatprep.subr.bf16.mxu0 %v12653_v25  ;;  %3672 = vmatprep.subr.bf16.mxu1 %v12655_v43  ;;  %v12711_v25 = vcombine.high %v3769_v35, %v3773_v36  ;;  %v3776_v43 = vld [vmem:[%s15022_s3 + $0x100] sm:$0xff]  ;;  %v3821_v35 = vld [vmem:[%s15022_s3 + $0x268] sm:$0xff]  ;;  %v12748_v36 = vcombine.low %v3808_v22, %v3812_v53 }
 0x2b0   : > { %3509 = vmatpush1.bf16.msra.mxu0 %v12652_v48  ;;  %3673 = vmatpush1.bf16.msra.mxu1 %v12654_v49  ;;  %v3781_v48 = vld [vmem:[%s15022_s3 + $0x128] sm:$0xff] }
 0x2b1   : > { %3510 = vmatprep.subr.bf16.mxu0 %v12661_v50  ;;  %3674 = vmatprep.subr.bf16.mxu1 %v12663_v51 }
 0x2b4   : > { %3511 = vmatpush1.bf16.msra.mxu0 %v12660_v58  ;;  %3675 = vmatpush1.bf16.msra.mxu1 %v12662_v59  ;;  %v12717_v58 = vcombine.high %v3776_v43, %v3780_v44 }
 0x2b5   : > { %3512 = vmatprep.subr.bf16.mxu0 %v12669_v60  ;;  %3676 = vmatprep.subr.bf16.mxu1 %v12671_v61  ;;  %v12719_v61 = vcombine.high %v3777_v47, %v3781_v48 }
 0x2b8   : > { %3513 = vmatpush1.bf16.msra.mxu0 %v12668_v2  ;;  %3677 = vmatpush1.bf16.msra.mxu1 %v12670_v3  ;;  %v12716_v3 = vcombine.low %v3776_v43, %v3780_v44  ;;  %v3825_v43 = vld [vmem:[%s15022_s3 + $0x288] sm:$0xff] }
 0x2b9   : > { %3523 = vmatprep.subr.bf16.mxu0 %v12677_v4  ;;  %3687 = vmatprep.subr.bf16.mxu1 %v12679_v5  ;;  %v12718_v4 = vcombine.low %v3777_v47, %v3781_v48  ;;  %v12725_v5 = vcombine.high %v3784_v62, %v3788_v63  ;;  %v3829_v44 = vld [vmem:[%s15022_s3 + $0x2a8] sm:$0xff]  ;;  %v12758_v47 = vcombine.low %v3817_v33, %v3821_v35 }
 0x2bb   : > { %3515 = vmatmul.mubr.bf16.vlgmr.msra.gmra.mrb[4].mxu0 %v15280_v34  ;;  %3679 = vmatmul.mubr.bf16.vlgmr.msra.gmra.mrb[4].mxu1 %v15280_v34  ;;  %v15507_v34 = vshrl.u32 %v1044_v12, 7  ;;  %v12735_v12 = vcombine.high %v3793_v9, %v3797_v10 }
 0x2bc   : > { %3524 = vmatpush1.bf16.msra.mxu0 %v12676_v8  ;;  %3688 = vmatpush1.bf16.msra.mxu1 %v12678_v57  ;;  %v3796_v8 = vld [vmem:[%s15022_s3 + $0x1a0] sm:$0xff]  ;;  %v12724_v57 = vcombine.low %v3784_v62, %v3788_v63  ;;  %v3841_v63 = vld [vmem:[%s15022_s3 + $0x308] sm:$0xff] }
 0x2bd   : > { %3555 = vmatprep.mubr.bf16.mxu0 %v14577_v42  ;;  %3719 = vmatprep.mubr.bf16.mxu1 %v14577_v42  ;;  %v14207_v42 = vld [vmem:[%s15003_s0 + $0x18] ss:$0 sps:$4 sm:$0xff]   ;;  %v15517_v28 = vsub.s32 1, %v15507_v34  ;;  %v3844_v62 = vld [vmem:[%s15022_s3 + $0x320] sm:$0xff] }
 0x2be   : > { %6858 = vmatprep.subr.bf16.mxu0 %v12685_v11  ;;  %7022 = vmatprep.subr.bf16.mxu1 %v12687_v13  ;;  %v12726_v11 = vcombine.low %v3785_v0, %v3789_v1  ;;  %v12733_v13 = vcombine.high %v3792_v7, %v3796_v8  ;;  %v3845_v0 = vld [vmem:[%s15022_s3 + $0x328] sm:$0xff] }
 0x2bf   : > { %v1051_v38 = vrot.slane %v15521_v15, %v15517_v28 }
 0x2c7   : > { %12682 = vmatmul.mubr.msk.bf16.vlgmr.msra.gmra.mrb[4].mxu0 %vm3068_vm0, %v14207_v42  ;;  %12683 = vmatmul.mubr.msk.bf16.vlgmr.msra.gmra.mrb[4].mxu1 %vm3068_vm0, %v14207_v42  ;;  %v3809_v42 = vld [vmem:[%s15022_s3 + $0x208] sm:$0xff] }
 0x2c8   : > { %6859 = vmatpush1.bf16.msra.mxu0 %v12684_v19  ;;  %7023 = vmatpush1.bf16.msra.mxu1 %v12686_v20  ;;  %v12732_v19 = vcombine.low %v3792_v7, %v3796_v8  ;;  %v12734_v20 = vcombine.low %v3793_v9, %v3797_v10  ;;  %v3852_v7 = vld [vmem:[%s15022_s3 + $0x360] sm:$0xff]  ;;  %v3849_v8 = vld [vmem:[%s15022_s3 + $0x348] sm:$0xff] }
 0x2c9   : > { %6860 = vmatprep.subr.bf16.mxu0 %v12693_v21  ;;  %7024 = vmatprep.subr.bf16.mxu1 %v12695_v23  ;;  %v12741_v21 = vcombine.high %v3800_v14, %v3804_v16  ;;  %v12743_v23 = vcombine.high %v3801_v17, %v3805_v18  ;;  %v3853_v9 = vld [vmem:[%s15022_s3 + $0x368] sm:$0xff]  ;;  %v3856_v14 = vld [vmem:[%s15022_s3 + $0x380] sm:$0xff] }
 0x2ca   : > { %v3860_v16 = vld [vmem:[%s15022_s3 + $0x3a0] sm:$0xff] }
 0x2cc   : > { %6861 = vmatpush1.bf16.msra.mxu0 %v12692_v27  ;;  %7025 = vmatpush1.bf16.msra.mxu1 %v12694_v29  ;;  %v12742_v27 = vcombine.low %v3801_v17, %v3805_v18  ;;  %v12749_v29 = vcombine.high %v3808_v22, %v3812_v53  ;;  %v15585_v17 = vsub.s32 3, %v15507_v34  ;;  %v3857_v18 = vld [vmem:[%s15022_s3 + $0x388] sm:$0xff]  ;;  %v12797_v22 = vcombine.high %v3856_v14, %v3860_v16 }
 0x2cd   : > { %6862 = vmatprep.subr.bf16.mxu0 %v12701_v30  ;;  %7026 = vmatprep.subr.bf16.mxu1 %v12703_v31  ;;  %v12751_v30 = vcombine.high %v3809_v42, %v3813_v24  ;;  %v3816_v31 = vld [vmem:[%s15022_s3 + $0x240] sm:$0xff] }
 0x2ce   : > { %v15529_v41 = vpop.f32.mrb[0].mxu0  ;;  %v15533_v45 = vpop.f32.mrb[0].mxu1 }
 0x2cf   : > { %v3231_v46 = vpop.f32.mrb[1].mxu0  ;;  %v15537_v50 = vpop.f32.mrb[1].mxu1 }
 0x2d0   : > { %6863 = vmatpush1.bf16.msra.mxu0 %v12700_v37  ;;  %v13872_v49 = vadd.f32 %v3231_v46, %v1051_v38  ;;  %v3233_v51 = vpop.f32.mrb[2].mxu0  ;;  %7027 = vmatpush1.bf16.msra.mxu1 %v12702_v39  ;;  %v3397_v54 = vpop.f32.mrb[2].mxu1  ;;  %v12750_v37 = vcombine.low %v3809_v42, %v3813_v24  ;;  %v12757_v38 = vcombine.high %v3816_v31, %v3820_v32  ;;  %v3864_v42 = vld [vmem:[%s15022_s3 + $0x3c0] sm:$0xff] }
 0x2d1   : > { %v3234_v55 = vpop.f32.mrb[3].mxu0  ;;  %6864 = vmatprep.subr.bf16.mxu0 %v12709_v40  ;;  %v3398_v60 = vpop.f32.mrb[3].mxu1  ;;  %7028 = vmatprep.subr.bf16.mxu1 %v12711_v25  ;;  %v12759_v39 = vcombine.high %v3817_v33, %v3821_v35  ;;  %v3824_v40 = vld [vmem:[%s15022_s3 + $0x280] sm:$0xff]  ;;  %v12756_v46 = vcombine.low %v3816_v31, %v3820_v32  ;;  %v3833_v54 = vld [vmem:[%s15022_s3 + $0x2c8] sm:$0xff] }
 0x2d2   : > { %v3729_v59 = vmax.f32 %v13872_v49, 0.0  ;;  %v3828_v25 = vld [vmem:[%s15022_s3 + $0x2a0] sm:$0xff]  ;;  %v12767_v49 = vcombine.high %v3825_v43, %v3829_v44  ;;  %v3837_v55 = vld [vmem:[%s15022_s3 + $0x2e8] sm:$0xff] }
 0x2d3   : > { %v12765_v48 = vcombine.high %v3824_v40, %v3828_v25  ;;  %v3832_v51 = vld [vmem:[%s15022_s3 + $0x2c0] sm:$0xff]  ;;  %v12775_v60 = vcombine.high %v3833_v54, %v3837_v55 }
 0x2d4   : > { %v15543_v2 = vpack.c.bf16 %v3729_v59, %v3729_v59  ;;  %6865 = vmatpush1.bf16.msra.mxu0 %v12708_v52  ;;  %7029 = vmatpush1.bf16.msra.mxu1 %v12710_v56  ;;  %v3836_v52 = vld [vmem:[%s15022_s3 + $0x2e0] sm:$0xff]  ;;  %v12764_v56 = vcombine.low %v3824_v40, %v3828_v25  ;;  %v3877_v40 = vld [vmem:[%s15022_s3 + $0x428] sm:$0xff] }
 0x2d5   : > { %6866 = vmatprep.subr.bf16.mxu0 %v12717_v58  ;;  %7030 = vmatprep.subr.bf16.mxu1 %v12719_v61  ;;  %v12766_v58 = vcombine.low %v3825_v43, %v3829_v44  ;;  %v12773_v59 = vcombine.high %v3832_v51, %v3836_v52  ;;  %v3840_v61 = vld [vmem:[%s15022_s3 + $0x300] sm:$0xff]  ;;  %v12772_v1 = vcombine.low %v3832_v51, %v3836_v52  ;;  %v3881_v51 = vld [vmem:[%s15022_s3 + $0x448] sm:$0xff] }
 0x2d6   : > { %6890 = vmatprep.mubr.bf16.mxu0 %v15543_v2  ;;  %7054 = vmatprep.mubr.bf16.mxu1 %v15543_v2  ;;  %v12780_v10 = vcombine.low %v3840_v61, %v3844_v62  ;;  %v3868_v24 = vld [vmem:[%s15022_s3 + $0x3e0] sm:$0xff]  ;;  %v3885_v52 = vld [vmem:[%s15022_s3 + $0x468] sm:$0xff] }
 0x2d7   : > { %v12805_v33 = vcombine.high %v3864_v42, %v3868_v24  ;;  %v12804_v25 = vcombine.low %v3864_v42, %v3868_v24  ;;  %v3913_v42 = vld [vmem:[%s15022_s3 + $0x548] sm:$0xff] }
 0x2d8   : > { %6867 = vmatpush1.bf16.msra.mxu0 %v12716_v3  ;;  %7031 = vmatpush1.bf16.msra.mxu1 %v12718_v4  ;;  %v12774_v3 = vcombine.low %v3833_v54, %v3837_v55  ;;  %v12781_v4 = vcombine.high %v3840_v61, %v3844_v62  ;;  %v12823_v61 = vcombine.high %v3881_v51, %v3885_v52  ;;  %v3889_v62 = vld [vmem:[%s15022_s3 + $0x488] sm:$0xff] }
 0x2d9   : > { %6868 = vmatprep.subr.bf16.mxu0 %v12725_v5  ;;  %7032 = vmatprep.subr.bf16.mxu1 %v12727_v6  ;;  %v12783_v5 = vcombine.high %v3841_v63, %v3845_v0  ;;  %v3848_v6 = vld [vmem:[%s15022_s3 + $0x340] sm:$0xff]  ;;  %v3917_v24 = vld [vmem:[%s15022_s3 + $0x568] sm:$0xff] }
 0x2dc   : > { %6869 = vmatpush1.bf16.msra.mxu0 %v12724_v57  ;;  %7033 = vmatpush1.bf16.msra.mxu1 %v12726_v11  ;;  %v15580_v57 = vsub.s32 0, %v15507_v34  ;;  %v12782_v11 = vcombine.low %v3841_v63, %v3845_v0  ;;  %v3893_v63 = vld [vmem:[%s15022_s3 + $0x4a8] sm:$0xff] }
 0x2dd   : > { %6870 = vmatprep.subr.bf16.mxu0 %v12733_v13  ;;  %7034 = vmatprep.subr.bf16.mxu1 %v12735_v12  ;;  %v12789_v13 = vcombine.high %v3848_v6, %v3852_v7  ;;  %v12791_v12 = vcombine.high %v3849_v8, %v3853_v9 }
 0x2e0   : > { %6871 = vmatpush1.bf16.msra.mxu0 %v12732_v19  ;;  %7035 = vmatpush1.bf16.msra.mxu1 %v12734_v20  ;;  %v3861_v19 = vld [vmem:[%s15022_s3 + $0x3a8] sm:$0xff]  ;;  %v12788_v20 = vcombine.low %v3848_v6, %v3852_v7  ;;  %v3900_v6 = vld [vmem:[%s15022_s3 + $0x4e0] sm:$0xff] }
 0x2e1   : > { %6872 = vmatprep.subr.bf16.mxu0 %v12741_v21  ;;  %7036 = vmatprep.subr.bf16.mxu1 %v12743_v23  ;;  %v1047_v21 = vrot.slane %v15521_v15, %v15580_v57  ;;  %v12790_v23 = vcombine.low %v3849_v8, %v3853_v9  ;;  %v12799_v53 = vcombine.high %v3857_v18, %v3861_v19  ;;  %v3897_v7 = vld [vmem:[%s15022_s3 + $0x4c8] sm:$0xff] }
 0x2e2   : > { %v12798_v32 = vcombine.low %v3857_v18, %v3861_v19  ;;  %v3901_v8 = vld [vmem:[%s15022_s3 + $0x4e8] sm:$0xff] }
 0x2e3   : > { %v13871_v31 = vadd.f32 %v15529_v41, %v1047_v21  ;;  %v3909_v18 = vld [vmem:[%s15022_s3 + $0x528] sm:$0xff] }
 0x2e4   : > { %6873 = vmatpush1.bf16.msra.mxu0 %v12740_v26  ;;  %7037 = vmatpush1.bf16.msra.mxu1 %v12742_v27  ;;  %v1059_v26 = vrot.slane %v15521_v15, %v15585_v17  ;;  %v3865_v27 = vld [vmem:[%s15022_s3 + $0x3c8] sm:$0xff] }
 0x2e5   : > { %6874 = vmatprep.subr.bf16.mxu0 %v12749_v29  ;;  %7038 = vmatprep.subr.bf16.mxu1 %v12751_v30  ;;  %v3869_v29 = vld [vmem:[%s15022_s3 + $0x3e8] sm:$0xff]  ;;  %v12796_v30 = vcombine.low %v3856_v14, %v3860_v16  ;;  %v3728_v43 = vmax.f32 %v13871_v31, 0.0  ;;  %v3908_v14 = vld [vmem:[%s15022_s3 + $0x520] sm:$0xff] }
 0x2e6   : > { %v12807_v35 = vcombine.high %v3865_v27, %v3869_v29  ;;  %v12806_v41 = vcombine.low %v3865_v27, %v3869_v29  ;;  %v3905_v16 = vld [vmem:[%s15022_s3 + $0x508] sm:$0xff]  ;;  %v3920_v31 = vld [vmem:[%s15022_s3 + $0x580] sm:$0xff] }
 0x2e7   : > { %v15607_v54 = vpack.c.bf16 %v3728_v43, %v3728_v43  ;;  %v12846_v27 = vcombine.low %v3905_v16, %v3909_v18  ;;  %v3929_v43 = vld [vmem:[%s15022_s3 + $0x5c8] sm:$0xff] }
 0x2e8   : > { %6875 = vmatpush1.bf16.msra.mxu0 %v12748_v36  ;;  %7039 = vmatpush1.bf16.msra.mxu1 %v12750_v37  ;;  %v3872_v36 = vld [vmem:[%s15022_s3 + $0x400] sm:$0xff] }
 0x2e9   : > { %6876 = vmatprep.subr.bf16.mxu0 %v12757_v38  ;;  %7040 = vmatprep.subr.bf16.mxu1 %v12759_v39  ;;  %v3876_v37 = vld [vmem:[%s15022_s3 + $0x420] sm:$0xff]  ;;  %v13874_v38 = vadd.f32 %v15537_v50, %v1059_v26  ;;  %v3873_v39 = vld [vmem:[%s15022_s3 + $0x408] sm:$0xff] }
 0x2ea   : > { %v12813_v44 = vcombine.high %v3872_v36, %v3876_v37  ;;  %v12812_v50 = vcombine.low %v3872_v36, %v3876_v37  ;;  %v12814_v55 = vcombine.low %v3873_v39, %v3877_v40  ;;  %v12854_v37 = vcombine.low %v3913_v42, %v3917_v24 }
 0x2ec   : > { %6877 = vmatpush1.bf16.msra.mxu0 %v12756_v46  ;;  %7041 = vmatpush1.bf16.msra.mxu1 %v12758_v47  ;;  %v12815_v46 = vcombine.high %v3873_v39, %v3877_v40  ;;  %v3731_v47 = vmax.f32 %v13874_v38, 0.0  ;;  %v3928_v40 = vld [vmem:[%s15022_s3 + $0x5c0] sm:$0xff] }
 0x2ed   : > { %6878 = vmatprep.subr.bf16.mxu0 %v12765_v48  ;;  %7042 = vmatprep.subr.bf16.mxu1 %v12767_v49  ;;  %v3880_v48 = vld [vmem:[%s15022_s3 + $0x440] sm:$0xff] }
 0x2ee   : > { %v3884_v49 = vld [vmem:[%s15022_s3 + $0x460] sm:$0xff] }
 0x2ef   : > { %v12820_v0 = vcombine.low %v3880_v48, %v3884_v49 }
 0x2f0   : > { %6879 = vmatpush1.bf16.msra.mxu0 %v12764_v56  ;;  %7043 = vmatpush1.bf16.msra.mxu1 %v12766_v58  ;;  %v12821_v56 = vcombine.high %v3880_v48, %v3884_v49  ;;  %v3888_v58 = vld [vmem:[%s15022_s3 + $0x480] sm:$0xff] }
 0x2f1   : > { %6880 = vmatprep.subr.bf16.mxu0 %v12773_v59  ;;  %7044 = vmatprep.subr.bf16.mxu1 %v12775_v60  ;;  %v3892_v59 = vld [vmem:[%s15022_s3 + $0x4a0] sm:$0xff]  ;;  %v15611_v60 = vpack.c.bf16 %v3731_v47, %v3731_v47 }
 0x2f2   : > { %v12828_v9 = vcombine.low %v3888_v58, %v3892_v59  ;;  %v3936_v49 = vld [vmem:[%s15022_s3 + $0x600] sm:$0xff] }
 0x2f4   : > { %6881 = vmatpush1.bf16.msra.mxu0 %v12772_v1  ;;  %7045 = vmatpush1.bf16.msra.mxu1 %v12774_v3  ;;  %v12822_v1 = vcombine.low %v3881_v51, %v3885_v52  ;;  %v12829_v3 = vcombine.high %v3888_v58, %v3892_v59  ;;  %v3937_v51 = vld [vmem:[%s15022_s3 + $0x608] sm:$0xff] }
 0x2f5   : > { %6882 = vmatprep.subr.bf16.mxu0 %v12781_v4  ;;  %7046 = vmatprep.subr.bf16.mxu1 %v12783_v5  ;;  %v12831_v4 = vcombine.high %v3889_v62, %v3893_v63  ;;  %v3896_v5 = vld [vmem:[%s15022_s3 + $0x4c0] sm:$0xff]  ;;  %v3941_v52 = vld [vmem:[%s15022_s3 + $0x628] sm:$0xff] }
 0x2f6   : > { %v12836_v19 = vcombine.low %v3896_v5, %v3900_v6  ;;  %v12879_v59 = vcombine.high %v3937_v51, %v3941_v52 }
 0x2f8   : > { %6883 = vmatpush1.bf16.msra.mxu0 %v12780_v10  ;;  %7047 = vmatpush1.bf16.msra.mxu1 %v12782_v11  ;;  %v12830_v10 = vcombine.low %v3889_v62, %v3893_v63  ;;  %v12837_v11 = vcombine.high %v3896_v5, %v3900_v6  ;;  %v3948_v62 = vld [vmem:[%s15022_s3 + $0x660] sm:$0xff]  ;;  %v3945_v63 = vld [vmem:[%s15022_s3 + $0x648] sm:$0xff] }
 0x2f9   : > { %6884 = vmatprep.subr.bf16.mxu0 %v12789_v13  ;;  %7048 = vmatprep.subr.bf16.mxu1 %v12791_v12  ;;  %v12839_v13 = vcombine.high %v3897_v7, %v3901_v8  ;;  %v3904_v12 = vld [vmem:[%s15022_s3 + $0x500] sm:$0xff] }
 0x2fa   : > { %v12845_v21 = vcombine.high %v3904_v12, %v3908_v14  ;;  %v12844_v26 = vcombine.low %v3904_v12, %v3908_v14  ;;  %v3952_v6 = vld [vmem:[%s15022_s3 + $0x680] sm:$0xff] }
 0x2fb   : > { %v3960_v14 = vld [vmem:[%s15022_s3 + $0x6c0] sm:$0xff] }
 0x2fc   : > { %6885 = vmatpush1.bf16.msra.mxu0 %v12788_v20  ;;  %7049 = vmatpush1.bf16.msra.mxu1 %v12790_v23  ;;  %v12838_v20 = vcombine.low %v3897_v7, %v3901_v8  ;;  %v12847_v23 = vcombine.high %v3905_v16, %v3909_v18  ;;  %v3956_v7 = vld [vmem:[%s15022_s3 + $0x6a0] sm:$0xff]  ;;  %v3953_v8 = vld [vmem:[%s15022_s3 + $0x688] sm:$0xff] }
 0x2fd   : > { %6886 = vmatprep.subr.bf16.mxu0 %v12797_v22  ;;  %7050 = vmatprep.subr.bf16.mxu1 %v12799_v53  ;;  %v3912_v22 = vld [vmem:[%s15022_s3 + $0x540] sm:$0xff]  ;;  %v3961_v18 = vld [vmem:[%s15022_s3 + $0x6c8] sm:$0xff] }
 0x2fe   : > { %v3916_v53 = vld [vmem:[%s15022_s3 + $0x560] sm:$0xff] }
 0x2ff   : > { %v12853_v29 = vcombine.high %v3912_v22, %v3916_v53  ;;  %v12852_v36 = vcombine.low %v3912_v22, %v3916_v53  ;;  %v3964_v16 = vld [vmem:[%s15022_s3 + $0x6e0] sm:$0xff] }
 0x300   : > { %6887 = vmatpush1.bf16.msra.mxu0 %v12796_v30  ;;  %7051 = vmatpush1.bf16.msra.mxu1 %v12798_v32  ;;  %v12855_v30 = vcombine.high %v3913_v42, %v3917_v24  ;;  %v3924_v32 = vld [vmem:[%s15022_s3 + $0x5a0] sm:$0xff]  ;;  %v3969_v24 = vld [vmem:[%s15022_s3 + $0x708] sm:$0xff] }
 0x301   : > { %6888 = vmatprep.subr.bf16.mxu0 %v12805_v33  ;;  %7052 = vmatprep.subr.bf16.mxu1 %v12807_v35  ;;  %v3921_v33 = vld [vmem:[%s15022_s3 + $0x588] sm:$0xff]  ;;  %v12861_v38 = vcombine.high %v3920_v31, %v3924_v32  ;;  %v3968_v53 = vld [vmem:[%s15022_s3 + $0x700] sm:$0xff] }
 0x302   : > { %v3925_v35 = vld [vmem:[%s15022_s3 + $0x5a8] sm:$0xff]  ;;  %v3972_v42 = vld [vmem:[%s15022_s3 + $0x720] sm:$0xff] }
 0x303   : > { %v12863_v39 = vcombine.high %v3921_v33, %v3925_v35 }
 0x304   : > { %6889 = vmatpush1.bf16.msra.mxu0 %v12804_v25  ;;  %7053 = vmatpush1.bf16.msra.mxu1 %v12806_v41  ;;  %v3932_v25 = vld [vmem:[%s15022_s3 + $0x5e0] sm:$0xff]  ;;  %v3933_v41 = vld [vmem:[%s15022_s3 + $0x5e8] sm:$0xff] }
 0x305   : > { %6899 = vmatprep.subr.bf16.mxu0 %v12813_v44  ;;  %7063 = vmatprep.subr.bf16.mxu1 %v12815_v46  ;;  %v12860_v44 = vcombine.low %v3920_v31, %v3924_v32  ;;  %v12862_v46 = vcombine.low %v3921_v33, %v3925_v35  ;;  %v12869_v47 = vcombine.high %v3928_v40, %v3932_v25  ;;  %v3976_v32 = vld [vmem:[%s15022_s3 + $0x740] sm:$0xff]  ;;  %v3977_v35 = vld [vmem:[%s15022_s3 + $0x748] sm:$0xff] }
 0x306   : > { %v12871_v48 = vcombine.high %v3929_v43, %v3933_v41  ;;  %v3980_v33 = vld [vmem:[%s15022_s3 + $0x760] sm:$0xff] }
 0x307   : > { %6891 = vmatmul.mubr.bf16.vlgmr.msra.gmra.mrb[8].mxu0 %v15607_v54  ;;  %7055 = vmatmul.mubr.bf16.vlgmr.msra.gmra.mrb[8].mxu1 %v15607_v54 }
 0x308   : > { %6900 = vmatpush1.bf16.msra.mxu0 %v12812_v50  ;;  %6931 = vmatprep.mubr.bf16.mxu0 %v15611_v60  ;;  %v3940_v50 = vld [vmem:[%s15022_s3 + $0x620] sm:$0xff] }
 0x309   : > { %7064 = vmatpush1.bf16.msra.mxu1 %v12814_v55  ;;  %7095 = vmatprep.mubr.bf16.mxu1 %v15611_v60  ;;  %v12868_v55 = vcombine.low %v3928_v40, %v3932_v25  ;;  %v12877_v58 = vcombine.high %v3936_v49, %v3940_v50  ;;  %v12917_v40 = vcombine.high %v3976_v32, %v3980_v33 }
 0x30a   : > { %6901 = vmatprep.subr.bf16.mxu0 %v12821_v56  ;;  %7065 = vmatprep.subr.bf16.mxu1 %v12823_v61  ;;  %v12870_v56 = vcombine.low %v3929_v43, %v3933_v41  ;;  %v3944_v61 = vld [vmem:[%s15022_s3 + $0x640] sm:$0xff] }
 0x30b   : > { %v3984_v43 = vld [vmem:[%s15022_s3 + $0x780] sm:$0xff] }
 0x30c   : > { %6902 = vmatpush1.bf16.msra.mxu0 %v12820_v0  ;;  %v3949_v0 = vld [vmem:[%s15022_s3 + $0x668] sm:$0xff]  ;;  %v3988_v41 = vld [vmem:[%s15022_s3 + $0x7a0] sm:$0xff] }
 0x30d   : > { %7066 = vmatpush1.bf16.msra.mxu1 %v12822_v1  ;;  %6903 = vmatprep.subr.bf16.mxu0 %v12829_v3  ;;  %v12876_v1 = vcombine.low %v3936_v49, %v3940_v50  ;;  %v12878_v3 = vcombine.low %v3937_v51, %v3941_v52  ;;  %v12887_v5 = vcombine.high %v3945_v63, %v3949_v0  ;;  %v3992_v52 = vld [vmem:[%s15022_s3 + $0x7c0] sm:$0xff] }
 0x30e   : > { %7067 = vmatprep.subr.bf16.mxu1 %v12831_v4  ;;  %v12885_v4 = vcombine.high %v3944_v61, %v3948_v62  ;;  %v12925_v50 = vcombine.high %v3984_v43, %v3988_v41 }
 0x310   : > { %6904 = vmatpush1.bf16.msra.mxu0 %v12828_v9  ;;  %v3957_v9 = vld [vmem:[%s15022_s3 + $0x6a8] sm:$0xff] }
 0x311   : > { %7068 = vmatpush1.bf16.msra.mxu1 %v12830_v10  ;;  %6905 = vmatprep.subr.bf16.mxu0 %v12837_v11  ;;  %v12884_v10 = vcombine.low %v3944_v61, %v3948_v62  ;;  %v12886_v11 = vcombine.low %v3945_v63, %v3949_v0  ;;  %v12895_v12 = vcombine.high %v3953_v8, %v3957_v9  ;;  %v4000_v0 = vld [vmem:[%s15022_s3 + $0x800] sm:$0xff] }
 0x312   : > { %7069 = vmatprep.subr.bf16.mxu1 %v12839_v13  ;;  %v12893_v13 = vcombine.high %v3952_v6, %v3956_v7 }
 0x314   : > { %6906 = vmatpush1.bf16.msra.mxu0 %v12836_v19  ;;  %v3965_v19 = vld [vmem:[%s15022_s3 + $0x6e8] sm:$0xff] }
 0x315   : > { %7070 = vmatpush1.bf16.msra.mxu1 %v12838_v20  ;;  %6907 = vmatprep.subr.bf16.mxu0 %v12845_v21  ;;  %v12892_v20 = vcombine.low %v3952_v6, %v3956_v7  ;;  %v12894_v21 = vcombine.low %v3953_v8, %v3957_v9  ;;  %v12903_v22 = vcombine.high %v3961_v18, %v3965_v19  ;;  %v4008_v9 = vld [vmem:[%s15022_s3 + $0x840] sm:$0xff] }
 0x316   : > { %7071 = vmatprep.subr.bf16.mxu1 %v12847_v23  ;;  %v12901_v23 = vcombine.high %v3960_v14, %v3964_v16 }
 0x318   : > { %6908 = vmatpush1.bf16.msra.mxu0 %v12844_v26  ;;  %v3973_v26 = vld [vmem:[%s15022_s3 + $0x728] sm:$0xff] }
 0x319   : > { %7072 = vmatpush1.bf16.msra.mxu1 %v12846_v27  ;;  %6909 = vmatprep.subr.bf16.mxu0 %v12853_v29  ;;  %v12900_v27 = vcombine.low %v3960_v14, %v3964_v16  ;;  %v12902_v29 = vcombine.low %v3961_v18, %v3965_v19  ;;  %v12911_v31 = vcombine.high %v3969_v24, %v3973_v26 }
 0x31a   : > { %7073 = vmatprep.subr.bf16.mxu1 %v12855_v30  ;;  %v12909_v30 = vcombine.high %v3968_v53, %v3972_v42 }
 0x31c   : > { %6910 = vmatpush1.bf16.msra.mxu0 %v12852_v36  ;;  %v3981_v36 = vld [vmem:[%s15022_s3 + $0x768] sm:$0xff] }
 0x31d   : > { %7074 = vmatpush1.bf16.msra.mxu1 %v12854_v37  ;;  %6911 = vmatprep.subr.bf16.mxu0 %v12861_v38  ;;  %v12908_v37 = vcombine.low %v3968_v53, %v3972_v42  ;;  %v15664_v38 = vsub.s32 2, %v15507_v34  ;;  %v12919_v25 = vcombine.high %v3977_v35, %v3981_v36  ;;  %v12918_v49 = vcombine.low %v3977_v35, %v3981_v36 }
 0x31e   : > { %7075 = vmatprep.subr.bf16.mxu1 %v12863_v39  ;;  %v12910_v39 = vcombine.low %v3969_v24, %v3973_v26 }
 0x320   : > { %6912 = vmatpush1.bf16.msra.mxu0 %v12860_v44  ;;  %v3985_v44 = vld [vmem:[%s15022_s3 + $0x788] sm:$0xff] }
 0x321   : > { %7076 = vmatpush1.bf16.msra.mxu1 %v12862_v46  ;;  %6913 = vmatprep.subr.bf16.mxu0 %v12869_v47  ;;  %v3989_v46 = vld [vmem:[%s15022_s3 + $0x7a8] sm:$0xff]  ;;  %v12916_v47 = vcombine.low %v3976_v32, %v3980_v33 }
 0x322   : > { %7077 = vmatprep.subr.bf16.mxu1 %v12871_v48  ;;  %v1055_v48 = vrot.slane %v15521_v15, %v15664_v38  ;;  %v12927_v51 = vcombine.high %v3985_v44, %v3989_v46  ;;  %v12926_v15 = vcombine.low %v3985_v44, %v3989_v46 }
 0x324   : > { %6914 = vmatpush1.bf16.msra.mxu0 %v12868_v55  ;;  %v3996_v55 = vld [vmem:[%s15022_s3 + $0x7e0] sm:$0xff]  ;;  %v13873_v61 = vadd.f32 %v15533_v45, %v1055_v48 }
 0x325   : > { %7078 = vmatpush1.bf16.msra.mxu1 %v12870_v56  ;;  %6915 = vmatprep.subr.bf16.mxu0 %v12877_v58  ;;  %v3993_v56 = vld [vmem:[%s15022_s3 + $0x7c8] sm:$0xff]  ;;  %v12933_v62 = vcombine.high %v3992_v52, %v3996_v55  ;;  %v4044_v48 = vld [vmem:[%s15022_s3 + $0x960] sm:$0xff] }
 0x326   : > { %7079 = vmatprep.subr.bf16.mxu1 %v12879_v59  ;;  %v3997_v58 = vld [vmem:[%s15022_s3 + $0x7e8] sm:$0xff]  ;;  %v12924_v59 = vcombine.low %v3984_v43, %v3988_v41  ;;  %v3730_v6 = vmax.f32 %v13873_v61, 0.0 }
 0x327   : > { %v12935_v63 = vcombine.high %v3993_v56, %v3997_v58  ;;  %v12934_v45 = vcombine.low %v3993_v56, %v3997_v58  ;;  %v4048_v58 = vld [vmem:[%s15022_s3 + $0x980] sm:$0xff]  ;;  %v4049_v61 = vld [vmem:[%s15022_s3 + $0x988] sm:$0xff] }
 0x328   : > { %6916 = vmatpush1.bf16.msra.mxu0 %v12876_v1  ;;  %v4004_v1 = vld [vmem:[%s15022_s3 + $0x820] sm:$0xff]  ;;  %v15685_v14 = vpack.c.bf16 %v3730_v6, %v3730_v6  ;;  %v4061_v6 = vld [vmem:[%s15022_s3 + $0x9e8] sm:$0xff] }
 0x329   : > { %7080 = vmatpush1.bf16.msra.mxu1 %v12878_v3  ;;  %6917 = vmatprep.subr.bf16.mxu0 %v12885_v4  ;;  %v4001_v3 = vld [vmem:[%s15022_s3 + $0x808] sm:$0xff]  ;;  %v12941_v7 = vcombine.high %v4000_v0, %v4004_v1 }
 0x32a   : > { %7081 = vmatprep.subr.bf16.mxu1 %v12887_v5  ;;  %v4005_v4 = vld [vmem:[%s15022_s3 + $0x828] sm:$0xff]  ;;  %v12932_v5 = vcombine.low %v3992_v52, %v3996_v55 }
 0x32b   : > { %v12943_v8 = vcombine.high %v4001_v3, %v4005_v4  ;;  %v12942_v16 = vcombine.low %v4001_v3, %v4005_v4  ;;  %v4056_v3 = vld [vmem:[%s15022_s3 + $0x9c0] sm:$0xff] }
 0x32c   : > { %6918 = vmatpush1.bf16.msra.mxu0 %v12884_v10  ;;  %v4012_v10 = vld [vmem:[%s15022_s3 + $0x860] sm:$0xff] }
 0x32d   : > { %7082 = vmatpush1.bf16.msra.mxu1 %v12886_v11  ;;  %6919 = vmatprep.subr.bf16.mxu0 %v12893_v13  ;;  %v4009_v11 = vld [vmem:[%s15022_s3 + $0x848] sm:$0xff]  ;;  %v12949_v18 = vcombine.high %v4008_v9, %v4012_v10  ;;  %v12948_v53 = vcombine.low %v4008_v9, %v4012_v10  ;;  %v4060_v4 = vld [vmem:[%s15022_s3 + $0x9e0] sm:$0xff] }
 0x32e   : > { %7083 = vmatprep.subr.bf16.mxu1 %v12895_v12  ;;  %v4013_v13 = vld [vmem:[%s15022_s3 + $0x868] sm:$0xff]  ;;  %v12940_v12 = vcombine.low %v4000_v0, %v4004_v1  ;;  %v4064_v10 = vld [vmem:[%s15022_s3 + $0xa00] sm:$0xff] }
 0x32f   : > { %v12951_v19 = vcombine.high %v4009_v11, %v4013_v13  ;;  %v12950_v42 = vcombine.low %v4009_v11, %v4013_v13  ;;  %v4068_v11 = vld [vmem:[%s15022_s3 + $0xa20] sm:$0xff]  ;;  %v4065_v13 = vld [vmem:[%s15022_s3 + $0xa08] sm:$0xff] }
 0x330   : > { %6920 = vmatpush1.bf16.msra.mxu0 %v12892_v20  ;;  %v4016_v20 = vld [vmem:[%s15022_s3 + $0x880] sm:$0xff] }
 0x331   : > { %7084 = vmatpush1.bf16.msra.mxu1 %v12894_v21  ;;  %6921 = vmatprep.subr.bf16.mxu0 %v12901_v23  ;;  %v4020_v21 = vld [vmem:[%s15022_s3 + $0x8a0] sm:$0xff]  ;;  %v4017_v23 = vld [vmem:[%s15022_s3 + $0x888] sm:$0xff] }
 0x332   : > { %7085 = vmatprep.subr.bf16.mxu1 %v12903_v22  ;;  %v4021_v22 = vld [vmem:[%s15022_s3 + $0x8a8] sm:$0xff]  ;;  %v12957_v24 = vcombine.high %v4016_v20, %v4020_v21  ;;  %v12956_v32 = vcombine.low %v4016_v20, %v4020_v21  ;;  %v4072_v21 = vld [vmem:[%s15022_s3 + $0xa40] sm:$0xff] }
 0x333   : > { %v12959_v26 = vcombine.high %v4017_v23, %v4021_v22  ;;  %v12958_v33 = vcombine.low %v4017_v23, %v4021_v22  ;;  %v4076_v23 = vld [vmem:[%s15022_s3 + $0xa60] sm:$0xff]  ;;  %v4073_v22 = vld [vmem:[%s15022_s3 + $0xa48] sm:$0xff] }
 0x334   : > { %6922 = vmatpush1.bf16.msra.mxu0 %v12900_v27  ;;  %v4024_v27 = vld [vmem:[%s15022_s3 + $0x8c0] sm:$0xff] }
 0x335   : > { %7086 = vmatpush1.bf16.msra.mxu1 %v12902_v29  ;;  %6923 = vmatprep.subr.bf16.mxu0 %v12909_v30  ;;  %v4028_v29 = vld [vmem:[%s15022_s3 + $0x8e0] sm:$0xff]  ;;  %v4025_v30 = vld [vmem:[%s15022_s3 + $0x8c8] sm:$0xff] }
 0x336   : > { %7087 = vmatprep.subr.bf16.mxu1 %v12911_v31  ;;  %v4029_v31 = vld [vmem:[%s15022_s3 + $0x8e8] sm:$0xff]  ;;  %v12965_v35 = vcombine.high %v4024_v27, %v4028_v29  ;;  %v12964_v43 = vcombine.low %v4024_v27, %v4028_v29  ;;  %v4080_v29 = vld [vmem:[%s15022_s3 + $0xa80] sm:$0xff] }
 0x337   : > { %v12967_v36 = vcombine.high %v4025_v30, %v4029_v31  ;;  %v12966_v41 = vcombine.low %v4025_v30, %v4029_v31  ;;  %v4084_v30 = vld [vmem:[%s15022_s3 + $0xaa0] sm:$0xff]  ;;  %v4081_v31 = vld [vmem:[%s15022_s3 + $0xa88] sm:$0xff] }
 0x338   : > { %6924 = vmatpush1.bf16.msra.mxu0 %v12908_v37  ;;  %v4032_v37 = vld [vmem:[%s15022_s3 + $0x900] sm:$0xff] }
 0x339   : > { %7088 = vmatpush1.bf16.msra.mxu1 %v12910_v39  ;;  %6925 = vmatprep.subr.bf16.mxu0 %v12917_v40  ;;  %v4036_v39 = vld [vmem:[%s15022_s3 + $0x920] sm:$0xff]  ;;  %v4033_v40 = vld [vmem:[%s15022_s3 + $0x908] sm:$0xff] }
 0x33a   : > { %7089 = vmatprep.subr.bf16.mxu1 %v12919_v25  ;;  %v4037_v25 = vld [vmem:[%s15022_s3 + $0x928] sm:$0xff]  ;;  %v12973_v44 = vcombine.high %v4032_v37, %v4036_v39 }
 0x33b   : > { %v12975_v46 = vcombine.high %v4033_v40, %v4037_v25  ;;  %v12974_v52 = vcombine.low %v4033_v40, %v4037_v25  ;;  %v4092_v40 = vld [vmem:[%s15022_s3 + $0xae0] sm:$0xff]  ;;  %v4089_v25 = vld [vmem:[%s15022_s3 + $0xac8] sm:$0xff] }
 0x33c   : > { %6926 = vmatpush1.bf16.msra.mxu0 %v12916_v47  ;;  %v4040_v47 = vld [vmem:[%s15022_s3 + $0x940] sm:$0xff] }
 0x33d   : > { %7090 = vmatpush1.bf16.msra.mxu1 %v12918_v49  ;;  %6927 = vmatprep.subr.bf16.mxu0 %v12925_v50  ;;  %v4041_v49 = vld [vmem:[%s15022_s3 + $0x948] sm:$0xff]  ;;  %v12981_v55 = vcombine.high %v4040_v47, %v4044_v48 }
 0x33e   : > { %7091 = vmatprep.subr.bf16.mxu1 %v12927_v51  ;;  %v4045_v50 = vld [vmem:[%s15022_s3 + $0x968] sm:$0xff]  ;;  %v12972_v51 = vcombine.low %v4032_v37, %v4036_v39  ;;  %v4088_v39 = vld [vmem:[%s15022_s3 + $0xac0] sm:$0xff] }
 0x33f   : > { %v12983_v56 = vcombine.high %v4041_v49, %v4045_v50 }
 0x340   : > { %6928 = vmatpush1.bf16.msra.mxu0 %v12924_v59  ;;  %v4052_v59 = vld [vmem:[%s15022_s3 + $0x9a0] sm:$0xff] }
 0x341   : > { %7092 = vmatpush1.bf16.msra.mxu1 %v12926_v15  ;;  %6929 = vmatprep.subr.bf16.mxu0 %v12933_v62  ;;  %v4053_v15 = vld [vmem:[%s15022_s3 + $0x9a8] sm:$0xff]  ;;  %v12980_v62 = vcombine.low %v4040_v47, %v4044_v48  ;;  %v12989_v0 = vcombine.high %v4048_v58, %v4052_v59  ;;  %v4096_v48 = vld [vmem:[%s15022_s3 + $0xb00] sm:$0xff] }
 0x342   : > { %7093 = vmatprep.subr.bf16.mxu1 %v12935_v63  ;;  %v12982_v63 = vcombine.low %v4041_v49, %v4045_v50  ;;  %v12991_v1 = vcombine.high %v4049_v61, %v4053_v15  ;;  %v4100_v49 = vld [vmem:[%s15022_s3 + $0xb20] sm:$0xff]  ;;  %v4097_v50 = vld [vmem:[%s15022_s3 + $0xb08] sm:$0xff] }
 0x344   : > { %6930 = vmatpush1.bf16.msra.mxu0 %v12932_v5  ;;  %v4057_v5 = vld [vmem:[%s15022_s3 + $0x9c8] sm:$0xff] }
 0x345   : > { %7094 = vmatpush1.bf16.msra.mxu1 %v12934_v45  ;;  %6940 = vmatprep.subr.bf16.mxu0 %v12941_v7  ;;  %v12988_v45 = vcombine.low %v4048_v58, %v4052_v59  ;;  %v12990_v7 = vcombine.low %v4049_v61, %v4053_v15  ;;  %v12999_v9 = vcombine.high %v4057_v5, %v4061_v6  ;;  %v4104_v59 = vld [vmem:[%s15022_s3 + $0xb40] sm:$0xff]  ;;  %v4105_v15 = vld [vmem:[%s15022_s3 + $0xb48] sm:$0xff] }
 0x346   : > { %7104 = vmatprep.subr.bf16.mxu1 %v12943_v8  ;;  %v12997_v8 = vcombine.high %v4056_v3, %v4060_v4  ;;  %v4108_v61 = vld [vmem:[%s15022_s3 + $0xb60] sm:$0xff] }
 0x347   : > { %6932 = vmatmul.mubr.bf16.vlgmr.msra.gmra.mrb[8].mxu0 %v15685_v14 }
 0x348   : > { %7096 = vmatmul.mubr.bf16.vlgmr.msra.gmra.mrb[8].mxu1 %v15685_v14  ;;  %6941 = vmatpush1.bf16.msra.mxu0 %v12940_v12  ;;  %v4069_v12 = vld [vmem:[%s15022_s3 + $0xa28] sm:$0xff] }
 0x349   : > { %7105 = vmatpush1.bf16.msra.mxu1 %v12942_v16  ;;  %6942 = vmatprep.subr.bf16.mxu0 %v12949_v18  ;;  %v12996_v16 = vcombine.low %v4056_v3, %v4060_v4  ;;  %v12998_v18 = vcombine.low %v4057_v5, %v4061_v6  ;;  %v13007_v20 = vcombine.high %v4065_v13, %v4069_v12  ;;  %v4112_v4 = vld [vmem:[%s15022_s3 + $0xb80] sm:$0xff]  ;;  %v4113_v6 = vld [vmem:[%s15022_s3 + $0xb88] sm:$0xff] }
 0x34a   : > { %7106 = vmatprep.subr.bf16.mxu1 %v12951_v19  ;;  %v13005_v19 = vcombine.high %v4064_v10, %v4068_v11  ;;  %v4116_v5 = vld [vmem:[%s15022_s3 + $0xba0] sm:$0xff] }
 0x34c   : > { %6943 = vmatpush1.bf16.msra.mxu0 %v12948_v53  ;;  %v4077_v53 = vld [vmem:[%s15022_s3 + $0xa68] sm:$0xff] }
 0x34d   : > { %7107 = vmatpush1.bf16.msra.mxu1 %v12950_v42  ;;  %6944 = vmatprep.subr.bf16.mxu0 %v12957_v24  ;;  %v13004_v42 = vcombine.low %v4064_v10, %v4068_v11  ;;  %v13006_v24 = vcombine.low %v4065_v13, %v4069_v12  ;;  %v13015_v27 = vcombine.high %v4073_v22, %v4077_v53  ;;  %v4120_v11 = vld [vmem:[%s15022_s3 + $0xbc0] sm:$0xff]  ;;  %v4121_v12 = vld [vmem:[%s15022_s3 + $0xbc8] sm:$0xff] }
 0x34e   : > { %7108 = vmatprep.subr.bf16.mxu1 %v12959_v26  ;;  %v13013_v26 = vcombine.high %v4072_v21, %v4076_v23  ;;  %v4124_v13 = vld [vmem:[%s15022_s3 + $0xbe0] sm:$0xff] }
 0x350   : > { %6945 = vmatpush1.bf16.msra.mxu0 %v12956_v32  ;;  %v4085_v32 = vld [vmem:[%s15022_s3 + $0xaa8] sm:$0xff] }
 0x351   : > { %7109 = vmatpush1.bf16.msra.mxu1 %v12958_v33  ;;  %6946 = vmatprep.subr.bf16.mxu0 %v12965_v35  ;;  %v13012_v33 = vcombine.low %v4072_v21, %v4076_v23  ;;  %v13014_v35 = vcombine.low %v4073_v22, %v4077_v53  ;;  %v13023_v37 = vcombine.high %v4081_v31, %v4085_v32  ;;  %v4128_v23 = vld [vmem:[%s15022_s3 + $0xc00] sm:$0xff]  ;;  %v4129_v53 = vld [vmem:[%s15022_s3 + $0xc08] sm:$0xff] }
 0x352   : > { %7110 = vmatprep.subr.bf16.mxu1 %v12967_v36  ;;  %v13021_v36 = vcombine.high %v4080_v29, %v4084_v30  ;;  %v4132_v22 = vld [vmem:[%s15022_s3 + $0xc20] sm:$0xff] }
 0x354   : > { %6947 = vmatpush1.bf16.msra.mxu0 %v12964_v43  ;;  %v4093_v43 = vld [vmem:[%s15022_s3 + $0xae8] sm:$0xff] }
 0x355   : > { %7111 = vmatpush1.bf16.msra.mxu1 %v12966_v41  ;;  %6948 = vmatprep.subr.bf16.mxu0 %v12973_v44  ;;  %v13020_v41 = vcombine.low %v4080_v29, %v4084_v30  ;;  %v13022_v44 = vcombine.low %v4081_v31, %v4085_v32  ;;  %v13031_v47 = vcombine.high %v4089_v25, %v4093_v43  ;;  %v15750_v30 = vsub.s32 4, %v15507_v34 }
 0x356   : > { %7112 = vmatprep.subr.bf16.mxu1 %v12975_v46  ;;  %v13029_v46 = vcombine.high %v4088_v39, %v4092_v40  ;;  %v15753_v31 = vsub.s32 5, %v15507_v34  ;;  %v15756_v32 = vsub.s32 7, %v15507_v34 }
 0x358   : > { %6949 = vmatpush1.bf16.msra.mxu0 %v12972_v51  ;;  %v4101_v51 = vld [vmem:[%s15022_s3 + $0xb28] sm:$0xff] }
 0x359   : > { %7113 = vmatpush1.bf16.msra.mxu1 %v12974_v52  ;;  %6950 = vmatprep.subr.bf16.mxu0 %v12981_v55  ;;  %v13028_v52 = vcombine.low %v4088_v39, %v4092_v40  ;;  %v13030_v55 = vcombine.low %v4089_v25, %v4093_v43  ;;  %v13039_v58 = vcombine.high %v4097_v50, %v4101_v51 }
 0x35a   : > { %7114 = vmatprep.subr.bf16.mxu1 %v12983_v56  ;;  %v13037_v56 = vcombine.high %v4096_v48, %v4100_v49 }
 0x35c   : > { %6951 = vmatpush1.bf16.msra.mxu0 %v12980_v62  ;;  %v4109_v62 = vld [vmem:[%s15022_s3 + $0xb68] sm:$0xff] }
 0x35d   : > { %7115 = vmatpush1.bf16.msra.mxu1 %v12982_v63  ;;  %6952 = vmatprep.subr.bf16.mxu0 %v12989_v0  ;;  %v13036_v63 = vcombine.low %v4096_v48, %v4100_v49  ;;  %v13038_v0 = vcombine.low %v4097_v50, %v4101_v51  ;;  %v13047_v3 = vcombine.high %v4105_v15, %v4109_v62 }
 0x35e   : > { %7116 = vmatprep.subr.bf16.mxu1 %v12991_v1  ;;  %v13045_v1 = vcombine.high %v4104_v59, %v4108_v61 }
 0x360   : > { %6953 = vmatpush1.bf16.msra.mxu0 %v12988_v45  ;;  %v4117_v45 = vld [vmem:[%s15022_s3 + $0xba8] sm:$0xff] }
 0x361   : > { %7117 = vmatpush1.bf16.msra.mxu1 %v12990_v7  ;;  %6954 = vmatprep.subr.bf16.mxu0 %v12997_v8  ;;  %v13044_v7 = vcombine.low %v4104_v59, %v4108_v61  ;;  %v13046_v8 = vcombine.low %v4105_v15, %v4109_v62  ;;  %v13055_v10 = vcombine.high %v4113_v6, %v4117_v45  ;;  %v4137_v59 = vld [vmem:[%s15022_s3 + $0xc48] sm:$0xff] }
 0x362   : > { %7118 = vmatprep.subr.bf16.mxu1 %v12999_v9  ;;  %v13053_v9 = vcombine.high %v4112_v4, %v4116_v5  ;;  %v4141_v61 = vld [vmem:[%s15022_s3 + $0xc68] sm:$0xff]  ;;  %v13068_v62 = vcombine.low %v4128_v23, %v4132_v22 }
 0x364   : > { %6955 = vmatpush1.bf16.msra.mxu0 %v12996_v16  ;;  %v4125_v16 = vld [vmem:[%s15022_s3 + $0xbe8] sm:$0xff] }
 0x365   : > { %7119 = vmatpush1.bf16.msra.mxu1 %v12998_v18  ;;  %6956 = vmatprep.subr.bf16.mxu0 %v13005_v19  ;;  %v13052_v18 = vcombine.low %v4112_v4, %v4116_v5  ;;  %v13054_v19 = vcombine.low %v4113_v6, %v4117_v45  ;;  %v13063_v21 = vcombine.high %v4121_v12, %v4125_v16  ;;  %v4148_v5 = vld [vmem:[%s15022_s3 + $0xca0] sm:$0xff]  ;;  %v4145_v6 = vld [vmem:[%s15022_s3 + $0xc88] sm:$0xff] }
 0x366   : > { %7120 = vmatprep.subr.bf16.mxu1 %v13007_v20  ;;  %v13061_v20 = vcombine.high %v4120_v11, %v4124_v13  ;;  %v13079_v4 = vcombine.high %v4137_v59, %v4141_v61  ;;  %v4149_v45 = vld [vmem:[%s15022_s3 + $0xca8] sm:$0xff] }
 0x368   : > { %6957 = vmatpush1.bf16.msra.mxu0 %v13004_v42  ;;  %v4133_v42 = vld [vmem:[%s15022_s3 + $0xc28] sm:$0xff] }
 0x369   : > { %7121 = vmatpush1.bf16.msra.mxu1 %v13006_v24  ;;  %6958 = vmatprep.subr.bf16.mxu0 %v13013_v26  ;;  %v13060_v24 = vcombine.low %v4120_v11, %v4124_v13  ;;  %v13062_v26 = vcombine.low %v4121_v12, %v4125_v16  ;;  %v13071_v29 = vcombine.high %v4129_v53, %v4133_v42  ;;  %v4152_v13 = vld [vmem:[%s15022_s3 + $0xcc0] sm:$0xff]  ;;  %v4153_v16 = vld [vmem:[%s15022_s3 + $0xcc8] sm:$0xff] }
 0x36a   : > { %7122 = vmatprep.subr.bf16.mxu1 %v13015_v27  ;;  %v13069_v27 = vcombine.high %v4128_v23, %v4132_v22  ;;  %v13087_v11 = vcombine.high %v4145_v6, %v4149_v45  ;;  %v4156_v12 = vld [vmem:[%s15022_s3 + $0xce0] sm:$0xff] }
 0x36b   : > { %v4160_v22 = vld [vmem:[%s15022_s3 + $0xd00] sm:$0xff] }
 0x36c   : > { %6959 = vmatpush1.bf16.msra.mxu0 %v13012_v33  ;;  %v15760_v33 = vld [vmem:[%s518_s9] sm:$0xff]  ;;  %s14486_s9 = scalar_lea.vmem %s14485_s29, 256 }
 0x36d   : > { %7123 = vmatpush1.bf16.msra.mxu1 %v13014_v35  ;;  %6960 = vmatprep.subr.bf16.mxu0 %v13021_v36  ;;  %v1063_v35 = vrot.slane %v15760_v33, %v15750_v30  ;;  %v1067_v36 = vrot.slane %v15760_v33, %v15753_v31  ;;  %p14488_p4 = scmp.lt.s32.totalorder %s14486_s9, %s14480_s17 }
 0x36e   : > { %7124 = vmatprep.subr.bf16.mxu1 %v13023_v37  ;;  %v1075_v37 = vrot.slane %v15760_v33, %v15756_v32 }
 0x36f   : > { %p14489_p5 = por %p14488_p4, %p14487_p10 }
 0x370   : > { %6961 = vmatpush1.bf16.msra.mxu0 %v13020_v41 }
 0x371   : > { %7125 = vmatpush1.bf16.msra.mxu1 %v13022_v44  ;;  %6962 = vmatprep.subr.bf16.mxu0 %v13029_v46  ;;  %p14490_p3 = pnand %p14489_p5, %p14483_p2 }
 0x372   : > { %7126 = vmatprep.subr.bf16.mxu1 %v13031_v47 }
 0x374   : > { %6963 = vmatpush1.bf16.msra.mxu0 %v13028_v52 }
 0x375   : > { %7127 = vmatpush1.bf16.msra.mxu1 %v13030_v55  ;;  %6964 = vmatprep.subr.bf16.mxu0 %v13037_v56  ;;  %v4136_v55 = vld [vmem:[%s15022_s3 + $0xc40] sm:$0xff] }
 0x376   : > { %7128 = vmatprep.subr.bf16.mxu1 %v13039_v58  ;;  %v4140_v58 = vld [vmem:[%s15022_s3 + $0xc60] sm:$0xff] }
 0x378   : > { %6965 = vmatpush1.bf16.msra.mxu0 %v13036_v63  ;;  %v13070_v63 = vcombine.low %v4129_v53, %v4133_v42  ;;  %v4164_v53 = vld [vmem:[%s15022_s3 + $0xd20] sm:$0xff]  ;;  %v4161_v42 = vld [vmem:[%s15022_s3 + $0xd08] sm:$0xff] }
 0x379   : > { %7129 = vmatpush1.bf16.msra.mxu1 %v13038_v0  ;;  %6966 = vmatprep.subr.bf16.mxu0 %v13045_v1  ;;  %v4144_v1 = vld [vmem:[%s15022_s3 + $0xc80] sm:$0xff] }
 0x37a   : > { %7130 = vmatprep.subr.bf16.mxu1 %v13047_v3  ;;  %v13077_v3 = vcombine.high %v4136_v55, %v4140_v58 }
 0x37c   : > { %6967 = vmatpush1.bf16.msra.mxu0 %v13044_v7 }
 0x37d   : > { %7131 = vmatpush1.bf16.msra.mxu1 %v13046_v8  ;;  %6968 = vmatprep.subr.bf16.mxu0 %v13053_v9  ;;  %v13076_v8 = vcombine.low %v4136_v55, %v4140_v58  ;;  %v13078_v9 = vcombine.low %v4137_v59, %v4141_v61  ;;  %v4184_v58 = vld [vmem:[%s15022_s3 + $0xdc0] sm:$0xff]  ;;  %v4185_v61 = vld [vmem:[%s15022_s3 + $0xdc8] sm:$0xff] }
 0x37e   : > { %7132 = vmatprep.subr.bf16.mxu1 %v13055_v10  ;;  %v13085_v10 = vcombine.high %v4144_v1, %v4148_v5  ;;  %v4188_v59 = vld [vmem:[%s15022_s3 + $0xde0] sm:$0xff] }
 0x380   : > { %6969 = vmatpush1.bf16.msra.mxu0 %v13052_v18  ;;  %v4157_v18 = vld [vmem:[%s15022_s3 + $0xce8] sm:$0xff] }
 0x381   : > { %7133 = vmatpush1.bf16.msra.mxu1 %v13054_v19  ;;  %6970 = vmatprep.subr.bf16.mxu0 %v13061_v20  ;;  %v13084_v19 = vcombine.low %v4144_v1, %v4148_v5  ;;  %v13086_v20 = vcombine.low %v4145_v6, %v4149_v45  ;;  %v13095_v23 = vcombine.high %v4153_v16, %v4157_v18  ;;  %v4192_v5 = vld [vmem:[%s15022_s3 + $0xe00] sm:$0xff]  ;;  %v4193_v45 = vld [vmem:[%s15022_s3 + $0xe08] sm:$0xff] }
 0x382   : > { %7134 = vmatprep.subr.bf16.mxu1 %v13063_v21  ;;  %v13093_v21 = vcombine.high %v4152_v13, %v4156_v12  ;;  %v4196_v6 = vld [vmem:[%s15022_s3 + $0xe20] sm:$0xff] }
 0x384   : > { %6971 = vmatpush1.bf16.msra.mxu0 %v13060_v24  ;;  %v4165_v24 = vld [vmem:[%s15022_s3 + $0xd28] sm:$0xff] }
 0x385   : > { %7135 = vmatpush1.bf16.msra.mxu1 %v13062_v26  ;;  %6981 = vmatprep.subr.bf16.mxu0 %v13069_v27  ;;  %v13092_v26 = vcombine.low %v4152_v13, %v4156_v12  ;;  %v13094_v27 = vcombine.low %v4153_v16, %v4157_v18  ;;  %v4200_v12 = vld [vmem:[%s15022_s3 + $0xe40] sm:$0xff]  ;;  %v4201_v18 = vld [vmem:[%s15022_s3 + $0xe48] sm:$0xff] }
 0x386   : > { %7145 = vmatprep.subr.bf16.mxu1 %v13071_v29  ;;  %v13101_v29 = vcombine.high %v4160_v22, %v4164_v53  ;;  %v4204_v16 = vld [vmem:[%s15022_s3 + $0xe60] sm:$0xff] }
 0x39a   : > { %v3557_v39 = vpop.f32.mrb[4].mxu0  ;;  %v15768_v25 = vpop.f32.mrb[4].mxu1 }
 0x39b   : > { %v13875_v40 = vadd.f32 %v3557_v39, %v1063_v35  ;;  %v3559_v43 = vpop.f32.mrb[5].mxu0  ;;  %v3723_v44 = vpop.f32.mrb[5].mxu1  ;;  %v13103_v35 = vcombine.high %v4161_v42, %v4165_v24  ;;  %v4169_v39 = vld [vmem:[%s15022_s3 + $0xd48] sm:$0xff] }
 0x39c   : > { %v13876_v41 = vadd.f32 %v3559_v43, %v1067_v36  ;;  %v3561_v46 = vpop.f32.mrb[6].mxu0  ;;  %v13878_v48 = vadd.f32 %v3723_v44, %v1075_v37  ;;  %v3725_v49 = vpop.f32.mrb[6].mxu1  ;;  %v4168_v36 = vld [vmem:[%s15022_s3 + $0xd40] sm:$0xff]  ;;  %v13100_v43 = vcombine.low %v4160_v22, %v4164_v53 }
 0x39d   : > { %v3732_v47 = vmax.f32 %v13875_v40, 0.0  ;;  %v3562_v50 = vpop.f32.mrb[7].mxu0  ;;  %v3726_v52 = vpop.f32.mrb[7].mxu1  ;;  %v4172_v37 = vld [vmem:[%s15022_s3 + $0xd60] sm:$0xff]  ;;  %v4173_v40 = vld [vmem:[%s15022_s3 + $0xd68] sm:$0xff] }
 0x39e   : > { %v3733_v51 = vmax.f32 %v13876_v41, 0.0  ;;  %v3735_v56 = vmax.f32 %v13878_v48, 0.0  ;;  %v13102_v41 = vcombine.low %v4161_v42, %v4165_v24  ;;  %v13109_v44 = vcombine.high %v4168_v36, %v4172_v37  ;;  %v4180_v48 = vld [vmem:[%s15022_s3 + $0xda0] sm:$0xff]  ;;  %v4177_v49 = vld [vmem:[%s15022_s3 + $0xd88] sm:$0xff] }
 0x39f   : > { %v15776_v0 = vpack.c.bf16 %v3732_v47, %v3732_v47  ;;  %v13111_v46 = vcombine.high %v4169_v39, %v4173_v40  ;;  %v4176_v47 = vld [vmem:[%s15022_s3 + $0xd80] sm:$0xff]  ;;  %v4181_v50 = vld [vmem:[%s15022_s3 + $0xda8] sm:$0xff]  ;;  %v13110_v52 = vcombine.low %v4169_v39, %v4173_v40 }
 0x3a0   : > { %v15774_v15 = vpack.c.bf16 %v3733_v51, %v3733_v51  ;;  %v15784_v7 = vpack.c.bf16 %v3735_v56, %v3735_v56  ;;  %v13108_v51 = vcombine.low %v4168_v36, %v4172_v37  ;;  %v13117_v55 = vcombine.high %v4176_v47, %v4180_v48  ;;  %v4208_v53 = vld [vmem:[%s15022_s3 + $0xe80] sm:$0xff]  ;;  %v4209_v24 = vld [vmem:[%s15022_s3 + $0xe88] sm:$0xff] }
 0x3a1   : > { %v13119_v56 = vcombine.high %v4177_v49, %v4181_v50  ;;  %v13118_v1 = vcombine.low %v4177_v49, %v4181_v50  ;;  %v4212_v42 = vld [vmem:[%s15022_s3 + $0xea0] sm:$0xff]  ;;  %v4217_v40 = vld [vmem:[%s15022_s3 + $0xec8] sm:$0xff] }
 0x3a2   : > { %6972 = vmatprep.mubr.bf16.mxu0 %v15774_v15  ;;  %7136 = vmatprep.mubr.bf16.mxu1 %v15774_v15  ;;  %v4216_v37 = vld [vmem:[%s15022_s3 + $0xec0] sm:$0xff]  ;;  %v4225_v50 = vld [vmem:[%s15022_s3 + $0xf08] sm:$0xff] }
 0x3a3   : > { %6973 = vmatmul.mubr.bf16.vlgmr.msra.gmra.mrb[8].mxu0 %v15776_v0  ;;  %7137 = vmatmul.mubr.bf16.vlgmr.msra.gmra.mrb[8].mxu1 %v15776_v0  ;;  %v4220_v39 = vld [vmem:[%s15022_s3 + $0xee0] sm:$0xff] }
 0x3a4   : > { %6982 = vmatpush1.bf16.msra.mxu0 %v13068_v62  ;;  %7146 = vmatpush1.bf16.msra.mxu1 %v13070_v63  ;;  %v4189_v62 = vld [vmem:[%s15022_s3 + $0xde8] sm:$0xff]  ;;  %v13116_v63 = vcombine.low %v4176_v47, %v4180_v48  ;;  %v4224_v48 = vld [vmem:[%s15022_s3 + $0xf00] sm:$0xff] }
 0x3a5   : > { %7013 = vmatprep.mubr.bf16.mxu0 %v15784_v7  ;;  %7177 = vmatprep.mubr.bf16.mxu1 %v15784_v7  ;;  %v4228_v49 = vld [vmem:[%s15022_s3 + $0xf20] sm:$0xff] }
 0x3a6   : > { %6983 = vmatprep.subr.bf16.mxu0 %v13077_v3  ;;  %7147 = vmatprep.subr.bf16.mxu1 %v13079_v4  ;;  %v13125_v3 = vcombine.high %v4184_v58, %v4188_v59  ;;  %v13127_v4 = vcombine.high %v4185_v61, %v4189_v62 }
 0x3a8   : > { %6984 = vmatpush1.bf16.msra.mxu0 %v13076_v8  ;;  %7148 = vmatpush1.bf16.msra.mxu1 %v13078_v9  ;;  %v4197_v8 = vld [vmem:[%s15022_s3 + $0xe28] sm:$0xff]  ;;  %v13124_v9 = vcombine.low %v4184_v58, %v4188_v59  ;;  %v4232_v59 = vld [vmem:[%s15022_s3 + $0xf40] sm:$0xff] }
 0x3a9   : > { %6985 = vmatprep.subr.bf16.mxu0 %v13085_v10  ;;  %7149 = vmatprep.subr.bf16.mxu1 %v13087_v11  ;;  %v13126_v10 = vcombine.low %v4185_v61, %v4189_v62  ;;  %v13133_v11 = vcombine.high %v4192_v5, %v4196_v6  ;;  %v13135_v13 = vcombine.high %v4193_v45, %v4197_v8  ;;  %v4236_v61 = vld [vmem:[%s15022_s3 + $0xf60] sm:$0xff]  ;;  %v4233_v62 = vld [vmem:[%s15022_s3 + $0xf48] sm:$0xff] }
 0x3ac   : > { %6986 = vmatpush1.bf16.msra.mxu0 %v13084_v19  ;;  %7150 = vmatpush1.bf16.msra.mxu1 %v13086_v20  ;;  %v4205_v19 = vld [vmem:[%s15022_s3 + $0xe68] sm:$0xff]  ;;  %v13132_v20 = vcombine.low %v4192_v5, %v4196_v6  ;;  %v13173_v5 = vcombine.high %v4232_v59, %v4236_v61 }
 0x3ad   : > { %6987 = vmatprep.subr.bf16.mxu0 %v13093_v21  ;;  %7151 = vmatprep.subr.bf16.mxu1 %v13095_v23  ;;  %v13134_v21 = vcombine.low %v4193_v45, %v4197_v8  ;;  %v13141_v23 = vcombine.high %v4200_v12, %v4204_v16  ;;  %v13143_v22 = vcombine.high %v4201_v18, %v4205_v19  ;;  %v4240_v45 = vld [vmem:[%s15022_s3 + $0xf80] sm:$0xff] }
 0x3ae   : > { %v4244_v8 = vld [vmem:[%s15022_s3 + $0xfa0] sm:$0xff] }
 0x3b0   : > { %6988 = vmatpush1.bf16.msra.mxu0 %v13092_v26  ;;  %7152 = vmatpush1.bf16.msra.mxu1 %v13094_v27  ;;  %v4213_v26 = vld [vmem:[%s15022_s3 + $0xea8] sm:$0xff]  ;;  %v13140_v27 = vcombine.low %v4200_v12, %v4204_v16  ;;  %v13181_v12 = vcombine.high %v4240_v45, %v4244_v8 }
 0x3b1   : > { %6989 = vmatprep.subr.bf16.mxu0 %v13101_v29  ;;  %7153 = vmatprep.subr.bf16.mxu1 %v13103_v35  ;;  %v13142_v29 = vcombine.low %v4201_v18, %v4205_v19  ;;  %v13149_v35 = vcombine.high %v4208_v53, %v4212_v42  ;;  %v13151_v36 = vcombine.high %v4209_v24, %v4213_v26  ;;  %v4248_v18 = vld [vmem:[%s15022_s3 + $0xfc0] sm:$0xff] }
 0x3b2   : > { %v4252_v19 = vld [vmem:[%s15022_s3 + $0xfe0] sm:$0xff] }
 0x3b4   : > { %6990 = vmatpush1.bf16.msra.mxu0 %v13100_v43  ;;  %7154 = vmatpush1.bf16.msra.mxu1 %v13102_v41  ;;  %v4221_v43 = vld [vmem:[%s15022_s3 + $0xee8] sm:$0xff]  ;;  %v13148_v41 = vcombine.low %v4208_v53, %v4212_v42 }
 0x3b5   : > { %6991 = vmatprep.subr.bf16.mxu0 %v13109_v44  ;;  %7155 = vmatprep.subr.bf16.mxu1 %v13111_v46  ;;  %v13150_v44 = vcombine.low %v4209_v24, %v4213_v26  ;;  %v13157_v46 = vcombine.high %v4216_v37, %v4220_v39  ;;  %v13159_v47 = vcombine.high %v4217_v40, %v4221_v43  ;;  %v3746_v24 = vld [vmem:[%s15022_s3 + $0x10] sm:$0xff] }
 0x3b6   : > { %v3750_v26 = vld [vmem:[%s15022_s3 + $0x30] sm:$0xff] }
 0x3b8   : > { %6992 = vmatpush1.bf16.msra.mxu0 %v13108_v51  ;;  %7156 = vmatpush1.bf16.msra.mxu1 %v13110_v52  ;;  %v4229_v51 = vld [vmem:[%s15022_s3 + $0xf28] sm:$0xff]  ;;  %v13156_v52 = vcombine.low %v4216_v37, %v4220_v39 }
 0x3b9   : > { %6993 = vmatprep.subr.bf16.mxu0 %v13117_v55  ;;  %7157 = vmatprep.subr.bf16.mxu1 %v13119_v56  ;;  %v13158_v55 = vcombine.low %v4217_v40, %v4221_v43  ;;  %v13165_v56 = vcombine.high %v4224_v48, %v4228_v49  ;;  %v13167_v58 = vcombine.high %v4225_v50, %v4229_v51  ;;  %v3754_v40 = vld [vmem:[%s15022_s3 + $0x50] sm:$0xff] }
 0x3ba   : > { %v3758_v43 = vld [vmem:[%s15022_s3 + $0x70] sm:$0xff] }
 0x3bc   : > { %6994 = vmatpush1.bf16.msra.mxu0 %v13116_v63  ;;  %7158 = vmatpush1.bf16.msra.mxu1 %v13118_v1  ;;  %v4237_v63 = vld [vmem:[%s15022_s3 + $0xf68] sm:$0xff]  ;;  %v13164_v1 = vcombine.low %v4224_v48, %v4228_v49  ;;  %v12697_v49 = vcombine.high %v3754_v40, %v3758_v43 }
 0x3bd   : > { %6995 = vmatprep.subr.bf16.mxu0 %v13125_v3  ;;  %7159 = vmatprep.subr.bf16.mxu1 %v13127_v4  ;;  %v13166_v3 = vcombine.low %v4225_v50, %v4229_v51  ;;  %v15835_v4 = vsub.s32 6, %v15507_v34  ;;  %v13175_v6 = vcombine.high %v4233_v62, %v4237_v63  ;;  %v3762_v51 = vld [vmem:[%s15022_s3 + $0x90] sm:$0xff] }
 0x3bf   : > { %v1071_v34 = vrot.slane %v15760_v33, %v15835_v4  ;;  %v13189_v33 = vcombine.high %v4248_v18, %v4252_v19 }
 0x3c0   : > { %6996 = vmatpush1.bf16.msra.mxu0 %v13124_v9  ;;  %7160 = vmatpush1.bf16.msra.mxu1 %v13126_v10  ;;  %v4241_v9 = vld [vmem:[%s15022_s3 + $0xf88] sm:$0xff] }
 0x3c1   : > { %6997 = vmatprep.subr.bf16.mxu0 %v13133_v11  ;;  %7161 = vmatprep.subr.bf16.mxu1 %v13135_v13  ;;  %v4245_v10 = vld [vmem:[%s15022_s3 + $0xfa8] sm:$0xff]  ;;  %v13172_v11 = vcombine.low %v4232_v59, %v4236_v61  ;;  %v13174_v13 = vcombine.low %v4233_v62, %v4237_v63  ;;  %v13877_v53 = vadd.f32 %v15768_v25, %v1071_v34  ;;  %v3770_v63 = vld [vmem:[%s15022_s3 + $0xd0] sm:$0xff] }
 0x3c2   : > { %v13183_v16 = vcombine.high %v4241_v9, %v4245_v10  ;;  %v12689_v25 = vcombine.high %v3746_v24, %v3750_v26 }
 0x3c3   : > { %v3734_v37 = vmax.f32 %v13877_v53, 0.0 }
 0x3c4   : > { %6998 = vmatpush1.bf16.msra.mxu0 %v13132_v20  ;;  %7162 = vmatpush1.bf16.msra.mxu1 %v13134_v21  ;;  %v4249_v20 = vld [vmem:[%s15022_s3 + $0xfc8] sm:$0xff] }
 0x3c5   : > { %6999 = vmatprep.subr.bf16.mxu0 %v13141_v23  ;;  %7163 = vmatprep.subr.bf16.mxu1 %v13143_v22  ;;  %v4253_v21 = vld [vmem:[%s15022_s3 + $0xfe8] sm:$0xff]  ;;  %v13180_v23 = vcombine.low %v4240_v45, %v4244_v8  ;;  %v13182_v22 = vcombine.low %v4241_v9, %v4245_v10  ;;  %v3778_v9 = vld [vmem:[%s15022_s3 + $0x110] sm:$0xff] }
 0x3c6   : > { %v13191_v42 = vcombine.high %v4249_v20, %v4253_v21  ;;  %v3782_v10 = vld [vmem:[%s15022_s3 + $0x130] sm:$0xff] }
 0x3c8   : > { %7000 = vmatpush1.bf16.msra.mxu0 %v13140_v27  ;;  %7164 = vmatpush1.bf16.msra.mxu1 %v13142_v29  ;;  %v3747_v27 = vld [vmem:[%s15022_s3 + $0x18] sm:$0xff] }
 0x3c9   : > { %7001 = vmatprep.subr.bf16.mxu0 %v13149_v35  ;;  %7165 = vmatprep.subr.bf16.mxu1 %v13151_v36  ;;  %v3751_v29 = vld [vmem:[%s15022_s3 + $0x38] sm:$0xff]  ;;  %v13188_v35 = vcombine.low %v4248_v18, %v4252_v19  ;;  %v13190_v36 = vcombine.low %v4249_v20, %v4253_v21  ;;  %v3786_v19 = vld [vmem:[%s15022_s3 + $0x150] sm:$0xff] }
 0x3ca   : > { %v12691_v39 = vcombine.high %v3747_v27, %v3751_v29  ;;  %v12690_v48 = vcombine.low %v3747_v27, %v3751_v29  ;;  %v3790_v20 = vld [vmem:[%s15022_s3 + $0x170] sm:$0xff]  ;;  %v3787_v21 = vld [vmem:[%s15022_s3 + $0x158] sm:$0xff] }
 0x3cb   : > { %v3795_v27 = vld [vmem:[%s15022_s3 + $0x198] sm:$0xff] }
 0x3cc   : > { %7002 = vmatpush1.bf16.msra.mxu0 %v13148_v41  ;;  %7166 = vmatpush1.bf16.msra.mxu1 %v13150_v44  ;;  %v3755_v41 = vld [vmem:[%s15022_s3 + $0x58] sm:$0xff] }
 0x3cd   : > { %7003 = vmatprep.subr.bf16.mxu0 %v13157_v46  ;;  %7167 = vmatprep.subr.bf16.mxu1 %v13159_v47  ;;  %v3759_v44 = vld [vmem:[%s15022_s3 + $0x78] sm:$0xff]  ;;  %v12688_v46 = vcombine.low %v3746_v24, %v3750_v26  ;;  %v15856_v47 = vpack.c.bf16 %v3734_v37, %v3734_v37  ;;  %v3794_v24 = vld [vmem:[%s15022_s3 + $0x190] sm:$0xff] }
 0x3ce   : > { %v12699_v50 = vcombine.high %v3755_v41, %v3759_v44  ;;  %v12698_v59 = vcombine.low %v3755_v41, %v3759_v44  ;;  %v3798_v26 = vld [vmem:[%s15022_s3 + $0x1b0] sm:$0xff]  ;;  %v3799_v29 = vld [vmem:[%s15022_s3 + $0x1b8] sm:$0xff] }
 0x3cf   : > { %v12737_v37 = vcombine.high %v3794_v24, %v3798_v26  ;;  %v3807_v41 = vld [vmem:[%s15022_s3 + $0x1f8] sm:$0xff]  ;;  %v12736_v44 = vcombine.low %v3794_v24, %v3798_v26  ;;  %v3846_v24 = vld [vmem:[%s15022_s3 + $0x330] sm:$0xff] }
 0x3d0   : > { %7004 = vmatpush1.bf16.msra.mxu0 %v13156_v52  ;;  %7168 = vmatpush1.bf16.msra.mxu1 %v13158_v55  ;;  %v3766_v52 = vld [vmem:[%s15022_s3 + $0xb0] sm:$0xff]  ;;  %v3763_v55 = vld [vmem:[%s15022_s3 + $0x98] sm:$0xff] }
 0x3d1   : > { %7005 = vmatprep.subr.bf16.mxu0 %v13165_v56  ;;  %7169 = vmatprep.subr.bf16.mxu1 %v13167_v58  ;;  %v3767_v56 = vld [vmem:[%s15022_s3 + $0xb8] sm:$0xff]  ;;  %v12696_v58 = vcombine.low %v3754_v40, %v3758_v43  ;;  %v12705_v61 = vcombine.high %v3762_v51, %v3766_v52  ;;  %v3806_v40 = vld [vmem:[%s15022_s3 + $0x1f0] sm:$0xff] }
 0x3d2   : > { %v12707_v62 = vcombine.high %v3763_v55, %v3767_v56  ;;  %v12706_v45 = vcombine.low %v3763_v55, %v3767_v56  ;;  %v3803_v43 = vld [vmem:[%s15022_s3 + $0x1d8] sm:$0xff] }
 0x3d3   : > { %v3815_v55 = vld [vmem:[%s15022_s3 + $0x238] sm:$0xff] }
 0x3d4   : > { %7006 = vmatpush1.bf16.msra.mxu0 %v13164_v1  ;;  %7170 = vmatpush1.bf16.msra.mxu1 %v13166_v3  ;;  %v3774_v1 = vld [vmem:[%s15022_s3 + $0xf0] sm:$0xff]  ;;  %v3771_v3 = vld [vmem:[%s15022_s3 + $0xd8] sm:$0xff] }
 0x3d5   : > { %7007 = vmatprep.subr.bf16.mxu0 %v13173_v5  ;;  %7171 = vmatprep.subr.bf16.mxu1 %v13175_v6  ;;  %v3775_v5 = vld [vmem:[%s15022_s3 + $0xf8] sm:$0xff]  ;;  %v12704_v6 = vcombine.low %v3762_v51, %v3766_v52  ;;  %v12712_v34 = vcombine.low %v3770_v63, %v3774_v1  ;;  %v3814_v51 = vld [vmem:[%s15022_s3 + $0x230] sm:$0xff] }
 0x3d6   : > { %v12715_v8 = vcombine.high %v3771_v3, %v3775_v5  ;;  %v3811_v52 = vld [vmem:[%s15022_s3 + $0x218] sm:$0xff] }
 0x3d7   : > { %v3843_v26 = vld [vmem:[%s15022_s3 + $0x318] sm:$0xff] }
 0x3d8   : > { %7008 = vmatpush1.bf16.msra.mxu0 %v13172_v11  ;;  %7172 = vmatpush1.bf16.msra.mxu1 %v13174_v13  ;;  %v3779_v11 = vld [vmem:[%s15022_s3 + $0x118] sm:$0xff] }
 0x3d9   : > { %7009 = vmatprep.subr.bf16.mxu0 %v13181_v12  ;;  %7173 = vmatprep.subr.bf16.mxu1 %v13183_v16  ;;  %v3783_v13 = vld [vmem:[%s15022_s3 + $0x138] sm:$0xff]  ;;  %v12714_v12 = vcombine.low %v3771_v3, %v3775_v5  ;;  %v12721_v16 = vcombine.high %v3778_v9, %v3782_v10 }
 0x3da   : > { %v12723_v18 = vcombine.high %v3779_v11, %v3783_v13  ;;  %v12722_v53 = vcombine.low %v3779_v11, %v3783_v13  ;;  %v3823_v3 = vld [vmem:[%s15022_s3 + $0x278] sm:$0xff] }
 0x3db   : > { %v3831_v11 = vld [vmem:[%s15022_s3 + $0x2b8] sm:$0xff] }
 0x3dc   : > { %7010 = vmatpush1.bf16.msra.mxu0 %v13180_v23  ;;  %7174 = vmatpush1.bf16.msra.mxu1 %v13182_v22  ;;  %v3791_v23 = vld [vmem:[%s15022_s3 + $0x178] sm:$0xff]  ;;  %v12720_v22 = vcombine.low %v3778_v9, %v3782_v10  ;;  %v3830_v9 = vld [vmem:[%s15022_s3 + $0x2b0] sm:$0xff] }
 0x3dd   : > { %7011 = vmatprep.subr.bf16.mxu0 %v13189_v33  ;;  %7175 = vmatprep.subr.bf16.mxu1 %v13191_v42  ;;  %v12729_v33 = vcombine.high %v3786_v19, %v3790_v20  ;;  %v12731_v42 = vcombine.high %v3787_v21, %v3791_v23  ;;  %v3827_v10 = vld [vmem:[%s15022_s3 + $0x298] sm:$0xff] }
 0x3e0   : > { %7012 = vmatpush1.bf16.msra.mxu0 %v13188_v35  ;;  %7176 = vmatpush1.bf16.msra.mxu1 %v13190_v36  ;;  %v12728_v35 = vcombine.low %v3786_v19, %v3790_v20  ;;  %v12730_v36 = vcombine.low %v3787_v21, %v3791_v23  ;;  %v3838_v19 = vld [vmem:[%s15022_s3 + $0x2f0] sm:$0xff]  ;;  %v3835_v20 = vld [vmem:[%s15022_s3 + $0x2d8] sm:$0xff] }
 0x3e1   : > { %7186 = vmatprep.subr.bf16.mxu0 %v12689_v25  ;;  %7350 = vmatprep.subr.bf16.mxu1 %v12691_v39  ;;  %v12739_v25 = vcombine.high %v3795_v27, %v3799_v29  ;;  %v3802_v39 = vld [vmem:[%s15022_s3 + $0x1d0] sm:$0xff]  ;;  %v3839_v21 = vld [vmem:[%s15022_s3 + $0x2f8] sm:$0xff] }
 0x3e2   : > { %v12744_v56 = vcombine.low %v3802_v39, %v3806_v40 }
 0x3e3   : > { %7014 = vmatmul.mubr.bf16.vlgmr.msra.gmra.mrb[8].mxu0 %v15856_v47  ;;  %7178 = vmatmul.mubr.bf16.vlgmr.msra.gmra.mrb[8].mxu1 %v15856_v47 }
 0x3e4   : > { %7187 = vmatpush1.bf16.msra.mxu0 %v12688_v46  ;;  %7218 = vmatprep.mubr.bf16.mxu0 %v15543_v2  ;;  %v12738_v46 = vcombine.low %v3795_v27, %v3799_v29  ;;  %v3847_v27 = vld [vmem:[%s15022_s3 + $0x338] sm:$0xff] }
 0x3e5   : > { %7351 = vmatpush1.bf16.msra.mxu1 %v12690_v48  ;;  %7382 = vmatprep.mubr.bf16.mxu1 %v15543_v2  ;;  %v12713_v2 = vcombine.high %v3770_v63, %v3774_v1  ;;  %v12745_v48 = vcombine.high %v3802_v39, %v3806_v40  ;;  %v3822_v63 = vld [vmem:[%s15022_s3 + $0x270] sm:$0xff]  ;;  %v3819_v1 = vld [vmem:[%s15022_s3 + $0x258] sm:$0xff] }
 0x3e6   : > { %7188 = vmatprep.subr.bf16.mxu0 %v12697_v49  ;;  %7352 = vmatprep.subr.bf16.mxu1 %v12699_v50  ;;  %v12747_v49 = vcombine.high %v3803_v43, %v3807_v41  ;;  %v3810_v50 = vld [vmem:[%s15022_s3 + $0x210] sm:$0xff]  ;;  %v3851_v40 = vld [vmem:[%s15022_s3 + $0x358] sm:$0xff] }
 0x3e7   : > { %v12752_v5 = vcombine.low %v3810_v50, %v3814_v51  ;;  %v3854_v39 = vld [vmem:[%s15022_s3 + $0x370] sm:$0xff] }
 0x3e8   : > { %7189 = vmatpush1.bf16.msra.mxu0 %v12696_v58  ;;  %v12746_v58 = vcombine.low %v3803_v43, %v3807_v41  ;;  %v3855_v43 = vld [vmem:[%s15022_s3 + $0x378] sm:$0xff] }
 0x3e9   : > { %7353 = vmatpush1.bf16.msra.mxu1 %v12698_v59  ;;  %7190 = vmatprep.subr.bf16.mxu0 %v12705_v61  ;;  %v12753_v59 = vcombine.high %v3810_v50, %v3814_v51  ;;  %v12755_v61 = vcombine.high %v3811_v52, %v3815_v55  ;;  %v3862_v50 = vld [vmem:[%s15022_s3 + $0x3b0] sm:$0xff]  ;;  %v3859_v51 = vld [vmem:[%s15022_s3 + $0x398] sm:$0xff] }
 0x3ea   : > { %7354 = vmatprep.subr.bf16.mxu1 %v12707_v62  ;;  %v3818_v62 = vld [vmem:[%s15022_s3 + $0x250] sm:$0xff] }
 0x3eb   : > { %v12760_v13 = vcombine.low %v3818_v62, %v3822_v63 }
 0x3ec   : > { %7191 = vmatpush1.bf16.msra.mxu0 %v12704_v6  ;;  %v12754_v6 = vcombine.low %v3811_v52, %v3815_v55  ;;  %v3863_v52 = vld [vmem:[%s15022_s3 + $0x3b8] sm:$0xff] }
 0x3ed   : > { %7355 = vmatpush1.bf16.msra.mxu1 %v12706_v45  ;;  %7192 = vmatprep.subr.bf16.mxu0 %v12713_v2  ;;  %v12761_v45 = vcombine.high %v3818_v62, %v3822_v63  ;;  %v12763_v2 = vcombine.high %v3819_v1, %v3823_v3  ;;  %v3870_v62 = vld [vmem:[%s15022_s3 + $0x3f0] sm:$0xff]  ;;  %v3867_v63 = vld [vmem:[%s15022_s3 + $0x3d8] sm:$0xff] }
 0x3ee   : > { %7356 = vmatprep.subr.bf16.mxu1 %v12715_v8  ;;  %v3826_v8 = vld [vmem:[%s15022_s3 + $0x290] sm:$0xff] }
 0x3ef   : > { %v12768_v23 = vcombine.low %v3826_v8, %v3830_v9 }
 0x3f0   : > { %7193 = vmatpush1.bf16.msra.mxu0 %v12712_v34  ;;  %v12762_v34 = vcombine.low %v3819_v1, %v3823_v3  ;;  %v3871_v1 = vld [vmem:[%s15022_s3 + $0x3f8] sm:$0xff] }
 0x3f1   : > { %7357 = vmatpush1.bf16.msra.mxu1 %v12714_v12  ;;  %7194 = vmatprep.subr.bf16.mxu0 %v12721_v16  ;;  %v12769_v12 = vcombine.high %v3826_v8, %v3830_v9  ;;  %v12771_v16 = vcombine.high %v3827_v10, %v3831_v11  ;;  %v3878_v8 = vld [vmem:[%s15022_s3 + $0x430] sm:$0xff]  ;;  %v3875_v9 = vld [vmem:[%s15022_s3 + $0x418] sm:$0xff] }
 0x3f2   : > { %7358 = vmatprep.subr.bf16.mxu1 %v12723_v18  ;;  %v3834_v18 = vld [vmem:[%s15022_s3 + $0x2d0] sm:$0xff] }
 0x3f3   : > { %v12776_v29 = vcombine.low %v3834_v18, %v3838_v19 }
 0x3f4   : > { %7195 = vmatpush1.bf16.msra.mxu0 %v12720_v22  ;;  %v12770_v22 = vcombine.low %v3827_v10, %v3831_v11  ;;  %v3879_v10 = vld [vmem:[%s15022_s3 + $0x438] sm:$0xff] }
 0x3f5   : > { %7359 = vmatpush1.bf16.msra.mxu1 %v12722_v53  ;;  %7196 = vmatprep.subr.bf16.mxu0 %v12729_v33  ;;  %v12777_v53 = vcombine.high %v3834_v18, %v3838_v19  ;;  %v12779_v33 = vcombine.high %v3835_v20, %v3839_v21  ;;  %v3886_v18 = vld [vmem:[%s15022_s3 + $0x470] sm:$0xff] }
 0x3f6   : > { %7360 = vmatprep.subr.bf16.mxu1 %v12731_v42  ;;  %v3842_v42 = vld [vmem:[%s15022_s3 + $0x310] sm:$0xff] }
 0x3f7   : > { %v12784_v41 = vcombine.low %v3842_v42, %v3846_v24 }
 0x3f8   : > { %7197 = vmatpush1.bf16.msra.mxu0 %v12728_v35  ;;  %v12778_v35 = vcombine.low %v3835_v20, %v3839_v21  ;;  %v3883_v20 = vld [vmem:[%s15022_s3 + $0x458] sm:$0xff] }
 0x3f9   : > { %7361 = vmatpush1.bf16.msra.mxu1 %v12730_v36  ;;  %7198 = vmatprep.subr.bf16.mxu0 %v12737_v37  ;;  %v12785_v36 = vcombine.high %v3842_v42, %v3846_v24  ;;  %v12787_v37 = vcombine.high %v3843_v26, %v3847_v27  ;;  %v3887_v21 = vld [vmem:[%s15022_s3 + $0x478] sm:$0xff] }
 0x3fa   : > { %7362 = vmatprep.subr.bf16.mxu1 %v12739_v25  ;;  %v3850_v25 = vld [vmem:[%s15022_s3 + $0x350] sm:$0xff]  ;;  %v12827_v42 = vcombine.high %v3883_v20, %v3887_v21  ;;  %v3891_v24 = vld [vmem:[%s15022_s3 + $0x498] sm:$0xff] }
 0x3fb   : > { %v12792_v55 = vcombine.low %v3850_v25, %v3854_v39 }
 0x3fc   : > { %7199 = vmatpush1.bf16.msra.mxu0 %v12736_v44  ;;  %v12786_v44 = vcombine.low %v3843_v26, %v3847_v27  ;;  %v3895_v26 = vld [vmem:[%s15022_s3 + $0x4b8] sm:$0xff] }
 0x3fd   : > { %7363 = vmatpush1.bf16.msra.mxu1 %v12738_v46  ;;  %7200 = vmatprep.subr.bf16.mxu0 %v12745_v48  ;;  %v12793_v46 = vcombine.high %v3850_v25, %v3854_v39  ;;  %v12795_v48 = vcombine.high %v3851_v40, %v3855_v43  ;;  %v3902_v25 = vld [vmem:[%s15022_s3 + $0x4f0] sm:$0xff]  ;;  %v3899_v39 = vld [vmem:[%s15022_s3 + $0x4d8] sm:$0xff] }
 0x3fe   : > { %7364 = vmatprep.subr.bf16.mxu1 %v12747_v49  ;;  %v3858_v49 = vld [vmem:[%s15022_s3 + $0x390] sm:$0xff] }
 0x3ff   : > { %v12800_v3 = vcombine.low %v3858_v49, %v3862_v50 }
 0x400   : > { %7201 = vmatpush1.bf16.msra.mxu0 %v12744_v56  ;;  %v12794_v56 = vcombine.low %v3851_v40, %v3855_v43  ;;  %v12834_v43 = vcombine.low %v3891_v24, %v3895_v26 }
 0x401   : > { %7365 = vmatpush1.bf16.msra.mxu1 %v12746_v58  ;;  %7202 = vmatprep.subr.bf16.mxu0 %v12753_v59  ;;  %v12801_v58 = vcombine.high %v3858_v49, %v3862_v50  ;;  %v12803_v59 = vcombine.high %v3859_v51, %v3863_v52  ;;  %v3911_v49 = vld [vmem:[%s15022_s3 + $0x538] sm:$0xff] }
 0x402   : > { %7366 = vmatprep.subr.bf16.mxu1 %v12755_v61  ;;  %v3866_v61 = vld [vmem:[%s15022_s3 + $0x3d0] sm:$0xff] }
 0x403   : > { %v12808_v11 = vcombine.low %v3866_v61, %v3870_v62 }
 0x404   : > { %7203 = vmatpush1.bf16.msra.mxu0 %v12752_v5  ;;  %v12802_v5 = vcombine.low %v3859_v51, %v3863_v52 }
 0x405   : > { %7367 = vmatpush1.bf16.msra.mxu1 %v12754_v6  ;;  %7204 = vmatprep.subr.bf16.mxu0 %v12761_v45  ;;  %v12809_v6 = vcombine.high %v3866_v61, %v3870_v62  ;;  %v12811_v45 = vcombine.high %v3867_v63, %v3871_v1  ;;  %v3919_v61 = vld [vmem:[%s15022_s3 + $0x578] sm:$0xff] }
 0x406   : > { %7368 = vmatprep.subr.bf16.mxu1 %v12763_v2  ;;  %v3874_v2 = vld [vmem:[%s15022_s3 + $0x410] sm:$0xff] }
 0x407   : > { %v12816_v19 = vcombine.low %v3874_v2, %v3878_v8 }
 0x408   : > { %7205 = vmatpush1.bf16.msra.mxu0 %v12760_v13  ;;  %v12810_v13 = vcombine.low %v3867_v63, %v3871_v1 }
 0x409   : > { %7369 = vmatpush1.bf16.msra.mxu1 %v12762_v34  ;;  %7206 = vmatprep.subr.bf16.mxu0 %v12769_v12  ;;  %v12817_v34 = vcombine.high %v3874_v2, %v3878_v8  ;;  %v12819_v12 = vcombine.high %v3875_v9, %v3879_v10  ;;  %v3927_v2 = vld [vmem:[%s15022_s3 + $0x5b8] sm:$0xff] }
 0x40a   : > { %7370 = vmatprep.subr.bf16.mxu1 %v12771_v16  ;;  %v3882_v16 = vld [vmem:[%s15022_s3 + $0x450] sm:$0xff] }
 0x40b   : > { %v12824_v27 = vcombine.low %v3882_v16, %v3886_v18 }
 0x40c   : > { %7207 = vmatpush1.bf16.msra.mxu0 %v12768_v23  ;;  %v12818_v23 = vcombine.low %v3875_v9, %v3879_v10 }
 0x40d   : > { %7371 = vmatpush1.bf16.msra.mxu1 %v12770_v22  ;;  %7208 = vmatprep.subr.bf16.mxu0 %v12777_v53  ;;  %v12825_v22 = vcombine.high %v3882_v16, %v3886_v18  ;;  %v3890_v53 = vld [vmem:[%s15022_s3 + $0x490] sm:$0xff]  ;;  %v3935_v16 = vld [vmem:[%s15022_s3 + $0x5f8] sm:$0xff] }
 0x40e   : > { %7372 = vmatprep.subr.bf16.mxu1 %v12779_v33  ;;  %v3894_v33 = vld [vmem:[%s15022_s3 + $0x4b0] sm:$0xff] }
 0x40f   : > { %v12832_v40 = vcombine.low %v3890_v53, %v3894_v33 }
 0x410   : > { %7209 = vmatpush1.bf16.msra.mxu0 %v12776_v29  ;;  %v12826_v29 = vcombine.low %v3883_v20, %v3887_v21 }
 0x411   : > { %7373 = vmatpush1.bf16.msra.mxu1 %v12778_v35  ;;  %7210 = vmatprep.subr.bf16.mxu0 %v12785_v36  ;;  %v12833_v35 = vcombine.high %v3890_v53, %v3894_v33  ;;  %v12835_v36 = vcombine.high %v3891_v24, %v3895_v26  ;;  %v3939_v53 = vld [vmem:[%s15022_s3 + $0x618] sm:$0xff] }
 0x412   : > { %7374 = vmatprep.subr.bf16.mxu1 %v12787_v37  ;;  %v3898_v37 = vld [vmem:[%s15022_s3 + $0x4d0] sm:$0xff]  ;;  %v3943_v33 = vld [vmem:[%s15022_s3 + $0x638] sm:$0xff] }
 0x413   : > { %v12840_v50 = vcombine.low %v3898_v37, %v3902_v25 }
 0x414   : > { %7211 = vmatpush1.bf16.msra.mxu0 %v12784_v41  ;;  %v12841_v41 = vcombine.high %v3898_v37, %v3902_v25  ;;  %v3951_v37 = vld [vmem:[%s15022_s3 + $0x678] sm:$0xff] }
 0x415   : > { %7375 = vmatpush1.bf16.msra.mxu1 %v12786_v44  ;;  %7212 = vmatprep.subr.bf16.mxu0 %v12793_v46  ;;  %v3906_v44 = vld [vmem:[%s15022_s3 + $0x510] sm:$0xff] }
 0x416   : > { %7376 = vmatprep.subr.bf16.mxu1 %v12795_v48  ;;  %v3910_v46 = vld [vmem:[%s15022_s3 + $0x530] sm:$0xff]  ;;  %v3907_v48 = vld [vmem:[%s15022_s3 + $0x518] sm:$0xff] }
 0x417   : > { %v12849_v52 = vcombine.high %v3906_v44, %v3910_v46  ;;  %v12848_v62 = vcombine.low %v3906_v44, %v3910_v46  ;;  %v12850_v63 = vcombine.low %v3907_v48, %v3911_v49  ;;  %v3959_v44 = vld [vmem:[%s15022_s3 + $0x6b8] sm:$0xff] }
 0x418   : > { %7213 = vmatpush1.bf16.msra.mxu0 %v12792_v55  ;;  %v12851_v55 = vcombine.high %v3907_v48, %v3911_v49 }
 0x419   : > { %7377 = vmatpush1.bf16.msra.mxu1 %v12794_v56  ;;  %7214 = vmatprep.subr.bf16.mxu0 %v12801_v58  ;;  %v3914_v56 = vld [vmem:[%s15022_s3 + $0x550] sm:$0xff] }
 0x41a   : > { %7378 = vmatprep.subr.bf16.mxu1 %v12803_v59  ;;  %v3918_v58 = vld [vmem:[%s15022_s3 + $0x570] sm:$0xff]  ;;  %v3915_v59 = vld [vmem:[%s15022_s3 + $0x558] sm:$0xff] }
 0x41b   : > { %v12857_v1 = vcombine.high %v3914_v56, %v3918_v58  ;;  %v12856_v8 = vcombine.low %v3914_v56, %v3918_v58  ;;  %v12858_v9 = vcombine.low %v3915_v59, %v3919_v61  ;;  %v3967_v56 = vld [vmem:[%s15022_s3 + $0x6f8] sm:$0xff] }
 0x41c   : > { %7215 = vmatpush1.bf16.msra.mxu0 %v12800_v3  ;;  %v12859_v3 = vcombine.high %v3915_v59, %v3919_v61 }
 0x41d   : > { %7379 = vmatpush1.bf16.msra.mxu1 %v12802_v5  ;;  %7216 = vmatprep.subr.bf16.mxu0 %v12809_v6  ;;  %v3922_v5 = vld [vmem:[%s15022_s3 + $0x590] sm:$0xff] }
 0x41e   : > { %7380 = vmatprep.subr.bf16.mxu1 %v12811_v45  ;;  %v3926_v6 = vld [vmem:[%s15022_s3 + $0x5b0] sm:$0xff]  ;;  %v3923_v45 = vld [vmem:[%s15022_s3 + $0x598] sm:$0xff] }
 0x41f   : > { %v12865_v10 = vcombine.high %v3922_v5, %v3926_v6  ;;  %v12864_v18 = vcombine.low %v3922_v5, %v3926_v6  ;;  %v3975_v5 = vld [vmem:[%s15022_s3 + $0x738] sm:$0xff] }
 0x420   : > { %7217 = vmatpush1.bf16.msra.mxu0 %v12808_v11  ;;  %v12867_v11 = vcombine.high %v3923_v45, %v3927_v2 }
 0x421   : > { %7381 = vmatpush1.bf16.msra.mxu1 %v12810_v13  ;;  %7227 = vmatprep.subr.bf16.mxu0 %v12817_v34  ;;  %v3930_v13 = vld [vmem:[%s15022_s3 + $0x5d0] sm:$0xff] }
 0x422   : > { %7391 = vmatprep.subr.bf16.mxu1 %v12819_v12  ;;  %v3934_v34 = vld [vmem:[%s15022_s3 + $0x5f0] sm:$0xff]  ;;  %v3931_v12 = vld [vmem:[%s15022_s3 + $0x5d8] sm:$0xff] }
 0x423   : > { %7219 = vmatmul.mubr.bf16.vlgmr.msra.gmra.mrb[12].mxu0 %v15607_v54  ;;  %v12873_v20 = vcombine.high %v3930_v13, %v3934_v34  ;;  %v12875_v21 = vcombine.high %v3931_v12, %v3935_v16  ;;  %v12874_v24 = vcombine.low %v3931_v12, %v3935_v16 }
 0x424   : > { %7383 = vmatmul.mubr.bf16.vlgmr.msra.gmra.mrb[12].mxu1 %v15607_v54  ;;  %7228 = vmatpush1.bf16.msra.mxu0 %v12816_v19  ;;  %v3903_v54 = vld [vmem:[%s15022_s3 + $0x4f8] sm:$0xff]  ;;  %v12866_v19 = vcombine.low %v3923_v45, %v3927_v2 }
 0x425   : > { %7259 = vmatprep.mubr.bf16.mxu0 %v15611_v60  ;;  %7392 = vmatpush1.bf16.msra.mxu1 %v12818_v23  ;;  %v12842_v51 = vcombine.low %v3899_v39, %v3903_v54  ;;  %v3938_v23 = vld [vmem:[%s15022_s3 + $0x610] sm:$0xff] }
 0x426   : > { %7423 = vmatprep.mubr.bf16.mxu1 %v15611_v60  ;;  %7229 = vmatprep.subr.bf16.mxu0 %v12825_v22  ;;  %v12843_v60 = vcombine.high %v3899_v39, %v3903_v54  ;;  %v3942_v22 = vld [vmem:[%s15022_s3 + $0x630] sm:$0xff]  ;;  %v12882_v39 = vcombine.low %v3939_v53, %v3943_v33 }
 0x427   : > { %7393 = vmatprep.subr.bf16.mxu1 %v12827_v42  ;;  %v12872_v42 = vcombine.low %v3930_v13, %v3934_v34  ;;  %v12881_v26 = vcombine.high %v3938_v23, %v3942_v22  ;;  %v12880_v25 = vcombine.low %v3938_v23, %v3942_v22  ;;  %v3983_v13 = vld [vmem:[%s15022_s3 + $0x778] sm:$0xff] }
 0x428   : > { %7230 = vmatpush1.bf16.msra.mxu0 %v12824_v27  ;;  %v12883_v27 = vcombine.high %v3939_v53, %v3943_v33  ;;  %v3991_v23 = vld [vmem:[%s15022_s3 + $0x7b8] sm:$0xff] }
 0x429   : > { %7394 = vmatpush1.bf16.msra.mxu1 %v12826_v29  ;;  %7231 = vmatprep.subr.bf16.mxu0 %v12833_v35  ;;  %v3946_v29 = vld [vmem:[%s15022_s3 + $0x650] sm:$0xff] }
 0x42a   : > { %7395 = vmatprep.subr.bf16.mxu1 %v12835_v36  ;;  %v3950_v35 = vld [vmem:[%s15022_s3 + $0x670] sm:$0xff]  ;;  %v3947_v36 = vld [vmem:[%s15022_s3 + $0x658] sm:$0xff] }
 0x42b   : > { %v12889_v54 = vcombine.high %v3946_v29, %v3950_v35  ;;  %v12888_v46 = vcombine.low %v3946_v29, %v3950_v35  ;;  %v12890_v48 = vcombine.low %v3947_v36, %v3951_v37  ;;  %v3999_v29 = vld [vmem:[%s15022_s3 + $0x7f8] sm:$0xff] }
 0x42c   : > { %7232 = vmatpush1.bf16.msra.mxu0 %v12832_v40  ;;  %v12891_v40 = vcombine.high %v3947_v36, %v3951_v37 }
 0x42d   : > { %7396 = vmatpush1.bf16.msra.mxu1 %v12834_v43  ;;  %7233 = vmatprep.subr.bf16.mxu0 %v12841_v41  ;;  %v3954_v43 = vld [vmem:[%s15022_s3 + $0x690] sm:$0xff] }
 0x42e   : > { %7397 = vmatprep.subr.bf16.mxu1 %v12843_v60  ;;  %v3958_v41 = vld [vmem:[%s15022_s3 + $0x6b0] sm:$0xff]  ;;  %v3955_v60 = vld [vmem:[%s15022_s3 + $0x698] sm:$0xff] }
 0x42f   : > { %v12897_v49 = vcombine.high %v3954_v43, %v3958_v41  ;;  %v12896_v58 = vcombine.low %v3954_v43, %v3958_v41  ;;  %v12898_v59 = vcombine.low %v3955_v60, %v3959_v44  ;;  %v4007_v43 = vld [vmem:[%s15022_s3 + $0x838] sm:$0xff] }
 0x430   : > { %7234 = vmatpush1.bf16.msra.mxu0 %v12840_v50  ;;  %v12899_v50 = vcombine.high %v3955_v60, %v3959_v44 }
 0x431   : > { %7398 = vmatpush1.bf16.msra.mxu1 %v12842_v51  ;;  %7235 = vmatprep.subr.bf16.mxu0 %v12849_v52  ;;  %v3962_v51 = vld [vmem:[%s15022_s3 + $0x6d0] sm:$0xff] }
 0x432   : > { %7399 = vmatprep.subr.bf16.mxu1 %v12851_v55  ;;  %v3966_v52 = vld [vmem:[%s15022_s3 + $0x6f0] sm:$0xff]  ;;  %v3963_v55 = vld [vmem:[%s15022_s3 + $0x6d8] sm:$0xff] }
 0x433   : > { %v12905_v61 = vcombine.high %v3962_v51, %v3966_v52  ;;  %v12904_v6 = vcombine.low %v3962_v51, %v3966_v52  ;;  %v12906_v45 = vcombine.low %v3963_v55, %v3967_v56  ;;  %v4011_v51 = vld [vmem:[%s15022_s3 + $0x858] sm:$0xff] }
 0x434   : > { %7236 = vmatpush1.bf16.msra.mxu0 %v12848_v62  ;;  %v12907_v62 = vcombine.high %v3963_v55, %v3967_v56  ;;  %v4015_v52 = vld [vmem:[%s15022_s3 + $0x878] sm:$0xff] }
 0x435   : > { %7400 = vmatpush1.bf16.msra.mxu1 %v12850_v63  ;;  %7237 = vmatprep.subr.bf16.mxu0 %v12857_v1  ;;  %v3970_v63 = vld [vmem:[%s15022_s3 + $0x710] sm:$0xff] }
 0x436   : > { %7401 = vmatprep.subr.bf16.mxu1 %v12859_v3  ;;  %v3974_v1 = vld [vmem:[%s15022_s3 + $0x730] sm:$0xff]  ;;  %v3971_v3 = vld [vmem:[%s15022_s3 + $0x718] sm:$0xff] }
 0x437   : > { %v12913_v2 = vcombine.high %v3970_v63, %v3974_v1  ;;  %v12912_v34 = vcombine.low %v3970_v63, %v3974_v1  ;;  %v12914_v12 = vcombine.low %v3971_v3, %v3975_v5  ;;  %v4023_v63 = vld [vmem:[%s15022_s3 + $0x8b8] sm:$0xff] }
 0x438   : > { %7238 = vmatpush1.bf16.msra.mxu0 %v12856_v8  ;;  %v12915_v8 = vcombine.high %v3971_v3, %v3975_v5  ;;  %v12954_v3 = vcombine.low %v4011_v51, %v4015_v52 }
 0x439   : > { %7402 = vmatpush1.bf16.msra.mxu1 %v12858_v9  ;;  %7239 = vmatprep.subr.bf16.mxu0 %v12865_v10  ;;  %v3978_v9 = vld [vmem:[%s15022_s3 + $0x750] sm:$0xff] }
 0x43a   : > { %7403 = vmatprep.subr.bf16.mxu1 %v12867_v11  ;;  %v3982_v10 = vld [vmem:[%s15022_s3 + $0x770] sm:$0xff]  ;;  %v3979_v11 = vld [vmem:[%s15022_s3 + $0x758] sm:$0xff] }
 0x43b   : > { %v12921_v16 = vcombine.high %v3978_v9, %v3982_v10  ;;  %v12920_v22 = vcombine.low %v3978_v9, %v3982_v10  ;;  %v12922_v53 = vcombine.low %v3979_v11, %v3983_v13 }
 0x43c   : > { %7240 = vmatpush1.bf16.msra.mxu0 %v12864_v18  ;;  %v12923_v18 = vcombine.high %v3979_v11, %v3983_v13  ;;  %v4034_v13 = vld [vmem:[%s15022_s3 + $0x910] sm:$0xff] }
 0x43d   : > { %7404 = vmatpush1.bf16.msra.mxu1 %v12866_v19  ;;  %7241 = vmatprep.subr.bf16.mxu0 %v12873_v20  ;;  %v3986_v19 = vld [vmem:[%s15022_s3 + $0x790] sm:$0xff] }
 0x43e   : > { %7405 = vmatprep.subr.bf16.mxu1 %v12875_v21  ;;  %v3990_v20 = vld [vmem:[%s15022_s3 + $0x7b0] sm:$0xff]  ;;  %v3987_v21 = vld [vmem:[%s15022_s3 + $0x798] sm:$0xff] }
 0x43f   : > { %v12929_v33 = vcombine.high %v3986_v19, %v3990_v20  ;;  %v12928_v35 = vcombine.low %v3986_v19, %v3990_v20  ;;  %v12930_v36 = vcombine.low %v3987_v21, %v3991_v23 }
 0x440   : > { %7242 = vmatpush1.bf16.msra.mxu0 %v12872_v42  ;;  %v12931_v42 = vcombine.high %v3987_v21, %v3991_v23  ;;  %v4042_v23 = vld [vmem:[%s15022_s3 + $0x950] sm:$0xff] }
 0x441   : > { %7406 = vmatpush1.bf16.msra.mxu1 %v12874_v24  ;;  %7243 = vmatprep.subr.bf16.mxu0 %v12881_v26  ;;  %v3994_v24 = vld [vmem:[%s15022_s3 + $0x7d0] sm:$0xff] }
 0x442   : > { %7407 = vmatprep.subr.bf16.mxu1 %v12883_v27  ;;  %v3998_v26 = vld [vmem:[%s15022_s3 + $0x7f0] sm:$0xff]  ;;  %v3995_v27 = vld [vmem:[%s15022_s3 + $0x7d8] sm:$0xff] }
 0x443   : > { %v12937_v37 = vcombine.high %v3994_v24, %v3998_v26  ;;  %v12936_v41 = vcombine.low %v3994_v24, %v3998_v26  ;;  %v12938_v60 = vcombine.low %v3995_v27, %v3999_v29 }
 0x444   : > { %7244 = vmatpush1.bf16.msra.mxu0 %v12880_v25  ;;  %v12939_v25 = vcombine.high %v3995_v27, %v3999_v29  ;;  %v4050_v29 = vld [vmem:[%s15022_s3 + $0x990] sm:$0xff] }
 0x445   : > { %7408 = vmatpush1.bf16.msra.mxu1 %v12882_v39  ;;  %7245 = vmatprep.subr.bf16.mxu0 %v12889_v54  ;;  %v4002_v39 = vld [vmem:[%s15022_s3 + $0x810] sm:$0xff] }
 0x446   : > { %7409 = vmatprep.subr.bf16.mxu1 %v12891_v40  ;;  %v4006_v54 = vld [vmem:[%s15022_s3 + $0x830] sm:$0xff]  ;;  %v4003_v40 = vld [vmem:[%s15022_s3 + $0x818] sm:$0xff] }
 0x447   : > { %v12945_v44 = vcombine.high %v4002_v39, %v4006_v54  ;;  %v12946_v55 = vcombine.low %v4003_v40, %v4007_v43 }
 0x448   : > { %7246 = vmatpush1.bf16.msra.mxu0 %v12888_v46  ;;  %v12947_v46 = vcombine.high %v4003_v40, %v4007_v43  ;;  %v4058_v43 = vld [vmem:[%s15022_s3 + $0x9d0] sm:$0xff] }
 0x449   : > { %7410 = vmatpush1.bf16.msra.mxu1 %v12890_v48  ;;  %7247 = vmatprep.subr.bf16.mxu0 %v12897_v49  ;;  %v4010_v48 = vld [vmem:[%s15022_s3 + $0x850] sm:$0xff] }
 0x44a   : > { %7411 = vmatprep.subr.bf16.mxu1 %v12899_v50  ;;  %v4014_v49 = vld [vmem:[%s15022_s3 + $0x870] sm:$0xff]  ;;  %v12944_v50 = vcombine.low %v4002_v39, %v4006_v54 }
 0x44b   : > { %v12953_v56 = vcombine.high %v4010_v48, %v4014_v49  ;;  %v12952_v1 = vcombine.low %v4010_v48, %v4014_v49 }
 0x44c   : > { %7248 = vmatpush1.bf16.msra.mxu0 %v12896_v58  ;;  %v4018_v58 = vld [vmem:[%s15022_s3 + $0x890] sm:$0xff] }
 0x44d   : > { %7412 = vmatpush1.bf16.msra.mxu1 %v12898_v59  ;;  %7249 = vmatprep.subr.bf16.mxu0 %v12905_v61  ;;  %v4022_v59 = vld [vmem:[%s15022_s3 + $0x8b0] sm:$0xff]  ;;  %v12955_v61 = vcombine.high %v4011_v51, %v4015_v52 }
 0x44e   : > { %7413 = vmatprep.subr.bf16.mxu1 %v12907_v62  ;;  %v4019_v62 = vld [vmem:[%s15022_s3 + $0x898] sm:$0xff]  ;;  %v12961_v5 = vcombine.high %v4018_v58, %v4022_v59  ;;  %v12960_v9 = vcombine.low %v4018_v58, %v4022_v59  ;;  %v4066_v51 = vld [vmem:[%s15022_s3 + $0xa10] sm:$0xff] }
 0x44f   : > { %v12962_v10 = vcombine.low %v4019_v62, %v4023_v63  ;;  %v4070_v52 = vld [vmem:[%s15022_s3 + $0xa30] sm:$0xff] }
 0x450   : > { %7250 = vmatpush1.bf16.msra.mxu0 %v12904_v6  ;;  %v12963_v6 = vcombine.high %v4019_v62, %v4023_v63  ;;  %v4074_v63 = vld [vmem:[%s15022_s3 + $0xa50] sm:$0xff] }
 0x451   : > { %7414 = vmatpush1.bf16.msra.mxu1 %v12906_v45  ;;  %7251 = vmatprep.subr.bf16.mxu0 %v12913_v2  ;;  %v4026_v45 = vld [vmem:[%s15022_s3 + $0x8d0] sm:$0xff] }
 0x452   : > { %7415 = vmatprep.subr.bf16.mxu1 %v12915_v8  ;;  %v4030_v2 = vld [vmem:[%s15022_s3 + $0x8f0] sm:$0xff]  ;;  %v4027_v8 = vld [vmem:[%s15022_s3 + $0x8d8] sm:$0xff] }
 0x453   : > { %v12969_v11 = vcombine.high %v4026_v45, %v4030_v2 }
 0x454   : > { %7252 = vmatpush1.bf16.msra.mxu0 %v12912_v34  ;;  %v4038_v34 = vld [vmem:[%s15022_s3 + $0x930] sm:$0xff] }
 0x455   : > { %7416 = vmatpush1.bf16.msra.mxu1 %v12914_v12  ;;  %7253 = vmatprep.subr.bf16.mxu0 %v12921_v16  ;;  %v4035_v12 = vld [vmem:[%s15022_s3 + $0x918] sm:$0xff]  ;;  %v12977_v20 = vcombine.high %v4034_v13, %v4038_v34 }
 0x456   : > { %7417 = vmatprep.subr.bf16.mxu1 %v12923_v18  ;;  %v4039_v16 = vld [vmem:[%s15022_s3 + $0x938] sm:$0xff]  ;;  %v12968_v18 = vcombine.low %v4026_v45, %v4030_v2 }
 0x457   : > { %v12979_v21 = vcombine.high %v4035_v12, %v4039_v16  ;;  %v12978_v24 = vcombine.low %v4035_v12, %v4039_v16  ;;  %v4090_v16 = vld [vmem:[%s15022_s3 + $0xad0] sm:$0xff] }
 0x458   : > { %7254 = vmatpush1.bf16.msra.mxu0 %v12920_v22  ;;  %v4046_v22 = vld [vmem:[%s15022_s3 + $0x970] sm:$0xff] }
 0x459   : > { %7418 = vmatpush1.bf16.msra.mxu1 %v12922_v53  ;;  %7255 = vmatprep.subr.bf16.mxu0 %v12929_v33  ;;  %v4043_v53 = vld [vmem:[%s15022_s3 + $0x958] sm:$0xff]  ;;  %v12985_v26 = vcombine.high %v4042_v23, %v4046_v22 }
 0x45a   : > { %7419 = vmatprep.subr.bf16.mxu1 %v12931_v42  ;;  %v4047_v33 = vld [vmem:[%s15022_s3 + $0x978] sm:$0xff]  ;;  %v12976_v42 = vcombine.low %v4034_v13, %v4038_v34 }
 0x45b   : > { %v12987_v27 = vcombine.high %v4043_v53, %v4047_v33  ;;  %v12986_v39 = vcombine.low %v4043_v53, %v4047_v33  ;;  %v4098_v33 = vld [vmem:[%s15022_s3 + $0xb10] sm:$0xff] }
 0x45c   : > { %7256 = vmatpush1.bf16.msra.mxu0 %v12928_v35  ;;  %v4054_v35 = vld [vmem:[%s15022_s3 + $0x9b0] sm:$0xff] }
 0x45d   : > { %7420 = vmatpush1.bf16.msra.mxu1 %v12930_v36  ;;  %7257 = vmatprep.subr.bf16.mxu0 %v12937_v37  ;;  %v4051_v36 = vld [vmem:[%s15022_s3 + $0x998] sm:$0xff]  ;;  %v12993_v54 = vcombine.high %v4050_v29, %v4054_v35 }
 0x45e   : > { %7421 = vmatprep.subr.bf16.mxu1 %v12939_v25  ;;  %v4055_v37 = vld [vmem:[%s15022_s3 + $0x9b8] sm:$0xff]  ;;  %v12984_v25 = vcombine.low %v4042_v23, %v4046_v22 }
 0x45f   : > { %v12995_v40 = vcombine.high %v4051_v36, %v4055_v37  ;;  %v12994_v48 = vcombine.low %v4051_v36, %v4055_v37  ;;  %v4106_v37 = vld [vmem:[%s15022_s3 + $0xb50] sm:$0xff] }
 0x460   : > { %7258 = vmatpush1.bf16.msra.mxu0 %v12936_v41  ;;  %v4062_v41 = vld [vmem:[%s15022_s3 + $0x9f0] sm:$0xff] }
 0x461   : > { %7422 = vmatpush1.bf16.msra.mxu1 %v12938_v60  ;;  %7268 = vmatprep.subr.bf16.mxu0 %v12945_v44  ;;  %v4059_v60 = vld [vmem:[%s15022_s3 + $0x9d8] sm:$0xff]  ;;  %v13001_v49 = vcombine.high %v4058_v43, %v4062_v41  ;;  %v13000_v58 = vcombine.low %v4058_v43, %v4062_v41 }
 0x462   : > { %7432 = vmatprep.subr.bf16.mxu1 %v12947_v46  ;;  %v4063_v44 = vld [vmem:[%s15022_s3 + $0x9f8] sm:$0xff]  ;;  %v12992_v46 = vcombine.low %v4050_v29, %v4054_v35 }
 0x463   : > { %7260 = vmatmul.mubr.bf16.vlgmr.msra.gmra.mrb[12].mxu0 %v15685_v14  ;;  %v13002_v59 = vcombine.low %v4059_v60, %v4063_v44 }
 0x464   : > { %7424 = vmatmul.mubr.bf16.vlgmr.msra.gmra.mrb[12].mxu1 %v15685_v14  ;;  %7269 = vmatpush1.bf16.msra.mxu0 %v12944_v50  ;;  %v4031_v14 = vld [vmem:[%s15022_s3 + $0x8f8] sm:$0xff]  ;;  %v13003_v50 = vcombine.high %v4059_v60, %v4063_v44  ;;  %v4114_v44 = vld [vmem:[%s15022_s3 + $0xb90] sm:$0xff] }
 0x465   : > { %7300 = vmatprep.mubr.bf16.mxu0 %v15774_v15  ;;  %7433 = vmatpush1.bf16.msra.mxu1 %v12946_v55  ;;  %v12970_v19 = vcombine.low %v4027_v8, %v4031_v14  ;;  %v4067_v55 = vld [vmem:[%s15022_s3 + $0xa18] sm:$0xff] }
 0x466   : > { %7464 = vmatprep.mubr.bf16.mxu1 %v15774_v15  ;;  %7270 = vmatprep.subr.bf16.mxu0 %v12953_v56  ;;  %v12971_v15 = vcombine.high %v4027_v8, %v4031_v14  ;;  %v4071_v56 = vld [vmem:[%s15022_s3 + $0xa38] sm:$0xff]  ;;  %v4082_v14 = vld [vmem:[%s15022_s3 + $0xa90] sm:$0xff] }
 0x467   : > { %7434 = vmatprep.subr.bf16.mxu1 %v12955_v61  ;;  %v13009_v61 = vcombine.high %v4066_v51, %v4070_v52  ;;  %v13011_v62 = vcombine.high %v4067_v55, %v4071_v56  ;;  %v13010_v45 = vcombine.low %v4067_v55, %v4071_v56  ;;  %v4122_v56 = vld [vmem:[%s15022_s3 + $0xbd0] sm:$0xff] }
 0x468   : > { %7271 = vmatpush1.bf16.msra.mxu0 %v12952_v1  ;;  %v4078_v1 = vld [vmem:[%s15022_s3 + $0xa70] sm:$0xff] }
 0x469   : > { %7435 = vmatpush1.bf16.msra.mxu1 %v12954_v3  ;;  %7272 = vmatprep.subr.bf16.mxu0 %v12961_v5  ;;  %v4075_v3 = vld [vmem:[%s15022_s3 + $0xa58] sm:$0xff]  ;;  %v13017_v2 = vcombine.high %v4074_v63, %v4078_v1 }
 0x46a   : > { %7436 = vmatprep.subr.bf16.mxu1 %v12963_v6  ;;  %v4079_v5 = vld [vmem:[%s15022_s3 + $0xa78] sm:$0xff]  ;;  %v13008_v6 = vcombine.low %v4066_v51, %v4070_v52 }
 0x46b   : > { %v13019_v8 = vcombine.high %v4075_v3, %v4079_v5  ;;  %v13018_v13 = vcombine.low %v4075_v3, %v4079_v5  ;;  %v4130_v5 = vld [vmem:[%s15022_s3 + $0xc10] sm:$0xff] }
 0x46c   : > { %7273 = vmatpush1.bf16.msra.mxu0 %v12960_v9  ;;  %v4086_v9 = vld [vmem:[%s15022_s3 + $0xab0] sm:$0xff] }
 0x46d   : > { %7437 = vmatpush1.bf16.msra.mxu1 %v12962_v10  ;;  %7274 = vmatprep.subr.bf16.mxu0 %v12969_v11  ;;  %v4083_v10 = vld [vmem:[%s15022_s3 + $0xa98] sm:$0xff]  ;;  %v13025_v34 = vcombine.high %v4082_v14, %v4086_v9 }
 0x46e   : > { %7438 = vmatprep.subr.bf16.mxu1 %v12971_v15  ;;  %v4087_v11 = vld [vmem:[%s15022_s3 + $0xab8] sm:$0xff]  ;;  %v13016_v15 = vcombine.low %v4074_v63, %v4078_v1 }
 0x46f   : > { %v13027_v12 = vcombine.high %v4083_v10, %v4087_v11  ;;  %v13026_v23 = vcombine.low %v4083_v10, %v4087_v11  ;;  %v4138_v11 = vld [vmem:[%s15022_s3 + $0xc50] sm:$0xff] }
 0x470   : > { %7275 = vmatpush1.bf16.msra.mxu0 %v12968_v18  ;;  %v4094_v18 = vld [vmem:[%s15022_s3 + $0xaf0] sm:$0xff] }
 0x471   : > { %7439 = vmatpush1.bf16.msra.mxu1 %v12970_v19  ;;  %7276 = vmatprep.subr.bf16.mxu0 %v12977_v20  ;;  %v4091_v19 = vld [vmem:[%s15022_s3 + $0xad8] sm:$0xff]  ;;  %v13033_v22 = vcombine.high %v4090_v16, %v4094_v18 }
 0x472   : > { %7440 = vmatprep.subr.bf16.mxu1 %v12979_v21  ;;  %v4095_v20 = vld [vmem:[%s15022_s3 + $0xaf8] sm:$0xff]  ;;  %v13024_v21 = vcombine.low %v4082_v14, %v4086_v9 }
 0x473   : > { %v13035_v53 = vcombine.high %v4091_v19, %v4095_v20  ;;  %v13034_v29 = vcombine.low %v4091_v19, %v4095_v20  ;;  %v4146_v19 = vld [vmem:[%s15022_s3 + $0xc90] sm:$0xff] }
 0x474   : > { %7277 = vmatpush1.bf16.msra.mxu0 %v12976_v42  ;;  %v4102_v42 = vld [vmem:[%s15022_s3 + $0xb30] sm:$0xff] }
 0x475   : > { %7441 = vmatpush1.bf16.msra.mxu1 %v12978_v24  ;;  %7278 = vmatprep.subr.bf16.mxu0 %v12985_v26  ;;  %v4099_v24 = vld [vmem:[%s15022_s3 + $0xb18] sm:$0xff]  ;;  %v13041_v35 = vcombine.high %v4098_v33, %v4102_v42  ;;  %v4150_v20 = vld [vmem:[%s15022_s3 + $0xcb0] sm:$0xff] }
 0x476   : > { %7442 = vmatprep.subr.bf16.mxu1 %v12987_v27  ;;  %v4103_v26 = vld [vmem:[%s15022_s3 + $0xb38] sm:$0xff]  ;;  %v13032_v27 = vcombine.low %v4090_v16, %v4094_v18 }
 0x477   : > { %v13043_v36 = vcombine.high %v4099_v24, %v4103_v26  ;;  %v13042_v43 = vcombine.low %v4099_v24, %v4103_v26  ;;  %v4154_v26 = vld [vmem:[%s15022_s3 + $0xcd0] sm:$0xff] }
 0x478   : > { %7279 = vmatpush1.bf16.msra.mxu0 %v12984_v25  ;;  %v4110_v25 = vld [vmem:[%s15022_s3 + $0xb70] sm:$0xff] }
 0x479   : > { %7443 = vmatpush1.bf16.msra.mxu1 %v12986_v39  ;;  %7280 = vmatprep.subr.bf16.mxu0 %v12993_v54  ;;  %v4107_v39 = vld [vmem:[%s15022_s3 + $0xb58] sm:$0xff]  ;;  %v13049_v41 = vcombine.high %v4106_v37, %v4110_v25 }
 0x47a   : > { %7444 = vmatprep.subr.bf16.mxu1 %v12995_v40  ;;  %v4111_v54 = vld [vmem:[%s15022_s3 + $0xb78] sm:$0xff]  ;;  %v13040_v40 = vcombine.low %v4098_v33, %v4102_v42  ;;  %v13089_v42 = vcombine.high %v4146_v19, %v4150_v20 }
 0x47b   : > { %v13051_v60 = vcombine.high %v4107_v39, %v4111_v54  ;;  %v13050_v51 = vcombine.low %v4107_v39, %v4111_v54  ;;  %v4166_v39 = vld [vmem:[%s15022_s3 + $0xd30] sm:$0xff]  ;;  %v4163_v54 = vld [vmem:[%s15022_s3 + $0xd18] sm:$0xff] }
 0x47c   : > { %7281 = vmatpush1.bf16.msra.mxu0 %v12992_v46  ;;  %v4118_v46 = vld [vmem:[%s15022_s3 + $0xbb0] sm:$0xff] }
 0x47d   : > { %7445 = vmatpush1.bf16.msra.mxu1 %v12994_v48  ;;  %7282 = vmatprep.subr.bf16.mxu0 %v13001_v49  ;;  %v4115_v48 = vld [vmem:[%s15022_s3 + $0xb98] sm:$0xff]  ;;  %v13057_v52 = vcombine.high %v4114_v44, %v4118_v46 }
 0x47e   : > { %7446 = vmatprep.subr.bf16.mxu1 %v13003_v50  ;;  %v4119_v49 = vld [vmem:[%s15022_s3 + $0xbb8] sm:$0xff]  ;;  %v13048_v50 = vcombine.low %v4106_v37, %v4110_v25  ;;  %v4162_v25 = vld [vmem:[%s15022_s3 + $0xd10] sm:$0xff] }
 0x47f   : > { %v13059_v55 = vcombine.high %v4115_v48, %v4119_v49  ;;  %v13058_v63 = vcombine.low %v4115_v48, %v4119_v49  ;;  %v4174_v48 = vld [vmem:[%s15022_s3 + $0xd70] sm:$0xff]  ;;  %v4171_v49 = vld [vmem:[%s15022_s3 + $0xd58] sm:$0xff] }
 0x480   : > { %7283 = vmatpush1.bf16.msra.mxu0 %v13000_v58  ;;  %v4126_v58 = vld [vmem:[%s15022_s3 + $0xbf0] sm:$0xff] }
 0x481   : > { %7447 = vmatpush1.bf16.msra.mxu1 %v13002_v59  ;;  %7284 = vmatprep.subr.bf16.mxu0 %v13009_v61  ;;  %v4123_v59 = vld [vmem:[%s15022_s3 + $0xbd8] sm:$0xff]  ;;  %v13065_v1 = vcombine.high %v4122_v56, %v4126_v58 }
 0x482   : > { %7448 = vmatprep.subr.bf16.mxu1 %v13011_v62  ;;  %v4127_v61 = vld [vmem:[%s15022_s3 + $0xbf8] sm:$0xff]  ;;  %v13056_v62 = vcombine.low %v4114_v44, %v4118_v46  ;;  %v4170_v46 = vld [vmem:[%s15022_s3 + $0xd50] sm:$0xff] }
 0x483   : > { %v13067_v3 = vcombine.high %v4123_v59, %v4127_v61  ;;  %v13066_v14 = vcombine.low %v4123_v59, %v4127_v61  ;;  %v4182_v59 = vld [vmem:[%s15022_s3 + $0xdb0] sm:$0xff]  ;;  %v4179_v61 = vld [vmem:[%s15022_s3 + $0xd98] sm:$0xff] }
 0x484   : > { %7285 = vmatpush1.bf16.msra.mxu0 %v13008_v6  ;;  %v4134_v6 = vld [vmem:[%s15022_s3 + $0xc30] sm:$0xff] }
 0x485   : > { %7449 = vmatpush1.bf16.msra.mxu1 %v13010_v45  ;;  %7286 = vmatprep.subr.bf16.mxu0 %v13017_v2  ;;  %v4131_v45 = vld [vmem:[%s15022_s3 + $0xc18] sm:$0xff]  ;;  %v13073_v9 = vcombine.high %v4130_v5, %v4134_v6 }
 0x486   : > { %7450 = vmatprep.subr.bf16.mxu1 %v13019_v8  ;;  %v4135_v2 = vld [vmem:[%s15022_s3 + $0xc38] sm:$0xff]  ;;  %v13064_v8 = vcombine.low %v4122_v56, %v4126_v58  ;;  %v4178_v58 = vld [vmem:[%s15022_s3 + $0xd90] sm:$0xff] }
 0x487   : > { %v13075_v10 = vcombine.high %v4131_v45, %v4135_v2  ;;  %v13074_v16 = vcombine.low %v4131_v45, %v4135_v2  ;;  %v4186_v2 = vld [vmem:[%s15022_s3 + $0xdd0] sm:$0xff] }
 0x488   : > { %7287 = vmatpush1.bf16.msra.mxu0 %v13016_v15  ;;  %v4142_v15 = vld [vmem:[%s15022_s3 + $0xc70] sm:$0xff] }
 0x489   : > { %7451 = vmatpush1.bf16.msra.mxu1 %v13018_v13  ;;  %7288 = vmatprep.subr.bf16.mxu0 %v13025_v34  ;;  %v13072_v13 = vcombine.low %v4130_v5, %v4134_v6  ;;  %v4139_v34 = vld [vmem:[%s15022_s3 + $0xc58] sm:$0xff]  ;;  %v13081_v18 = vcombine.high %v4138_v11, %v4142_v15 }
 0x48a   : > { %7452 = vmatprep.subr.bf16.mxu1 %v13027_v12  ;;  %v4143_v12 = vld [vmem:[%s15022_s3 + $0xc78] sm:$0xff] }
 0x48b   : > { %v13082_v33 = vcombine.low %v4139_v34, %v4143_v12 }
 0x48c   : > { %7289 = vmatpush1.bf16.msra.mxu0 %v13024_v21  ;;  %v13083_v21 = vcombine.high %v4139_v34, %v4143_v12  ;;  %v13120_v34 = vcombine.low %v4178_v58, %v4182_v59 }
 0x48d   : > { %7453 = vmatpush1.bf16.msra.mxu1 %v13026_v23  ;;  %7290 = vmatprep.subr.bf16.mxu0 %v13033_v22  ;;  %v4147_v23 = vld [vmem:[%s15022_s3 + $0xc98] sm:$0xff] }
 0x48e   : > { %7454 = vmatprep.subr.bf16.mxu1 %v13035_v53  ;;  %v4151_v22 = vld [vmem:[%s15022_s3 + $0xcb8] sm:$0xff]  ;;  %v13080_v53 = vcombine.low %v4138_v11, %v4142_v15 }
 0x48f   : > { %v13091_v24 = vcombine.high %v4147_v23, %v4151_v22  ;;  %v4191_v11 = vld [vmem:[%s15022_s3 + $0xdf8] sm:$0xff] }
 0x490   : > { %7291 = vmatpush1.bf16.msra.mxu0 %v13032_v27  ;;  %v4158_v27 = vld [vmem:[%s15022_s3 + $0xcf0] sm:$0xff] }
 0x491   : > { %7455 = vmatpush1.bf16.msra.mxu1 %v13034_v29  ;;  %7292 = vmatprep.subr.bf16.mxu0 %v13041_v35  ;;  %v4155_v29 = vld [vmem:[%s15022_s3 + $0xcd8] sm:$0xff]  ;;  %v13088_v35 = vcombine.low %v4146_v19, %v4150_v20  ;;  %v13097_v37 = vcombine.high %v4154_v26, %v4158_v27 }
 0x492   : > { %7456 = vmatprep.subr.bf16.mxu1 %v13043_v36  ;;  %v13090_v36 = vcombine.low %v4147_v23, %v4151_v22  ;;  %v4198_v23 = vld [vmem:[%s15022_s3 + $0xe30] sm:$0xff]  ;;  %v4195_v22 = vld [vmem:[%s15022_s3 + $0xe18] sm:$0xff] }
 0x494   : > { %7293 = vmatpush1.bf16.msra.mxu0 %v13040_v40  ;;  %v4167_v40 = vld [vmem:[%s15022_s3 + $0xd38] sm:$0xff] }
 0x495   : > { %7457 = vmatpush1.bf16.msra.mxu1 %v13042_v43  ;;  %7294 = vmatprep.subr.bf16.mxu0 %v13049_v41  ;;  %v13096_v43 = vcombine.low %v4154_v26, %v4158_v27  ;;  %v13107_v44 = vcombine.high %v4163_v54, %v4167_v40  ;;  %v4202_v27 = vld [vmem:[%s15022_s3 + $0xe50] sm:$0xff] }
 0x496   : > { %7458 = vmatprep.subr.bf16.mxu1 %v13051_v60  ;;  %v13105_v60 = vcombine.high %v4162_v25, %v4166_v39 }
 0x498   : > { %7295 = vmatpush1.bf16.msra.mxu0 %v13048_v50  ;;  %v4175_v50 = vld [vmem:[%s15022_s3 + $0xd78] sm:$0xff] }
 0x499   : > { %7459 = vmatpush1.bf16.msra.mxu1 %v13050_v51  ;;  %7296 = vmatprep.subr.bf16.mxu0 %v13057_v52  ;;  %v13104_v51 = vcombine.low %v4162_v25, %v4166_v39  ;;  %v13106_v52 = vcombine.low %v4163_v54, %v4167_v40  ;;  %v13115_v56 = vcombine.high %v4171_v49, %v4175_v50  ;;  %v4210_v39 = vld [vmem:[%s15022_s3 + $0xe90] sm:$0xff]  ;;  %v4211_v40 = vld [vmem:[%s15022_s3 + $0xe98] sm:$0xff] }
 0x49a   : > { %7460 = vmatprep.subr.bf16.mxu1 %v13059_v55  ;;  %v13113_v55 = vcombine.high %v4170_v46, %v4174_v48  ;;  %v4214_v54 = vld [vmem:[%s15022_s3 + $0xeb0] sm:$0xff] }
 0x49c   : > { %7297 = vmatpush1.bf16.msra.mxu0 %v13056_v62  ;;  %v4183_v62 = vld [vmem:[%s15022_s3 + $0xdb8] sm:$0xff] }
 0x49d   : > { %7461 = vmatpush1.bf16.msra.mxu1 %v13058_v63  ;;  %7298 = vmatprep.subr.bf16.mxu0 %v13065_v1  ;;  %v13112_v63 = vcombine.low %v4170_v46, %v4174_v48  ;;  %v13114_v1 = vcombine.low %v4171_v49, %v4175_v50  ;;  %v13123_v45 = vcombine.high %v4179_v61, %v4183_v62  ;;  %v4218_v48 = vld [vmem:[%s15022_s3 + $0xed0] sm:$0xff]  ;;  %v4219_v50 = vld [vmem:[%s15022_s3 + $0xed8] sm:$0xff] }
 0x49e   : > { %7462 = vmatprep.subr.bf16.mxu1 %v13067_v3  ;;  %v13121_v3 = vcombine.high %v4178_v58, %v4182_v59  ;;  %v4222_v49 = vld [vmem:[%s15022_s3 + $0xef0] sm:$0xff] }
 0x49f   : > { %v4226_v59 = vld [vmem:[%s15022_s3 + $0xf10] sm:$0xff] }
 0x4a0   : > { %7299 = vmatpush1.bf16.msra.mxu0 %v13064_v8  ;;  %v4190_v8 = vld [vmem:[%s15022_s3 + $0xdf0] sm:$0xff] }
 0x4a1   : > { %7463 = vmatpush1.bf16.msra.mxu1 %v13066_v14  ;;  %7309 = vmatprep.subr.bf16.mxu0 %v13073_v9  ;;  %v13129_v19 = vcombine.high %v4186_v2, %v4190_v8 }
 0x4a2   : > { %7473 = vmatprep.subr.bf16.mxu1 %v13075_v10  ;;  %v4187_v10 = vld [vmem:[%s15022_s3 + $0xdd8] sm:$0xff] }
 0x4a3   : > { %7301 = vmatmul.mubr.bf16.vlgmr.msra.gmra.mrb[12].mxu0 %v15776_v0  ;;  %v13131_v20 = vcombine.high %v4187_v10, %v4191_v11 }
 0x4a4   : > { %7465 = vmatmul.mubr.bf16.vlgmr.msra.gmra.mrb[12].mxu1 %v15776_v0  ;;  %7310 = vmatpush1.bf16.msra.mxu0 %v13072_v13  ;;  %v4159_v0 = vld [vmem:[%s15022_s3 + $0xcf8] sm:$0xff] }
 0x4a5   : > { %7341 = vmatprep.mubr.bf16.mxu0 %v15784_v7  ;;  %7474 = vmatpush1.bf16.msra.mxu1 %v13074_v16  ;;  %v13098_v41 = vcombine.low %v4155_v29, %v4159_v0 }
 0x4a6   : > { %7505 = vmatprep.mubr.bf16.mxu1 %v15784_v7  ;;  %7311 = vmatprep.subr.bf16.mxu0 %v13081_v18  ;;  %v13099_v7 = vcombine.high %v4155_v29, %v4159_v0  ;;  %v13122_v18 = vcombine.low %v4179_v61, %v4183_v62  ;;  %v4206_v29 = vld [vmem:[%s15022_s3 + $0xe70] sm:$0xff]  ;;  %v4203_v0 = vld [vmem:[%s15022_s3 + $0xe58] sm:$0xff] }
 0x4a7   : > { %7475 = vmatprep.subr.bf16.mxu1 %v13083_v21  ;;  %v4194_v21 = vld [vmem:[%s15022_s3 + $0xe10] sm:$0xff]  ;;  %v4227_v62 = vld [vmem:[%s15022_s3 + $0xf18] sm:$0xff] }
 0x4a8   : > { %7312 = vmatpush1.bf16.msra.mxu0 %v13080_v53  ;;  %v4199_v53 = vld [vmem:[%s15022_s3 + $0xe38] sm:$0xff]  ;;  %v4230_v61 = vld [vmem:[%s15022_s3 + $0xf30] sm:$0xff] }
 0x4a9   : > { %7476 = vmatpush1.bf16.msra.mxu1 %v13082_v33  ;;  %7313 = vmatprep.subr.bf16.mxu0 %v13089_v42  ;;  %v13128_v33 = vcombine.low %v4186_v2, %v4190_v8  ;;  %v13130_v42 = vcombine.low %v4187_v10, %v4191_v11  ;;  %v13139_v26 = vcombine.high %v4195_v22, %v4199_v53  ;;  %v4234_v8 = vld [vmem:[%s15022_s3 + $0xf50] sm:$0xff]  ;;  %v4235_v11 = vld [vmem:[%s15022_s3 + $0xf58] sm:$0xff] }
 0x4aa   : > { %7477 = vmatprep.subr.bf16.mxu1 %v13091_v24  ;;  %v13137_v24 = vcombine.high %v4194_v21, %v4198_v23  ;;  %v4238_v10 = vld [vmem:[%s15022_s3 + $0xf70] sm:$0xff] }
 0x4ac   : > { %7314 = vmatpush1.bf16.msra.mxu0 %v13088_v35  ;;  %v4207_v35 = vld [vmem:[%s15022_s3 + $0xe78] sm:$0xff] }
 0x4ad   : > { %7478 = vmatpush1.bf16.msra.mxu1 %v13090_v36  ;;  %7315 = vmatprep.subr.bf16.mxu0 %v13097_v37  ;;  %v13136_v36 = vcombine.low %v4194_v21, %v4198_v23  ;;  %v13138_v37 = vcombine.low %v4195_v22, %v4199_v53  ;;  %v13147_v25 = vcombine.high %v4203_v0, %v4207_v35  ;;  %v4247_v21 = vld [vmem:[%s15022_s3 + $0xfb8] sm:$0xff]  ;;  %v16128_v23 = vld [vmem:[%s536_s15] sm:$0xff] }
 0x4ae   : > { %7479 = vmatprep.subr.bf16.mxu1 %v13099_v7  ;;  %v13145_v7 = vcombine.high %v4202_v27, %v4206_v29  ;;  %v13176_v22 = vcombine.low %v4234_v8, %v4238_v10 }
 0x4b0   : > { %7316 = vmatpush1.bf16.msra.mxu0 %v13096_v43  ;;  %v4215_v43 = vld [vmem:[%s15022_s3 + $0xeb8] sm:$0xff] }
 0x4b1   : > { %7480 = vmatpush1.bf16.msra.mxu1 %v13098_v41  ;;  %7317 = vmatprep.subr.bf16.mxu0 %v13105_v60  ;;  %v13144_v41 = vcombine.low %v4202_v27, %v4206_v29  ;;  %v13146_v60 = vcombine.low %v4203_v0, %v4207_v35  ;;  %v13155_v46 = vcombine.high %v4211_v40, %v4215_v43  ;;  %v4251_v29 = vld [vmem:[%s15022_s3 + $0xfd8] sm:$0xff] }
 0x4b2   : > { %7481 = vmatprep.subr.bf16.mxu1 %v13107_v44  ;;  %v13153_v44 = vcombine.high %v4210_v39, %v4214_v54  ;;  %v4265_v27 = vrot.slane %v16128_v23, %v15517_v28  ;;  %v4255_v0 = vld [vmem:[%s15022_s3 + $0xff8] sm:$0xff] }
 0x4b4   : > { %7318 = vmatpush1.bf16.msra.mxu0 %v13104_v51  ;;  %v4223_v51 = vld [vmem:[%s15022_s3 + $0xef8] sm:$0xff] }
 0x4b5   : > { %7482 = vmatpush1.bf16.msra.mxu1 %v13106_v52  ;;  %7319 = vmatprep.subr.bf16.mxu0 %v13113_v55  ;;  %v13152_v52 = vcombine.low %v4210_v39, %v4214_v54  ;;  %v13154_v55 = vcombine.low %v4211_v40, %v4215_v43  ;;  %v13163_v58 = vcombine.high %v4219_v50, %v4223_v51  ;;  %v7534_v39 = vld [vmem:[%s15029_s14 + $0x20] sm:$0xff]  ;;  %v7531_v40 = vld [vmem:[%s15029_s14 + $0x8] sm:$0xff] }
 0x4b6   : > { %v16086_v5 = vpop.f32.mrb[8].mxu0  ;;  %v16088_v6 = vpop.f32.mrb[8].mxu1  ;;  %7483 = vmatprep.subr.bf16.mxu1 %v13115_v56  ;;  %v13161_v56 = vcombine.high %v4218_v48, %v4222_v49  ;;  %v7535_v43 = vld [vmem:[%s15029_s14 + $0x28] sm:$0xff] }
 0x4b7   : > { %v16092_v14 = vpop.f32.mrb[9].mxu0  ;;  %v16094_v9 = vpop.f32.mrb[9].mxu1 }
 0x4b8   : > { %v7019_v15 = vpop.f32.mrb[10].mxu0  ;;  %v7183_v13 = vpop.f32.mrb[10].mxu1  ;;  %7320 = vmatpush1.bf16.msra.mxu0 %v13112_v63  ;;  %v4231_v63 = vld [vmem:[%s15022_s3 + $0xf38] sm:$0xff]  ;;  %v13880_v54 = vadd.f32 %v16092_v14, %v4265_v27 }
 0x4b9   : > { %7484 = vmatpush1.bf16.msra.mxu1 %v13114_v1  ;;  %v7020_v12 = vpop.f32.mrb[11].mxu0  ;;  %v7184_v16 = vpop.f32.mrb[11].mxu1  ;;  %7321 = vmatprep.subr.bf16.mxu0 %v13121_v3  ;;  %v13160_v1 = vcombine.low %v4218_v48, %v4222_v49  ;;  %v13162_v3 = vcombine.low %v4219_v50, %v4223_v51  ;;  %v13171_v2 = vcombine.high %v4227_v62, %v4231_v63  ;;  %v4239_v15 = vld [vmem:[%s15022_s3 + $0xf78] sm:$0xff]  ;;  %v7538_v49 = vld [vmem:[%s15029_s14 + $0x40] sm:$0xff] }
 0x4ba   : > { %7485 = vmatprep.subr.bf16.mxu1 %v13123_v45  ;;  %v13169_v45 = vcombine.high %v4226_v59, %v4230_v61  ;;  %v13168_v13 = vcombine.low %v4226_v59, %v4230_v61  ;;  %v13177_v12 = vcombine.high %v4234_v8, %v4238_v10  ;;  %v13179_v16 = vcombine.high %v4235_v11, %v4239_v15  ;;  %v7542_v50 = vld [vmem:[%s15029_s14 + $0x60] sm:$0xff]  ;;  %v7539_v51 = vld [vmem:[%s15029_s14 + $0x48] sm:$0xff] }
 0x4bb   : > { %v13178_v53 = vcombine.low %v4235_v11, %v4239_v15  ;;  %v7515_v48 = vmax.f32 %v13880_v54, 0.0  ;;  %v7550_v59 = vld [vmem:[%s15029_s14 + $0xa0] sm:$0xff]  ;;  %v7555_v15 = vld [vmem:[%s15029_s14 + $0xc8] sm:$0xff] }
 0x4bc   : > { %7322 = vmatpush1.bf16.msra.mxu0 %v13120_v34  ;;  %v13170_v34 = vcombine.low %v4227_v62, %v4231_v63  ;;  %v7547_v63 = vld [vmem:[%s15029_s14 + $0x88] sm:$0xff]  ;;  %v7554_v10 = vld [vmem:[%s15029_s14 + $0xc0] sm:$0xff] }
 0x4bd   : > { %7486 = vmatpush1.bf16.msra.mxu1 %v13122_v18  ;;  %7323 = vmatprep.subr.bf16.mxu0 %v13129_v19  ;;  %v4242_v18 = vld [vmem:[%s15022_s3 + $0xf90] sm:$0xff]  ;;  %v16147_v61 = vpack.c.bf16 %v7515_v48, %v7515_v48  ;;  %v7571_v27 = vld [vmem:[%s15029_s14 + $0x148] sm:$0xff] }
 0x4be   : > { %7487 = vmatprep.subr.bf16.mxu1 %v13131_v20  ;;  %v4246_v19 = vld [vmem:[%s15022_s3 + $0xfb0] sm:$0xff]  ;;  %v4243_v20 = vld [vmem:[%s15022_s3 + $0xf98] sm:$0xff] }
 0x4bf   : > { %v13184_v35 = vcombine.low %v4242_v18, %v4246_v19  ;;  %v7558_v11 = vld [vmem:[%s15029_s14 + $0xe0] sm:$0xff]  ;;  %v7583_v54 = vld [vmem:[%s15029_s14 + $0x1a8] sm:$0xff] }
 0x4c0   : > { %7324 = vmatpush1.bf16.msra.mxu0 %v13128_v33  ;;  %v13185_v33 = vcombine.high %v4242_v18, %v4246_v19  ;;  %v7562_v18 = vld [vmem:[%s15029_s14 + $0x100] sm:$0xff]  ;;  %v7587_v48 = vld [vmem:[%s15029_s14 + $0x1c8] sm:$0xff] }
 0x4c1   : > { %7488 = vmatpush1.bf16.msra.mxu1 %v13130_v42  ;;  %7325 = vmatprep.subr.bf16.mxu0 %v13137_v24  ;;  %v13187_v42 = vcombine.high %v4243_v20, %v4247_v21  ;;  %v4250_v24 = vld [vmem:[%s15022_s3 + $0xfd0] sm:$0xff] }
 0x4c2   : > { %7489 = vmatprep.subr.bf16.mxu1 %v13139_v26  ;;  %v4254_v26 = vld [vmem:[%s15022_s3 + $0xff0] sm:$0xff] }
 0x4c3   : > { %v7566_v19 = vld [vmem:[%s15029_s14 + $0x120] sm:$0xff] }
 0x4c4   : > { %7326 = vmatpush1.bf16.msra.mxu0 %v13136_v36  ;;  %v13186_v36 = vcombine.low %v4243_v20, %v4247_v21  ;;  %v7563_v20 = vld [vmem:[%s15029_s14 + $0x108] sm:$0xff] }
 0x4c5   : > { %7490 = vmatpush1.bf16.msra.mxu1 %v13138_v37  ;;  %7327 = vmatprep.subr.bf16.mxu0 %v13145_v7  ;;  %v13193_v37 = vcombine.high %v4250_v24, %v4254_v26  ;;  %v13195_v7 = vcombine.high %v4251_v29, %v4255_v0  ;;  %v7567_v21 = vld [vmem:[%s15029_s14 + $0x128] sm:$0xff] }
 0x4c6   : > { %7491 = vmatprep.subr.bf16.mxu1 %v13147_v25  ;;  %v7530_v25 = vld [vmem:[%s15029_s14] sm:$0xff] }
 0x4c7   : > { %v13196_v14 = vcombine.low %v7530_v25, %v7534_v39 }
 0x4c8   : > { %7328 = vmatpush1.bf16.msra.mxu0 %v13144_v41  ;;  %v13192_v41 = vcombine.low %v4250_v24, %v4254_v26  ;;  %v7570_v24 = vld [vmem:[%s15029_s14 + $0x140] sm:$0xff] }
 0x4c9   : > { %7492 = vmatpush1.bf16.msra.mxu1 %v13146_v60  ;;  %7329 = vmatprep.subr.bf16.mxu0 %v13153_v44  ;;  %v13194_v60 = vcombine.low %v4251_v29, %v4255_v0  ;;  %v13197_v44 = vcombine.high %v7530_v25, %v7534_v39  ;;  %v7574_v26 = vld [vmem:[%s15029_s14 + $0x160] sm:$0xff]  ;;  %v7575_v29 = vld [vmem:[%s15029_s14 + $0x168] sm:$0xff]  ;;  %v13228_v0 = vcombine.low %v7562_v18, %v7566_v19 }
 0x4ca   : > { %7493 = vmatprep.subr.bf16.mxu1 %v13155_v46  ;;  %v13199_v46 = vcombine.high %v7531_v40, %v7535_v43  ;;  %v7582_v25 = vld [vmem:[%s15029_s14 + $0x1a0] sm:$0xff]  ;;  %v7579_v39 = vld [vmem:[%s15029_s14 + $0x188] sm:$0xff] }
 0x4cc   : > { %7330 = vmatpush1.bf16.msra.mxu0 %v13152_v52  ;;  %v7543_v52 = vld [vmem:[%s15029_s14 + $0x68] sm:$0xff] }
 0x4cd   : > { %7494 = vmatpush1.bf16.msra.mxu1 %v13154_v55  ;;  %7331 = vmatprep.subr.bf16.mxu0 %v13161_v56  ;;  %v13198_v55 = vcombine.low %v7531_v40, %v7535_v43  ;;  %v13205_v56 = vcombine.high %v7538_v49, %v7542_v50  ;;  %v13207_v62 = vcombine.high %v7539_v51, %v7543_v52 }
 0x4ce   : > { %7495 = vmatprep.subr.bf16.mxu1 %v13163_v58  ;;  %v7546_v58 = vld [vmem:[%s15029_s14 + $0x80] sm:$0xff]  ;;  %v13236_v40 = vcombine.low %v7570_v24, %v7574_v26  ;;  %v13238_v43 = vcombine.low %v7571_v27, %v7575_v29 }
 0x4d0   : > { %7332 = vmatpush1.bf16.msra.mxu0 %v13160_v1  ;;  %v7551_v1 = vld [vmem:[%s15029_s14 + $0xa8] sm:$0xff] }
 0x4d1   : > { %7496 = vmatpush1.bf16.msra.mxu1 %v13162_v3  ;;  %7333 = vmatprep.subr.bf16.mxu0 %v13169_v45  ;;  %v13204_v3 = vcombine.low %v7538_v49, %v7542_v50  ;;  %v13206_v45 = vcombine.low %v7539_v51, %v7543_v52  ;;  %v13215_v8 = vcombine.high %v7547_v63, %v7551_v1  ;;  %v7591_v49 = vld [vmem:[%s15029_s14 + $0x1e8] sm:$0xff] }
 0x4d2   : > { %7497 = vmatprep.subr.bf16.mxu1 %v13171_v2  ;;  %v13213_v2 = vcombine.high %v7546_v58, %v7550_v59  ;;  %v13255_v52 = vcombine.high %v7587_v48, %v7591_v49 }
 0x4d4   : > { %7334 = vmatpush1.bf16.msra.mxu0 %v13168_v13  ;;  %v13212_v13 = vcombine.low %v7546_v58, %v7550_v59  ;;  %v7595_v58 = vld [vmem:[%s15029_s14 + $0x208] sm:$0xff] }
 0x4d5   : > { %7498 = vmatpush1.bf16.msra.mxu1 %v13170_v34  ;;  %7335 = vmatprep.subr.bf16.mxu0 %v13177_v12  ;;  %v13214_v34 = vcombine.low %v7547_v63, %v7551_v1  ;;  %v13221_v12 = vcombine.high %v7554_v10, %v7558_v11  ;;  %v7599_v59 = vld [vmem:[%s15029_s14 + $0x228] sm:$0xff]  ;;  %v13254_v63 = vcombine.low %v7587_v48, %v7591_v49 }
 0x4d6   : > { %7499 = vmatprep.subr.bf16.mxu1 %v13179_v16 }
 0x4d8   : > { %7336 = vmatpush1.bf16.msra.mxu0 %v13176_v22  ;;  %v13220_v22 = vcombine.low %v7554_v10, %v7558_v11  ;;  %v7607_v10 = vld [vmem:[%s15029_s14 + $0x268] sm:$0xff] }
 0x4d9   : > { %7500 = vmatpush1.bf16.msra.mxu1 %v13178_v53  ;;  %7337 = vmatprep.subr.bf16.mxu0 %v13185_v33  ;;  %v13229_v33 = vcombine.high %v7562_v18, %v7566_v19  ;;  %v7615_v18 = vld [vmem:[%s15029_s14 + $0x2a8] sm:$0xff] }
 0x4da   : > { %7501 = vmatprep.subr.bf16.mxu1 %v13187_v42  ;;  %v13231_v42 = vcombine.high %v7563_v20, %v7567_v21 }
 0x4dc   : > { %7338 = vmatpush1.bf16.msra.mxu0 %v13184_v35  ;;  %v13230_v35 = vcombine.low %v7563_v20, %v7567_v21 }
 0x4dd   : > { %7502 = vmatpush1.bf16.msra.mxu1 %v13186_v36  ;;  %7339 = vmatprep.subr.bf16.mxu0 %v13193_v37  ;;  %v13237_v36 = vcombine.high %v7570_v24, %v7574_v26  ;;  %v13239_v37 = vcombine.high %v7571_v27, %v7575_v29  ;;  %v7623_v24 = vld [vmem:[%s15029_s14 + $0x2e8] sm:$0xff] }
 0x4de   : > { %7503 = vmatprep.subr.bf16.mxu1 %v13195_v7  ;;  %v7578_v7 = vld [vmem:[%s15029_s14 + $0x180] sm:$0xff] }
 0x4df   : > { %v13244_v50 = vcombine.low %v7578_v7, %v7582_v25 }
 0x4e0   : > { %7340 = vmatpush1.bf16.msra.mxu0 %v13192_v41  ;;  %v13245_v41 = vcombine.high %v7578_v7, %v7582_v25  ;;  %v7631_v7 = vld [vmem:[%s15029_s14 + $0x328] sm:$0xff] }
 0x4e1   : > { %7504 = vmatpush1.bf16.msra.mxu1 %v13194_v60  ;;  %10644 = vmatprep.subr.bf16.mxu0 %v13197_v44  ;;  %v13247_v60 = vcombine.high %v7579_v39, %v7583_v54  ;;  %v7586_v44 = vld [vmem:[%s15029_s14 + $0x1c0] sm:$0xff] }
 0x4e2   : > { %10808 = vmatprep.subr.bf16.mxu1 %v13199_v46  ;;  %v7590_v46 = vld [vmem:[%s15029_s14 + $0x1e0] sm:$0xff] }
 0x4e3   : > { %7342 = vmatmul.mubr.bf16.vlgmr.msra.gmra.mrb[12].mxu0 %v15856_v47  ;;  %v13253_v51 = vcombine.high %v7586_v44, %v7590_v46 }
 0x4e4   : > { %7506 = vmatmul.mubr.bf16.vlgmr.msra.gmra.mrb[12].mxu1 %v15856_v47  ;;  %10645 = vmatpush1.bf16.msra.mxu0 %v13196_v14  ;;  %v7559_v47 = vld [vmem:[%s15029_s14 + $0xe8] sm:$0xff]  ;;  %v13246_v14 = vcombine.low %v7579_v39, %v7583_v54 }
 0x4e5   : > { %10676 = vmatprep.mubr.bf16.mxu0 %v16147_v61  ;;  %10809 = vmatpush1.bf16.msra.mxu1 %v13198_v55  ;;  %v13223_v16 = vcombine.high %v7555_v15, %v7559_v47  ;;  %v13222_v53 = vcombine.low %v7555_v15, %v7559_v47  ;;  %v7594_v55 = vld [vmem:[%s15029_s14 + $0x200] sm:$0xff]  ;;  %v13262_v15 = vcombine.low %v7595_v58, %v7599_v59 }
 0x4e6   : > { %10840 = vmatprep.mubr.bf16.mxu1 %v16147_v61  ;;  %10646 = vmatprep.subr.bf16.mxu0 %v13205_v56  ;;  %v7598_v56 = vld [vmem:[%s15029_s14 + $0x220] sm:$0xff] }
 0x4e7   : > { %10810 = vmatprep.subr.bf16.mxu1 %v13207_v62  ;;  %v13252_v62 = vcombine.low %v7586_v44, %v7590_v46  ;;  %v13261_v1 = vcombine.high %v7594_v55, %v7598_v56  ;;  %v13260_v11 = vcombine.low %v7594_v55, %v7598_v56  ;;  %v7639_v44 = vld [vmem:[%s15029_s14 + $0x368] sm:$0xff] }
 0x4e8   : > { %10647 = vmatpush1.bf16.msra.mxu0 %v13204_v3  ;;  %v13263_v3 = vcombine.high %v7595_v58, %v7599_v59  ;;  %v7647_v55 = vld [vmem:[%s15029_s14 + $0x3a8] sm:$0xff]  ;;  %v4261_v58 = vrot.slane %v16128_v23, %v15580_v57 }
 0x4e9   : > { %10811 = vmatpush1.bf16.msra.mxu1 %v13206_v45  ;;  %10648 = vmatprep.subr.bf16.mxu0 %v13213_v2  ;;  %v7602_v45 = vld [vmem:[%s15029_s14 + $0x240] sm:$0xff] }
 0x4ea   : > { %10812 = vmatprep.subr.bf16.mxu1 %v13215_v8  ;;  %v7606_v2 = vld [vmem:[%s15029_s14 + $0x260] sm:$0xff]  ;;  %v7603_v8 = vld [vmem:[%s15029_s14 + $0x248] sm:$0xff] }
 0x4eb   : > { %v13269_v47 = vcombine.high %v7602_v45, %v7606_v2  ;;  %v13268_v19 = vcombine.low %v7602_v45, %v7606_v2  ;;  %v13270_v20 = vcombine.low %v7603_v8, %v7607_v10  ;;  %v4273_v45 = vrot.slane %v16128_v23, %v15585_v17  ;;  %v7651_v2 = vld [vmem:[%s15029_s14 + $0x3c8] sm:$0xff] }
 0x4ec   : > { %10649 = vmatpush1.bf16.msra.mxu0 %v13212_v13  ;;  %v13271_v13 = vcombine.high %v7603_v8, %v7607_v10  ;;  %v7655_v8 = vld [vmem:[%s15029_s14 + $0x3e8] sm:$0xff] }
 0x4ed   : > { %10813 = vmatpush1.bf16.msra.mxu1 %v13214_v34  ;;  %10650 = vmatprep.subr.bf16.mxu0 %v13221_v12  ;;  %v7610_v34 = vld [vmem:[%s15029_s14 + $0x280] sm:$0xff] }
 0x4ee   : > { %10814 = vmatprep.subr.bf16.mxu1 %v13223_v16  ;;  %v7614_v12 = vld [vmem:[%s15029_s14 + $0x2a0] sm:$0xff]  ;;  %v7611_v16 = vld [vmem:[%s15029_s14 + $0x288] sm:$0xff] }
 0x4ef   : > { %v13277_v21 = vcombine.high %v7610_v34, %v7614_v12  ;;  %v13276_v26 = vcombine.low %v7610_v34, %v7614_v12  ;;  %v13278_v27 = vcombine.low %v7611_v16, %v7615_v18  ;;  %v7658_v34 = vld [vmem:[%s15029_s14 + $0x400] sm:$0xff] }
 0x4f0   : > { %10651 = vmatpush1.bf16.msra.mxu0 %v13220_v22  ;;  %v13279_v22 = vcombine.high %v7611_v16, %v7615_v18  ;;  %v7662_v12 = vld [vmem:[%s15029_s14 + $0x420] sm:$0xff]  ;;  %v13882_v16 = vadd.f32 %v16094_v9, %v4273_v45  ;;  %v7659_v18 = vld [vmem:[%s15029_s14 + $0x408] sm:$0xff] }
 0x4f1   : > { %10815 = vmatpush1.bf16.msra.mxu1 %v13222_v53  ;;  %10652 = vmatprep.subr.bf16.mxu0 %v13229_v33  ;;  %v7618_v53 = vld [vmem:[%s15029_s14 + $0x2c0] sm:$0xff]  ;;  %v13324_v9 = vcombine.low %v7658_v34, %v7662_v12 }
 0x4f2   : > { %10816 = vmatprep.subr.bf16.mxu1 %v13231_v42  ;;  %v7622_v33 = vld [vmem:[%s15029_s14 + $0x2e0] sm:$0xff]  ;;  %v7619_v42 = vld [vmem:[%s15029_s14 + $0x2c8] sm:$0xff] }
 0x4f3   : > { %v13285_v29 = vcombine.high %v7618_v53, %v7622_v33  ;;  %v13284_v25 = vcombine.low %v7618_v53, %v7622_v33  ;;  %v13286_v39 = vcombine.low %v7619_v42, %v7623_v24  ;;  %v7517_v33 = vmax.f32 %v13882_v16, 0.0  ;;  %v7698_v45 = vld [vmem:[%s15029_s14 + $0x540] sm:$0xff]  ;;  %v7707_v16 = vld [vmem:[%s15029_s14 + $0x588] sm:$0xff] }
 0x4f4   : > { %10653 = vmatpush1.bf16.msra.mxu0 %v13228_v0  ;;  %v13287_v0 = vcombine.high %v7619_v42, %v7623_v24  ;;  %v7666_v42 = vld [vmem:[%s15029_s14 + $0x440] sm:$0xff] }
 0x4f5   : > { %10817 = vmatpush1.bf16.msra.mxu1 %v13230_v35  ;;  %10654 = vmatprep.subr.bf16.mxu0 %v13237_v36  ;;  %v7626_v35 = vld [vmem:[%s15029_s14 + $0x300] sm:$0xff] }
 0x4f6   : > { %10818 = vmatprep.subr.bf16.mxu1 %v13239_v37  ;;  %v7630_v36 = vld [vmem:[%s15029_s14 + $0x320] sm:$0xff]  ;;  %v7627_v37 = vld [vmem:[%s15029_s14 + $0x308] sm:$0xff] }
 0x4f7   : > { %v13293_v54 = vcombine.high %v7626_v35, %v7630_v36  ;;  %v13292_v46 = vcombine.low %v7626_v35, %v7630_v36  ;;  %v13294_v48 = vcombine.low %v7627_v37, %v7631_v7  ;;  %v7670_v24 = vld [vmem:[%s15029_s14 + $0x460] sm:$0xff] }
 0x4f8   : > { %10655 = vmatpush1.bf16.msra.mxu0 %v13236_v40  ;;  %v13295_v40 = vcombine.high %v7627_v37, %v7631_v7  ;;  %v13333_v35 = vcombine.high %v7666_v42, %v7670_v24  ;;  %v7674_v36 = vld [vmem:[%s15029_s14 + $0x480] sm:$0xff]  ;;  %v16225_v7 = vpack.c.bf16 %v7517_v33, %v7517_v33  ;;  %v7715_v33 = vld [vmem:[%s15029_s14 + $0x5c8] sm:$0xff] }
 0x4f9   : > { %10819 = vmatpush1.bf16.msra.mxu1 %v13238_v43  ;;  %10656 = vmatprep.subr.bf16.mxu0 %v13245_v41  ;;  %v7634_v43 = vld [vmem:[%s15029_s14 + $0x340] sm:$0xff] }
 0x4fa   : > { %10820 = vmatprep.subr.bf16.mxu1 %v13247_v60  ;;  %v7638_v41 = vld [vmem:[%s15029_s14 + $0x360] sm:$0xff]  ;;  %v7635_v60 = vld [vmem:[%s15029_s14 + $0x348] sm:$0xff] }
 0x4fb   : > { %v13301_v49 = vcombine.high %v7634_v43, %v7638_v41  ;;  %v13300_v56 = vcombine.low %v7634_v43, %v7638_v41  ;;  %v13302_v59 = vcombine.low %v7635_v60, %v7639_v44  ;;  %v7678_v37 = vld [vmem:[%s15029_s14 + $0x4a0] sm:$0xff] }
 0x4fc   : > { %10657 = vmatpush1.bf16.msra.mxu0 %v13244_v50  ;;  %v13303_v50 = vcombine.high %v7635_v60, %v7639_v44  ;;  %v13341_v41 = vcombine.high %v7674_v36, %v7678_v37  ;;  %v7682_v44 = vld [vmem:[%s15029_s14 + $0x4c0] sm:$0xff] }
 0x4fd   : > { %10821 = vmatpush1.bf16.msra.mxu1 %v13246_v14  ;;  %10658 = vmatprep.subr.bf16.mxu0 %v13253_v51  ;;  %v7642_v14 = vld [vmem:[%s15029_s14 + $0x380] sm:$0xff] }
 0x4fe   : > { %10822 = vmatprep.subr.bf16.mxu1 %v13255_v52  ;;  %v7646_v51 = vld [vmem:[%s15029_s14 + $0x3a0] sm:$0xff]  ;;  %v7643_v52 = vld [vmem:[%s15029_s14 + $0x388] sm:$0xff] }
 0x4ff   : > { %v13308_v10 = vcombine.low %v7642_v14, %v7646_v51 }
 0x500   : > { %10659 = vmatpush1.bf16.msra.mxu0 %v13252_v62  ;;  %v13309_v62 = vcombine.high %v7642_v14, %v7646_v51 }
 0x501   : > { %10823 = vmatpush1.bf16.msra.mxu1 %v13254_v63  ;;  %10660 = vmatprep.subr.bf16.mxu0 %v13261_v1  ;;  %v13311_v63 = vcombine.high %v7643_v52, %v7647_v55  ;;  %v7650_v1 = vld [vmem:[%s15029_s14 + $0x3c0] sm:$0xff] }
 0x502   : > { %10824 = vmatprep.subr.bf16.mxu1 %v13263_v3  ;;  %v7654_v3 = vld [vmem:[%s15029_s14 + $0x3e0] sm:$0xff] }
 0x504   : > { %10661 = vmatpush1.bf16.msra.mxu0 %v13260_v11  ;;  %v13879_v11 = vadd.f32 %v16086_v5, %v4261_v58  ;;  %v13318_v5 = vcombine.low %v7651_v2, %v7655_v8  ;;  %v7691_v58 = vld [vmem:[%s15029_s14 + $0x508] sm:$0xff] }
 0x505   : > { %10825 = vmatpush1.bf16.msra.mxu1 %v13262_v15  ;;  %10662 = vmatprep.subr.bf16.mxu0 %v13269_v47  ;;  %v13310_v15 = vcombine.low %v7643_v52, %v7647_v55  ;;  %v13317_v47 = vcombine.high %v7650_v1, %v7654_v3  ;;  %v7690_v55 = vld [vmem:[%s15029_s14 + $0x500] sm:$0xff] }
 0x506   : > { %10826 = vmatprep.subr.bf16.mxu1 %v13271_v13  ;;  %v13319_v13 = vcombine.high %v7651_v2, %v7655_v8  ;;  %v7702_v2 = vld [vmem:[%s15029_s14 + $0x560] sm:$0xff]  ;;  %v7699_v8 = vld [vmem:[%s15029_s14 + $0x548] sm:$0xff] }
 0x508   : > { %10663 = vmatpush1.bf16.msra.mxu0 %v13268_v19  ;;  %v7663_v19 = vld [vmem:[%s15029_s14 + $0x428] sm:$0xff] }
 0x509   : > { %10827 = vmatpush1.bf16.msra.mxu1 %v13270_v20  ;;  %10664 = vmatprep.subr.bf16.mxu0 %v13277_v21  ;;  %v13316_v20 = vcombine.low %v7650_v1, %v7654_v3  ;;  %v7514_v21 = vmax.f32 %v13879_v11, 0.0  ;;  %v13327_v53 = vcombine.high %v7659_v18, %v7663_v19 }
 0x50a   : > { %10828 = vmatprep.subr.bf16.mxu1 %v13279_v22  ;;  %v13325_v22 = vcombine.high %v7658_v34, %v7662_v12  ;;  %v7706_v34 = vld [vmem:[%s15029_s14 + $0x580] sm:$0xff] }
 0x50b   : > { %v7710_v12 = vld [vmem:[%s15029_s14 + $0x5a0] sm:$0xff] }
 0x50c   : > { %10665 = vmatpush1.bf16.msra.mxu0 %v13276_v26  ;;  %v7667_v26 = vld [vmem:[%s15029_s14 + $0x448] sm:$0xff] }
 0x50d   : > { %10829 = vmatpush1.bf16.msra.mxu1 %v13278_v27  ;;  %10666 = vmatprep.subr.bf16.mxu0 %v13285_v29  ;;  %v7671_v27 = vld [vmem:[%s15029_s14 + $0x468] sm:$0xff]  ;;  %v16221_v29 = vpack.c.bf16 %v7514_v21, %v7514_v21  ;;  %v13373_v21 = vcombine.high %v7706_v34, %v7710_v12 }
 0x50e   : > { %10830 = vmatprep.subr.bf16.mxu1 %v13287_v0  ;;  %v13326_v0 = vcombine.low %v7659_v18, %v7663_v19  ;;  %v13334_v43 = vcombine.low %v7667_v26, %v7671_v27  ;;  %v7711_v18 = vld [vmem:[%s15029_s14 + $0x5a8] sm:$0xff]  ;;  %v13364_v19 = vcombine.low %v7698_v45, %v7702_v2 }
 0x510   : > { %10667 = vmatpush1.bf16.msra.mxu0 %v13284_v25  ;;  %v13335_v25 = vcombine.high %v7667_v26, %v7671_v27 }
 0x511   : > { %10831 = vmatpush1.bf16.msra.mxu1 %v13286_v39  ;;  %10668 = vmatprep.subr.bf16.mxu0 %v13293_v54  ;;  %v7675_v39 = vld [vmem:[%s15029_s14 + $0x488] sm:$0xff] }
 0x512   : > { %10832 = vmatprep.subr.bf16.mxu1 %v13295_v40  ;;  %v7679_v54 = vld [vmem:[%s15029_s14 + $0x4a8] sm:$0xff]  ;;  %v13332_v40 = vcombine.low %v7666_v42, %v7670_v24  ;;  %v13372_v24 = vcombine.low %v7706_v34, %v7710_v12 }
 0x513   : > { %v13343_v60 = vcombine.high %v7675_v39, %v7679_v54  ;;  %v13342_v14 = vcombine.low %v7675_v39, %v7679_v54  ;;  %v7719_v42 = vld [vmem:[%s15029_s14 + $0x5e8] sm:$0xff] }
 0x514   : > { %10669 = vmatpush1.bf16.msra.mxu0 %v13292_v46  ;;  %v7686_v46 = vld [vmem:[%s15029_s14 + $0x4e0] sm:$0xff]  ;;  %v13383_v27 = vcombine.high %v7715_v33, %v7719_v42  ;;  %v13382_v39 = vcombine.low %v7715_v33, %v7719_v42  ;;  %v7759_v34 = vld [vmem:[%s15029_s14 + $0x728] sm:$0xff] }
 0x515   : > { %10833 = vmatpush1.bf16.msra.mxu1 %v13294_v48  ;;  %10670 = vmatprep.subr.bf16.mxu0 %v13301_v49  ;;  %v7683_v48 = vld [vmem:[%s15029_s14 + $0x4c8] sm:$0xff]  ;;  %v13349_v51 = vcombine.high %v7682_v44, %v7686_v46 }
 0x516   : > { %10834 = vmatprep.subr.bf16.mxu1 %v13303_v50  ;;  %v7687_v49 = vld [vmem:[%s15029_s14 + $0x4e8] sm:$0xff]  ;;  %v13340_v50 = vcombine.low %v7674_v36, %v7678_v37 }
 0x517   : > { %v13351_v52 = vcombine.high %v7683_v48, %v7687_v49  ;;  %v7723_v36 = vld [vmem:[%s15029_s14 + $0x608] sm:$0xff] }
 0x518   : > { %10671 = vmatpush1.bf16.msra.mxu0 %v13300_v56  ;;  %v7694_v56 = vld [vmem:[%s15029_s14 + $0x520] sm:$0xff]  ;;  %v7727_v37 = vld [vmem:[%s15029_s14 + $0x628] sm:$0xff] }
 0x519   : > { %10835 = vmatpush1.bf16.msra.mxu1 %v13302_v59  ;;  %10672 = vmatprep.subr.bf16.mxu0 %v13309_v62  ;;  %v7695_v59 = vld [vmem:[%s15029_s14 + $0x528] sm:$0xff]  ;;  %v13348_v62 = vcombine.low %v7682_v44, %v7686_v46  ;;  %v13357_v1 = vcombine.high %v7690_v55, %v7694_v56  ;;  %v13356_v11 = vcombine.low %v7690_v55, %v7694_v56 }
 0x51a   : > { %10836 = vmatprep.subr.bf16.mxu1 %v13311_v63  ;;  %v13350_v63 = vcombine.low %v7683_v48, %v7687_v49  ;;  %v13359_v3 = vcombine.high %v7691_v58, %v7695_v59  ;;  %v7735_v44 = vld [vmem:[%s15029_s14 + $0x668] sm:$0xff]  ;;  %v13390_v48 = vcombine.low %v7723_v36, %v7727_v37 }
 0x51b   : > { %v7743_v55 = vld [vmem:[%s15029_s14 + $0x6a8] sm:$0xff] }
 0x51c   : > { %10673 = vmatpush1.bf16.msra.mxu0 %v13308_v10  ;;  %v7703_v10 = vld [vmem:[%s15029_s14 + $0x568] sm:$0xff] }
 0x51d   : > { %10837 = vmatpush1.bf16.msra.mxu1 %v13310_v15  ;;  %10674 = vmatprep.subr.bf16.mxu0 %v13317_v47  ;;  %v13358_v15 = vcombine.low %v7691_v58, %v7695_v59  ;;  %v13365_v47 = vcombine.high %v7698_v45, %v7702_v2  ;;  %v7751_v45 = vld [vmem:[%s15029_s14 + $0x6e8] sm:$0xff] }
 0x51e   : > { %10838 = vmatprep.subr.bf16.mxu1 %v13319_v13  ;;  %v13367_v13 = vcombine.high %v7699_v8, %v7703_v10 }
 0x520   : > { %10675 = vmatpush1.bf16.msra.mxu0 %v13316_v20  ;;  %v13366_v20 = vcombine.low %v7699_v8, %v7703_v10 }
 0x521   : > { %10839 = vmatpush1.bf16.msra.mxu1 %v13318_v5  ;;  %10685 = vmatprep.subr.bf16.mxu0 %v13325_v22  ;;  %v13375_v5 = vcombine.high %v7707_v16, %v7711_v18  ;;  %v7714_v22 = vld [vmem:[%s15029_s14 + $0x5c0] sm:$0xff] }
 0x522   : > { %10849 = vmatprep.subr.bf16.mxu1 %v13327_v53  ;;  %v7718_v53 = vld [vmem:[%s15029_s14 + $0x5e0] sm:$0xff] }
 0x523   : > { %10677 = vmatmul.mubr.bf16.vlgmr.msra.gmra.mrb[16].mxu0 %v16221_v29  ;;  %v13381_v26 = vcombine.high %v7714_v22, %v7718_v53 }
 0x524   : > { %10841 = vmatmul.mubr.bf16.vlgmr.msra.gmra.mrb[16].mxu1 %v16221_v29  ;;  %10686 = vmatpush1.bf16.msra.mxu0 %v13324_v9  ;;  %v13374_v9 = vcombine.low %v7707_v16, %v7711_v18 }
 0x525   : > { %10717 = vmatprep.mubr.bf16.mxu0 %v16225_v7  ;;  %10850 = vmatpush1.bf16.msra.mxu1 %v13326_v0  ;;  %v7722_v0 = vld [vmem:[%s15029_s14 + $0x600] sm:$0xff] }
 0x526   : > { %10881 = vmatprep.mubr.bf16.mxu1 %v16225_v7  ;;  %10687 = vmatprep.subr.bf16.mxu0 %v13333_v35  ;;  %v7726_v35 = vld [vmem:[%s15029_s14 + $0x620] sm:$0xff] }
 0x527   : > { %10851 = vmatprep.subr.bf16.mxu1 %v13335_v25  ;;  %v13380_v25 = vcombine.low %v7714_v22, %v7718_v53  ;;  %v13389_v54 = vcombine.high %v7722_v0, %v7726_v35  ;;  %v13388_v46 = vcombine.low %v7722_v0, %v7726_v35  ;;  %v7767_v22 = vld [vmem:[%s15029_s14 + $0x768] sm:$0xff] }
 0x528   : > { %10688 = vmatpush1.bf16.msra.mxu0 %v13332_v40  ;;  %v13391_v40 = vcombine.high %v7723_v36, %v7727_v37  ;;  %v7775_v0 = vld [vmem:[%s15029_s14 + $0x7a8] sm:$0xff]  ;;  %v4269_v36 = vrot.slane %v16128_v23, %v15664_v38 }
 0x529   : > { %10852 = vmatpush1.bf16.msra.mxu1 %v13334_v43  ;;  %10689 = vmatprep.subr.bf16.mxu0 %v13341_v41  ;;  %v7730_v43 = vld [vmem:[%s15029_s14 + $0x640] sm:$0xff] }
 0x52a   : > { %10853 = vmatprep.subr.bf16.mxu1 %v13343_v60  ;;  %v7734_v41 = vld [vmem:[%s15029_s14 + $0x660] sm:$0xff]  ;;  %v7731_v60 = vld [vmem:[%s15029_s14 + $0x648] sm:$0xff] }
 0x52b   : > { %v13397_v49 = vcombine.high %v7730_v43, %v7734_v41  ;;  %v13396_v56 = vcombine.low %v7730_v43, %v7734_v41  ;;  %v13398_v58 = vcombine.low %v7731_v60, %v7735_v44  ;;  %v7779_v43 = vld [vmem:[%s15029_s14 + $0x7c8] sm:$0xff] }
 0x52c   : > { %10690 = vmatpush1.bf16.msra.mxu0 %v13340_v50  ;;  %v13399_v50 = vcombine.high %v7731_v60, %v7735_v44  ;;  %v7783_v41 = vld [vmem:[%s15029_s14 + $0x7e8] sm:$0xff]  ;;  %v13881_v44 = vadd.f32 %v16088_v6, %v4269_v36 }
 0x52d   : > { %10854 = vmatpush1.bf16.msra.mxu1 %v13342_v14  ;;  %10691 = vmatprep.subr.bf16.mxu0 %v13349_v51  ;;  %v7738_v14 = vld [vmem:[%s15029_s14 + $0x680] sm:$0xff]  ;;  %v13446_v6 = vcombine.low %v7779_v43, %v7783_v41 }
 0x52e   : > { %10855 = vmatprep.subr.bf16.mxu1 %v13351_v52  ;;  %v7742_v51 = vld [vmem:[%s15029_s14 + $0x6a0] sm:$0xff]  ;;  %v7739_v52 = vld [vmem:[%s15029_s14 + $0x688] sm:$0xff] }
 0x52f   : > { %v13405_v59 = vcombine.high %v7738_v14, %v7742_v51  ;;  %v13404_v2 = vcombine.low %v7738_v14, %v7742_v51  ;;  %v13406_v8 = vcombine.low %v7739_v52, %v7743_v55  ;;  %v7787_v14 = vld [vmem:[%s15029_s14 + $0x808] sm:$0xff] }
 0x530   : > { %10692 = vmatpush1.bf16.msra.mxu0 %v13348_v62  ;;  %v13407_v62 = vcombine.high %v7739_v52, %v7743_v55  ;;  %v7791_v51 = vld [vmem:[%s15029_s14 + $0x828] sm:$0xff]  ;;  %v7516_v55 = vmax.f32 %v13881_v44, 0.0 }
 0x531   : > { %10856 = vmatpush1.bf16.msra.mxu1 %v13350_v63  ;;  %10693 = vmatprep.subr.bf16.mxu0 %v13357_v1  ;;  %v7746_v63 = vld [vmem:[%s15029_s14 + $0x6c0] sm:$0xff] }
 0x532   : > { %10857 = vmatprep.subr.bf16.mxu1 %v13359_v3  ;;  %v7750_v1 = vld [vmem:[%s15029_s14 + $0x6e0] sm:$0xff]  ;;  %v7747_v3 = vld [vmem:[%s15029_s14 + $0x6c8] sm:$0xff] }
 0x533   : > { %v13413_v10 = vcombine.high %v7746_v63, %v7750_v1  ;;  %v13412_v12 = vcombine.low %v7746_v63, %v7750_v1  ;;  %v13414_v16 = vcombine.low %v7747_v3, %v7751_v45  ;;  %v7795_v63 = vld [vmem:[%s15029_s14 + $0x848] sm:$0xff] }
 0x534   : > { %10694 = vmatpush1.bf16.msra.mxu0 %v13356_v11  ;;  %v13415_v11 = vcombine.high %v7747_v3, %v7751_v45  ;;  %v7799_v1 = vld [vmem:[%s15029_s14 + $0x868] sm:$0xff]  ;;  %v16296_v45 = vpack.c.bf16 %v7516_v55, %v7516_v55  ;;  %v7842_v55 = vld [vmem:[%s15029_s14 + $0x9c0] sm:$0xff] }
 0x535   : > { %10858 = vmatpush1.bf16.msra.mxu1 %v13358_v15  ;;  %10695 = vmatprep.subr.bf16.mxu0 %v13365_v47  ;;  %v7754_v15 = vld [vmem:[%s15029_s14 + $0x700] sm:$0xff] }
 0x536   : > { %10859 = vmatprep.subr.bf16.mxu1 %v13367_v13  ;;  %v7758_v47 = vld [vmem:[%s15029_s14 + $0x720] sm:$0xff]  ;;  %v7755_v13 = vld [vmem:[%s15029_s14 + $0x708] sm:$0xff] }
 0x537   : > { %v13421_v18 = vcombine.high %v7754_v15, %v7758_v47  ;;  %v13420_v53 = vcombine.low %v7754_v15, %v7758_v47  ;;  %v13422_v33 = vcombine.low %v7755_v13, %v7759_v34  ;;  %v7806_v15 = vld [vmem:[%s15029_s14 + $0x8a0] sm:$0xff]  ;;  %v7803_v47 = vld [vmem:[%s15029_s14 + $0x888] sm:$0xff] }
 0x538   : > { %10696 = vmatpush1.bf16.msra.mxu0 %v13364_v19  ;;  %v13423_v19 = vcombine.high %v7755_v13, %v7759_v34  ;;  %v7807_v13 = vld [vmem:[%s15029_s14 + $0x8a8] sm:$0xff] }
 0x539   : > { %10860 = vmatpush1.bf16.msra.mxu1 %v13366_v20  ;;  %10697 = vmatprep.subr.bf16.mxu0 %v13373_v21  ;;  %v7762_v20 = vld [vmem:[%s15029_s14 + $0x740] sm:$0xff] }
 0x53a   : > { %10861 = vmatprep.subr.bf16.mxu1 %v13375_v5  ;;  %v7766_v21 = vld [vmem:[%s15029_s14 + $0x760] sm:$0xff]  ;;  %v7763_v5 = vld [vmem:[%s15029_s14 + $0x748] sm:$0xff] }
 0x53b   : > { %v13429_v42 = vcombine.high %v7762_v20, %v7766_v21  ;;  %v13428_v35 = vcombine.low %v7762_v20, %v7766_v21  ;;  %v13430_v37 = vcombine.low %v7763_v5, %v7767_v22  ;;  %v7814_v20 = vld [vmem:[%s15029_s14 + $0x8e0] sm:$0xff]  ;;  %v7811_v21 = vld [vmem:[%s15029_s14 + $0x8c8] sm:$0xff] }
 0x53c   : > { %10698 = vmatpush1.bf16.msra.mxu0 %v13372_v24  ;;  %v13431_v24 = vcombine.high %v7763_v5, %v7767_v22  ;;  %v7815_v5 = vld [vmem:[%s15029_s14 + $0x8e8] sm:$0xff] }
 0x53d   : > { %10862 = vmatpush1.bf16.msra.mxu1 %v13374_v9  ;;  %10699 = vmatprep.subr.bf16.mxu0 %v13381_v26  ;;  %v7770_v9 = vld [vmem:[%s15029_s14 + $0x780] sm:$0xff] }
 0x53e   : > { %10863 = vmatprep.subr.bf16.mxu1 %v13383_v27  ;;  %v7774_v26 = vld [vmem:[%s15029_s14 + $0x7a0] sm:$0xff]  ;;  %v7771_v27 = vld [vmem:[%s15029_s14 + $0x788] sm:$0xff] }
 0x53f   : > { %v13436_v60 = vcombine.low %v7770_v9, %v7774_v26  ;;  %v13438_v23 = vcombine.low %v7771_v27, %v7775_v0 }
 0x540   : > { %10700 = vmatpush1.bf16.msra.mxu0 %v13380_v25  ;;  %v13437_v25 = vcombine.high %v7770_v9, %v7774_v26  ;;  %v7822_v9 = vld [vmem:[%s15029_s14 + $0x920] sm:$0xff]  ;;  %v7819_v26 = vld [vmem:[%s15029_s14 + $0x908] sm:$0xff] }
 0x541   : > { %10864 = vmatpush1.bf16.msra.mxu1 %v13382_v39  ;;  %10701 = vmatprep.subr.bf16.mxu0 %v13389_v54  ;;  %v13439_v39 = vcombine.high %v7771_v27, %v7775_v0  ;;  %v7778_v54 = vld [vmem:[%s15029_s14 + $0x7c0] sm:$0xff]  ;;  %v7823_v27 = vld [vmem:[%s15029_s14 + $0x928] sm:$0xff] }
 0x542   : > { %10865 = vmatprep.subr.bf16.mxu1 %v13391_v40  ;;  %v7782_v40 = vld [vmem:[%s15029_s14 + $0x7e0] sm:$0xff] }
 0x543   : > { %v13444_v52 = vcombine.low %v7778_v54, %v7782_v40 }
 0x544   : > { %10702 = vmatpush1.bf16.msra.mxu0 %v13388_v46  ;;  %v13445_v46 = vcombine.high %v7778_v54, %v7782_v40  ;;  %v7827_v54 = vld [vmem:[%s15029_s14 + $0x948] sm:$0xff] }
 0x545   : > { %10866 = vmatpush1.bf16.msra.mxu1 %v13390_v48  ;;  %10703 = vmatprep.subr.bf16.mxu0 %v13397_v49  ;;  %v13447_v48 = vcombine.high %v7779_v43, %v7783_v41  ;;  %v7786_v49 = vld [vmem:[%s15029_s14 + $0x800] sm:$0xff]  ;;  %v7831_v40 = vld [vmem:[%s15029_s14 + $0x968] sm:$0xff]  ;;  %v13486_v41 = vcombine.low %v7819_v26, %v7823_v27 }
 0x546   : > { %10867 = vmatprep.subr.bf16.mxu1 %v13399_v50  ;;  %v7790_v50 = vld [vmem:[%s15029_s14 + $0x820] sm:$0xff]  ;;  %v13495_v44 = vcombine.high %v7827_v54, %v7831_v40 }
 0x547   : > { %v13452_v3 = vcombine.low %v7786_v49, %v7790_v50 }
 0x548   : > { %10704 = vmatpush1.bf16.msra.mxu0 %v13396_v56  ;;  %v13453_v56 = vcombine.high %v7786_v49, %v7790_v50  ;;  %v7839_v49 = vld [vmem:[%s15029_s14 + $0x9a8] sm:$0xff] }
 0x549   : > { %10868 = vmatpush1.bf16.msra.mxu1 %v13398_v58  ;;  %10705 = vmatprep.subr.bf16.mxu0 %v13405_v59  ;;  %v13455_v58 = vcombine.high %v7787_v14, %v7791_v51  ;;  %v7794_v59 = vld [vmem:[%s15029_s14 + $0x840] sm:$0xff] }
 0x54a   : > { %10869 = vmatprep.subr.bf16.mxu1 %v13407_v62  ;;  %v7798_v62 = vld [vmem:[%s15029_s14 + $0x860] sm:$0xff] }
 0x54b   : > { %v13460_v34 = vcombine.low %v7794_v59, %v7798_v62 }
 0x54c   : > { %10706 = vmatpush1.bf16.msra.mxu0 %v13404_v2  ;;  %v13454_v2 = vcombine.low %v7787_v14, %v7791_v51  ;;  %v13494_v14 = vcombine.low %v7827_v54, %v7831_v40 }
 0x54d   : > { %10870 = vmatpush1.bf16.msra.mxu1 %v13406_v8  ;;  %10707 = vmatprep.subr.bf16.mxu0 %v13413_v10  ;;  %v13461_v8 = vcombine.high %v7794_v59, %v7798_v62  ;;  %v13463_v10 = vcombine.high %v7795_v63, %v7799_v1 }
 0x54e   : > { %10871 = vmatprep.subr.bf16.mxu1 %v13415_v11  ;;  %v7802_v11 = vld [vmem:[%s15029_s14 + $0x880] sm:$0xff] }
 0x54f   : > { %v13468_v22 = vcombine.low %v7802_v11, %v7806_v15 }
 0x550   : > { %10708 = vmatpush1.bf16.msra.mxu0 %v13412_v12  ;;  %v13462_v12 = vcombine.low %v7795_v63, %v7799_v1 }
 0x551   : > { %10872 = vmatpush1.bf16.msra.mxu1 %v13414_v16  ;;  %10709 = vmatprep.subr.bf16.mxu0 %v13421_v18  ;;  %v13469_v16 = vcombine.high %v7802_v11, %v7806_v15  ;;  %v13471_v18 = vcombine.high %v7803_v47, %v7807_v13 }
 0x552   : > { %10873 = vmatprep.subr.bf16.mxu1 %v13423_v19  ;;  %v7810_v19 = vld [vmem:[%s15029_s14 + $0x8c0] sm:$0xff] }
 0x553   : > { %v13476_v0 = vcombine.low %v7810_v19, %v7814_v20 }
 0x554   : > { %10710 = vmatpush1.bf16.msra.mxu0 %v13420_v53  ;;  %v13470_v53 = vcombine.low %v7803_v47, %v7807_v13 }
 0x555   : > { %10874 = vmatpush1.bf16.msra.mxu1 %v13422_v33  ;;  %10711 = vmatprep.subr.bf16.mxu0 %v13429_v42  ;;  %v13477_v33 = vcombine.high %v7810_v19, %v7814_v20  ;;  %v13479_v42 = vcombine.high %v7811_v21, %v7815_v5 }
 0x556   : > { %10875 = vmatprep.subr.bf16.mxu1 %v13431_v24  ;;  %v7818_v24 = vld [vmem:[%s15029_s14 + $0x900] sm:$0xff] }
 0x557   : > { %v13485_v36 = vcombine.high %v7818_v24, %v7822_v9  ;;  %v13484_v43 = vcombine.low %v7818_v24, %v7822_v9 }
 0x558   : > { %10712 = vmatpush1.bf16.msra.mxu0 %v13428_v35  ;;  %v13478_v35 = vcombine.low %v7811_v21, %v7815_v5 }
 0x559   : > { %10876 = vmatpush1.bf16.msra.mxu1 %v13430_v37  ;;  %10713 = vmatprep.subr.bf16.mxu0 %v13437_v25  ;;  %v13487_v37 = vcombine.high %v7819_v26, %v7823_v27  ;;  %v7826_v25 = vld [vmem:[%s15029_s14 + $0x940] sm:$0xff] }
 0x55a   : > { %10877 = vmatprep.subr.bf16.mxu1 %v13439_v39  ;;  %v7830_v39 = vld [vmem:[%s15029_s14 + $0x960] sm:$0xff] }
 0x55b   : > { %v13492_v50 = vcombine.low %v7826_v25, %v7830_v39 }
 0x55c   : > { %10714 = vmatpush1.bf16.msra.mxu0 %v13436_v60  ;;  %v13493_v60 = vcombine.high %v7826_v25, %v7830_v39 }
 0x55d   : > { %10878 = vmatpush1.bf16.msra.mxu1 %v13438_v23  ;;  %10715 = vmatprep.subr.bf16.mxu0 %v13445_v46  ;;  %v7834_v23 = vld [vmem:[%s15029_s14 + $0x980] sm:$0xff] }
 0x55e   : > { %10879 = vmatprep.subr.bf16.mxu1 %v13447_v48  ;;  %v7838_v46 = vld [vmem:[%s15029_s14 + $0x9a0] sm:$0xff]  ;;  %v7835_v48 = vld [vmem:[%s15029_s14 + $0x988] sm:$0xff] }
 0x55f   : > { %v13501_v51 = vcombine.high %v7834_v23, %v7838_v46  ;;  %v13500_v59 = vcombine.low %v7834_v23, %v7838_v46  ;;  %v13502_v62 = vcombine.low %v7835_v48, %v7839_v49 }
 0x560   : > { %10716 = vmatpush1.bf16.msra.mxu0 %v13444_v52  ;;  %v13503_v52 = vcombine.high %v7835_v48, %v7839_v49 }
 0x561   : > { %10880 = vmatpush1.bf16.msra.mxu1 %v13446_v6  ;;  %10726 = vmatprep.subr.bf16.mxu0 %v13453_v56  ;;  %v7846_v6 = vld [vmem:[%s15029_s14 + $0x9e0] sm:$0xff]  ;;  %v7843_v56 = vld [vmem:[%s15029_s14 + $0x9c8] sm:$0xff] }
 0x562   : > { %10890 = vmatprep.subr.bf16.mxu1 %v13455_v58  ;;  %v7847_v58 = vld [vmem:[%s15029_s14 + $0x9e8] sm:$0xff]  ;;  %v13509_v63 = vcombine.high %v7842_v55, %v7846_v6  ;;  %v13508_v11 = vcombine.low %v7842_v55, %v7846_v6 }
 0x563   : > { %10718 = vmatmul.mubr.bf16.vlgmr.msra.gmra.mrb[16].mxu0 %v16296_v45  ;;  %v13511_v1 = vcombine.high %v7843_v56, %v7847_v58  ;;  %v13510_v15 = vcombine.low %v7843_v56, %v7847_v58 }
 0x564   : > { %10882 = vmatmul.mubr.bf16.vlgmr.msra.gmra.mrb[16].mxu1 %v16296_v45  ;;  %10727 = vmatpush1.bf16.msra.mxu0 %v13452_v3  ;;  %v7850_v3 = vld [vmem:[%s15029_s14 + $0xa00] sm:$0xff] }
 0x565   : > { %10891 = vmatpush1.bf16.msra.mxu1 %v13454_v2  ;;  %10728 = vmatprep.subr.bf16.mxu0 %v13461_v8  ;;  %v7854_v2 = vld [vmem:[%s15029_s14 + $0xa20] sm:$0xff]  ;;  %v7851_v8 = vld [vmem:[%s15029_s14 + $0xa08] sm:$0xff] }
 0x566   : > { %10892 = vmatprep.subr.bf16.mxu1 %v13463_v10  ;;  %v7855_v10 = vld [vmem:[%s15029_s14 + $0xa28] sm:$0xff]  ;;  %v13517_v47 = vcombine.high %v7850_v3, %v7854_v2  ;;  %v13516_v19 = vcombine.low %v7850_v3, %v7854_v2 }
 0x567   : > { %v13519_v13 = vcombine.high %v7851_v8, %v7855_v10  ;;  %v13518_v20 = vcombine.low %v7851_v8, %v7855_v10 }
 0x568   : > { %10729 = vmatpush1.bf16.msra.mxu0 %v13460_v34  ;;  %v7858_v34 = vld [vmem:[%s15029_s14 + $0xa40] sm:$0xff] }
 0x569   : > { %10893 = vmatpush1.bf16.msra.mxu1 %v13462_v12  ;;  %10730 = vmatprep.subr.bf16.mxu0 %v13469_v16  ;;  %v7862_v12 = vld [vmem:[%s15029_s14 + $0xa60] sm:$0xff]  ;;  %v7859_v16 = vld [vmem:[%s15029_s14 + $0xa48] sm:$0xff] }
 0x56a   : > { %10894 = vmatprep.subr.bf16.mxu1 %v13471_v18  ;;  %v7863_v18 = vld [vmem:[%s15029_s14 + $0xa68] sm:$0xff]  ;;  %v13525_v21 = vcombine.high %v7858_v34, %v7862_v12  ;;  %v13524_v24 = vcombine.low %v7858_v34, %v7862_v12 }
 0x56b   : > { %v13527_v5 = vcombine.high %v7859_v16, %v7863_v18  ;;  %v13526_v9 = vcombine.low %v7859_v16, %v7863_v18 }
 0x56c   : > { %10731 = vmatpush1.bf16.msra.mxu0 %v13468_v22  ;;  %v7866_v22 = vld [vmem:[%s15029_s14 + $0xa80] sm:$0xff] }
 0x56d   : > { %10895 = vmatpush1.bf16.msra.mxu1 %v13470_v53  ;;  %10732 = vmatprep.subr.bf16.mxu0 %v13477_v33  ;;  %v7870_v53 = vld [vmem:[%s15029_s14 + $0xaa0] sm:$0xff]  ;;  %v7867_v33 = vld [vmem:[%s15029_s14 + $0xa88] sm:$0xff] }
 0x56e   : > { %10896 = vmatprep.subr.bf16.mxu1 %v13479_v42  ;;  %v7871_v42 = vld [vmem:[%s15029_s14 + $0xaa8] sm:$0xff]  ;;  %v13533_v26 = vcombine.high %v7866_v22, %v7870_v53  ;;  %v13532_v25 = vcombine.low %v7866_v22, %v7870_v53 }
 0x56f   : > { %v13535_v27 = vcombine.high %v7867_v33, %v7871_v42  ;;  %v13534_v39 = vcombine.low %v7867_v33, %v7871_v42 }
 0x570   : > { %10733 = vmatpush1.bf16.msra.mxu0 %v13476_v0  ;;  %v7874_v0 = vld [vmem:[%s15029_s14 + $0xac0] sm:$0xff] }
 0x571   : > { %10897 = vmatpush1.bf16.msra.mxu1 %v13478_v35  ;;  %10734 = vmatprep.subr.bf16.mxu0 %v13485_v36  ;;  %v7878_v35 = vld [vmem:[%s15029_s14 + $0xae0] sm:$0xff]  ;;  %v7875_v36 = vld [vmem:[%s15029_s14 + $0xac8] sm:$0xff] }
 0x572   : > { %10898 = vmatprep.subr.bf16.mxu1 %v13487_v37  ;;  %v7879_v37 = vld [vmem:[%s15029_s14 + $0xae8] sm:$0xff]  ;;  %v13541_v54 = vcombine.high %v7874_v0, %v7878_v35  ;;  %v13540_v23 = vcombine.low %v7874_v0, %v7878_v35 }
 0x573   : > { %v13543_v40 = vcombine.high %v7875_v36, %v7879_v37  ;;  %v13542_v46 = vcombine.low %v7875_v36, %v7879_v37 }
 0x574   : > { %10735 = vmatpush1.bf16.msra.mxu0 %v13484_v43  ;;  %v7882_v43 = vld [vmem:[%s15029_s14 + $0xb00] sm:$0xff] }
 0x575   : > { %10899 = vmatpush1.bf16.msra.mxu1 %v13486_v41  ;;  %10736 = vmatprep.subr.bf16.mxu0 %v13493_v60  ;;  %v7886_v41 = vld [vmem:[%s15029_s14 + $0xb20] sm:$0xff]  ;;  %v7883_v60 = vld [vmem:[%s15029_s14 + $0xb08] sm:$0xff] }
 0x576   : > { %10900 = vmatprep.subr.bf16.mxu1 %v13495_v44  ;;  %v7887_v44 = vld [vmem:[%s15029_s14 + $0xb28] sm:$0xff]  ;;  %v13549_v48 = vcombine.high %v7882_v43, %v7886_v41  ;;  %v13548_v55 = vcombine.low %v7882_v43, %v7886_v41 }
 0x577   : > { %v13551_v49 = vcombine.high %v7883_v60, %v7887_v44  ;;  %v13550_v6 = vcombine.low %v7883_v60, %v7887_v44 }
 0x578   : > { %10737 = vmatpush1.bf16.msra.mxu0 %v13492_v50  ;;  %v7890_v50 = vld [vmem:[%s15029_s14 + $0xb40] sm:$0xff] }
 0x579   : > { %10901 = vmatpush1.bf16.msra.mxu1 %v13494_v14  ;;  %10738 = vmatprep.subr.bf16.mxu0 %v13501_v51  ;;  %v7894_v14 = vld [vmem:[%s15029_s14 + $0xb60] sm:$0xff]  ;;  %v7891_v51 = vld [vmem:[%s15029_s14 + $0xb48] sm:$0xff] }
 0x57a   : > { %10902 = vmatprep.subr.bf16.mxu1 %v13503_v52  ;;  %v7895_v52 = vld [vmem:[%s15029_s14 + $0xb68] sm:$0xff]  ;;  %v13557_v56 = vcombine.high %v7890_v50, %v7894_v14  ;;  %v13556_v3 = vcombine.low %v7890_v50, %v7894_v14 }
 0x57b   : > { %v13559_v58 = vcombine.high %v7891_v51, %v7895_v52  ;;  %v13558_v2 = vcombine.low %v7891_v51, %v7895_v52  ;;  %v7923_v50 = vld [vmem:[%s15029_s14 + $0xc48] sm:$0xff] }
 0x57c   : > { %10739 = vmatpush1.bf16.msra.mxu0 %v13500_v59  ;;  %v7898_v59 = vld [vmem:[%s15029_s14 + $0xb80] sm:$0xff]  ;;  %v7927_v14 = vld [vmem:[%s15029_s14 + $0xc68] sm:$0xff] }
 0x57d   : > { %10903 = vmatpush1.bf16.msra.mxu1 %v13502_v62  ;;  %10740 = vmatprep.subr.bf16.mxu0 %v13509_v63  ;;  %v7902_v62 = vld [vmem:[%s15029_s14 + $0xba0] sm:$0xff]  ;;  %v7899_v63 = vld [vmem:[%s15029_s14 + $0xb88] sm:$0xff] }
 0x57e   : > { %10904 = vmatprep.subr.bf16.mxu1 %v13511_v1  ;;  %v7903_v1 = vld [vmem:[%s15029_s14 + $0xba8] sm:$0xff]  ;;  %v13565_v8 = vcombine.high %v7898_v59, %v7902_v62  ;;  %v13564_v34 = vcombine.low %v7898_v59, %v7902_v62  ;;  %v13591_v59 = vcombine.high %v7923_v50, %v7927_v14  ;;  %v7934_v62 = vld [vmem:[%s15029_s14 + $0xca0] sm:$0xff] }
 0x57f   : > { %v13567_v10 = vcombine.high %v7899_v63, %v7903_v1  ;;  %v13566_v12 = vcombine.low %v7899_v63, %v7903_v1  ;;  %v7931_v63 = vld [vmem:[%s15029_s14 + $0xc88] sm:$0xff] }
 0x580   : > { %10741 = vmatpush1.bf16.msra.mxu0 %v13508_v11  ;;  %v7906_v11 = vld [vmem:[%s15029_s14 + $0xbc0] sm:$0xff]  ;;  %v7935_v1 = vld [vmem:[%s15029_s14 + $0xca8] sm:$0xff] }
 0x581   : > { %10905 = vmatpush1.bf16.msra.mxu1 %v13510_v15  ;;  %10742 = vmatprep.subr.bf16.mxu0 %v13517_v47  ;;  %v7910_v15 = vld [vmem:[%s15029_s14 + $0xbe0] sm:$0xff]  ;;  %v7907_v47 = vld [vmem:[%s15029_s14 + $0xbc8] sm:$0xff] }
 0x582   : > { %10906 = vmatprep.subr.bf16.mxu1 %v13519_v13  ;;  %v7911_v13 = vld [vmem:[%s15029_s14 + $0xbe8] sm:$0xff]  ;;  %v13573_v16 = vcombine.high %v7906_v11, %v7910_v15  ;;  %v13572_v22 = vcombine.low %v7906_v11, %v7910_v15  ;;  %v13599_v11 = vcombine.high %v7931_v63, %v7935_v1  ;;  %v7938_v15 = vld [vmem:[%s15029_s14 + $0xcc0] sm:$0xff] }
 0x583   : > { %v13575_v18 = vcombine.high %v7907_v47, %v7911_v13  ;;  %v13574_v53 = vcombine.low %v7907_v47, %v7911_v13  ;;  %v7942_v47 = vld [vmem:[%s15029_s14 + $0xce0] sm:$0xff]  ;;  %v7939_v13 = vld [vmem:[%s15029_s14 + $0xcc8] sm:$0xff] }
 0x584   : > { %10743 = vmatpush1.bf16.msra.mxu0 %v13516_v19  ;;  %v7914_v19 = vld [vmem:[%s15029_s14 + $0xc00] sm:$0xff] }
 0x585   : > { %10907 = vmatpush1.bf16.msra.mxu1 %v13518_v20  ;;  %10744 = vmatprep.subr.bf16.mxu0 %v13525_v21  ;;  %v7918_v20 = vld [vmem:[%s15029_s14 + $0xc20] sm:$0xff]  ;;  %v7915_v21 = vld [vmem:[%s15029_s14 + $0xc08] sm:$0xff] }
 0x586   : > { %10908 = vmatprep.subr.bf16.mxu1 %v13527_v5  ;;  %v7919_v5 = vld [vmem:[%s15029_s14 + $0xc28] sm:$0xff]  ;;  %v13581_v33 = vcombine.high %v7914_v19, %v7918_v20  ;;  %v13580_v52 = vcombine.low %v7914_v19, %v7918_v20  ;;  %v7946_v20 = vld [vmem:[%s15029_s14 + $0xd00] sm:$0xff] }
 0x587   : > { %v13583_v42 = vcombine.high %v7915_v21, %v7919_v5 }
 0x588   : > { %10745 = vmatpush1.bf16.msra.mxu0 %v13524_v24  ;;  %v16362_v24 = vld [vmem:[%s536_s15] sm:$0xff] }
 0x589   : > { %10909 = vmatpush1.bf16.msra.mxu1 %v13526_v9  ;;  %10746 = vmatprep.subr.bf16.mxu0 %v13533_v26  ;;  %v4277_v9 = vrot.slane %v16362_v24, %v15750_v30  ;;  %v4281_v26 = vrot.slane %v16362_v24, %v15753_v31 }
 0x58a   : > { %10910 = vmatprep.subr.bf16.mxu1 %v13535_v27  ;;  %v4289_v27 = vrot.slane %v16362_v24, %v15756_v32 }
 0x58c   : > { %10747 = vmatpush1.bf16.msra.mxu0 %v13532_v25 }
 0x58d   : > { %10911 = vmatpush1.bf16.msra.mxu1 %v13534_v39  ;;  %10748 = vmatprep.subr.bf16.mxu0 %v13541_v54 }
 0x58e   : > { %10912 = vmatprep.subr.bf16.mxu1 %v13543_v40 }
 0x590   : > { %10749 = vmatpush1.bf16.msra.mxu0 %v13540_v23 }
 0x591   : > { %10913 = vmatpush1.bf16.msra.mxu1 %v13542_v46  ;;  %10750 = vmatprep.subr.bf16.mxu0 %v13549_v48  ;;  %v7922_v46 = vld [vmem:[%s15029_s14 + $0xc40] sm:$0xff] }
 0x592   : > { %10914 = vmatprep.subr.bf16.mxu1 %v13551_v49  ;;  %v7926_v49 = vld [vmem:[%s15029_s14 + $0xc60] sm:$0xff] }
 0x594   : > { %10751 = vmatpush1.bf16.msra.mxu0 %v13548_v55  ;;  %v13582_v55 = vcombine.low %v7915_v21, %v7919_v5  ;;  %v7950_v21 = vld [vmem:[%s15029_s14 + $0xd20] sm:$0xff]  ;;  %v7947_v5 = vld [vmem:[%s15029_s14 + $0xd08] sm:$0xff] }
 0x595   : > { %10915 = vmatpush1.bf16.msra.mxu1 %v13550_v6  ;;  %10752 = vmatprep.subr.bf16.mxu0 %v13557_v56  ;;  %v7930_v56 = vld [vmem:[%s15029_s14 + $0xc80] sm:$0xff] }
 0x596   : > { %10916 = vmatprep.subr.bf16.mxu1 %v13559_v58  ;;  %v13589_v58 = vcombine.high %v7922_v46, %v7926_v49 }
 0x598   : > { %10753 = vmatpush1.bf16.msra.mxu0 %v13556_v3 }
 0x599   : > { %10917 = vmatpush1.bf16.msra.mxu1 %v13558_v2  ;;  %10754 = vmatprep.subr.bf16.mxu0 %v13565_v8  ;;  %v13588_v2 = vcombine.low %v7922_v46, %v7926_v49  ;;  %v13590_v8 = vcombine.low %v7923_v50, %v7927_v14  ;;  %v7970_v49 = vld [vmem:[%s15029_s14 + $0xdc0] sm:$0xff]  ;;  %v7971_v14 = vld [vmem:[%s15029_s14 + $0xdc8] sm:$0xff] }
 0x59a   : > { %10918 = vmatprep.subr.bf16.mxu1 %v13567_v10  ;;  %v13597_v10 = vcombine.high %v7930_v56, %v7934_v62  ;;  %v7974_v50 = vld [vmem:[%s15029_s14 + $0xde0] sm:$0xff] }
 0x59c   : > { %10755 = vmatpush1.bf16.msra.mxu0 %v13564_v34  ;;  %v7943_v34 = vld [vmem:[%s15029_s14 + $0xce8] sm:$0xff] }
 0x59d   : > { %10919 = vmatpush1.bf16.msra.mxu1 %v13566_v12  ;;  %10756 = vmatprep.subr.bf16.mxu0 %v13573_v16  ;;  %v13596_v12 = vcombine.low %v7930_v56, %v7934_v62  ;;  %v13598_v16 = vcombine.low %v7931_v63, %v7935_v1  ;;  %v13607_v19 = vcombine.high %v7939_v13, %v7943_v34  ;;  %v7978_v62 = vld [vmem:[%s15029_s14 + $0xe00] sm:$0xff]  ;;  %v7979_v1 = vld [vmem:[%s15029_s14 + $0xe08] sm:$0xff] }
 0x59e   : > { %10920 = vmatprep.subr.bf16.mxu1 %v13575_v18  ;;  %v13605_v18 = vcombine.high %v7938_v15, %v7942_v47  ;;  %v7982_v63 = vld [vmem:[%s15029_s14 + $0xe20] sm:$0xff] }
 0x5a0   : > { %10757 = vmatpush1.bf16.msra.mxu0 %v13572_v22  ;;  %v7951_v22 = vld [vmem:[%s15029_s14 + $0xd28] sm:$0xff] }
 0x5a1   : > { %10921 = vmatpush1.bf16.msra.mxu1 %v13574_v53  ;;  %10767 = vmatprep.subr.bf16.mxu0 %v13581_v33  ;;  %v13604_v53 = vcombine.low %v7938_v15, %v7942_v47  ;;  %v13606_v33 = vcombine.low %v7939_v13, %v7943_v34  ;;  %v7986_v47 = vld [vmem:[%s15029_s14 + $0xe40] sm:$0xff]  ;;  %v7987_v34 = vld [vmem:[%s15029_s14 + $0xe48] sm:$0xff] }
 0x5a2   : > { %10931 = vmatprep.subr.bf16.mxu1 %v13583_v42  ;;  %v13613_v42 = vcombine.high %v7946_v20, %v7950_v21  ;;  %v7990_v13 = vld [vmem:[%s15029_s14 + $0xe60] sm:$0xff] }
 0x5b6   : > { %v7343_v0 = vpop.f32.mrb[12].mxu0 }
 0x5b7   : > { %v13883_v35 = vadd.f32 %v7343_v0, %v4277_v9  ;;  %v16370_v36 = vpop.f32.mrb[12].mxu1  ;;  %v7345_v37 = vpop.f32.mrb[13].mxu0  ;;  %v13615_v9 = vcombine.high %v7947_v5, %v7951_v22  ;;  %v7955_v0 = vld [vmem:[%s15029_s14 + $0xd48] sm:$0xff] }
 0x5b8   : > { %v13884_v25 = vadd.f32 %v7345_v37, %v4281_v26  ;;  %v7509_v39 = vpop.f32.mrb[13].mxu1  ;;  %v7347_v54 = vpop.f32.mrb[14].mxu0  ;;  %v7954_v26 = vld [vmem:[%s15029_s14 + $0xd40] sm:$0xff]  ;;  %v13612_v37 = vcombine.low %v7946_v20, %v7950_v21 }
 0x5b9   : > { %v7518_v40 = vmax.f32 %v13883_v35, 0.0  ;;  %v13886_v43 = vadd.f32 %v7509_v39, %v4289_v27  ;;  %v7511_v41 = vpop.f32.mrb[14].mxu1  ;;  %v7348_v60 = vpop.f32.mrb[15].mxu0  ;;  %v7958_v27 = vld [vmem:[%s15029_s14 + $0xd60] sm:$0xff]  ;;  %v7959_v35 = vld [vmem:[%s15029_s14 + $0xd68] sm:$0xff] }
 0x5ba   : > { %v7519_v44 = vmax.f32 %v13884_v25, 0.0  ;;  %v7512_v23 = vpop.f32.mrb[15].mxu1  ;;  %v13614_v25 = vcombine.low %v7947_v5, %v7951_v22  ;;  %v13621_v39 = vcombine.high %v7954_v26, %v7958_v27  ;;  %v13623_v54 = vcombine.high %v7955_v0, %v7959_v35  ;;  %v7963_v41 = vld [vmem:[%s15029_s14 + $0xd88] sm:$0xff]  ;;  %v7994_v21 = vld [vmem:[%s15029_s14 + $0xe80] sm:$0xff] }
 0x5bb   : > { %v7521_v48 = vmax.f32 %v13886_v43, 0.0  ;;  %v16378_v6 = vpack.c.bf16 %v7518_v40, %v7518_v40  ;;  %v7962_v40 = vld [vmem:[%s15029_s14 + $0xd80] sm:$0xff]  ;;  %v7967_v60 = vld [vmem:[%s15029_s14 + $0xda8] sm:$0xff]  ;;  %v13622_v23 = vcombine.low %v7955_v0, %v7959_v35 }
 0x5bc   : > { %v16376_v51 = vpack.c.bf16 %v7519_v44, %v7519_v44  ;;  %v7966_v43 = vld [vmem:[%s15029_s14 + $0xda0] sm:$0xff]  ;;  %v13620_v44 = vcombine.low %v7954_v26, %v7958_v27  ;;  %v13630_v56 = vcombine.low %v7963_v41, %v7967_v60  ;;  %v7995_v22 = vld [vmem:[%s15029_s14 + $0xe88] sm:$0xff] }
 0x5bd   : > { %v16386_v3 = vpack.c.bf16 %v7521_v48, %v7521_v48  ;;  %v13629_v46 = vcombine.high %v7962_v40, %v7966_v43  ;;  %v13631_v48 = vcombine.high %v7963_v41, %v7967_v60  ;;  %v7998_v5 = vld [vmem:[%s15029_s14 + $0xea0] sm:$0xff]  ;;  %v8003_v35 = vld [vmem:[%s15029_s14 + $0xec8] sm:$0xff] }
 0x5be   : > { %10758 = vmatprep.mubr.bf16.mxu0 %v16376_v51  ;;  %10922 = vmatprep.mubr.bf16.mxu1 %v16376_v51  ;;  %v8002_v27 = vld [vmem:[%s15029_s14 + $0xec0] sm:$0xff]  ;;  %v8011_v60 = vld [vmem:[%s15029_s14 + $0xf08] sm:$0xff] }
 0x5bf   : > { %10759 = vmatmul.mubr.bf16.vlgmr.msra.gmra.mrb[16].mxu0 %v16378_v6  ;;  %10923 = vmatmul.mubr.bf16.vlgmr.msra.gmra.mrb[16].mxu1 %v16378_v6  ;;  %v8006_v0 = vld [vmem:[%s15029_s14 + $0xee0] sm:$0xff] }
 0x5c0   : > { %10768 = vmatpush1.bf16.msra.mxu0 %v13580_v52  ;;  %10932 = vmatpush1.bf16.msra.mxu1 %v13582_v55  ;;  %v7975_v52 = vld [vmem:[%s15029_s14 + $0xde8] sm:$0xff]  ;;  %v13628_v55 = vcombine.low %v7962_v40, %v7966_v43  ;;  %v8010_v43 = vld [vmem:[%s15029_s14 + $0xf00] sm:$0xff] }
 0x5c1   : > { %10799 = vmatprep.mubr.bf16.mxu0 %v16386_v3  ;;  %10963 = vmatprep.mubr.bf16.mxu1 %v16386_v3  ;;  %v8014_v41 = vld [vmem:[%s15029_s14 + $0xf20] sm:$0xff] }
 0x5c2   : > { %10769 = vmatprep.subr.bf16.mxu0 %v13589_v58  ;;  %10933 = vmatprep.subr.bf16.mxu1 %v13591_v59  ;;  %v13637_v58 = vcombine.high %v7970_v49, %v7974_v50  ;;  %v13639_v59 = vcombine.high %v7971_v14, %v7975_v52 }
 0x5c4   : > { %10770 = vmatpush1.bf16.msra.mxu0 %v13588_v2  ;;  %10934 = vmatpush1.bf16.msra.mxu1 %v13590_v8  ;;  %v7983_v2 = vld [vmem:[%s15029_s14 + $0xe28] sm:$0xff]  ;;  %v13636_v8 = vcombine.low %v7970_v49, %v7974_v50  ;;  %v8018_v50 = vld [vmem:[%s15029_s14 + $0xf40] sm:$0xff] }
 0x5c5   : > { %10771 = vmatprep.subr.bf16.mxu0 %v13597_v10  ;;  %10935 = vmatprep.subr.bf16.mxu1 %v13599_v11  ;;  %v13638_v10 = vcombine.low %v7971_v14, %v7975_v52  ;;  %v13645_v11 = vcombine.high %v7978_v62, %v7982_v63  ;;  %v13647_v15 = vcombine.high %v7979_v1, %v7983_v2  ;;  %v8022_v14 = vld [vmem:[%s15029_s14 + $0xf60] sm:$0xff]  ;;  %v8019_v52 = vld [vmem:[%s15029_s14 + $0xf48] sm:$0xff] }
 0x5c8   : > { %10772 = vmatpush1.bf16.msra.mxu0 %v13596_v12  ;;  %10936 = vmatpush1.bf16.msra.mxu1 %v13598_v16  ;;  %v7991_v12 = vld [vmem:[%s15029_s14 + $0xe68] sm:$0xff]  ;;  %v13644_v16 = vcombine.low %v7978_v62, %v7982_v63  ;;  %v8026_v63 = vld [vmem:[%s15029_s14 + $0xf80] sm:$0xff] }
 0x5c9   : > { %10773 = vmatprep.subr.bf16.mxu0 %v13605_v18  ;;  %10937 = vmatprep.subr.bf16.mxu1 %v13607_v19  ;;  %v13646_v18 = vcombine.low %v7979_v1, %v7983_v2  ;;  %v13653_v19 = vcombine.high %v7986_v47, %v7990_v13  ;;  %v13655_v20 = vcombine.high %v7987_v34, %v7991_v12  ;;  %v8030_v1 = vld [vmem:[%s15029_s14 + $0xfa0] sm:$0xff]  ;;  %v8027_v2 = vld [vmem:[%s15029_s14 + $0xf88] sm:$0xff] }
 0x5cc   : > { %10774 = vmatpush1.bf16.msra.mxu0 %v13604_v53  ;;  %10938 = vmatpush1.bf16.msra.mxu1 %v13606_v33  ;;  %v7999_v53 = vld [vmem:[%s15029_s14 + $0xea8] sm:$0xff]  ;;  %v13652_v33 = vcombine.low %v7986_v47, %v7990_v13  ;;  %v13693_v47 = vcombine.high %v8026_v63, %v8030_v1 }
 0x5cd   : > { %10775 = vmatprep.subr.bf16.mxu0 %v13613_v42  ;;  %10939 = vmatprep.subr.bf16.mxu1 %v13615_v9  ;;  %v13654_v42 = vcombine.low %v7987_v34, %v7991_v12  ;;  %v13661_v9 = vcombine.high %v7994_v21, %v7998_v5  ;;  %v13663_v26 = vcombine.high %v7995_v22, %v7999_v53  ;;  %v8034_v34 = vld [vmem:[%s15029_s14 + $0xfc0] sm:$0xff] }
 0x5ce   : > { %v8038_v12 = vld [vmem:[%s15029_s14 + $0xfe0] sm:$0xff] }
 0x5d0   : > { %10776 = vmatpush1.bf16.msra.mxu0 %v13612_v37  ;;  %10940 = vmatpush1.bf16.msra.mxu1 %v13614_v25  ;;  %v8007_v37 = vld [vmem:[%s15029_s14 + $0xee8] sm:$0xff]  ;;  %v13660_v25 = vcombine.low %v7994_v21, %v7998_v5 }
 0x5d1   : > { %10777 = vmatprep.subr.bf16.mxu0 %v13621_v39  ;;  %10941 = vmatprep.subr.bf16.mxu1 %v13623_v54  ;;  %v13662_v39 = vcombine.low %v7995_v22, %v7999_v53  ;;  %v13669_v54 = vcombine.high %v8002_v27, %v8006_v0  ;;  %v13671_v40 = vcombine.high %v8003_v35, %v8007_v37  ;;  %v7532_v22 = vld [vmem:[%s15029_s14 + $0x10] sm:$0xff] }
 0x5d2   : > { %v7536_v53 = vld [vmem:[%s15029_s14 + $0x30] sm:$0xff] }
 0x5d4   : > { %10778 = vmatpush1.bf16.msra.mxu0 %v13620_v44  ;;  %10942 = vmatpush1.bf16.msra.mxu1 %v13622_v23  ;;  %v8015_v44 = vld [vmem:[%s15029_s14 + $0xf28] sm:$0xff]  ;;  %v13668_v23 = vcombine.low %v8002_v27, %v8006_v0 }
 0x5d5   : > { %10779 = vmatprep.subr.bf16.mxu0 %v13629_v46  ;;  %10943 = vmatprep.subr.bf16.mxu1 %v13631_v48  ;;  %v13670_v46 = vcombine.low %v8003_v35, %v8007_v37  ;;  %v13677_v48 = vcombine.high %v8010_v43, %v8014_v41  ;;  %v13679_v49 = vcombine.high %v8011_v60, %v8015_v44  ;;  %v7540_v35 = vld [vmem:[%s15029_s14 + $0x50] sm:$0xff] }
 0x5d6   : > { %v7544_v37 = vld [vmem:[%s15029_s14 + $0x70] sm:$0xff] }
 0x5d8   : > { %10780 = vmatpush1.bf16.msra.mxu0 %v13628_v55  ;;  %10944 = vmatpush1.bf16.msra.mxu1 %v13630_v56  ;;  %v8023_v55 = vld [vmem:[%s15029_s14 + $0xf68] sm:$0xff]  ;;  %v13676_v56 = vcombine.low %v8010_v43, %v8014_v41  ;;  %v13209_v41 = vcombine.high %v7540_v35, %v7544_v37 }
 0x5d9   : > { %10781 = vmatprep.subr.bf16.mxu0 %v13637_v58  ;;  %10945 = vmatprep.subr.bf16.mxu1 %v13639_v59  ;;  %v13678_v58 = vcombine.low %v8011_v60, %v8015_v44  ;;  %v13685_v59 = vcombine.high %v8018_v50, %v8022_v14  ;;  %v13687_v62 = vcombine.high %v8019_v52, %v8023_v55  ;;  %v7548_v44 = vld [vmem:[%s15029_s14 + $0x90] sm:$0xff] }
 0x5dc   : > { %10782 = vmatpush1.bf16.msra.mxu0 %v13636_v8  ;;  %10946 = vmatpush1.bf16.msra.mxu1 %v13638_v10  ;;  %v8031_v8 = vld [vmem:[%s15029_s14 + $0xfa8] sm:$0xff]  ;;  %v13684_v10 = vcombine.low %v8018_v50, %v8022_v14 }
 0x5dd   : > { %10783 = vmatprep.subr.bf16.mxu0 %v13645_v11  ;;  %10947 = vmatprep.subr.bf16.mxu1 %v13647_v15  ;;  %v13686_v11 = vcombine.low %v8019_v52, %v8023_v55  ;;  %v4285_v15 = vrot.slane %v16362_v24, %v15835_v4  ;;  %v13695_v13 = vcombine.high %v8027_v2, %v8031_v8  ;;  %v7556_v55 = vld [vmem:[%s15029_s14 + $0xd0] sm:$0xff] }
 0x5de   : > { %v13701_v24 = vcombine.high %v8034_v34, %v8038_v12 }
 0x5df   : > { %v13885_v21 = vadd.f32 %v16370_v36, %v4285_v15  ;;  %v13201_v36 = vcombine.high %v7532_v22, %v7536_v53 }
 0x5e0   : > { %10784 = vmatpush1.bf16.msra.mxu0 %v13644_v16  ;;  %10948 = vmatpush1.bf16.msra.mxu1 %v13646_v18  ;;  %v8035_v16 = vld [vmem:[%s15029_s14 + $0xfc8] sm:$0xff] }
 0x5e1   : > { %10785 = vmatprep.subr.bf16.mxu0 %v13653_v19  ;;  %10949 = vmatprep.subr.bf16.mxu1 %v13655_v20  ;;  %v8039_v18 = vld [vmem:[%s15029_s14 + $0xfe8] sm:$0xff]  ;;  %v13692_v19 = vcombine.low %v8026_v63, %v8030_v1  ;;  %v13694_v20 = vcombine.low %v8027_v2, %v8031_v8  ;;  %v7520_v27 = vmax.f32 %v13885_v21, 0.0  ;;  %v7564_v2 = vld [vmem:[%s15029_s14 + $0x110] sm:$0xff] }
 0x5e2   : > { %v13703_v5 = vcombine.high %v8035_v16, %v8039_v18  ;;  %v7568_v8 = vld [vmem:[%s15029_s14 + $0x130] sm:$0xff] }
 0x5e4   : > { %10786 = vmatpush1.bf16.msra.mxu0 %v13652_v33  ;;  %10950 = vmatpush1.bf16.msra.mxu1 %v13654_v42  ;;  %v7533_v33 = vld [vmem:[%s15029_s14 + $0x18] sm:$0xff] }
 0x5e5   : > { %10787 = vmatprep.subr.bf16.mxu0 %v13661_v9  ;;  %10951 = vmatprep.subr.bf16.mxu1 %v13663_v26  ;;  %v7537_v42 = vld [vmem:[%s15029_s14 + $0x38] sm:$0xff]  ;;  %v13700_v9 = vcombine.low %v8034_v34, %v8038_v12  ;;  %v13702_v26 = vcombine.low %v8035_v16, %v8039_v18  ;;  %v7572_v12 = vld [vmem:[%s15029_s14 + $0x150] sm:$0xff] }
 0x5e6   : > { %v13203_v0 = vcombine.high %v7533_v33, %v7537_v42  ;;  %v13202_v43 = vcombine.low %v7533_v33, %v7537_v42  ;;  %v7576_v16 = vld [vmem:[%s15029_s14 + $0x170] sm:$0xff]  ;;  %v7573_v18 = vld [vmem:[%s15029_s14 + $0x158] sm:$0xff] }
 0x5e7   : > { %v7581_v33 = vld [vmem:[%s15029_s14 + $0x198] sm:$0xff] }
 0x5e8   : > { %10788 = vmatpush1.bf16.msra.mxu0 %v13660_v25  ;;  %10952 = vmatpush1.bf16.msra.mxu1 %v13662_v39  ;;  %v7541_v25 = vld [vmem:[%s15029_s14 + $0x58] sm:$0xff] }
 0x5e9   : > { %10789 = vmatprep.subr.bf16.mxu0 %v13669_v54  ;;  %10953 = vmatprep.subr.bf16.mxu1 %v13671_v40  ;;  %v7545_v39 = vld [vmem:[%s15029_s14 + $0x78] sm:$0xff]  ;;  %v13200_v54 = vcombine.low %v7532_v22, %v7536_v53  ;;  %v16455_v40 = vpack.c.bf16 %v7520_v27, %v7520_v27  ;;  %v7580_v22 = vld [vmem:[%s15029_s14 + $0x190] sm:$0xff] }
 0x5ea   : > { %v13211_v60 = vcombine.high %v7541_v25, %v7545_v39  ;;  %v13210_v50 = vcombine.low %v7541_v25, %v7545_v39  ;;  %v7584_v53 = vld [vmem:[%s15029_s14 + $0x1b0] sm:$0xff]  ;;  %v7585_v42 = vld [vmem:[%s15029_s14 + $0x1b8] sm:$0xff] }
 0x5eb   : > { %v13249_v27 = vcombine.high %v7580_v22, %v7584_v53  ;;  %v7593_v25 = vld [vmem:[%s15029_s14 + $0x1f8] sm:$0xff]  ;;  %v13248_v39 = vcombine.low %v7580_v22, %v7584_v53  ;;  %v7632_v22 = vld [vmem:[%s15029_s14 + $0x330] sm:$0xff] }
 0x5ec   : > { %10790 = vmatpush1.bf16.msra.mxu0 %v13668_v23  ;;  %10954 = vmatpush1.bf16.msra.mxu1 %v13670_v46  ;;  %v7552_v23 = vld [vmem:[%s15029_s14 + $0xb0] sm:$0xff]  ;;  %v7549_v46 = vld [vmem:[%s15029_s14 + $0x98] sm:$0xff] }
 0x5ed   : > { %10791 = vmatprep.subr.bf16.mxu0 %v13677_v48  ;;  %10955 = vmatprep.subr.bf16.mxu1 %v13679_v49  ;;  %v7553_v48 = vld [vmem:[%s15029_s14 + $0xb8] sm:$0xff]  ;;  %v13208_v49 = vcombine.low %v7540_v35, %v7544_v37  ;;  %v13217_v14 = vcombine.high %v7548_v44, %v7552_v23  ;;  %v7592_v35 = vld [vmem:[%s15029_s14 + $0x1f0] sm:$0xff] }
 0x5ee   : > { %v13219_v52 = vcombine.high %v7549_v46, %v7553_v48  ;;  %v13218_v63 = vcombine.low %v7549_v46, %v7553_v48  ;;  %v7589_v37 = vld [vmem:[%s15029_s14 + $0x1d8] sm:$0xff] }
 0x5ef   : > { %v7601_v46 = vld [vmem:[%s15029_s14 + $0x238] sm:$0xff] }
 0x5f0   : > { %10792 = vmatpush1.bf16.msra.mxu0 %v13676_v56  ;;  %10956 = vmatpush1.bf16.msra.mxu1 %v13678_v58  ;;  %v7560_v56 = vld [vmem:[%s15029_s14 + $0xf0] sm:$0xff]  ;;  %v7557_v58 = vld [vmem:[%s15029_s14 + $0xd8] sm:$0xff] }
 0x5f1   : > { %10793 = vmatprep.subr.bf16.mxu0 %v13685_v59  ;;  %10957 = vmatprep.subr.bf16.mxu1 %v13687_v62  ;;  %v7561_v59 = vld [vmem:[%s15029_s14 + $0xf8] sm:$0xff]  ;;  %v13216_v62 = vcombine.low %v7548_v44, %v7552_v23  ;;  %v13224_v15 = vcombine.low %v7556_v55, %v7560_v56  ;;  %v7600_v44 = vld [vmem:[%s15029_s14 + $0x230] sm:$0xff] }
 0x5f2   : > { %v13227_v1 = vcombine.high %v7557_v58, %v7561_v59  ;;  %v7597_v23 = vld [vmem:[%s15029_s14 + $0x218] sm:$0xff] }
 0x5f3   : > { %v7629_v53 = vld [vmem:[%s15029_s14 + $0x318] sm:$0xff] }
 0x5f4   : > { %10794 = vmatpush1.bf16.msra.mxu0 %v13684_v10  ;;  %10958 = vmatpush1.bf16.msra.mxu1 %v13686_v11  ;;  %v7565_v10 = vld [vmem:[%s15029_s14 + $0x118] sm:$0xff] }
 0x5f5   : > { %10795 = vmatprep.subr.bf16.mxu0 %v13693_v47  ;;  %10959 = vmatprep.subr.bf16.mxu1 %v13695_v13  ;;  %v7569_v11 = vld [vmem:[%s15029_s14 + $0x138] sm:$0xff]  ;;  %v13226_v47 = vcombine.low %v7557_v58, %v7561_v59  ;;  %v13233_v13 = vcombine.high %v7564_v2, %v7568_v8 }
 0x5f6   : > { %v13235_v34 = vcombine.high %v7565_v10, %v7569_v11  ;;  %v13234_v21 = vcombine.low %v7565_v10, %v7569_v11  ;;  %v7609_v58 = vld [vmem:[%s15029_s14 + $0x278] sm:$0xff] }
 0x5f7   : > { %v7617_v10 = vld [vmem:[%s15029_s14 + $0x2b8] sm:$0xff] }
 0x5f8   : > { %10796 = vmatpush1.bf16.msra.mxu0 %v13692_v19  ;;  %10960 = vmatpush1.bf16.msra.mxu1 %v13694_v20  ;;  %v7577_v19 = vld [vmem:[%s15029_s14 + $0x178] sm:$0xff]  ;;  %v13232_v20 = vcombine.low %v7564_v2, %v7568_v8  ;;  %v7616_v2 = vld [vmem:[%s15029_s14 + $0x2b0] sm:$0xff] }
 0x5f9   : > { %10797 = vmatprep.subr.bf16.mxu0 %v13701_v24  ;;  %10961 = vmatprep.subr.bf16.mxu1 %v13703_v5  ;;  %v13241_v24 = vcombine.high %v7572_v12, %v7576_v16  ;;  %v13243_v5 = vcombine.high %v7573_v18, %v7577_v19  ;;  %v7613_v8 = vld [vmem:[%s15029_s14 + $0x298] sm:$0xff] }
 0x5fc   : > { %10798 = vmatpush1.bf16.msra.mxu0 %v13700_v9  ;;  %10962 = vmatpush1.bf16.msra.mxu1 %v13702_v26  ;;  %v13240_v9 = vcombine.low %v7572_v12, %v7576_v16  ;;  %v13242_v26 = vcombine.low %v7573_v18, %v7577_v19  ;;  %v7624_v12 = vld [vmem:[%s15029_s14 + $0x2f0] sm:$0xff]  ;;  %v7621_v16 = vld [vmem:[%s15029_s14 + $0x2d8] sm:$0xff] }
 0x5fd   : > { %10972 = vmatprep.subr.bf16.mxu0 %v13201_v36  ;;  %11136 = vmatprep.subr.bf16.mxu1 %v13203_v0  ;;  %v13251_v36 = vcombine.high %v7581_v33, %v7585_v42  ;;  %v7588_v0 = vld [vmem:[%s15029_s14 + $0x1d0] sm:$0xff]  ;;  %v7625_v18 = vld [vmem:[%s15029_s14 + $0x2f8] sm:$0xff] }
 0x5fe   : > { %v13256_v48 = vcombine.low %v7588_v0, %v7592_v35 }
 0x5ff   : > { %10800 = vmatmul.mubr.bf16.vlgmr.msra.gmra.mrb[16].mxu0 %v16455_v40  ;;  %10964 = vmatmul.mubr.bf16.vlgmr.msra.gmra.mrb[16].mxu1 %v16455_v40 }
 0x600   : > { %10973 = vmatpush1.bf16.msra.mxu0 %v13200_v54  ;;  %11004 = vmatprep.mubr.bf16.mxu0 %v16147_v61  ;;  %v13250_v54 = vcombine.low %v7581_v33, %v7585_v42  ;;  %v7633_v33 = vld [vmem:[%s15029_s14 + $0x338] sm:$0xff] }
 0x601   : > { %11137 = vmatpush1.bf16.msra.mxu1 %v13202_v43  ;;  %11168 = vmatprep.mubr.bf16.mxu1 %v16147_v61  ;;  %v13225_v61 = vcombine.high %v7556_v55, %v7560_v56  ;;  %v13257_v43 = vcombine.high %v7588_v0, %v7592_v35  ;;  %v7608_v55 = vld [vmem:[%s15029_s14 + $0x270] sm:$0xff]  ;;  %v7605_v56 = vld [vmem:[%s15029_s14 + $0x258] sm:$0xff] }
 0x602   : > { %10974 = vmatprep.subr.bf16.mxu0 %v13209_v41  ;;  %11138 = vmatprep.subr.bf16.mxu1 %v13211_v60  ;;  %v13259_v41 = vcombine.high %v7589_v37, %v7593_v25  ;;  %v7596_v60 = vld [vmem:[%s15029_s14 + $0x210] sm:$0xff]  ;;  %v7637_v35 = vld [vmem:[%s15029_s14 + $0x358] sm:$0xff] }
 0x603   : > { %v13264_v59 = vcombine.low %v7596_v60, %v7600_v44  ;;  %v7640_v0 = vld [vmem:[%s15029_s14 + $0x370] sm:$0xff] }
 0x604   : > { %10975 = vmatpush1.bf16.msra.mxu0 %v13208_v49  ;;  %v13258_v49 = vcombine.low %v7589_v37, %v7593_v25  ;;  %v7641_v37 = vld [vmem:[%s15029_s14 + $0x378] sm:$0xff] }
 0x605   : > { %11139 = vmatpush1.bf16.msra.mxu1 %v13210_v50  ;;  %10976 = vmatprep.subr.bf16.mxu0 %v13217_v14  ;;  %v13265_v50 = vcombine.high %v7596_v60, %v7600_v44  ;;  %v13267_v14 = vcombine.high %v7597_v23, %v7601_v46  ;;  %v7648_v60 = vld [vmem:[%s15029_s14 + $0x3b0] sm:$0xff]  ;;  %v7645_v44 = vld [vmem:[%s15029_s14 + $0x398] sm:$0xff] }
 0x606   : > { %11140 = vmatprep.subr.bf16.mxu1 %v13219_v52  ;;  %v7604_v52 = vld [vmem:[%s15029_s14 + $0x250] sm:$0xff] }
 0x607   : > { %v13272_v11 = vcombine.low %v7604_v52, %v7608_v55 }
 0x608   : > { %10977 = vmatpush1.bf16.msra.mxu0 %v13216_v62  ;;  %v13266_v62 = vcombine.low %v7597_v23, %v7601_v46  ;;  %v7649_v23 = vld [vmem:[%s15029_s14 + $0x3b8] sm:$0xff] }
 0x609   : > { %11141 = vmatpush1.bf16.msra.mxu1 %v13218_v63  ;;  %10978 = vmatprep.subr.bf16.mxu0 %v13225_v61  ;;  %v13273_v63 = vcombine.high %v7604_v52, %v7608_v55  ;;  %v13275_v61 = vcombine.high %v7605_v56, %v7609_v58  ;;  %v7656_v52 = vld [vmem:[%s15029_s14 + $0x3f0] sm:$0xff]  ;;  %v7653_v55 = vld [vmem:[%s15029_s14 + $0x3d8] sm:$0xff] }
 0x60a   : > { %11142 = vmatprep.subr.bf16.mxu1 %v13227_v1  ;;  %v7612_v1 = vld [vmem:[%s15029_s14 + $0x290] sm:$0xff] }
 0x60b   : > { %v13280_v19 = vcombine.low %v7612_v1, %v7616_v2 }
 0x60c   : > { %10979 = vmatpush1.bf16.msra.mxu0 %v13224_v15  ;;  %v13274_v15 = vcombine.low %v7605_v56, %v7609_v58  ;;  %v7657_v56 = vld [vmem:[%s15029_s14 + $0x3f8] sm:$0xff] }
 0x60d   : > { %11143 = vmatpush1.bf16.msra.mxu1 %v13226_v47  ;;  %10980 = vmatprep.subr.bf16.mxu0 %v13233_v13  ;;  %v13281_v47 = vcombine.high %v7612_v1, %v7616_v2  ;;  %v13283_v13 = vcombine.high %v7613_v8, %v7617_v10  ;;  %v7664_v1 = vld [vmem:[%s15029_s14 + $0x430] sm:$0xff]  ;;  %v7661_v2 = vld [vmem:[%s15029_s14 + $0x418] sm:$0xff] }
 0x60e   : > { %11144 = vmatprep.subr.bf16.mxu1 %v13235_v34  ;;  %v7620_v34 = vld [vmem:[%s15029_s14 + $0x2d0] sm:$0xff] }
 0x60f   : > { %v13288_v42 = vcombine.low %v7620_v34, %v7624_v12 }
 0x610   : > { %10981 = vmatpush1.bf16.msra.mxu0 %v13232_v20  ;;  %v13282_v20 = vcombine.low %v7613_v8, %v7617_v10  ;;  %v7665_v8 = vld [vmem:[%s15029_s14 + $0x438] sm:$0xff] }
 0x611   : > { %11145 = vmatpush1.bf16.msra.mxu1 %v13234_v21  ;;  %10982 = vmatprep.subr.bf16.mxu0 %v13241_v24  ;;  %v13289_v21 = vcombine.high %v7620_v34, %v7624_v12  ;;  %v13291_v24 = vcombine.high %v7621_v16, %v7625_v18  ;;  %v7672_v34 = vld [vmem:[%s15029_s14 + $0x470] sm:$0xff] }
 0x612   : > { %11146 = vmatprep.subr.bf16.mxu1 %v13243_v5  ;;  %v7628_v5 = vld [vmem:[%s15029_s14 + $0x310] sm:$0xff] }
 0x613   : > { %v13296_v25 = vcombine.low %v7628_v5, %v7632_v22 }
 0x614   : > { %10983 = vmatpush1.bf16.msra.mxu0 %v13240_v9  ;;  %v13290_v9 = vcombine.low %v7621_v16, %v7625_v18  ;;  %v7669_v16 = vld [vmem:[%s15029_s14 + $0x458] sm:$0xff] }
 0x615   : > { %11147 = vmatpush1.bf16.msra.mxu1 %v13242_v26  ;;  %10984 = vmatprep.subr.bf16.mxu0 %v13249_v27  ;;  %v13297_v26 = vcombine.high %v7628_v5, %v7632_v22  ;;  %v13299_v27 = vcombine.high %v7629_v53, %v7633_v33  ;;  %v7673_v18 = vld [vmem:[%s15029_s14 + $0x478] sm:$0xff] }
 0x616   : > { %11148 = vmatprep.subr.bf16.mxu1 %v13251_v36  ;;  %v7636_v36 = vld [vmem:[%s15029_s14 + $0x350] sm:$0xff]  ;;  %v13339_v5 = vcombine.high %v7669_v16, %v7673_v18  ;;  %v7677_v22 = vld [vmem:[%s15029_s14 + $0x498] sm:$0xff] }
 0x617   : > { %v13304_v46 = vcombine.low %v7636_v36, %v7640_v0 }
 0x618   : > { %10985 = vmatpush1.bf16.msra.mxu0 %v13248_v39  ;;  %v13298_v39 = vcombine.low %v7629_v53, %v7633_v33  ;;  %v7681_v53 = vld [vmem:[%s15029_s14 + $0x4b8] sm:$0xff] }
 0x619   : > { %11149 = vmatpush1.bf16.msra.mxu1 %v13250_v54  ;;  %10986 = vmatprep.subr.bf16.mxu0 %v13257_v43  ;;  %v13305_v54 = vcombine.high %v7636_v36, %v7640_v0  ;;  %v13307_v43 = vcombine.high %v7637_v35, %v7641_v37  ;;  %v7688_v36 = vld [vmem:[%s15029_s14 + $0x4f0] sm:$0xff]  ;;  %v7685_v0 = vld [vmem:[%s15029_s14 + $0x4d8] sm:$0xff] }
 0x61a   : > { %11150 = vmatprep.subr.bf16.mxu1 %v13259_v41  ;;  %v7644_v41 = vld [vmem:[%s15029_s14 + $0x390] sm:$0xff] }
 0x61b   : > { %v13312_v58 = vcombine.low %v7644_v41, %v7648_v60 }
 0x61c   : > { %10987 = vmatpush1.bf16.msra.mxu0 %v13256_v48  ;;  %v13306_v48 = vcombine.low %v7637_v35, %v7641_v37  ;;  %v13346_v37 = vcombine.low %v7677_v22, %v7681_v53 }
 0x61d   : > { %11151 = vmatpush1.bf16.msra.mxu1 %v13258_v49  ;;  %10988 = vmatprep.subr.bf16.mxu0 %v13265_v50  ;;  %v13313_v49 = vcombine.high %v7644_v41, %v7648_v60  ;;  %v13315_v50 = vcombine.high %v7645_v44, %v7649_v23  ;;  %v7697_v41 = vld [vmem:[%s15029_s14 + $0x538] sm:$0xff] }
 0x61e   : > { %11152 = vmatprep.subr.bf16.mxu1 %v13267_v14  ;;  %v7652_v14 = vld [vmem:[%s15029_s14 + $0x3d0] sm:$0xff] }
 0x61f   : > { %v13320_v10 = vcombine.low %v7652_v14, %v7656_v52 }
 0x620   : > { %10989 = vmatpush1.bf16.msra.mxu0 %v13264_v59  ;;  %v13314_v59 = vcombine.low %v7645_v44, %v7649_v23 }
 0x621   : > { %11153 = vmatpush1.bf16.msra.mxu1 %v13266_v62  ;;  %10990 = vmatprep.subr.bf16.mxu0 %v13273_v63  ;;  %v13321_v62 = vcombine.high %v7652_v14, %v7656_v52  ;;  %v13323_v63 = vcombine.high %v7653_v55, %v7657_v56  ;;  %v7705_v14 = vld [vmem:[%s15029_s14 + $0x578] sm:$0xff] }
 0x622   : > { %11154 = vmatprep.subr.bf16.mxu1 %v13275_v61  ;;  %v7660_v61 = vld [vmem:[%s15029_s14 + $0x410] sm:$0xff] }
 0x623   : > { %v13328_v12 = vcombine.low %v7660_v61, %v7664_v1 }
 0x624   : > { %10991 = vmatpush1.bf16.msra.mxu0 %v13272_v11  ;;  %v13322_v11 = vcombine.low %v7653_v55, %v7657_v56 }
 0x625   : > { %11155 = vmatpush1.bf16.msra.mxu1 %v13274_v15  ;;  %10992 = vmatprep.subr.bf16.mxu0 %v13281_v47  ;;  %v13329_v15 = vcombine.high %v7660_v61, %v7664_v1  ;;  %v13331_v47 = vcombine.high %v7661_v2, %v7665_v8  ;;  %v7713_v61 = vld [vmem:[%s15029_s14 + $0x5b8] sm:$0xff] }
 0x626   : > { %11156 = vmatprep.subr.bf16.mxu1 %v13283_v13  ;;  %v7668_v13 = vld [vmem:[%s15029_s14 + $0x450] sm:$0xff] }
 0x627   : > { %v13336_v33 = vcombine.low %v7668_v13, %v7672_v34 }
 0x628   : > { %10993 = vmatpush1.bf16.msra.mxu0 %v13280_v19  ;;  %v13330_v19 = vcombine.low %v7661_v2, %v7665_v8 }
 0x629   : > { %11157 = vmatpush1.bf16.msra.mxu1 %v13282_v20  ;;  %10994 = vmatprep.subr.bf16.mxu0 %v13289_v21  ;;  %v13337_v20 = vcombine.high %v7668_v13, %v7672_v34  ;;  %v7676_v21 = vld [vmem:[%s15029_s14 + $0x490] sm:$0xff]  ;;  %v7721_v13 = vld [vmem:[%s15029_s14 + $0x5f8] sm:$0xff] }
 0x62a   : > { %11158 = vmatprep.subr.bf16.mxu1 %v13291_v24  ;;  %v7680_v24 = vld [vmem:[%s15029_s14 + $0x4b0] sm:$0xff] }
 0x62b   : > { %v13344_v35 = vcombine.low %v7676_v21, %v7680_v24 }
 0x62c   : > { %10995 = vmatpush1.bf16.msra.mxu0 %v13288_v42  ;;  %v13338_v42 = vcombine.low %v7669_v16, %v7673_v18 }
 0x62d   : > { %11159 = vmatpush1.bf16.msra.mxu1 %v13290_v9  ;;  %10996 = vmatprep.subr.bf16.mxu0 %v13297_v26  ;;  %v13345_v9 = vcombine.high %v7676_v21, %v7680_v24  ;;  %v13347_v26 = vcombine.high %v7677_v22, %v7681_v53  ;;  %v7725_v21 = vld [vmem:[%s15029_s14 + $0x618] sm:$0xff] }
 0x62e   : > { %11160 = vmatprep.subr.bf16.mxu1 %v13299_v27  ;;  %v7684_v27 = vld [vmem:[%s15029_s14 + $0x4d0] sm:$0xff]  ;;  %v7729_v24 = vld [vmem:[%s15029_s14 + $0x638] sm:$0xff] }
 0x62f   : > { %v13352_v60 = vcombine.low %v7684_v27, %v7688_v36 }
 0x630   : > { %10997 = vmatpush1.bf16.msra.mxu0 %v13296_v25  ;;  %v13353_v25 = vcombine.high %v7684_v27, %v7688_v36  ;;  %v7737_v27 = vld [vmem:[%s15029_s14 + $0x678] sm:$0xff] }
 0x631   : > { %11161 = vmatpush1.bf16.msra.mxu1 %v13298_v39  ;;  %10998 = vmatprep.subr.bf16.mxu0 %v13305_v54  ;;  %v7692_v39 = vld [vmem:[%s15029_s14 + $0x510] sm:$0xff] }
 0x632   : > { %11162 = vmatprep.subr.bf16.mxu1 %v13307_v43  ;;  %v7696_v54 = vld [vmem:[%s15029_s14 + $0x530] sm:$0xff]  ;;  %v7693_v43 = vld [vmem:[%s15029_s14 + $0x518] sm:$0xff] }
 0x633   : > { %v13361_v23 = vcombine.high %v7692_v39, %v7696_v54  ;;  %v13360_v52 = vcombine.low %v7692_v39, %v7696_v54  ;;  %v13362_v55 = vcombine.low %v7693_v43, %v7697_v41  ;;  %v7745_v39 = vld [vmem:[%s15029_s14 + $0x6b8] sm:$0xff] }
 0x634   : > { %10999 = vmatpush1.bf16.msra.mxu0 %v13304_v46  ;;  %v13363_v46 = vcombine.high %v7693_v43, %v7697_v41 }
 0x635   : > { %11163 = vmatpush1.bf16.msra.mxu1 %v13306_v48  ;;  %11000 = vmatprep.subr.bf16.mxu0 %v13313_v49  ;;  %v7700_v48 = vld [vmem:[%s15029_s14 + $0x550] sm:$0xff] }
 0x636   : > { %11164 = vmatprep.subr.bf16.mxu1 %v13315_v50  ;;  %v7704_v49 = vld [vmem:[%s15029_s14 + $0x570] sm:$0xff]  ;;  %v7701_v50 = vld [vmem:[%s15029_s14 + $0x558] sm:$0xff] }
 0x637   : > { %v13369_v56 = vcombine.high %v7700_v48, %v7704_v49  ;;  %v13368_v1 = vcombine.low %v7700_v48, %v7704_v49  ;;  %v13370_v2 = vcombine.low %v7701_v50, %v7705_v14  ;;  %v7753_v48 = vld [vmem:[%s15029_s14 + $0x6f8] sm:$0xff] }
 0x638   : > { %11001 = vmatpush1.bf16.msra.mxu0 %v13312_v58  ;;  %v13371_v58 = vcombine.high %v7701_v50, %v7705_v14 }
 0x639   : > { %11165 = vmatpush1.bf16.msra.mxu1 %v13314_v59  ;;  %11002 = vmatprep.subr.bf16.mxu0 %v13321_v62  ;;  %v7708_v59 = vld [vmem:[%s15029_s14 + $0x590] sm:$0xff] }
 0x63a   : > { %11166 = vmatprep.subr.bf16.mxu1 %v13323_v63  ;;  %v7712_v62 = vld [vmem:[%s15029_s14 + $0x5b0] sm:$0xff]  ;;  %v7709_v63 = vld [vmem:[%s15029_s14 + $0x598] sm:$0xff] }
 0x63b   : > { %v13377_v8 = vcombine.high %v7708_v59, %v7712_v62  ;;  %v13376_v34 = vcombine.low %v7708_v59, %v7712_v62  ;;  %v7761_v59 = vld [vmem:[%s15029_s14 + $0x738] sm:$0xff] }
 0x63c   : > { %11003 = vmatpush1.bf16.msra.mxu0 %v13320_v10  ;;  %v13379_v10 = vcombine.high %v7709_v63, %v7713_v61 }
 0x63d   : > { %11167 = vmatpush1.bf16.msra.mxu1 %v13322_v11  ;;  %11013 = vmatprep.subr.bf16.mxu0 %v13329_v15  ;;  %v7716_v11 = vld [vmem:[%s15029_s14 + $0x5d0] sm:$0xff] }
 0x63e   : > { %11177 = vmatprep.subr.bf16.mxu1 %v13331_v47  ;;  %v7720_v15 = vld [vmem:[%s15029_s14 + $0x5f0] sm:$0xff]  ;;  %v7717_v47 = vld [vmem:[%s15029_s14 + $0x5d8] sm:$0xff] }
 0x63f   : > { %11005 = vmatmul.mubr.bf16.vlgmr.msra.gmra.mrb[20].mxu0 %v16221_v29  ;;  %v13385_v16 = vcombine.high %v7716_v11, %v7720_v15  ;;  %v13387_v18 = vcombine.high %v7717_v47, %v7721_v13  ;;  %v13386_v22 = vcombine.low %v7717_v47, %v7721_v13 }
 0x640   : > { %11169 = vmatmul.mubr.bf16.vlgmr.msra.gmra.mrb[20].mxu1 %v16221_v29  ;;  %11014 = vmatpush1.bf16.msra.mxu0 %v13328_v12  ;;  %v7689_v29 = vld [vmem:[%s15029_s14 + $0x4f8] sm:$0xff]  ;;  %v13378_v12 = vcombine.low %v7709_v63, %v7713_v61 }
 0x641   : > { %11045 = vmatprep.mubr.bf16.mxu0 %v16225_v7  ;;  %11178 = vmatpush1.bf16.msra.mxu1 %v13330_v19  ;;  %v13354_v44 = vcombine.low %v7685_v0, %v7689_v29  ;;  %v7724_v19 = vld [vmem:[%s15029_s14 + $0x610] sm:$0xff] }
 0x642   : > { %11209 = vmatprep.mubr.bf16.mxu1 %v16225_v7  ;;  %11015 = vmatprep.subr.bf16.mxu0 %v13337_v20  ;;  %v13355_v7 = vcombine.high %v7685_v0, %v7689_v29  ;;  %v7728_v20 = vld [vmem:[%s15029_s14 + $0x630] sm:$0xff]  ;;  %v13394_v0 = vcombine.low %v7725_v21, %v7729_v24 }
 0x643   : > { %11179 = vmatprep.subr.bf16.mxu1 %v13339_v5  ;;  %v13384_v5 = vcombine.low %v7716_v11, %v7720_v15  ;;  %v13393_v53 = vcombine.high %v7724_v19, %v7728_v20  ;;  %v13392_v36 = vcombine.low %v7724_v19, %v7728_v20  ;;  %v7769_v11 = vld [vmem:[%s15029_s14 + $0x778] sm:$0xff] }
 0x644   : > { %11016 = vmatpush1.bf16.msra.mxu0 %v13336_v33  ;;  %v13395_v33 = vcombine.high %v7725_v21, %v7729_v24  ;;  %v7777_v19 = vld [vmem:[%s15029_s14 + $0x7b8] sm:$0xff] }
 0x645   : > { %11180 = vmatpush1.bf16.msra.mxu1 %v13338_v42  ;;  %11017 = vmatprep.subr.bf16.mxu0 %v13345_v9  ;;  %v7732_v42 = vld [vmem:[%s15029_s14 + $0x650] sm:$0xff] }
 0x646   : > { %11181 = vmatprep.subr.bf16.mxu1 %v13347_v26  ;;  %v7736_v9 = vld [vmem:[%s15029_s14 + $0x670] sm:$0xff]  ;;  %v7733_v26 = vld [vmem:[%s15029_s14 + $0x658] sm:$0xff] }
 0x647   : > { %v13401_v29 = vcombine.high %v7732_v42, %v7736_v9  ;;  %v13400_v54 = vcombine.low %v7732_v42, %v7736_v9  ;;  %v13402_v43 = vcombine.low %v7733_v26, %v7737_v27  ;;  %v7785_v42 = vld [vmem:[%s15029_s14 + $0x7f8] sm:$0xff] }
 0x648   : > { %11018 = vmatpush1.bf16.msra.mxu0 %v13344_v35  ;;  %v13403_v35 = vcombine.high %v7733_v26, %v7737_v27 }
 0x649   : > { %11182 = vmatpush1.bf16.msra.mxu1 %v13346_v37  ;;  %11019 = vmatprep.subr.bf16.mxu0 %v13353_v25  ;;  %v7740_v37 = vld [vmem:[%s15029_s14 + $0x690] sm:$0xff] }
 0x64a   : > { %11183 = vmatprep.subr.bf16.mxu1 %v13355_v7  ;;  %v7744_v25 = vld [vmem:[%s15029_s14 + $0x6b0] sm:$0xff]  ;;  %v7741_v7 = vld [vmem:[%s15029_s14 + $0x698] sm:$0xff] }
 0x64b   : > { %v13409_v41 = vcombine.high %v7740_v37, %v7744_v25  ;;  %v13408_v49 = vcombine.low %v7740_v37, %v7744_v25  ;;  %v13410_v50 = vcombine.low %v7741_v7, %v7745_v39  ;;  %v7793_v37 = vld [vmem:[%s15029_s14 + $0x838] sm:$0xff] }
 0x64c   : > { %11020 = vmatpush1.bf16.msra.mxu0 %v13352_v60  ;;  %v13411_v60 = vcombine.high %v7741_v7, %v7745_v39 }
 0x64d   : > { %11184 = vmatpush1.bf16.msra.mxu1 %v13354_v44  ;;  %11021 = vmatprep.subr.bf16.mxu0 %v13361_v23  ;;  %v7748_v44 = vld [vmem:[%s15029_s14 + $0x6d0] sm:$0xff] }
 0x64e   : > { %11185 = vmatprep.subr.bf16.mxu1 %v13363_v46  ;;  %v7752_v23 = vld [vmem:[%s15029_s14 + $0x6f0] sm:$0xff]  ;;  %v7749_v46 = vld [vmem:[%s15029_s14 + $0x6d8] sm:$0xff] }
 0x64f   : > { %v13417_v14 = vcombine.high %v7748_v44, %v7752_v23  ;;  %v13416_v62 = vcombine.low %v7748_v44, %v7752_v23  ;;  %v13418_v63 = vcombine.low %v7749_v46, %v7753_v48  ;;  %v7797_v44 = vld [vmem:[%s15029_s14 + $0x858] sm:$0xff] }
 0x650   : > { %11022 = vmatpush1.bf16.msra.mxu0 %v13360_v52  ;;  %v13419_v52 = vcombine.high %v7749_v46, %v7753_v48  ;;  %v7801_v23 = vld [vmem:[%s15029_s14 + $0x878] sm:$0xff] }
 0x651   : > { %11186 = vmatpush1.bf16.msra.mxu1 %v13362_v55  ;;  %11023 = vmatprep.subr.bf16.mxu0 %v13369_v56  ;;  %v7756_v55 = vld [vmem:[%s15029_s14 + $0x710] sm:$0xff] }
 0x652   : > { %11187 = vmatprep.subr.bf16.mxu1 %v13371_v58  ;;  %v7760_v56 = vld [vmem:[%s15029_s14 + $0x730] sm:$0xff]  ;;  %v7757_v58 = vld [vmem:[%s15029_s14 + $0x718] sm:$0xff] }
 0x653   : > { %v13425_v61 = vcombine.high %v7756_v55, %v7760_v56  ;;  %v13424_v15 = vcombine.low %v7756_v55, %v7760_v56  ;;  %v13426_v47 = vcombine.low %v7757_v58, %v7761_v59  ;;  %v7809_v55 = vld [vmem:[%s15029_s14 + $0x8b8] sm:$0xff] }
 0x654   : > { %11024 = vmatpush1.bf16.msra.mxu0 %v13368_v1  ;;  %v13427_v1 = vcombine.high %v7757_v58, %v7761_v59  ;;  %v13466_v58 = vcombine.low %v7797_v44, %v7801_v23 }
 0x655   : > { %11188 = vmatpush1.bf16.msra.mxu1 %v13370_v2  ;;  %11025 = vmatprep.subr.bf16.mxu0 %v13377_v8  ;;  %v7764_v2 = vld [vmem:[%s15029_s14 + $0x750] sm:$0xff] }
 0x656   : > { %11189 = vmatprep.subr.bf16.mxu1 %v13379_v10  ;;  %v7768_v8 = vld [vmem:[%s15029_s14 + $0x770] sm:$0xff]  ;;  %v7765_v10 = vld [vmem:[%s15029_s14 + $0x758] sm:$0xff] }
 0x657   : > { %v13433_v13 = vcombine.high %v7764_v2, %v7768_v8  ;;  %v13432_v20 = vcombine.low %v7764_v2, %v7768_v8  ;;  %v13434_v21 = vcombine.low %v7765_v10, %v7769_v11 }
 0x658   : > { %11026 = vmatpush1.bf16.msra.mxu0 %v13376_v34  ;;  %v13435_v34 = vcombine.high %v7765_v10, %v7769_v11  ;;  %v7820_v11 = vld [vmem:[%s15029_s14 + $0x910] sm:$0xff] }
 0x659   : > { %11190 = vmatpush1.bf16.msra.mxu1 %v13378_v12  ;;  %11027 = vmatprep.subr.bf16.mxu0 %v13385_v16  ;;  %v7772_v12 = vld [vmem:[%s15029_s14 + $0x790] sm:$0xff] }
 0x65a   : > { %11191 = vmatprep.subr.bf16.mxu1 %v13387_v18  ;;  %v7776_v16 = vld [vmem:[%s15029_s14 + $0x7b0] sm:$0xff]  ;;  %v7773_v18 = vld [vmem:[%s15029_s14 + $0x798] sm:$0xff] }
 0x65b   : > { %v13441_v24 = vcombine.high %v7772_v12, %v7776_v16  ;;  %v13440_v9 = vcombine.low %v7772_v12, %v7776_v16  ;;  %v13442_v26 = vcombine.low %v7773_v18, %v7777_v19 }
 0x65c   : > { %11028 = vmatpush1.bf16.msra.mxu0 %v13384_v5  ;;  %v13443_v5 = vcombine.high %v7773_v18, %v7777_v19  ;;  %v7828_v19 = vld [vmem:[%s15029_s14 + $0x950] sm:$0xff] }
 0x65d   : > { %11192 = vmatpush1.bf16.msra.mxu1 %v13386_v22  ;;  %11029 = vmatprep.subr.bf16.mxu0 %v13393_v53  ;;  %v7780_v22 = vld [vmem:[%s15029_s14 + $0x7d0] sm:$0xff] }
 0x65e   : > { %11193 = vmatprep.subr.bf16.mxu1 %v13395_v33  ;;  %v7784_v53 = vld [vmem:[%s15029_s14 + $0x7f0] sm:$0xff]  ;;  %v7781_v33 = vld [vmem:[%s15029_s14 + $0x7d8] sm:$0xff] }
 0x65f   : > { %v13449_v27 = vcombine.high %v7780_v22, %v7784_v53  ;;  %v13448_v25 = vcombine.low %v7780_v22, %v7784_v53  ;;  %v13450_v7 = vcombine.low %v7781_v33, %v7785_v42 }
 0x660   : > { %11030 = vmatpush1.bf16.msra.mxu0 %v13392_v36  ;;  %v13451_v36 = vcombine.high %v7781_v33, %v7785_v42  ;;  %v7836_v42 = vld [vmem:[%s15029_s14 + $0x990] sm:$0xff] }
 0x661   : > { %11194 = vmatpush1.bf16.msra.mxu1 %v13394_v0  ;;  %11031 = vmatprep.subr.bf16.mxu0 %v13401_v29  ;;  %v7788_v0 = vld [vmem:[%s15029_s14 + $0x810] sm:$0xff] }
 0x662   : > { %11195 = vmatprep.subr.bf16.mxu1 %v13403_v35  ;;  %v7792_v29 = vld [vmem:[%s15029_s14 + $0x830] sm:$0xff]  ;;  %v7789_v35 = vld [vmem:[%s15029_s14 + $0x818] sm:$0xff] }
 0x663   : > { %v13457_v39 = vcombine.high %v7788_v0, %v7792_v29  ;;  %v13458_v46 = vcombine.low %v7789_v35, %v7793_v37 }
 0x664   : > { %11032 = vmatpush1.bf16.msra.mxu0 %v13400_v54  ;;  %v13459_v54 = vcombine.high %v7789_v35, %v7793_v37  ;;  %v7844_v37 = vld [vmem:[%s15029_s14 + $0x9d0] sm:$0xff] }
 0x665   : > { %11196 = vmatpush1.bf16.msra.mxu1 %v13402_v43  ;;  %11033 = vmatprep.subr.bf16.mxu0 %v13409_v41  ;;  %v7796_v43 = vld [vmem:[%s15029_s14 + $0x850] sm:$0xff] }
 0x666   : > { %11197 = vmatprep.subr.bf16.mxu1 %v13411_v60  ;;  %v7800_v41 = vld [vmem:[%s15029_s14 + $0x870] sm:$0xff]  ;;  %v13456_v60 = vcombine.low %v7788_v0, %v7792_v29 }
 0x667   : > { %v13465_v48 = vcombine.high %v7796_v43, %v7800_v41  ;;  %v13464_v56 = vcombine.low %v7796_v43, %v7800_v41 }
 0x668   : > { %11034 = vmatpush1.bf16.msra.mxu0 %v13408_v49  ;;  %v7804_v49 = vld [vmem:[%s15029_s14 + $0x890] sm:$0xff] }
 0x669   : > { %11198 = vmatpush1.bf16.msra.mxu1 %v13410_v50  ;;  %11035 = vmatprep.subr.bf16.mxu0 %v13417_v14  ;;  %v7808_v50 = vld [vmem:[%s15029_s14 + $0x8b0] sm:$0xff]  ;;  %v13467_v14 = vcombine.high %v7797_v44, %v7801_v23 }
 0x66a   : > { %11199 = vmatprep.subr.bf16.mxu1 %v13419_v52  ;;  %v7805_v52 = vld [vmem:[%s15029_s14 + $0x898] sm:$0xff]  ;;  %v13473_v59 = vcombine.high %v7804_v49, %v7808_v50  ;;  %v13472_v2 = vcombine.low %v7804_v49, %v7808_v50  ;;  %v7852_v44 = vld [vmem:[%s15029_s14 + $0xa10] sm:$0xff] }
 0x66b   : > { %v13474_v8 = vcombine.low %v7805_v52, %v7809_v55  ;;  %v7856_v23 = vld [vmem:[%s15029_s14 + $0xa30] sm:$0xff] }
 0x66c   : > { %11036 = vmatpush1.bf16.msra.mxu0 %v13416_v62  ;;  %v13475_v62 = vcombine.high %v7805_v52, %v7809_v55  ;;  %v7860_v55 = vld [vmem:[%s15029_s14 + $0xa50] sm:$0xff] }
 0x66d   : > { %11200 = vmatpush1.bf16.msra.mxu1 %v13418_v63  ;;  %11037 = vmatprep.subr.bf16.mxu0 %v13425_v61  ;;  %v7812_v63 = vld [vmem:[%s15029_s14 + $0x8d0] sm:$0xff] }
 0x66e   : > { %11201 = vmatprep.subr.bf16.mxu1 %v13427_v1  ;;  %v7816_v61 = vld [vmem:[%s15029_s14 + $0x8f0] sm:$0xff]  ;;  %v7813_v1 = vld [vmem:[%s15029_s14 + $0x8d8] sm:$0xff] }
 0x66f   : > { %v13481_v10 = vcombine.high %v7812_v63, %v7816_v61 }
 0x670   : > { %11038 = vmatpush1.bf16.msra.mxu0 %v13424_v15  ;;  %v7824_v15 = vld [vmem:[%s15029_s14 + $0x930] sm:$0xff] }
 0x671   : > { %11202 = vmatpush1.bf16.msra.mxu1 %v13426_v47  ;;  %11039 = vmatprep.subr.bf16.mxu0 %v13433_v13  ;;  %v7821_v47 = vld [vmem:[%s15029_s14 + $0x918] sm:$0xff]  ;;  %v13489_v16 = vcombine.high %v7820_v11, %v7824_v15 }
 0x672   : > { %11203 = vmatprep.subr.bf16.mxu1 %v13435_v34  ;;  %v7825_v13 = vld [vmem:[%s15029_s14 + $0x938] sm:$0xff]  ;;  %v13480_v34 = vcombine.low %v7812_v63, %v7816_v61 }
 0x673   : > { %v13491_v18 = vcombine.high %v7821_v47, %v7825_v13  ;;  %v13490_v22 = vcombine.low %v7821_v47, %v7825_v13  ;;  %v7876_v13 = vld [vmem:[%s15029_s14 + $0xad0] sm:$0xff] }
 0x674   : > { %11040 = vmatpush1.bf16.msra.mxu0 %v13432_v20  ;;  %v7832_v20 = vld [vmem:[%s15029_s14 + $0x970] sm:$0xff] }
 0x675   : > { %11204 = vmatpush1.bf16.msra.mxu1 %v13434_v21  ;;  %11041 = vmatprep.subr.bf16.mxu0 %v13441_v24  ;;  %v7829_v21 = vld [vmem:[%s15029_s14 + $0x958] sm:$0xff]  ;;  %v13497_v53 = vcombine.high %v7828_v19, %v7832_v20 }
 0x676   : > { %11205 = vmatprep.subr.bf16.mxu1 %v13443_v5  ;;  %v7833_v24 = vld [vmem:[%s15029_s14 + $0x978] sm:$0xff]  ;;  %v13488_v5 = vcombine.low %v7820_v11, %v7824_v15 }
 0x677   : > { %v13499_v33 = vcombine.high %v7829_v21, %v7833_v24  ;;  %v13498_v0 = vcombine.low %v7829_v21, %v7833_v24  ;;  %v7884_v24 = vld [vmem:[%s15029_s14 + $0xb10] sm:$0xff] }
 0x678   : > { %11042 = vmatpush1.bf16.msra.mxu0 %v13440_v9  ;;  %v7840_v9 = vld [vmem:[%s15029_s14 + $0x9b0] sm:$0xff] }
 0x679   : > { %11206 = vmatpush1.bf16.msra.mxu1 %v13442_v26  ;;  %11043 = vmatprep.subr.bf16.mxu0 %v13449_v27  ;;  %v7837_v26 = vld [vmem:[%s15029_s14 + $0x998] sm:$0xff]  ;;  %v13505_v29 = vcombine.high %v7836_v42, %v7840_v9 }
 0x67a   : > { %11207 = vmatprep.subr.bf16.mxu1 %v13451_v36  ;;  %v7841_v27 = vld [vmem:[%s15029_s14 + $0x9b8] sm:$0xff]  ;;  %v13496_v36 = vcombine.low %v7828_v19, %v7832_v20 }
 0x67b   : > { %v13507_v35 = vcombine.high %v7837_v26, %v7841_v27  ;;  %v13506_v43 = vcombine.low %v7837_v26, %v7841_v27  ;;  %v7892_v27 = vld [vmem:[%s15029_s14 + $0xb50] sm:$0xff] }
 0x67c   : > { %11044 = vmatpush1.bf16.msra.mxu0 %v13448_v25  ;;  %v7848_v25 = vld [vmem:[%s15029_s14 + $0x9f0] sm:$0xff] }
 0x67d   : > { %11208 = vmatpush1.bf16.msra.mxu1 %v13450_v7  ;;  %11054 = vmatprep.subr.bf16.mxu0 %v13457_v39  ;;  %v7845_v7 = vld [vmem:[%s15029_s14 + $0x9d8] sm:$0xff]  ;;  %v13513_v41 = vcombine.high %v7844_v37, %v7848_v25  ;;  %v13512_v49 = vcombine.low %v7844_v37, %v7848_v25 }
 0x67e   : > { %11218 = vmatprep.subr.bf16.mxu1 %v13459_v54  ;;  %v7849_v39 = vld [vmem:[%s15029_s14 + $0x9f8] sm:$0xff]  ;;  %v13504_v54 = vcombine.low %v7836_v42, %v7840_v9 }
 0x67f   : > { %11046 = vmatmul.mubr.bf16.vlgmr.msra.gmra.mrb[20].mxu0 %v16296_v45  ;;  %v13514_v50 = vcombine.low %v7845_v7, %v7849_v39 }
 0x680   : > { %11210 = vmatmul.mubr.bf16.vlgmr.msra.gmra.mrb[20].mxu1 %v16296_v45  ;;  %11055 = vmatpush1.bf16.msra.mxu0 %v13456_v60  ;;  %v7817_v45 = vld [vmem:[%s15029_s14 + $0x8f8] sm:$0xff]  ;;  %v13515_v60 = vcombine.high %v7845_v7, %v7849_v39  ;;  %v7900_v39 = vld [vmem:[%s15029_s14 + $0xb90] sm:$0xff] }
 0x681   : > { %11086 = vmatprep.mubr.bf16.mxu0 %v16376_v51  ;;  %11219 = vmatpush1.bf16.msra.mxu1 %v13458_v46  ;;  %v13482_v12 = vcombine.low %v7813_v1, %v7817_v45  ;;  %v7853_v46 = vld [vmem:[%s15029_s14 + $0xa18] sm:$0xff] }
 0x682   : > { %11250 = vmatprep.mubr.bf16.mxu1 %v16376_v51  ;;  %11056 = vmatprep.subr.bf16.mxu0 %v13465_v48  ;;  %v13483_v51 = vcombine.high %v7813_v1, %v7817_v45  ;;  %v7857_v48 = vld [vmem:[%s15029_s14 + $0xa38] sm:$0xff]  ;;  %v7868_v45 = vld [vmem:[%s15029_s14 + $0xa90] sm:$0xff] }
 0x683   : > { %11220 = vmatprep.subr.bf16.mxu1 %v13467_v14  ;;  %v13521_v14 = vcombine.high %v7852_v44, %v7856_v23  ;;  %v13523_v52 = vcombine.high %v7853_v46, %v7857_v48  ;;  %v13522_v63 = vcombine.low %v7853_v46, %v7857_v48  ;;  %v7908_v48 = vld [vmem:[%s15029_s14 + $0xbd0] sm:$0xff] }
 0x684   : > { %11057 = vmatpush1.bf16.msra.mxu0 %v13464_v56  ;;  %v7864_v56 = vld [vmem:[%s15029_s14 + $0xa70] sm:$0xff] }
 0x685   : > { %11221 = vmatpush1.bf16.msra.mxu1 %v13466_v58  ;;  %11058 = vmatprep.subr.bf16.mxu0 %v13473_v59  ;;  %v7861_v58 = vld [vmem:[%s15029_s14 + $0xa58] sm:$0xff]  ;;  %v13529_v61 = vcombine.high %v7860_v55, %v7864_v56 }
 0x686   : > { %11222 = vmatprep.subr.bf16.mxu1 %v13475_v62  ;;  %v7865_v59 = vld [vmem:[%s15029_s14 + $0xa78] sm:$0xff]  ;;  %v13520_v62 = vcombine.low %v7852_v44, %v7856_v23 }
 0x687   : > { %v13531_v1 = vcombine.high %v7861_v58, %v7865_v59  ;;  %v13530_v11 = vcombine.low %v7861_v58, %v7865_v59  ;;  %v7916_v59 = vld [vmem:[%s15029_s14 + $0xc10] sm:$0xff] }
 0x688   : > { %11059 = vmatpush1.bf16.msra.mxu0 %v13472_v2  ;;  %v7872_v2 = vld [vmem:[%s15029_s14 + $0xab0] sm:$0xff] }
 0x689   : > { %11223 = vmatpush1.bf16.msra.mxu1 %v13474_v8  ;;  %11060 = vmatprep.subr.bf16.mxu0 %v13481_v10  ;;  %v7869_v8 = vld [vmem:[%s15029_s14 + $0xa98] sm:$0xff]  ;;  %v13537_v15 = vcombine.high %v7868_v45, %v7872_v2 }
 0x68a   : > { %11224 = vmatprep.subr.bf16.mxu1 %v13483_v51  ;;  %v7873_v10 = vld [vmem:[%s15029_s14 + $0xab8] sm:$0xff]  ;;  %v13528_v51 = vcombine.low %v7860_v55, %v7864_v56 }
 0x68b   : > { %v13539_v47 = vcombine.high %v7869_v8, %v7873_v10  ;;  %v13538_v19 = vcombine.low %v7869_v8, %v7873_v10  ;;  %v7924_v10 = vld [vmem:[%s15029_s14 + $0xc50] sm:$0xff] }
 0x68c   : > { %11061 = vmatpush1.bf16.msra.mxu0 %v13480_v34  ;;  %v7880_v34 = vld [vmem:[%s15029_s14 + $0xaf0] sm:$0xff] }
 0x68d   : > { %11225 = vmatpush1.bf16.msra.mxu1 %v13482_v12  ;;  %11062 = vmatprep.subr.bf16.mxu0 %v13489_v16  ;;  %v7877_v12 = vld [vmem:[%s15029_s14 + $0xad8] sm:$0xff]  ;;  %v13545_v20 = vcombine.high %v7876_v13, %v7880_v34 }
 0x68e   : > { %11226 = vmatprep.subr.bf16.mxu1 %v13491_v18  ;;  %v7881_v16 = vld [vmem:[%s15029_s14 + $0xaf8] sm:$0xff]  ;;  %v13536_v18 = vcombine.low %v7868_v45, %v7872_v2 }
 0x68f   : > { %v13547_v21 = vcombine.high %v7877_v12, %v7881_v16  ;;  %v13546_v42 = vcombine.low %v7877_v12, %v7881_v16  ;;  %v7932_v12 = vld [vmem:[%s15029_s14 + $0xc90] sm:$0xff] }
 0x690   : > { %11063 = vmatpush1.bf16.msra.mxu0 %v13488_v5  ;;  %v7888_v5 = vld [vmem:[%s15029_s14 + $0xb30] sm:$0xff] }
 0x691   : > { %11227 = vmatpush1.bf16.msra.mxu1 %v13490_v22  ;;  %11064 = vmatprep.subr.bf16.mxu0 %v13497_v53  ;;  %v7885_v22 = vld [vmem:[%s15029_s14 + $0xb18] sm:$0xff]  ;;  %v13553_v9 = vcombine.high %v7884_v24, %v7888_v5  ;;  %v7936_v16 = vld [vmem:[%s15029_s14 + $0xcb0] sm:$0xff] }
 0x692   : > { %11228 = vmatprep.subr.bf16.mxu1 %v13499_v33  ;;  %v7889_v53 = vld [vmem:[%s15029_s14 + $0xb38] sm:$0xff]  ;;  %v13544_v33 = vcombine.low %v7876_v13, %v7880_v34 }
 0x693   : > { %v13555_v26 = vcombine.high %v7885_v22, %v7889_v53  ;;  %v13554_v37 = vcombine.low %v7885_v22, %v7889_v53  ;;  %v7940_v53 = vld [vmem:[%s15029_s14 + $0xcd0] sm:$0xff] }
 0x694   : > { %11065 = vmatpush1.bf16.msra.mxu0 %v13496_v36  ;;  %v7896_v36 = vld [vmem:[%s15029_s14 + $0xb70] sm:$0xff] }
 0x695   : > { %11229 = vmatpush1.bf16.msra.mxu1 %v13498_v0  ;;  %11066 = vmatprep.subr.bf16.mxu0 %v13505_v29  ;;  %v7893_v0 = vld [vmem:[%s15029_s14 + $0xb58] sm:$0xff]  ;;  %v13561_v25 = vcombine.high %v7892_v27, %v7896_v36 }
 0x696   : > { %11230 = vmatprep.subr.bf16.mxu1 %v13507_v35  ;;  %v7897_v29 = vld [vmem:[%s15029_s14 + $0xb78] sm:$0xff]  ;;  %v13552_v35 = vcombine.low %v7884_v24, %v7888_v5  ;;  %v13601_v5 = vcombine.high %v7932_v12, %v7936_v16 }
 0x697   : > { %v13563_v7 = vcombine.high %v7893_v0, %v7897_v29  ;;  %v13562_v44 = vcombine.low %v7893_v0, %v7897_v29  ;;  %v7952_v0 = vld [vmem:[%s15029_s14 + $0xd30] sm:$0xff]  ;;  %v7949_v29 = vld [vmem:[%s15029_s14 + $0xd18] sm:$0xff] }
 0x698   : > { %11067 = vmatpush1.bf16.msra.mxu0 %v13504_v54  ;;  %v7904_v54 = vld [vmem:[%s15029_s14 + $0xbb0] sm:$0xff] }
 0x699   : > { %11231 = vmatpush1.bf16.msra.mxu1 %v13506_v43  ;;  %11068 = vmatprep.subr.bf16.mxu0 %v13513_v41  ;;  %v7901_v43 = vld [vmem:[%s15029_s14 + $0xb98] sm:$0xff]  ;;  %v13569_v23 = vcombine.high %v7900_v39, %v7904_v54 }
 0x69a   : > { %11232 = vmatprep.subr.bf16.mxu1 %v13515_v60  ;;  %v7905_v41 = vld [vmem:[%s15029_s14 + $0xbb8] sm:$0xff]  ;;  %v13560_v60 = vcombine.low %v7892_v27, %v7896_v36  ;;  %v7948_v36 = vld [vmem:[%s15029_s14 + $0xd10] sm:$0xff] }
 0x69b   : > { %v13571_v46 = vcombine.high %v7901_v43, %v7905_v41  ;;  %v13570_v55 = vcombine.low %v7901_v43, %v7905_v41  ;;  %v7960_v43 = vld [vmem:[%s15029_s14 + $0xd70] sm:$0xff]  ;;  %v7957_v41 = vld [vmem:[%s15029_s14 + $0xd58] sm:$0xff] }
 0x69c   : > { %11069 = vmatpush1.bf16.msra.mxu0 %v13512_v49  ;;  %v7912_v49 = vld [vmem:[%s15029_s14 + $0xbf0] sm:$0xff] }
 0x69d   : > { %11233 = vmatpush1.bf16.msra.mxu1 %v13514_v50  ;;  %11070 = vmatprep.subr.bf16.mxu0 %v13521_v14  ;;  %v7909_v50 = vld [vmem:[%s15029_s14 + $0xbd8] sm:$0xff]  ;;  %v13577_v56 = vcombine.high %v7908_v48, %v7912_v49 }
 0x69e   : > { %11234 = vmatprep.subr.bf16.mxu1 %v13523_v52  ;;  %v7913_v14 = vld [vmem:[%s15029_s14 + $0xbf8] sm:$0xff]  ;;  %v13568_v52 = vcombine.low %v7900_v39, %v7904_v54  ;;  %v7956_v54 = vld [vmem:[%s15029_s14 + $0xd50] sm:$0xff] }
 0x69f   : > { %v13579_v58 = vcombine.high %v7909_v50, %v7913_v14  ;;  %v13578_v45 = vcombine.low %v7909_v50, %v7913_v14  ;;  %v7968_v50 = vld [vmem:[%s15029_s14 + $0xdb0] sm:$0xff]  ;;  %v7965_v14 = vld [vmem:[%s15029_s14 + $0xd98] sm:$0xff] }
 0x6a0   : > { %11071 = vmatpush1.bf16.msra.mxu0 %v13520_v62  ;;  %v7920_v62 = vld [vmem:[%s15029_s14 + $0xc30] sm:$0xff] }
 0x6a1   : > { %11235 = vmatpush1.bf16.msra.mxu1 %v13522_v63  ;;  %11072 = vmatprep.subr.bf16.mxu0 %v13529_v61  ;;  %v7917_v63 = vld [vmem:[%s15029_s14 + $0xc18] sm:$0xff]  ;;  %v13585_v2 = vcombine.high %v7916_v59, %v7920_v62 }
 0x6a2   : > { %11236 = vmatprep.subr.bf16.mxu1 %v13531_v1  ;;  %v7921_v61 = vld [vmem:[%s15029_s14 + $0xc38] sm:$0xff]  ;;  %v13576_v1 = vcombine.low %v7908_v48, %v7912_v49  ;;  %v7964_v49 = vld [vmem:[%s15029_s14 + $0xd90] sm:$0xff] }
 0x6a3   : > { %v13587_v8 = vcombine.high %v7917_v63, %v7921_v61  ;;  %v13586_v13 = vcombine.low %v7917_v63, %v7921_v61  ;;  %v7972_v61 = vld [vmem:[%s15029_s14 + $0xdd0] sm:$0xff] }
 0x6a4   : > { %11073 = vmatpush1.bf16.msra.mxu0 %v13528_v51  ;;  %v7928_v51 = vld [vmem:[%s15029_s14 + $0xc70] sm:$0xff] }
 0x6a5   : > { %11237 = vmatpush1.bf16.msra.mxu1 %v13530_v11  ;;  %11074 = vmatprep.subr.bf16.mxu0 %v13537_v15  ;;  %v13584_v11 = vcombine.low %v7916_v59, %v7920_v62  ;;  %v7925_v15 = vld [vmem:[%s15029_s14 + $0xc58] sm:$0xff]  ;;  %v13593_v34 = vcombine.high %v7924_v10, %v7928_v51 }
 0x6a6   : > { %11238 = vmatprep.subr.bf16.mxu1 %v13539_v47  ;;  %v7929_v47 = vld [vmem:[%s15029_s14 + $0xc78] sm:$0xff] }
 0x6a7   : > { %v13594_v24 = vcombine.low %v7925_v15, %v7929_v47 }
 0x6a8   : > { %11075 = vmatpush1.bf16.msra.mxu0 %v13536_v18  ;;  %v13595_v18 = vcombine.high %v7925_v15, %v7929_v47  ;;  %v13632_v15 = vcombine.low %v7964_v49, %v7968_v50 }
 0x6a9   : > { %11239 = vmatpush1.bf16.msra.mxu1 %v13538_v19  ;;  %11076 = vmatprep.subr.bf16.mxu0 %v13545_v20  ;;  %v7933_v19 = vld [vmem:[%s15029_s14 + $0xc98] sm:$0xff] }
 0x6aa   : > { %11240 = vmatprep.subr.bf16.mxu1 %v13547_v21  ;;  %v7937_v20 = vld [vmem:[%s15029_s14 + $0xcb8] sm:$0xff]  ;;  %v13592_v21 = vcombine.low %v7924_v10, %v7928_v51 }
 0x6ab   : > { %v13603_v22 = vcombine.high %v7933_v19, %v7937_v20  ;;  %v7977_v10 = vld [vmem:[%s15029_s14 + $0xdf8] sm:$0xff] }
 0x6ac   : > { %11077 = vmatpush1.bf16.msra.mxu0 %v13544_v33  ;;  %v7944_v33 = vld [vmem:[%s15029_s14 + $0xcf0] sm:$0xff] }
 0x6ad   : > { %11241 = vmatpush1.bf16.msra.mxu1 %v13546_v42  ;;  %11078 = vmatprep.subr.bf16.mxu0 %v13553_v9  ;;  %v7941_v42 = vld [vmem:[%s15029_s14 + $0xcd8] sm:$0xff]  ;;  %v13600_v9 = vcombine.low %v7932_v12, %v7936_v16  ;;  %v13609_v27 = vcombine.high %v7940_v53, %v7944_v33 }
 0x6ae   : > { %11242 = vmatprep.subr.bf16.mxu1 %v13555_v26  ;;  %v13602_v26 = vcombine.low %v7933_v19, %v7937_v20  ;;  %v7984_v19 = vld [vmem:[%s15029_s14 + $0xe30] sm:$0xff]  ;;  %v7981_v20 = vld [vmem:[%s15029_s14 + $0xe18] sm:$0xff] }
 0x6b0   : > { %11079 = vmatpush1.bf16.msra.mxu0 %v13552_v35  ;;  %v7953_v35 = vld [vmem:[%s15029_s14 + $0xd38] sm:$0xff] }
 0x6b1   : > { %11243 = vmatpush1.bf16.msra.mxu1 %v13554_v37  ;;  %11080 = vmatprep.subr.bf16.mxu0 %v13561_v25  ;;  %v13608_v37 = vcombine.low %v7940_v53, %v7944_v33  ;;  %v13619_v39 = vcombine.high %v7949_v29, %v7953_v35  ;;  %v7988_v33 = vld [vmem:[%s15029_s14 + $0xe50] sm:$0xff] }
 0x6b2   : > { %11244 = vmatprep.subr.bf16.mxu1 %v13563_v7  ;;  %v13617_v7 = vcombine.high %v7948_v36, %v7952_v0 }
 0x6b4   : > { %11081 = vmatpush1.bf16.msra.mxu0 %v13560_v60  ;;  %v7961_v60 = vld [vmem:[%s15029_s14 + $0xd78] sm:$0xff] }
 0x6b5   : > { %11245 = vmatpush1.bf16.msra.mxu1 %v13562_v44  ;;  %11082 = vmatprep.subr.bf16.mxu0 %v13569_v23  ;;  %v13616_v44 = vcombine.low %v7948_v36, %v7952_v0  ;;  %v13618_v23 = vcombine.low %v7949_v29, %v7953_v35  ;;  %v13627_v48 = vcombine.high %v7957_v41, %v7961_v60  ;;  %v7996_v0 = vld [vmem:[%s15029_s14 + $0xe90] sm:$0xff]  ;;  %v7997_v35 = vld [vmem:[%s15029_s14 + $0xe98] sm:$0xff] }
 0x6b6   : > { %11246 = vmatprep.subr.bf16.mxu1 %v13571_v46  ;;  %v13625_v46 = vcombine.high %v7956_v54, %v7960_v43  ;;  %v8000_v29 = vld [vmem:[%s15029_s14 + $0xeb0] sm:$0xff] }
 0x6b8   : > { %11083 = vmatpush1.bf16.msra.mxu0 %v13568_v52  ;;  %v7969_v52 = vld [vmem:[%s15029_s14 + $0xdb8] sm:$0xff] }
 0x6b9   : > { %11247 = vmatpush1.bf16.msra.mxu1 %v13570_v55  ;;  %11084 = vmatprep.subr.bf16.mxu0 %v13577_v56  ;;  %v13624_v55 = vcombine.low %v7956_v54, %v7960_v43  ;;  %v13626_v56 = vcombine.low %v7957_v41, %v7961_v60  ;;  %v13635_v63 = vcombine.high %v7965_v14, %v7969_v52  ;;  %v8004_v43 = vld [vmem:[%s15029_s14 + $0xed0] sm:$0xff]  ;;  %v8005_v60 = vld [vmem:[%s15029_s14 + $0xed8] sm:$0xff] }
 0x6ba   : > { %11248 = vmatprep.subr.bf16.mxu1 %v13579_v58  ;;  %v13633_v58 = vcombine.high %v7964_v49, %v7968_v50  ;;  %v8008_v41 = vld [vmem:[%s15029_s14 + $0xef0] sm:$0xff] }
 0x6bb   : > { %v8012_v50 = vld [vmem:[%s15029_s14 + $0xf10] sm:$0xff] }
 0x6bc   : > { %11085 = vmatpush1.bf16.msra.mxu0 %v13576_v1  ;;  %v7976_v1 = vld [vmem:[%s15029_s14 + $0xdf0] sm:$0xff] }
 0x6bd   : > { %11249 = vmatpush1.bf16.msra.mxu1 %v13578_v45  ;;  %11095 = vmatprep.subr.bf16.mxu0 %v13585_v2  ;;  %v13641_v12 = vcombine.high %v7972_v61, %v7976_v1 }
 0x6be   : > { %11259 = vmatprep.subr.bf16.mxu1 %v13587_v8  ;;  %v7973_v8 = vld [vmem:[%s15029_s14 + $0xdd8] sm:$0xff] }
 0x6bf   : > { %11087 = vmatmul.mubr.bf16.vlgmr.msra.gmra.mrb[20].mxu0 %v16378_v6  ;;  %v13643_v16 = vcombine.high %v7973_v8, %v7977_v10 }
 0x6c0   : > { %11251 = vmatmul.mubr.bf16.vlgmr.msra.gmra.mrb[20].mxu1 %v16378_v6  ;;  %11096 = vmatpush1.bf16.msra.mxu0 %v13584_v11  ;;  %v7945_v6 = vld [vmem:[%s15029_s14 + $0xcf8] sm:$0xff] }
 0x6c1   : > { %11127 = vmatprep.mubr.bf16.mxu0 %v16386_v3  ;;  %11260 = vmatpush1.bf16.msra.mxu1 %v13586_v13  ;;  %v13610_v25 = vcombine.low %v7941_v42, %v7945_v6 }
 0x6c2   : > { %11291 = vmatprep.mubr.bf16.mxu1 %v16386_v3  ;;  %11097 = vmatprep.subr.bf16.mxu0 %v13593_v34  ;;  %v13611_v3 = vcombine.high %v7941_v42, %v7945_v6  ;;  %v13634_v34 = vcombine.low %v7965_v14, %v7969_v52  ;;  %v7992_v42 = vld [vmem:[%s15029_s14 + $0xe70] sm:$0xff]  ;;  %v7989_v6 = vld [vmem:[%s15029_s14 + $0xe58] sm:$0xff] }
 0x6c3   : > { %11261 = vmatprep.subr.bf16.mxu1 %v13595_v18  ;;  %v7980_v18 = vld [vmem:[%s15029_s14 + $0xe10] sm:$0xff]  ;;  %v8013_v52 = vld [vmem:[%s15029_s14 + $0xf18] sm:$0xff] }
 0x6c4   : > { %11098 = vmatpush1.bf16.msra.mxu0 %v13592_v21  ;;  %v7985_v21 = vld [vmem:[%s15029_s14 + $0xe38] sm:$0xff]  ;;  %v8016_v14 = vld [vmem:[%s15029_s14 + $0xf30] sm:$0xff] }
 0x6c5   : > { %11262 = vmatpush1.bf16.msra.mxu1 %v13594_v24  ;;  %11099 = vmatprep.subr.bf16.mxu0 %v13601_v5  ;;  %v13640_v24 = vcombine.low %v7972_v61, %v7976_v1  ;;  %v13642_v5 = vcombine.low %v7973_v8, %v7977_v10  ;;  %v13651_v53 = vcombine.high %v7981_v20, %v7985_v21  ;;  %v8020_v1 = vld [vmem:[%s15029_s14 + $0xf50] sm:$0xff]  ;;  %v8021_v10 = vld [vmem:[%s15029_s14 + $0xf58] sm:$0xff] }
 0x6c6   : > { %11263 = vmatprep.subr.bf16.mxu1 %v13603_v22  ;;  %v13649_v22 = vcombine.high %v7980_v18, %v7984_v19  ;;  %v8024_v8 = vld [vmem:[%s15029_s14 + $0xf70] sm:$0xff] }
 0x6c8   : > { %11100 = vmatpush1.bf16.msra.mxu0 %v13600_v9  ;;  %v7993_v9 = vld [vmem:[%s15029_s14 + $0xe78] sm:$0xff] }
 0x6c9   : > { %11264 = vmatpush1.bf16.msra.mxu1 %v13602_v26  ;;  %11101 = vmatprep.subr.bf16.mxu0 %v13609_v27  ;;  %v13648_v26 = vcombine.low %v7980_v18, %v7984_v19  ;;  %v13650_v27 = vcombine.low %v7981_v20, %v7985_v21  ;;  %v13659_v36 = vcombine.high %v7989_v6, %v7993_v9  ;;  %v8033_v18 = vld [vmem:[%s15029_s14 + $0xfb8] sm:$0xff]  ;;  %v16727_v19 = vld [vmem:[%s554_s22] sm:$0xff] }
 0x6ca   : > { %11265 = vmatprep.subr.bf16.mxu1 %v13611_v3  ;;  %v13657_v3 = vcombine.high %v7988_v33, %v7992_v42  ;;  %v13688_v20 = vcombine.low %v8020_v1, %v8024_v8 }
 0x6cc   : > { %11102 = vmatpush1.bf16.msra.mxu0 %v13608_v37  ;;  %v8001_v37 = vld [vmem:[%s15029_s14 + $0xeb8] sm:$0xff] }
 0x6cd   : > { %11266 = vmatpush1.bf16.msra.mxu1 %v13610_v25  ;;  %11103 = vmatprep.subr.bf16.mxu0 %v13617_v7  ;;  %v13656_v25 = vcombine.low %v7988_v33, %v7992_v42  ;;  %v13658_v7 = vcombine.low %v7989_v6, %v7993_v9  ;;  %v13667_v54 = vcombine.high %v7997_v35, %v8001_v37  ;;  %v8037_v42 = vld [vmem:[%s15029_s14 + $0xfd8] sm:$0xff] }
 0x6ce   : > { %11267 = vmatprep.subr.bf16.mxu1 %v13619_v39  ;;  %v13665_v39 = vcombine.high %v7996_v0, %v8000_v29  ;;  %v8051_v33 = vrot.slane %v16727_v19, %v15517_v28  ;;  %v8041_v6 = vld [vmem:[%s15029_s14 + $0xff8] sm:$0xff]  ;;  %v8059_v9 = vrot.slane %v16727_v19, %v15585_v17 }
 0x6cf   : > { %v13706_v17 = vcombine.low %v8037_v42, %v8041_v6 }
 0x6d0   : > { %11104 = vmatpush1.bf16.msra.mxu0 %v13616_v44  ;;  %v8009_v44 = vld [vmem:[%s15029_s14 + $0xef8] sm:$0xff] }
 0x6d1   : > { %11268 = vmatpush1.bf16.msra.mxu1 %v13618_v23  ;;  %11105 = vmatprep.subr.bf16.mxu0 %v13625_v46  ;;  %v13664_v23 = vcombine.low %v7996_v0, %v8000_v29  ;;  %v13666_v46 = vcombine.low %v7997_v35, %v8001_v37  ;;  %v13675_v49 = vcombine.high %v8005_v60, %v8009_v44  ;;  %v14143_v35 = vld [vmem:[%s15037_s1 + $0x40] sm:$0xff]  }
 0x6d2   : > { %v16685_v59 = vpop.f32.mrb[16].mxu0  ;;  %v16687_v62 = vpop.f32.mrb[16].mxu1  ;;  %11269 = vmatprep.subr.bf16.mxu1 %v13627_v48  ;;  %v13673_v48 = vcombine.high %v8004_v43, %v8008_v41  ;;  %v14144_v37 = vld [vmem:[%s15037_s1 + $0xc0] sm:$0xff]  }
 0x6d3   : > { %v16691_v45 = vpop.f32.mrb[17].mxu0  ;;  %v16693_v2 = vpop.f32.mrb[17].mxu1 }
 0x6d4   : > { %v10805_v51 = vpop.f32.mrb[18].mxu0  ;;  %v10969_v11 = vpop.f32.mrb[18].mxu1  ;;  %11106 = vmatpush1.bf16.msra.mxu0 %v13624_v55  ;;  %v8017_v55 = vld [vmem:[%s15029_s14 + $0xf38] sm:$0xff]  ;;  %v13888_v0 = vadd.f32 %v16691_v45, %v8051_v33  ;;  %v13890_v28 = vadd.f32 %v16693_v2, %v8059_v9  ;;  %v14146_v45 = vld [vmem:[%s15037_s1 + $0x80] sm:$0xff]  }
 0x6d5   : > { %11270 = vmatpush1.bf16.msra.mxu1 %v13626_v56  ;;  %v10806_v47 = vpop.f32.mrb[19].mxu0  ;;  %v10970_v13 = vpop.f32.mrb[19].mxu1  ;;  %11107 = vmatprep.subr.bf16.mxu0 %v13633_v58  ;;  %v13672_v56 = vcombine.low %v8004_v43, %v8008_v41  ;;  %v13674_v58 = vcombine.low %v8005_v60, %v8009_v44  ;;  %v13683_v61 = vcombine.high %v8013_v52, %v8017_v55  ;;  %v8025_v51 = vld [vmem:[%s15029_s14 + $0xf78] sm:$0xff] }
 0x6d6   : > { %11271 = vmatprep.subr.bf16.mxu1 %v13635_v63  ;;  %v13681_v63 = vcombine.high %v8012_v50, %v8016_v14  ;;  %v13680_v11 = vcombine.low %v8012_v50, %v8016_v14  ;;  %v13689_v47 = vcombine.high %v8020_v1, %v8024_v8  ;;  %v13691_v13 = vcombine.high %v8021_v10, %v8025_v51  ;;  %v14147_v2 = vld [vmem:[%s15037_s1 + $0x48] sm:$0xff]   ;;  %v14156_v50 = vld [vmem:[%s15037_s1 + $0xd8] sm:$0xff]  }
 0x6d7   : > { %v13690_v21 = vcombine.low %v8021_v10, %v8025_v51  ;;  %v14148_v43 = vld [vmem:[%s15037_s1 + $0xc8] sm:$0xff]   ;;  %v14157_v14 = vld [vmem:[%s15037_s1 + $0x18] sm:$0xff]   ;;  %v8047_v10 = vrot.slane %v16727_v19, %v15580_v57  ;;  %v14170_v57 = vld [vmem:[%s15037_s1 + $0xb0] sm:$0xff]  }
 0x6d8   : > { %11108 = vmatpush1.bf16.msra.mxu0 %v13632_v15  ;;  %v13682_v15 = vcombine.low %v8013_v52, %v8017_v55  ;;  %v14149_v60 = vld [vmem:[%s15037_s1 + $0x8] sm:$0xff]   ;;  %v14158_v52 = vld [vmem:[%s15037_s1 + $0x98] sm:$0xff]   ;;  %v14159_v55 = vld [vmem:[%s15037_s1 + $0x60] sm:$0xff]  }
 0x6d9   : > { %11272 = vmatpush1.bf16.msra.mxu1 %v13634_v34  ;;  %11109 = vmatprep.subr.bf16.mxu0 %v13641_v12  ;;  %v8028_v34 = vld [vmem:[%s15029_s14 + $0xf90] sm:$0xff]  ;;  %v14150_v44 = vld [vmem:[%s15037_s1 + $0x88] sm:$0xff]  }
 0x6da   : > { %11273 = vmatprep.subr.bf16.mxu1 %v13643_v16  ;;  %v8032_v12 = vld [vmem:[%s15029_s14 + $0xfb0] sm:$0xff]  ;;  %v8029_v16 = vld [vmem:[%s15029_s14 + $0xf98] sm:$0xff] }
 0x6db   : > { %v14164_v1 = vld [vmem:[%s15037_s1 + $0xe8] sm:$0xff]  }
 0x6dc   : > { %11110 = vmatpush1.bf16.msra.mxu0 %v13640_v24  ;;  %v13697_v24 = vcombine.high %v8028_v34, %v8032_v12  ;;  %v14165_v8 = vld [vmem:[%s15037_s1 + $0x28] sm:$0xff]  }
 0x6dd   : > { %11274 = vmatpush1.bf16.msra.mxu1 %v13642_v5  ;;  %11111 = vmatprep.subr.bf16.mxu0 %v13649_v22  ;;  %v13699_v5 = vcombine.high %v8029_v16, %v8033_v18  ;;  %v8036_v22 = vld [vmem:[%s15029_s14 + $0xfd0] sm:$0xff]  ;;  %v14166_v51 = vld [vmem:[%s15037_s1 + $0xa8] sm:$0xff]  }
 0x6de   : > { %11275 = vmatprep.subr.bf16.mxu1 %v13651_v53  ;;  %v8040_v53 = vld [vmem:[%s15029_s14 + $0xff0] sm:$0xff]  ;;  %v14179_v33 = vld [vmem:[%s15037_s1 + $0x148] sm:$0xff]  }
 0x6df   : > { %v13704_v29 = vcombine.low %v8036_v22, %v8040_v53  ;;  %v14181_v9 = vld [vmem:[%s15037_s1 + $0x108] sm:$0xff]  }
 0x6e0   : > { %11112 = vmatpush1.bf16.msra.mxu0 %v13648_v26  ;;  %v13696_v26 = vcombine.low %v8028_v34, %v8032_v12  ;;  %v13887_v34 = vadd.f32 %v16685_v59, %v8047_v10  ;;  %v14171_v12 = vld [vmem:[%s15037_s1 + $0x78] sm:$0xff]   ;;  %v14175_v59 = vld [vmem:[%s15037_s1 + $0x140] sm:$0xff]  }
 0x6e1   : > { %11276 = vmatpush1.bf16.msra.mxu1 %v13650_v27  ;;  %11113 = vmatprep.subr.bf16.mxu0 %v13657_v3  ;;  %v13698_v27 = vcombine.low %v8029_v16, %v8033_v18  ;;  %v13705_v3 = vcombine.high %v8036_v22, %v8040_v53  ;;  %v14172_v18 = vld [vmem:[%s15037_s1 + $0xf8] sm:$0xff]   ;;  %v14177_v22 = vld [vmem:[%s15037_s1 + $0x100] sm:$0xff]  }
 0x6e2   : > { %11277 = vmatprep.subr.bf16.mxu1 %v13659_v36  ;;  %v13707_v36 = vcombine.high %v8037_v42, %v8041_v6  ;;  %v14178_v53 = vld [vmem:[%s15037_s1 + $0x180] sm:$0xff]   ;;  %v14180_v6 = vld [vmem:[%s15037_s1 + $0x1c8] sm:$0xff]  }
 0x6e4   : > { %11114 = vmatpush1.bf16.msra.mxu0 %v13656_v25  ;;  %v11301_v25 = vmax.f32 %v13888_v0, 0.0  ;;  %v14186_v0 = vld [vmem:[%s15037_s1 + $0x190] sm:$0xff]  }
 0x6e5   : > { %11278 = vmatpush1.bf16.msra.mxu1 %v13658_v7  ;;  %11115 = vmatprep.subr.bf16.mxu0 %v13665_v39  ;;  %v11303_v7 = vmax.f32 %v13890_v28, 0.0  ;;  %v14145_v39 = vld [vmem:[%s15037_s1] sm:$0xff]   ;;  %v14187_v28 = vld [vmem:[%s15037_s1 + $0x158] sm:$0xff]  }
 0x6e6   : > { %11279 = vmatprep.subr.bf16.mxu1 %v13667_v54  ;;  %v11309_v54 = vpack.c.bf16 %v11301_v25, %v11301_v25  ;;  %v14192_v25 = vld [vmem:[%s15037_s1 + $0x1e0] sm:$0xff]  }
 0x6e7   : > { %v11311_v41 = vpack.c.bf16 %v11303_v7, %v11303_v7  ;;  %v14193_v7 = vld [vmem:[%s15037_s1 + $0x120] sm:$0xff]  }
 0x6e8   : > { %11116 = vmatpush1.bf16.msra.mxu0 %v13664_v23  ;;  %v14151_v23 = vld [vmem:[%s15037_s1 + $0x50] sm:$0xff]  }
 0x6e9   : > { %11280 = vmatpush1.bf16.msra.mxu1 %v13666_v46  ;;  %11117 = vmatprep.subr.bf16.mxu0 %v13673_v48  ;;  %v14152_v46 = vld [vmem:[%s15037_s1 + $0xd0] sm:$0xff]  }
 0x6ea   : > { %11281 = vmatprep.subr.bf16.mxu1 %v13675_v49  ;;  %v14153_v48 = vld [vmem:[%s15037_s1 + $0x10] sm:$0xff]   ;;  %v14155_v49 = vld [vmem:[%s15037_s1 + $0x58] sm:$0xff]  }
 0x6ec   : > { %11118 = vmatpush1.bf16.msra.mxu0 %v13672_v56  ;;  %v14160_v56 = vld [vmem:[%s15037_s1 + $0xe0] sm:$0xff]  }
 0x6ed   : > { %11282 = vmatpush1.bf16.msra.mxu1 %v13674_v58  ;;  %11119 = vmatprep.subr.bf16.mxu0 %v13681_v63  ;;  %v14161_v58 = vld [vmem:[%s15037_s1 + $0x20] sm:$0xff]  }
 0x6ee   : > { %11283 = vmatprep.subr.bf16.mxu1 %v13683_v61  ;;  %v14162_v63 = vld [vmem:[%s15037_s1 + $0xa0] sm:$0xff]   ;;  %v14163_v61 = vld [vmem:[%s15037_s1 + $0x68] sm:$0xff]  }
 0x6f0   : > { %11120 = vmatpush1.bf16.msra.mxu0 %v13680_v11  ;;  %v14167_v11 = vld [vmem:[%s15037_s1 + $0x70] sm:$0xff]  }
 0x6f1   : > { %11284 = vmatpush1.bf16.msra.mxu1 %v13682_v15  ;;  %11121 = vmatprep.subr.bf16.mxu0 %v13689_v47  ;;  %v8055_v15 = vrot.slane %v16727_v19, %v15664_v38  ;;  %v14168_v47 = vld [vmem:[%s15037_s1 + $0xf0] sm:$0xff]   ;;  %v14173_v38 = vld [vmem:[%s15037_s1 + $0x38] sm:$0xff]  }
 0x6f2   : > { %11285 = vmatprep.subr.bf16.mxu1 %v13691_v13  ;;  %v14169_v13 = vld [vmem:[%s15037_s1 + $0x30] sm:$0xff]  }
 0x6f3   : > { %v13889_v16 = vadd.f32 %v16687_v62, %v8055_v15 }
 0x6f4   : > { %11122 = vmatpush1.bf16.msra.mxu0 %v13688_v20  ;;  %v11300_v20 = vmax.f32 %v13887_v34, 0.0 }
 0x6f5   : > { %11286 = vmatpush1.bf16.msra.mxu1 %v13690_v21  ;;  %11123 = vmatprep.subr.bf16.mxu0 %v13697_v24  ;;  %v14174_v21 = vld [vmem:[%s15037_s1 + $0xb8] sm:$0xff]   ;;  %v11302_v24 = vmax.f32 %v13889_v16, 0.0 }
 0x6f6   : > { %11287 = vmatprep.subr.bf16.mxu1 %v13699_v5  ;;  %v14176_v5 = vld [vmem:[%s15037_s1 + $0x1c0] sm:$0xff]   ;;  %v11308_v62 = vpack.c.bf16 %v11300_v20, %v11300_v20 }
 0x6f7   : > { %v11310_v42 = vpack.c.bf16 %v11302_v24, %v11302_v24 }
 0x6f8   : > { %11124 = vmatpush1.bf16.msra.mxu0 %v13696_v26  ;;  %v14182_v26 = vld [vmem:[%s15037_s1 + $0x188] sm:$0xff]  }
 0x6f9   : > { %11288 = vmatpush1.bf16.msra.mxu1 %v13698_v27  ;;  %11125 = vmatprep.subr.bf16.mxu0 %v13705_v3  ;;  %v14183_v27 = vld [vmem:[%s15037_s1 + $0x150] sm:$0xff]  }
 0x6fa   : > { %11289 = vmatprep.subr.bf16.mxu1 %v13707_v36  ;;  %v14184_v3 = vld [vmem:[%s15037_s1 + $0x1d0] sm:$0xff]  }
 0x6fb   : > { %v14185_v36 = vld [vmem:[%s15037_s1 + $0x110] sm:$0xff]  }
 0x6fc   : > { %11126 = vmatpush1.bf16.msra.mxu0 %v13704_v29  ;;  %v14188_v29 = vld [vmem:[%s15037_s1 + $0x1d8] sm:$0xff]  }
 0x6fd   : > { %11290 = vmatpush1.bf16.msra.mxu1 %v13706_v17  ;;  %13783 = vmatprep.subr.bf16.mxu0 %v14143_v35  ;;  %v14189_v17 = vld [vmem:[%s15037_s1 + $0x118] sm:$0xff]  }
 0x6fe   : > { %13805 = vmatprep.subr.bf16.mxu1 %v14144_v37  ;;  %v14190_v35 = vld [vmem:[%s15037_s1 + $0x198] sm:$0xff]   ;;  %v14191_v37 = vld [vmem:[%s15037_s1 + $0x160] sm:$0xff]  }
 0x6ff   : > { %11128 = vmatmul.mubr.bf16.vlgmr.msra.gmra.mrb[20].mxu0 %v16455_v40 }
 0x700   : > { %11292 = vmatmul.mubr.bf16.vlgmr.msra.gmra.mrb[20].mxu1 %v16455_v40  ;;  %13784 = vmatpush3.bf16.msra.mxu0 %v14145_v39  ;;  %v14154_v40 = vld [vmem:[%s15037_s1 + $0x90] sm:$0xff]   ;;  %v14194_v39 = vld [vmem:[%s15037_s1 + $0x1a0] sm:$0xff]  }
 0x701   : > { %11867 = vmatprep.mubr.bf16.mxu0 %v11309_v54  ;;  %13806 = vmatpush3.bf16.msra.mxu1 %v14146_v45  ;;  %v14195_v45 = vld [vmem:[%s15037_s1 + $0x168] sm:$0xff]  }
 0x702   : > { %11907 = vmatprep.mubr.bf16.mxu1 %v11311_v41  ;;  %13785 = vmatprep.subr.bf16.mxu0 %v14147_v2  ;;  %v14196_v2 = vld [vmem:[%s15037_s1 + $0x1e8] sm:$0xff]   ;;  %v14199_v41 = vld [vmem:[%s15037_s1 + $0x170] sm:$0xff]  }
 0x703   : > { %13807 = vmatprep.subr.bf16.mxu1 %v14148_v43  ;;  %v14197_v54 = vld [vmem:[%s15037_s1 + $0x128] sm:$0xff]  }
 0x704   : > { %13786 = vmatpush3.bf16.msra.mxu0 %v14149_v60  ;;  %v14198_v43 = vld [vmem:[%s15037_s1 + $0x1a8] sm:$0xff]   ;;  %v14200_v60 = vld [vmem:[%s15037_s1 + $0x1f0] sm:$0xff]  }
 0x705   : > { %13808 = vmatpush3.bf16.msra.mxu1 %v14150_v44  ;;  %13787 = vmatprep.subr.bf16.mxu0 %v14151_v23  ;;  %v14201_v44 = vld [vmem:[%s15037_s1 + $0x130] sm:$0xff]  }
 0x706   : > { %13809 = vmatprep.subr.bf16.mxu1 %v14152_v46  ;;  %v14202_v23 = vld [vmem:[%s15037_s1 + $0x1b0] sm:$0xff]   ;;  %v14203_v46 = vld [vmem:[%s15037_s1 + $0x178] sm:$0xff]  }
 0x708   : > { %13788 = vmatpush3.bf16.msra.mxu0 %v14153_v48  ;;  %v14204_v48 = vld [vmem:[%s15037_s1 + $0x1f8] sm:$0xff]  }
 0x709   : > { %13810 = vmatpush3.bf16.msra.mxu1 %v14154_v40  ;;  %13789 = vmatprep.subr.bf16.mxu0 %v14155_v49  ;;  %v14205_v40 = vld [vmem:[%s15037_s1 + $0x138] sm:$0xff]  }
 0x70a   : > { %13811 = vmatprep.subr.bf16.mxu1 %v14156_v50  ;;  %v14206_v49 = vld [vmem:[%s15037_s1 + $0x1b8] sm:$0xff]   ;;  %v8063_v50 = vrot.slane %v16727_v19, %v15750_v30 }
 0x70c   : > { %13790 = vmatpush3.bf16.msra.mxu0 %v14157_v14  ;;  %v8071_v14 = vrot.slane %v16727_v19, %v15835_v4 }
 0x70d   : > { %13812 = vmatpush3.bf16.msra.mxu1 %v14158_v52  ;;  %13791 = vmatprep.subr.bf16.mxu0 %v14159_v55  ;;  %v8067_v52 = vrot.slane %v16727_v19, %v15753_v31  ;;  %v8075_v55 = vrot.slane %v16727_v19, %v15756_v32 }
 0x70e   : > { %13813 = vmatprep.subr.bf16.mxu1 %v14160_v56 }
 0x710   : > { %13792 = vmatpush3.bf16.msra.mxu0 %v14161_v58 }
 0x711   : > { %13814 = vmatpush3.bf16.msra.mxu1 %v14162_v63  ;;  %13793 = vmatprep.subr.bf16.mxu0 %v14163_v61 }
 0x712   : > { %13815 = vmatprep.subr.bf16.mxu1 %v14164_v1 }
 0x714   : > { %13794 = vmatpush3.bf16.msra.mxu0 %v14165_v8 }
 0x715   : > { %13816 = vmatpush3.bf16.msra.mxu1 %v14166_v51  ;;  %13795 = vmatprep.subr.bf16.mxu0 %v14167_v11 }
 0x716   : > { %13817 = vmatprep.subr.bf16.mxu1 %v14168_v47 }
 0x718   : > { %13796 = vmatpush3.bf16.msra.mxu0 %v14169_v13 }
 0x719   : > { %13818 = vmatpush3.bf16.msra.mxu1 %v14170_v57  ;;  %13797 = vmatprep.subr.bf16.mxu0 %v14171_v12 }
 0x71a   : > { %13819 = vmatprep.subr.bf16.mxu1 %v14172_v18 }
 0x71c   : > { %13798 = vmatpush3.bf16.msra.mxu0 %v14173_v38  ;;  %v13708_v38 = vld [vmem:[%s571_s19] ss:$0 sm:$0xff] }
 0x71d   : > { %13820 = vmatpush3.bf16.msra.mxu1 %v14174_v21  ;;  %13827 = vmatprep.subr.bf16.mxu0 %v14175_v59 }
 0x71e   : > { %13849 = vmatprep.subr.bf16.mxu1 %v14176_v5 }
 0x71f   : > { %11868 = vmatmul.mubr.bf16.vlgmr.msra.gmra.mrb[24].mxu0 %v11308_v62 }
 0x720   : > { %11908 = vmatmul.mubr.bf16.vlgmr.msra.gmra.mrb[24].mxu1 %v11310_v42  ;;  %13828 = vmatpush3.bf16.msra.mxu0 %v14177_v22 }
 0x721   : > { %13850 = vmatpush3.bf16.msra.mxu1 %v14178_v53  ;;  %13829 = vmatprep.subr.bf16.mxu0 %v14179_v33 }
 0x722   : > { %13851 = vmatprep.subr.bf16.mxu1 %v14180_v6 }
 0x724   : > { %13830 = vmatpush3.bf16.msra.mxu0 %v14181_v9 }
 0x725   : > { %13852 = vmatpush3.bf16.msra.mxu1 %v14182_v26  ;;  %13831 = vmatprep.subr.bf16.mxu0 %v14183_v27 }
 0x726   : > { %13853 = vmatprep.subr.bf16.mxu1 %v14184_v3 }
 0x728   : > { %13832 = vmatpush3.bf16.msra.mxu0 %v14185_v36 }
 0x729   : > { %13854 = vmatpush3.bf16.msra.mxu1 %v14186_v0  ;;  %13833 = vmatprep.subr.bf16.mxu0 %v14187_v28 }
 0x72a   : > { %13855 = vmatprep.subr.bf16.mxu1 %v14188_v29 }
 0x72c   : > { %13834 = vmatpush3.bf16.msra.mxu0 %v14189_v17 }
 0x72d   : > { %13856 = vmatpush3.bf16.msra.mxu1 %v14190_v35  ;;  %13835 = vmatprep.subr.bf16.mxu0 %v14191_v37 }
 0x72e   : > { %13857 = vmatprep.subr.bf16.mxu1 %v14192_v25 }
 0x730   : > { %13836 = vmatpush3.bf16.msra.mxu0 %v14193_v7 }
 0x731   : > { %13858 = vmatpush3.bf16.msra.mxu1 %v14194_v39  ;;  %13837 = vmatprep.subr.bf16.mxu0 %v14195_v45 }
 0x732   : > { %13859 = vmatprep.subr.bf16.mxu1 %v14196_v2 }
 0x734   : > { %13838 = vmatpush3.bf16.msra.mxu0 %v14197_v54 }
 0x735   : > { %13860 = vmatpush3.bf16.msra.mxu1 %v14198_v43  ;;  %13839 = vmatprep.subr.bf16.mxu0 %v14199_v41 }
 0x736   : > { %13861 = vmatprep.subr.bf16.mxu1 %v14200_v60 }
 0x738   : > { %13840 = vmatpush3.bf16.msra.mxu0 %v14201_v44 }
 0x739   : > { %13862 = vmatpush3.bf16.msra.mxu1 %v14202_v23  ;;  %13841 = vmatprep.subr.bf16.mxu0 %v14203_v46 }
 0x73a   : > { %13863 = vmatprep.subr.bf16.mxu1 %v14204_v48 }
 0x73c   : > { %13842 = vmatpush3.bf16.msra.mxu0 %v14205_v40 }
 0x73d   : > { %13864 = vmatpush3.bf16.msra.mxu1 %v14206_v49 }
 0x7d2   : > { %v11129_v56 = vpop.f32.mrb[20].mxu0 }
 0x7d3   : > { %v13891_v58 = vadd.f32 %v11129_v56, %v8063_v50  ;;  %v11293_v63 = vpop.f32.mrb[20].mxu1  ;;  %v11131_v61 = vpop.f32.mrb[21].mxu0 }
 0x7d4   : > { %v13893_v1 = vadd.f32 %v11293_v63, %v8071_v14  ;;  %v13892_v8 = vadd.f32 %v11131_v61, %v8067_v52  ;;  %v11295_v10 = vpop.f32.mrb[21].mxu1  ;;  %v11133_v51 = vpop.f32.mrb[22].mxu0 }
 0x7d5   : > { %v11304_v11 = vmax.f32 %v13891_v58, 0.0  ;;  %v13894_v15 = vadd.f32 %v11295_v10, %v8075_v55  ;;  %v11297_v30 = vpop.f32.mrb[22].mxu1  ;;  %v11134_v47 = vpop.f32.mrb[23].mxu0 }
 0x7d6   : > { %v11306_v4 = vmax.f32 %v13893_v1, 0.0  ;;  %v11305_v13 = vmax.f32 %v13892_v8, 0.0  ;;  %v11298_v34 = vpop.f32.mrb[23].mxu1 }
 0x7d7   : > { %v11307_v31 = vmax.f32 %v13894_v15, 0.0  ;;  %v11312_v12 = vpack.c.bf16 %v11304_v11, %v11304_v11 }
 0x7d8   : > { %v11313_v57 = vpack.c.bf16 %v11305_v13, %v11305_v13  ;;  %v11314_v19 = vpack.c.bf16 %v11306_v4, %v11306_v4 }
 0x7d9   : > { %v11315_v32 = vpack.c.bf16 %v11307_v31, %v11307_v31 }
 0x7da   : > { %11947 = vmatprep.mubr.bf16.mxu0 %v11313_v57 }
 0x7db   : > { %11987 = vmatprep.mubr.bf16.mxu1 %v11315_v32  ;;  %11948 = vmatmul.mubr.bf16.vlgmr.msra.gmra.mrb[28].mxu0 %v11312_v12 }
 0x7dc   : > { %11988 = vmatmul.mubr.bf16.vlgmr.msra.gmra.mrb[28].mxu1 %v11314_v19 }
 0x7f2   : > { %v13799_v16 = vpop.f32.mrb[24].mxu0 }
 0x7f3   : > { %v13821_v18 = vpop.f32.mrb[24].mxu1  ;;  %v13800_v20 = vpop.f32.mrb[25].mxu0 }
 0x7f4   : > { %v13801_v21 = vadd.f32 %v13800_v20, %v13799_v16  ;;  %v13822_v59 = vpop.f32.mrb[25].mxu1  ;;  %v13802_v24 = vpop.f32.mrb[26].mxu0 }
 0x7f5   : > { %v13823_v5 = vadd.f32 %v13822_v59, %v13821_v18  ;;  %v13824_v22 = vpop.f32.mrb[26].mxu1  ;;  %v13803_v62 = vpop.f32.mrb[27].mxu0 }
 0x7f6   : > { %v11870_v53 = vadd.f32 %v13801_v21, %v13708_v38  ;;  %v13825_v33 = vpop.f32.mrb[27].mxu1 }
 0x7f8   : > { %v11910_v42 = vadd.f32 %v13823_v5, %v11870_v53 }
 0x8ae   : > { %v13843_v6 = vpop.f32.mrb[28].mxu0 }
 0x8af   : > { %v13865_v9 = vpop.f32.mrb[28].mxu1  ;;  %v13844_v26 = vpop.f32.mrb[29].mxu0 }
 0x8b0   : > { %v13845_v27 = vadd.f32 %v13844_v26, %v13843_v6  ;;  %v13866_v3 = vpop.f32.mrb[29].mxu1  ;;  %v13846_v36 = vpop.f32.mrb[30].mxu0 }
 0x8b1   : > { %v13867_v0 = vadd.f32 %v13866_v3, %v13865_v9  ;;  %v13868_v28 = vpop.f32.mrb[30].mxu1  ;;  %v13847_v29 = vpop.f32.mrb[31].mxu0 }
 0x8b2   : > { %v11950_v17 = vadd.f32 %v13845_v27, %v11910_v42  ;;  %v13869_v35 = vpop.f32.mrb[31].mxu1 }
 0x8b4   : > { %v11990_v37 = vadd.f32 %v13867_v0, %v11950_v17 }
 0x8b6   : > { %11995 = vst [vmem:[%s644_s16] sm:$0xff] %v11990_v37 }
 0x8b7   : > { %14493 = shalt.err (!%p14490_p3)
}
 0x8b8   : > { %s14494_s11 = scalar_lea.hbm %s16825_s26, 128  ;;  %s14498_s15 = scalar_lea.hbm %s16935_s24, 384 }
 0x8b9   : > { %p14495_p13 = scmp.ne.s32.totalorder %s16825_s26, %s14494_s11  ;;  %p14499_p8 = scmp.lt.u32.totalorder %s16825_s26, %s16935_s24 }
 0x8ba   : > { %p14500_p11 = scmp.lt.u32.totalorder %s14498_s15, %s14494_s11  ;;  %p14502_p9 = scmp.lt.u32.totalorder %s14494_s11, %s16825_s26 }
 0x8bb   : > { %p14496_p6 = pnand %p14495_p13, %p16936_p0 }
 0x8bc   : > { %p14501_p1 = por %p14500_p11, %p14499_p8 }
 0x8bd   : > { %p14497_p7 = pneg %p14496_p6 }
 0x8be   : > { %p14503_p12 = por %p14502_p9, %p14501_p1 }
 0x8c0   : > { %p14504_p2 = pnand %p14503_p12, %p14497_p7 }
 0x8c2   : > { %14507 = shalt.err (!%p14504_p2)
}
 0x8c3   : > { %14063 = dma.vmem_to_hbm [thread:$0]  (%p16936_p0), %s16827_s27, 128, %s16825_s26, %s11997_s5  }
 0x8c4 PF: > { %s16937_s20 = sld [smem:[#allocation24_spill]]  ;;  %s16938_s22 = sld [smem:[#allocation29_spill]] }
 0x8c5   : > { %p14098_p10 = scmp.ge.s32.totalorder %s14562_s12, 2 }
 0x8ca   : > { %s12022_s25 = sand.u32 1, %s16937_s20   ;;  %p16939_p4 = scmp.ne.s32.totalorder %s16938_s22, 0 }
 0x8cb   : > { %s12023_s1 = scalar_lea.sflag [#allocation4], %s12022_s25 }
 0x8cc   : > { %p14094_p5 = pnand %p14098_p10, %p16939_p4 }
 0x8ce   : > { %14545 = dma.done.wait (!%p14094_p5), %s12023_s1, 128  }
 0x8cf   : > { %14547 = vsyncadd (!%p14094_p5), %s12023_s1, 4294967168  ;;  %s16940_s12 = sld [smem:[#allocation26_spill]]  ;;  %s16941_s19 = sld [smem:[#allocation25_spill]] }
 0x8d0   : > { %s16942_s11 = sld [smem:[#allocation27_spill]]  ;;  %s16943_s30 = smov %s14554_s10 }
 0x8d5   : > { %p34_p3 = scmp.ge.s32.totalorder %s16940_s12, 5   ;;  %s16944_s10 = smov %s16941_s19 }
 0x8d7   :  { %36 = sbr.rel (!%p34_p3) target bundleno = 19 (0x13), region = 197 }
 0x8de   :  { %12028 = vsyncpa [#allocation3], 1 }
 0x8df   :  { %12030 = vsyncpa [#allocation3 + $0x1], 1 }
 0x8e0   :  { %12031 = vsyncpa [#allocation6], 1 }
 0x8e1   :  { %12033 = vsyncpa [#allocation6 + $0x1], 1 }
 0x8e2   :  { %12034 = vsyncpa [#allocation9], 1 }
 0x8e3   :  { %12036 = vsyncpa [#allocation9 + $0x1], 1 }
 0x8e4   :  { %12037 = vsyncpa [#allocation12], 1 }
 0x8e5   :  { %12039 = vsyncpa [#allocation12 + $0x1], 1 }
 0x8e6   :  { %12040 = vsyncpa [#allocation15], 1 }
 0x8e7   :  { %12042 = vsyncpa [#allocation15 + $0x1], 1 }
 0x8e8   :  { %12043 = vsyncpa [#allocation4], 1 }
 0x8e9   :  { %12045 = vsyncpa [#allocation4 + $0x1], 1 }

</bundles_post_ra>
